<compile_context>
chip_gen: v7x
topology: tpu7x:2x2x1
jax: 0.10.0
libtpu: 0.0.40
codegen_flags: <defaults>
</compile_context>

<pallas_src>
import functools
import math
from collections import namedtuple

import numpy as np
import jax
import jax.numpy as jnp
from jax.experimental import pallas as pl
from jax.experimental.pallas import tpu as pltpu

NestedTensor = namedtuple("NestedTensor", ["tensors", "mask"])


def _pos_embed_kernel(lh_ref, uw_ref, inv_ref, ph_ref, nm_ref, pos_ref, *,
                      normalize, scale):
    """One grid step = (batch element b, channel half ci); ci==0 -> y, ci==1 -> x.

    Writes the output directly in NCHW block layout (1, F, H, W), so no
    post-kernel transpose / extra HBM round-trip is needed.
    """
    f32 = jnp.float32
    ci = pl.program_id(1)                   # 0 -> y half, 1 -> x half
    nm = nm_ref[0]                          # (H, W) bf16, 1.0 where NOT masked

    # Cumulative sums on the MXU (exact: 0/1 bf16 operands, f32 accumulation).
    #   cumsum along H:  y_embed = L_h @ nm   (L_h lower-triangular ones)
    #   cumsum along W:  x_embed = nm  @ U_w  (U_w upper-triangular ones)
    y_embed = jnp.dot(lh_ref[...], nm, preferred_element_type=f32)    # (H, W)
    x_embed = jnp.dot(nm, uw_ref[...], preferred_element_type=f32)    # (H, W)

    if normalize:
        eps = 1e-6
        # Divide only the (1, W) / (H, 1) normalizers; broadcast-multiply the rest.
        y_embed = y_embed * (scale / (y_embed[-1:, :] + eps))
        x_embed = x_embed * (scale / (x_embed[:, -1:] + eps))

    # This step emits either the y half or the x half; a single scalar-predicated
    # (H, W) select replaces the old full-size (H, W, C) iota/where pass.
    base = jnp.where(ci == 0, y_embed, x_embed)                       # (H, W)

    inv = inv_ref[...]      # (F, 1, W): 1 / temperature**(2*(d//2)/F), W-replicated
    ph = ph_ref[...]        # (F, 1, W): 0 for even d, pi/2 for odd d
    # out[d] = sin(arg) for even d, cos(arg) = sin(arg + pi/2) for odd d.
    # (jnp.sin lowers to a VPU polynomial; argument kept in f32, cast only at store.)
    pos_ref[0] = jnp.sin(base[None, :, :] * inv + ph).astype(pos_ref.dtype)


def position_embedding_sine(tensor_list, num_pos_feats=64, temperature=10000,
                            normalize=False, scale=None, out_dtype=jnp.float32):
    if scale is not None and normalize is False:
        raise ValueError("normalize should be True if scale is passed")
    if scale is None:
        scale = 2 * math.pi
    if num_pos_feats % 2 != 0:
        # Same implicit constraint as the PyTorch implementation (dim_t pairing).
        raise ValueError("num_pos_feats must be even")

    mask = tensor_list.mask                        # (B, H, W) bool, True = padded
    B, H, W = mask.shape
    F = num_pos_feats
    C = 2 * F

    # 0/1 "not masked" map; bf16 is exact for 0/1 values and halves the input DMA.
    not_mask = jnp.logical_not(mask).astype(jnp.bfloat16)

    # Grid-invariant constants (constant index_maps -> VMEM resident across steps).
    rh = np.arange(H)
    lower_h = jnp.asarray(rh[:, None] >= rh[None, :], dtype=jnp.bfloat16)    # (H, H)
    rw = np.arange(W)
    upper_w = jnp.asarray(rw[:, None] <= rw[None, :], dtype=jnp.bfloat16)    # (W, W)

    d = np.arange(F, dtype=np.float64)
    inv_f = np.asarray(temperature, np.float64) ** (-(2.0 * np.floor(d / 2.0) / F))
    phase_f = (d % 2.0) * (np.pi / 2.0)
    # Pre-replicated along W so the in-kernel broadcast to (F, H, W) is a cheap
    # sublane broadcast (no per-channel scalar extraction).
    inv_fw = jnp.asarray(np.broadcast_to(inv_f[:, None, None], (F, 1, W)),
                         dtype=jnp.float32)                                  # (F,1,W)
    phase_fw = jnp.asarray(np.broadcast_to(phase_f[:, None, None], (F, 1, W)),
                           dtype=jnp.float32)                                # (F,1,W)

    kernel = functools.partial(
        _pos_embed_kernel, normalize=normalize, scale=float(scale))

    # Scoped-VMEM budget: ~2x double-buffered output block + elementwise temporaries
    # + (small) inputs.  Capped at 64 MiB so it is valid on v7x as well.
    out_block_bytes = F * H * W * jnp.dtype(out_dtype).itemsize
    vmem_limit = int(min(64 * 2**20, max(32 * 2**20, 8 * out_block_bytes)))

    pos = pl.pallas_call(
        kernel,
        out_shape=jax.ShapeDtypeStruct((B, C, H, W), out_dtype),
        grid=(B, 2),                                       # (batch, channel half)
        in_specs=[
            pl.BlockSpec((H, H), lambda b, ci: (0, 0)),         # lower-tri ones
            pl.BlockSpec((W, W), lambda b, ci: (0, 0)),         # upper-tri ones
            pl.BlockSpec((F, 1, W), lambda b, ci: (0, 0, 0)),   # 1 / dim_t
            pl.BlockSpec((F, 1, W), lambda b, ci: (0, 0, 0)),   # phase
            pl.BlockSpec((1, H, W), lambda b, ci: (b, 0, 0)),   # not_mask
        ],
        out_specs=pl.BlockSpec((1, F, H, W), lambda b, ci: (b, ci, 0, 0)),
        compiler_params=pltpu.CompilerParams(
            dimension_semantics=("parallel", "parallel"),
            vmem_limit_bytes=vmem_limit,
        ),
    )(lower_h, upper_w, inv_fw, phase_fw, not_mask)

    # Already NCHW (B, 2*num_pos_feats, H, W) -- matches the PyTorch module exactly.
    return pos


def _reference(tensor_list, num_pos_feats, temperature, normalize, scale):
    """Pure-JAX port of the PyTorch forward, for correctness checking."""
    if scale is None:
        scale = 2 * math.pi
    mask = tensor_list.mask
    not_mask = (~mask).astype(jnp.float32)
    y_embed = jnp.cumsum(not_mask, axis=1)
    x_embed = jnp.cumsum(not_mask, axis=2)
    if normalize:
        eps = 1e-6
        y_embed = y_embed / (y_embed[:, -1:, :] + eps) * scale
        x_embed = x_embed / (x_embed[:, :, -1:] + eps) * scale
    dim_t = jnp.arange(num_pos_feats, dtype=jnp.float32)
    dim_t = temperature ** (2 * jnp.floor(dim_t / 2) / num_pos_feats)
    pos_x = x_embed[..., None] / dim_t
    pos_y = y_embed[..., None] / dim_t
    B, H, W = mask.shape
    pos_x = jnp.stack([jnp.sin(pos_x[..., 0::2]), jnp.cos(pos_x[..., 1::2])],
                      axis=4).reshape(B, H, W, -1)
    pos_y = jnp.stack([jnp.sin(pos_y[..., 0::2]), jnp.cos(pos_y[..., 1::2])],
                      axis=4).reshape(B, H, W, -1)
    pos = jnp.concatenate([pos_y, pos_x], axis=3).transpose(0, 3, 1, 2)
    return pos


if __name__ == "__main__":
    key = jax.random.PRNGKey(0)
    B, Cin, H, W = 2, 4, 16, 16
    num_pos_feats = 32

    # x is only consulted for device/dtype in the original module; values unused.
    x = jax.random.normal(key, (B, Cin, H, W), dtype=jnp.float32)

    # DETR-style padding mask: True = padded.
    h_valid = jnp.array([16, 12])
    w_valid = jnp.array([16, 10])
    rows = jnp.arange(H)[None, :, None]
    cols = jnp.arange(W)[None, None, :]
    mask = ~((rows < h_valid[:, None, None]) & (cols < w_valid[:, None, None]))

    tl = NestedTensor(tensors=x, mask=mask)

    ok = True
    for normalize in (False, True):
        out = position_embedding_sine(tl, num_pos_feats=num_pos_feats,
                                      temperature=10000, normalize=normalize)
        out = jax.block_until_ready(out)
        ref = _reference(tl, num_pos_feats, 10000, normalize, None)
        assert out.shape == (B, 2 * num_pos_feats, H, W), out.shape
        if not jnp.allclose(out, ref, atol=1e-4, rtol=1e-4):
            ok = False
            print("MISMATCH (normalize=%s): max err %e" %
                  (normalize, float(jnp.max(jnp.abs(out - ref)))))

    if ok:
        print("KERNEL_OK")
</pallas_src>

<mosaic_0001>
module attributes {stable_mosaic.version = 11 : i64} {
  func.func @_pos_embed_kernel(%arg0: i32, %arg1: i32, %arg2: memref<16x16xbf16, #tpu.memory_space<vmem>>, %arg3: memref<16x16xbf16, #tpu.memory_space<vmem>>, %arg4: memref<32x1x16xf32, #tpu.memory_space<vmem>>, %arg5: memref<32x1x16xf32, #tpu.memory_space<vmem>>, %arg6: memref<1x16x16xbf16, #tpu.memory_space<vmem>>, %arg7: memref<1x32x16x16xf32, #tpu.memory_space<vmem>>) attributes {dimension_semantics = [#tpu.dimension_semantics<parallel>, #tpu.dimension_semantics<parallel>], iteration_bounds = array<i64: 2, 2>, scalar_prefetch = 0 : i64, scratch_operands = 0 : i64, tpu.core_type = #tpu.core_type<tc>, window_params = [{pipeline_mode = #tpu.pipeline_mode<synchronous>, transform_indices = @transform_0, window_bounds = array<i64: 16, 16>}, {pipeline_mode = #tpu.pipeline_mode<synchronous>, transform_indices = @transform_1, window_bounds = array<i64: 16, 16>}, {pipeline_mode = #tpu.pipeline_mode<synchronous>, transform_indices = @transform_2, window_bounds = array<i64: 32, 1, 16>}, {pipeline_mode = #tpu.pipeline_mode<synchronous>, transform_indices = @transform_3, window_bounds = array<i64: 32, 1, 16>}, {transform_indices = @transform_4, window_bounds = array<i64: 1, 16, 16>}, {transform_indices = @transform_5, window_bounds = array<i64: 1, 32, 16, 16>}]} {
    %c0 = arith.constant 0 : index
    %c0_0 = arith.constant 0 : index
    %c0_1 = arith.constant 0 : index
    %0 = vector.load %arg6[%c0, %c0_0, %c0_1] : memref<1x16x16xbf16, #tpu.memory_space<vmem>>, vector<1x16x16xbf16>
    %1 = vector.shape_cast %0 : vector<1x16x16xbf16> to vector<16x16xbf16>
    %c0_2 = arith.constant 0 : index
    %c0_3 = arith.constant 0 : index
    %2 = vector.load %arg2[%c0_2, %c0_3] : memref<16x16xbf16, #tpu.memory_space<vmem>>, vector<16x16xbf16>
    %cst = arith.constant dense<0.000000e+00> : vector<16x16xf32>
    %3 = tpu.matmul %2, %1, %cst {dimension_numbers = #tpu.dot_dimension_numbers<[1], [0], [0], [1], [0, 0, 1, 1], [], []>} : vector<16x16xbf16>, vector<16x16xbf16>, vector<16x16xf32> -> vector<16x16xf32>
    %c0_4 = arith.constant 0 : index
    %c0_5 = arith.constant 0 : index
    %4 = vector.load %arg3[%c0_4, %c0_5] : memref<16x16xbf16, #tpu.memory_space<vmem>>, vector<16x16xbf16>
    %cst_6 = arith.constant dense<0.000000e+00> : vector<16x16xf32>
    %5 = tpu.matmul %1, %4, %cst_6 {dimension_numbers = #tpu.dot_dimension_numbers<[1], [0], [0], [1], [0, 0, 1, 1], [], []>} : vector<16x16xbf16>, vector<16x16xbf16>, vector<16x16xf32> -> vector<16x16xf32>
    %c0_i32 = arith.constant 0 : i32
    %6 = arith.cmpi eq, %arg1, %c0_i32 : i32
    %7 = arith.select %6, %3, %5 : vector<16x16xf32>
    %c0_7 = arith.constant 0 : index
    %c0_8 = arith.constant 0 : index
    %c0_9 = arith.constant 0 : index
    %8 = vector.load %arg4[%c0_7, %c0_8, %c0_9] : memref<32x1x16xf32, #tpu.memory_space<vmem>>, vector<32x1x16xf32>
    %c0_10 = arith.constant 0 : index
    %c0_11 = arith.constant 0 : index
    %c0_12 = arith.constant 0 : index
    %9 = vector.load %arg5[%c0_10, %c0_11, %c0_12] : memref<32x1x16xf32, #tpu.memory_space<vmem>>, vector<32x1x16xf32>
    %10 = vector.shape_cast %7 : vector<16x16xf32> to vector<1x16x16xf32>
    %11 = vector.broadcast %10 : vector<1x16x16xf32> to vector<32x16x16xf32>
    %12 = vector.broadcast %8 : vector<32x1x16xf32> to vector<32x16x16xf32>
    %13 = arith.mulf %11, %12 : vector<32x16x16xf32>
    %14 = vector.broadcast %9 : vector<32x1x16xf32> to vector<32x16x16xf32>
    %15 = arith.addf %13, %14 : vector<32x16x16xf32>
    %16 = math.sin %15 : vector<32x16x16xf32>
    %c0_13 = arith.constant 0 : index
    %c0_14 = arith.constant 0 : index
    %c0_15 = arith.constant 0 : index
    %c0_16 = arith.constant 0 : index
    %17 = vector.load %arg7[%c0_13, %c0_14, %c0_15, %c0_16] : memref<1x32x16x16xf32, #tpu.memory_space<vmem>>, vector<1x32x16x16xf32>
    %18 = vector.shape_cast %17 : vector<1x32x16x16xf32> to vector<32x16x16xf32>
    %19 = vector.shape_cast %16 : vector<32x16x16xf32> to vector<1x32x16x16xf32>
    tpu.vector_store %arg7[%c0_13, %c0_14, %c0_15, %c0_16], %19 {strides = array<i32>} : memref<1x32x16x16xf32, #tpu.memory_space<vmem>>, vector<1x32x16x16xf32>,
    return
  }
  func.func @transform_0(%arg0: i32, %arg1: i32) -> (i32, i32) {
    %c0_i32 = arith.constant 0 : i32
    %c0_i32_0 = arith.constant 0 : i32
    %c0_i32_1 = arith.constant 0 : i32
    return %c0_i32, %c0_i32_0 : i32, i32
  }
  func.func @transform_1(%arg0: i32, %arg1: i32) -> (i32, i32) {
    %c0_i32 = arith.constant 0 : i32
    %c0_i32_0 = arith.constant 0 : i32
    %c0_i32_1 = arith.constant 0 : i32
    return %c0_i32, %c0_i32_0 : i32, i32
  }
  func.func @transform_2(%arg0: i32, %arg1: i32) -> (i32, i32, i32) {
    %c0_i32 = arith.constant 0 : i32
    %c0_i32_0 = arith.constant 0 : i32
    %c0_i32_1 = arith.constant 0 : i32
    %c0_i32_2 = arith.constant 0 : i32
    return %c0_i32, %c0_i32_0, %c0_i32_1 : i32, i32, i32
  }
  func.func @transform_3(%arg0: i32, %arg1: i32) -> (i32, i32, i32) {
    %c0_i32 = arith.constant 0 : i32
    %c0_i32_0 = arith.constant 0 : i32
    %c0_i32_1 = arith.constant 0 : i32
    %c0_i32_2 = arith.constant 0 : i32
    return %c0_i32, %c0_i32_0, %c0_i32_1 : i32, i32, i32
  }
  func.func @transform_4(%arg0: i32, %arg1: i32) -> (i32, i32, i32) {
    %c0_i32 = arith.constant 0 : i32
    %c0_i32_0 = arith.constant 0 : i32
    %c0_i32_1 = arith.constant 0 : i32
    return %arg0, %c0_i32, %c0_i32_0 : i32, i32, i32
  }
  func.func @transform_5(%arg0: i32, %arg1: i32) -> (i32, i32, i32, i32) {
    %c0_i32 = arith.constant 0 : i32
    %c0_i32_0 = arith.constant 0 : i32
    %c0_i32_1 = arith.constant 0 : i32
    return %arg0, %arg1, %c0_i32, %c0_i32_0 : i32, i32, i32, i32
  }
}

</mosaic_0001>

<bundles_post_ra>
// kernel: tpu_custom_call.1
= control target key start
LH: loop header
LB: loop body
LE: loop exit
PB: predicated region body
PF: predicated region fallthrough
CT: control target
= control target key end

     0   :  { %s8751_s18 = smov 0   ;;  %s8753_s19 = smov 0   ;;  %s15035_s0 = inlined_call_operand.vmem [shape: bf16[16,16], index: 0, kind: input, shape index: {}]   ;;  %s15036_s1 = inlined_call_operand.vmem [shape: bf16[16,16], index: 1, kind: input, shape index: {}]   ;;  %s15037_s2 = inlined_call_operand.vmem [shape: f32[32,1,16], index: 2, kind: input, shape index: {}]   ;;  %s15038_s3 = inlined_call_operand.vmem [shape: f32[32,1,16], index: 3, kind: input, shape index: {}]   ;;  %s15039_s4 = inlined_call_operand.vmem [shape: bf16[2,16,16], index: 4, kind: input, shape index: {}]   ;;  %s15040_s5 = inlined_call_operand.vmem [shape: f32[2,64,16,16], index: 5, kind: output, shape index: {}]  }
   0x1   :  { %s8755_s20 = smov 0   ;;  %s8757_s21 = smov 0  }
   0x2   :  { %s8759_s22 = smov 0  }
   0x3 LB: > { %s24_s23 = sadd.s32 1, %s8703_s20  ;;  %s27_s24 = sadd.s32 1, %s8707_s21  ;;  %s8711_s22 = sphi %s8759_s22, %s15_s22   ;;  %s8707_s21 = sphi %s8757_s21, %s15169_s21   ;;  %s8703_s20 = sphi %s8755_s20, %s15168_s20   ;;  %s8699_s19 = sphi %s8753_s19, %s15167_s19   ;;  %s8695_s18 = sphi %s8751_s18, %s15166_s18  }
   0x4   : > { %p25_p0 = scmp.ge.s32.totalorder %s24_s23, 2  ;;  %p7759_p1 = scmp.ge.s32.totalorder %s8711_s22, 1 }
   0x5   : > { %p201_p2 = scmp.lt.s32.totalorder %s8711_s22, 5 }
   0x6   : > { %s15171_s23 = smov (%p25_p0, %s24_s23), 0  ;;  %s15173_s24 = smov (!%p25_p0, %s27_s24), %s8707_s21 }
   0x7   : > { %p202_p3 = pnand %p7759_p1, %p201_p2  ;;  %p29_p4 = scmp.ge.s32.totalorder %s15173_s24, 2 }
   0x8   : > { %v8414_v0 = vld [vmem:[%s15036_s1] sm:$0xff] (!%p202_p3)   ;;  %v8713_v1 = vmov (!%p202_p3), 0.0   ;;  %p234_p5 = scmp.lt.s32.totalorder (!%p202_p3), %s8699_s19, 1  ;;  %vm8714_vm0 = vmmov (!%p202_p3), 0   ;;  %vm266_vm1 = vcmask (!%p202_p3), 130048   ;;  %p363_p6 = scmp.eq.s32.totalorder (!%p202_p3), %s8695_s18, 0 }
   0x9   : > { %s15175_s24 = smov (%p29_p4, %s15173_s24), 0  ;;  %205 = sbr.rel (%p202_p3) target bundleno = 1875 (0x753), region = 40 }
   0xa   : > { %8104 = vmatprep.subr.bf16.mxu1 (!%p202_p3), %v8713_v1  ;;  %8098 = vmatprep.subr.bf16.mxu0 (!%p202_p3), %v8713_v1  ;;  %v8415_v3 = vld [vmem:[%s15035_s0] sm:$0xff] (!%p202_p3)   ;;  %v8715_v54 = vmov (!%p202_p3), 683565275   ;;  %v8716_v58 = vmov (!%p202_p3), 2475754826   ;;  %s7762_s28 = sshll.u32 (!%p202_p3), %s8695_s18, 5 }
   0xb   : > { %8105 = vmatpush3.bf16.msra.mxu1 (!%p202_p3), %v8414_v0  ;;  %8106 = vmatprep.mubr.msk.bf16.mxu1 (!%p202_p3), %vm8714_vm0, %v8713_v1  ;;  %v7771_v15 = vld [vmem:[%s15037_s2] ss:$0 sm:$0xff] (!%p202_p3)  ;;  %v7772_v17 = vld [vmem:[%s15037_s2 + $0x1] ss:$0 sm:$0xff] (!%p202_p3)  ;;  %v8717_v60 = vmov (!%p202_p3), 2131351028  }
   0xc   : > { %8100 = vmatprep.mubr.msk.bf16.mxu0 (!%p202_p3), %vm8714_vm0, %v8713_v1  ;;  %v7803_v18 = vld [vmem:[%s15038_s3] ss:$0 sm:$0xff] (!%p202_p3)  ;;  %v7804_v22 = vld [vmem:[%s15038_s3 + $0x1] ss:$0 sm:$0xff] (!%p202_p3)  ;;  %v8718_v62 = vmov (!%p202_p3), 2102212464  }
   0xd   : > { %v8719_v0 = vmov (!%p202_p3), 920167782   ;;  %p9024_p7 = scmp.lt.s32.totalorder (!%p202_p3), %s7762_s28, 63 }
  0x10   : > { %s15177_s19 = smov (!%p234_p5, %s8699_s19), 1  ;;  %s15179_s28 = smov (!%p9024_p7, %s7762_s28), 63 }
  0x11   : > { %s8093_s27 = sshll.u32 %s15177_s19, 3  ;;  %s7763_s18 = sshll.u32 %s15179_s28, 1 }
  0x12   : > { %s238_s30 = scalar_lea.vmem %s15039_s4, %s8093_s27  ;;  %s7764_s9 = sshll.u32 %s15177_s19, 7 }
  0x13   : > { %v8416_v2 = vld [vmem:[%s238_s30] sm:$0xff]   ;;  %s364_s8 = scalar_select %p363_p6, 1, 0 }
  0x14   : > { %8099 = vmatpush3.bf16.msra.mxu0 %v8416_v2  ;;  %8107 = vmatmul.mubr.msk.bf16.vlgmr.msra.gmra.mrb[0].mxu1 %vm266_vm1, %v8416_v2  ;;  %s9094_s19 = sadd.s32 %s7764_s9, %s7763_s18 }
  0x15   : > { %v365_v4 = vstv %s364_s8  ;;  %s7765_s10 = sshll.u32 %s9094_s19, 3 }
  0x16   : > { %vm366_vm2 = vcmp.eq.s32.totalorder %v365_v4, 1  ;;  %s9134_s13 = scalar_lea.vmem %s15040_s5, %s7765_s10 }
  0x17   : > { %8101 = vmatmul.mubr.msk.bf16.vlgmr.msra.gmra.mrb[0].mxu0 %vm266_vm1, %v8415_v3 }
  0xe7   : > { %v356_v5 = vpop.f32.mrb[0].mxu1 }
  0xe8   : > { %v8108_v6 = vpop.f32.mrb[1].mxu1 }
  0xe9   : > { %v359_v7 = vpop.f32.mrb[2].mxu1 }
  0xea   : > { %v304_v8 = vpop.f32.mrb[0].mxu0  ;;  %v8109_v9 = vpop.f32.mrb[3].mxu1 }
  0xeb   : > { %v8102_v10 = vpop.f32.mrb[1].mxu0  ;;  %v8798_v11 = vsel %vm366_vm2, %v304_v8, %v356_v5 }
  0xec   : > { %v307_v12 = vpop.f32.mrb[2].mxu0  ;;  %v625_v16 = vmul.f32 %v7771_v15, %v8798_v11  ;;  %v627_v20 = vmul.f32 %v7772_v17, %v8798_v11 }
  0xed   : > { %v8103_v13 = vpop.f32.mrb[3].mxu0  ;;  %v8800_v14 = vsel %vm366_vm2, %v307_v12, %v359_v7  ;;  %v8720_v7 = vmov 1326507024  }
  0xee   : > { %v626_v19 = vmul.f32 %v7771_v15, %v8800_v14  ;;  %v8814_v21 = vadd.f32 %v7803_v18, %v625_v16  ;;  %v8821_v24 = vadd.f32 %v7804_v22, %v627_v20  ;;  %v628_v36 = vmul.f32 %v7772_v17, %v8800_v14 }
  0xf0   : > { %v8819_v23 = vadd.f32 %v7803_v18, %v626_v19  ;;  %v945_v25 = vand.u32 2147483647, %v8814_v21  ;;  %v948_v26 = vand.u32 2139095040, %v8814_v21  ;;  %v1156_v34 = vand.u32 2139095040, %v8821_v24 }
  0xf1   : > { %v1153_v42 = vand.u32 2147483647, %v8821_v24  ;;  %v8834_v45 = vadd.f32 %v7804_v22, %v628_v36  ;;  %vm947_vm0 = vcmp.lt.s32.totalorder %v8814_v21, 0 }
  0xf2   : > { %v1049_v27 = vand.u32 2147483647, %v8819_v23  ;;  %v1052_v28 = vand.u32 2139095040, %v8819_v23  ;;  %v949_v29 = vshrl.u32 %v948_v26, 23  ;;  %v952_v30 = vand.u32 8388607, %v945_v25 }
  0xf3   : > { %v1157_v38 = vshrl.u32 %v1156_v34, 23  ;;  %v8842_v51 = vand.u32 8388607, %v1153_v42  ;;  %vm8958_vm2 = vcmp.le.f32.partialorder %v945_v25, 0.7853982 }
  0xf4   : > { %v1053_v31 = vshrl.u32 %v1052_v28, 23  ;;  %v1056_v32 = vand.u32 8388607, %v1049_v27  ;;  %v7835_v33 = vadd.s32 4294967169, %v949_v29  ;;  %v953_v39 = vor.u32 8388608, %v952_v30 }
  0xf5   : > { %v7843_v43 = vadd.s32 4294967169, %v1157_v38 }
  0xf6   : > { %v7839_v35 = vadd.s32 4294967169, %v1053_v31  ;;  %v955_v37 = vadd.s32 1, %v7835_v33  ;;  %v1057_v40 = vor.u32 8388608, %v1056_v32  ;;  %v8836_v49 = vshll.u32 %v953_v39, 8 }
  0xf7   : > { %v8844_v52 = vadd.s32 1, %v7843_v43 }
  0xf8   : > { %v1059_v41 = vadd.s32 1, %v7839_v35  ;;  %vm956_vm3 = vcmp.gt.s32.totalorder %v955_v37, 0  ;;  %v8838_v50 = vshll.u32 %v1057_v40, 8 }
  0xf9   : > { %v957_v44 = vsel %vm956_vm3, %v955_v37, 0  ;;  %vm1164_vm14 = vcmp.gt.s32.totalorder %v8844_v52, 0  ;;  %vm1051_vm3 = vcmp.lt.s32.totalorder %v8819_v23, 0 }
  0xfa   : > { %vm1060_vm4 = vcmp.gt.s32.totalorder %v1059_v41, 0  ;;  %v958_v46 = vshrl.u32 %v957_v44, 5  ;;  %v959_v47 = vand.u32 31, %v957_v44 }
  0xfb   : > { %v1061_v48 = vsel %vm1060_vm4, %v1059_v41, 0 }
  0xfc   : > { %v960_v53 = vsub.s32 32, %v959_v47  ;;  %v962_v55 = vshll.u32 %v8715_v54, %v959_v47  ;;  %v8847_v56 = vshrl.u32 %v1061_v48, 5  ;;  %v1063_v57 = vand.u32 31, %v1061_v48 }
  0xfd   : > { %v965_v59 = vshll.u32 %v8716_v58, %v959_v47  ;;  %v968_v61 = vshll.u32 %v8717_v60, %v959_v47  ;;  %v971_v63 = vshll.u32 %v8718_v62, %v959_v47  ;;  %v974_v1 = vshll.u32 %v8719_v0, %v959_v47 }
  0xfe   : > { %v963_v2 = vshrl.u32 %v8716_v58, %v960_v53  ;;  %v966_v3 = vshrl.u32 %v8717_v60, %v960_v53  ;;  %v969_v4 = vshrl.u32 %v8718_v62, %v960_v53  ;;  %vm977_vm5 = vcmp.lt.s32.totalorder %v958_v46, 1 }
  0xff   : > { %v961_v5 = vshrl.u32 %v8715_v54, %v960_v53  ;;  %v972_v6 = vshrl.u32 %v8719_v0, %v960_v53  ;;  %v975_v8 = vshrl.u32 %v8720_v7, %v960_v53  ;;  %vm978_vm6 = vcmp.lt.s32.totalorder %v958_v46, 2 }
 0x100   : > { %v964_v9 = vor.u32 %v963_v2, %v962_v55  ;;  %v967_v10 = vor.u32 %v966_v3, %v965_v59  ;;  %v970_v12 = vor.u32 %v969_v4, %v968_v61  ;;  %v1064_v13 = vsub.s32 32, %v1063_v57 }
 0x101   : > { %v973_v15 = vor.u32 %v972_v6, %v971_v63  ;;  %v976_v16 = vor.u32 %v975_v8, %v974_v1  ;;  %vm979_vm7 = vcmp.lt.s32.totalorder %v958_v46, 3  ;;  %vm980_vm8 = vcmp.lt.s32.totalorder %v958_v46, 4 }
 0x102   : > { %v981_v17 = vsel %vm977_vm5, %v961_v5, %v964_v9  ;;  %v982_v18 = vsel %vm980_vm8, %v970_v12, 2102212464  ;;  %v985_v19 = vsel %vm977_vm5, %v964_v9, %v967_v10  ;;  %v989_v20 = vsel %vm977_vm5, %v967_v10, %v970_v12 }
 0x103   : > { %v983_v22 = vsel %vm979_vm7, %v967_v10, %v982_v18  ;;  %v986_v26 = vsel %vm980_vm8, %v973_v15, 920167782  ;;  %v990_v28 = vsel %vm980_vm8, %v976_v16, 1326507024  ;;  %v1066_v29 = vshll.u32 %v8715_v54, %v1063_v57 }
 0x104   : > { %v987_v30 = vsel %vm979_vm7, %v970_v12, %v986_v26  ;;  %v991_v31 = vsel %vm979_vm7, %v973_v15, %v990_v28  ;;  %v1067_v32 = vshrl.u32 %v8716_v58, %v1064_v13  ;;  %v1069_v33 = vshll.u32 %v8716_v58, %v1063_v57 }
 0x105   : > { %v984_v34 = vsel %vm978_vm6, %v981_v17, %v983_v22  ;;  %v988_v35 = vsel %vm978_vm6, %v985_v19, %v987_v30  ;;  %v992_v36 = vsel %vm978_vm6, %v989_v20, %v991_v31  ;;  %v1070_v37 = vshrl.u32 %v8717_v60, %v1064_v13 }
 0x106   : > { %v8870_v38 = vmul.u32.u64.low %v8836_v49, %v992_v36  ;;  %v8871_v39 = vmul.u32.u64.high %v8836_v49, %v992_v36, %v8870_v38  ;;  %v8874_v40 = vmul.u32.u64.low %v8836_v49, %v988_v35  ;;  %v8875_v41 = vmul.u32.u64.high %v8836_v49, %v988_v35, %v8874_v40 }
 0x107   : > { %v1068_v43 = vor.u32 %v1067_v32, %v1066_v29  ;;  %v1071_v44 = vor.u32 %v1070_v37, %v1069_v33  ;;  %v1072_v47 = vshll.u32 %v8717_v60, %v1063_v57  ;;  %v1073_v48 = vshrl.u32 %v8718_v62, %v1064_v13  ;;  %v7773_v33 = vld [vmem:[%s15037_s2 + $0x2] ss:$0 sm:$0xff] }
 0x108   : > { %v1065_v46 = vshrl.u32 %v8715_v54, %v1064_v13  ;;  %v1075_v53 = vshll.u32 %v8718_v62, %v1063_v57  ;;  %v1076_v55 = vshrl.u32 %v8719_v0, %v1064_v13  ;;  %v1079_v59 = vshrl.u32 %v8720_v7, %v1064_v13 }
 0x109   : > { %v1000_v61 = vmul.u32 %v8836_v49, %v984_v34  ;;  %v1074_v63 = vor.u32 %v1073_v48, %v1072_v47  ;;  %v1078_v1 = vshll.u32 %v8719_v0, %v1063_v57  ;;  %vm1081_vm9 = vcmp.lt.s32.totalorder %v8847_v56, 1  ;;  %v8917_v34 = vld [vmem:[%s15037_s2 + $0x3] ss:$0 sm:$0xff] }
 0x10a   : > { %vm1002_vm10 = vc.u32 %v8871_v39, %v8874_v40  ;;  %v1003_v2 = vadd.s32 1, %v8875_v41  ;;  %v1077_v3 = vor.u32 %v1076_v55, %v1075_v53  ;;  %vm1082_vm11 = vcmp.lt.s32.totalorder %v8847_v56, 2 }
 0x10b   : > { %v1080_v4 = vor.u32 %v1079_v59, %v1078_v1  ;;  %vm1083_vm12 = vcmp.lt.s32.totalorder %v8847_v56, 3  ;;  %vm1084_vm13 = vcmp.lt.s32.totalorder %v8847_v56, 4  ;;  %v1089_v5 = vsel %vm1081_vm9, %v1068_v43, %v1071_v44 }
 0x10c   : > { %v1004_v49 = vsel %vm1002_vm10, %v1003_v2, %v8875_v41  ;;  %v1086_v6 = vsel %vm1084_vm13, %v1074_v63, 2102212464  ;;  %v1090_v57 = vsel %vm1084_vm13, %v1077_v3, 920167782  ;;  %v1093_v8 = vsel %vm1081_vm9, %v1071_v44, %v1074_v63 }
 0x10d   : > { %v1005_v9 = vadd.s32 %v1004_v49, %v1000_v61  ;;  %v1085_v10 = vsel %vm1081_vm9, %v1065_v46, %v1068_v43  ;;  %v1091_v12 = vsel %vm1083_vm12, %v1074_v63, %v1090_v57  ;;  %v1094_v13 = vsel %vm1084_vm13, %v1080_v4, 1326507024 }
 0x10e   : > { %v1087_v15 = vsel %vm1083_vm12, %v1071_v44, %v1086_v6  ;;  %v1092_v16 = vsel %vm1082_vm11, %v1089_v5, %v1091_v12  ;;  %v1095_v17 = vsel %vm1083_vm12, %v1077_v3, %v1094_v13  ;;  %v1165_v29 = vsel %vm1164_vm14, %v8844_v52, 0 }
 0x10f   : > { %v1006_v18 = vadd.s32 536870912, %v1005_v9  ;;  %v1096_v19 = vsel %vm1082_vm11, %v1093_v8, %v1095_v17  ;;  %v8900_v20 = vmul.u32.u64.low %v8838_v50, %v1092_v16  ;;  %v8901_v22 = vmul.u32.u64.high %v8838_v50, %v1092_v16, %v8900_v20 }
 0x110   : > { %v8905_v26 = vmul.u32.u64.low %v8838_v50, %v1096_v19  ;;  %v8906_v28 = vmul.u32.u64.high %v8838_v50, %v1096_v19, %v8905_v26  ;;  %v1088_v31 = vsel %vm1082_vm11, %v1085_v10, %v1087_v15  ;;  %v1167_v32 = vand.u32 31, %v1165_v29 }
 0x111   : > { %v1007_v30 = vshrl.u32 %v1006_v18, 30  ;;  %v1260_v35 = vand.u32 2139095040, %v8834_v45  ;;  %v1107_v37 = vadd.s32 1, %v8901_v22  ;;  %v1161_v52 = vor.u32 8388608, %v8842_v51 }
 0x112   : > { %v1257_v56 = vand.u32 2147483647, %v8834_v45  ;;  %v1104_v38 = vmul.u32 %v8838_v50, %v1088_v31  ;;  %vm1106_vm15 = vc.u32 %v8906_v28, %v8900_v20  ;;  %v1168_v41 = vsub.s32 32, %v1167_v32 }
 0x113   : > { %v1008_v36 = vshll.u32 %v1007_v30, 30  ;;  %v8927_v43 = vmul.f32 %v7773_v33, %v8798_v11  ;;  %v8931_v44 = vmul.f32 %v8917_v34, %v8798_v11  ;;  %v1108_v48 = vsel %vm1106_vm15, %v1107_v37, %v8901_v22 }
 0x114   : > { %v8937_v51 = vmul.f32 %v7773_v33, %v8800_v14  ;;  %v1109_v50 = vadd.s32 %v1108_v48, %v1104_v38  ;;  %v1261_v46 = vshrl.u32 %v1260_v35, 23  ;;  %v1001_v53 = vadd.s32 %v8874_v40, %v8871_v39 }
 0x115   : > { %v8933_v47 = vsub.s32 %v1005_v9, %v1008_v36  ;;  %v8943_v59 = vshll.u32 %v1161_v52, 8  ;;  %v8947_v61 = vand.u32 8388607, %v1257_v56  ;;  %v1031_v63 = vsub.s32 4, %v1007_v30 }
 0x116   : > { %v1110_v1 = vadd.s32 536870912, %v1109_v50  ;;  %v1171_v2 = vshrl.u32 %v8716_v58, %v1168_v41  ;;  %v1174_v3 = vshrl.u32 %v8717_v60, %v1168_v41  ;;  %v1166_v5 = vshrl.u32 %v1165_v29, 5 }
 0x117   : > { %v1011_v55 = vsub.s32 0, %v8933_v47  ;;  %v1177_v49 = vshrl.u32 %v8718_v62, %v1168_v41  ;;  %v1180_v39 = vshrl.u32 %v8719_v0, %v1168_v41  ;;  %v1170_v6 = vshll.u32 %v8715_v54, %v1167_v32 }
 0x118   : > { %v1111_v40 = vshrl.u32 %v1110_v1, 30  ;;  %v1173_v57 = vshll.u32 %v8716_v58, %v1167_v32  ;;  %v7847_v8 = vadd.s32 4294967169, %v1261_v46  ;;  %v1176_v12 = vshll.u32 %v8717_v60, %v1167_v32 }
 0x119   : > { %v7836_v4 = vmin.u32 %v1011_v55, %v8933_v47  ;;  %v1179_v13 = vshll.u32 %v8718_v62, %v1167_v32  ;;  %v1183_v15 = vshrl.u32 %v8720_v7, %v1168_v41  ;;  %v1032_v16 = vsel %vm947_vm0, %v1031_v63, %v1007_v30 }
 0x11a   : > { %v1112_v17 = vshll.u32 %v1111_v40, 30  ;;  %v1172_v18 = vor.u32 %v1171_v2, %v1170_v6  ;;  %v1175_v19 = vor.u32 %v1174_v3, %v1173_v57  ;;  %v1178_v25 = vor.u32 %v1177_v49, %v1176_v12 }
 0x11b   : > { %v1013_v10 = vclz %v7836_v4  ;;  %v1181_v26 = vor.u32 %v1180_v39, %v1179_v13  ;;  %v1182_v29 = vshll.u32 %v8719_v0, %v1167_v32  ;;  %v1135_v33 = vsub.s32 4, %v1111_v40 }
 0x11c   : > { %v8969_v31 = vsub.s32 %v1109_v50, %v1112_v17  ;;  %v1169_v35 = vshrl.u32 %v8715_v54, %v1168_v41  ;;  %vm1185_vm4 = vcmp.lt.s32.totalorder %v1166_v5, 1  ;;  %vm1186_vm6 = vcmp.lt.s32.totalorder %v1166_v5, 2 }
 0x11d   : > { %v7837_v22 = vadd.s32 4294967294, %v1013_v10  ;;  %v1184_v36 = vor.u32 %v1183_v15, %v1182_v29  ;;  %vm1187_vm7 = vcmp.lt.s32.totalorder %v1166_v5, 3  ;;  %vm8974_vm8 = vcmp.le.f32.partialorder %v1049_v27, 0.7853982 }
 0x11e   : > { %v1115_v52 = vsub.s32 0, %v8969_v31  ;;  %vm1188_vm9 = vcmp.lt.s32.totalorder %v1166_v5, 4  ;;  %v1193_v32 = vsel %vm1185_vm4, %v1172_v18, %v1175_v19  ;;  %v1197_v27 = vsel %vm1185_vm4, %v1175_v19, %v1178_v25 }
 0x11f   : > { %vm7838_vm5 = vcmp.lt.s32.totalorder %v7837_v22, 0  ;;  %v1190_v41 = vsel %vm1188_vm9, %v1178_v25, 2102212464  ;;  %v1194_v50 = vsel %vm1188_vm9, %v1181_v26, 920167782  ;;  %v1034_v49 = vsel %vm8958_vm2, 0, %v1032_v16 }
 0x120   : > { %v1016_v30 = vsel %vm7838_vm5, 0, %v7837_v22  ;;  %v7840_v55 = vmin.u32 %v1115_v52, %v8969_v31  ;;  %v1195_v63 = vsel %vm1187_vm7, %v1178_v25, %v1194_v50  ;;  %v1198_v4 = vsel %vm1188_vm9, %v1184_v36, 1326507024 }
 0x121   : > { %v1017_v38 = vsub.s32 32, %v1016_v30  ;;  %v1021_v48 = vsub.s32 4294967266, %v1016_v30  ;;  %v1018_v46 = vshll.u32 %v8933_v47, %v1016_v30  ;;  %v1196_v3 = vsel %vm1186_vm6, %v1193_v32, %v1195_v63 }
 0x122   : > { %v1117_v39 = vclz %v7840_v55  ;;  %v1189_v6 = vsel %vm1185_vm4, %v1169_v35, %v1172_v18  ;;  %v1191_v57 = vsel %vm1187_vm7, %v1175_v19, %v1190_v41  ;;  %v1136_v12 = vsel %vm1051_vm3, %v1135_v33, %v1111_v40 }
 0x123   : > { %v1019_v1 = vshrl.u32 %v1001_v53, %v1017_v38  ;;  %v1022_v2 = vadd.s32 127, %v1021_v48  ;;  %v1199_v13 = vsel %vm1187_vm7, %v1181_v26, %v1198_v4  ;;  %v1192_v18 = vsel %vm1186_vm6, %v1189_v6, %v1191_v57 }
 0x124   : > { %v7841_v53 = vadd.s32 4294967294, %v1117_v39  ;;  %v1200_v15 = vsel %vm1186_vm6, %v1197_v27, %v1199_v13  ;;  %v8994_v17 = vmul.u32.u64.low %v8943_v59, %v1196_v3  ;;  %v8995_v22 = vmul.u32.u64.high %v8943_v59, %v1196_v3, %v8994_v17 }
 0x125   : > { %v1020_v47 = vor.u32 %v1019_v1, %v1018_v46  ;;  %v1023_v10 = vshll.u32 %v1022_v2, 23  ;;  %v9000_v19 = vmul.u32.u64.low %v8943_v59, %v1200_v15  ;;  %v9001_v25 = vmul.u32.u64.high %v8943_v59, %v1200_v15, %v9000_v19 }
 0x126   : > { %v1038_v29 = vadd.s32 3, %v1034_v49  ;;  %v1105_v40 = vadd.s32 %v8900_v20, %v8906_v28  ;;  %vm7842_vm10 = vcmp.lt.s32.totalorder %v7841_v53, 0  ;;  %v1267_v26 = vadd.s32 1, %v7847_v8  ;;  %v9013_v20 = vld [vmem:[%s15037_s2 + $0x4] ss:$0 sm:$0xff] }
 0x127   : > { %v1024_v16 = vor.u32 4788187, %v1023_v10  ;;  %v1027_v35 = vcvt.s32.f32 %v1020_v47  ;;  %v1120_v36 = vsel %vm7842_vm10, 0, %v7841_v53  ;;  %v1138_v30 = vsel %vm8974_vm8, 0, %v1136_v12 }
 0x128   : > { %v1121_v52 = vsub.s32 32, %v1120_v36  ;;  %v1125_v32 = vsub.s32 4294967266, %v1120_v36  ;;  %v1208_v5 = vmul.u32 %v8943_v59, %v1192_v18  ;;  %v1211_v38 = vadd.s32 1, %v8995_v22  ;;  %v7805_v59 = vld [vmem:[%s15038_s3 + $0x2] ss:$0 sm:$0xff] }
 0x129   : > { %v1025_v33 = vand.u32 2147483647, %v1024_v16  ;;  %v1122_v8 = vshll.u32 %v8969_v31, %v1120_v36  ;;  %vm1210_vm11 = vc.u32 %v9001_v25, %v8994_v17  ;;  %vm1268_vm12 = vcmp.gt.s32.totalorder %v1267_v26, 0 }
 0x12a   : > { %v1123_v48 = vshrl.u32 %v1105_v40, %v1121_v52  ;;  %v1126_v41 = vadd.s32 127, %v1125_v32  ;;  %v1212_v50 = vsel %vm1210_vm11, %v1211_v38, %v8995_v22  ;;  %v1269_v46 = vsel %vm1268_vm12, %v1267_v26, 0 }
 0x12b   : > { %v1028_v28 = vmul.f32 %v1027_v35, %v1025_v33  ;;  %v1142_v63 = vadd.s32 3, %v1138_v30  ;;  %v1213_v27 = vadd.s32 %v1212_v50, %v1208_v5  ;;  %v1271_v1 = vand.u32 31, %v1269_v46 }
 0x12c   : > { %v9030_v31 = vmul.f32 %v9013_v20, %v8798_v11  ;;  %v1124_v2 = vor.u32 %v1123_v48, %v1122_v8  ;;  %v1127_v3 = vshll.u32 %v1126_v41, 23  ;;  %v1265_v4 = vor.u32 8388608, %v8947_v61 }
 0x12d   : > { %v1029_v55 = vxor.u32 2147483648, %v1028_v28  ;;  %v9034_v49 = vadd.f32 %v7805_v59, %v8927_v43  ;;  %v1214_v6 = vadd.s32 536870912, %v1213_v27  ;;  %v9038_v57 = vsub.s32 32, %v1271_v1 }
 0x12e   : > { %v9042_v47 = vmul.f32 %v8917_v34, %v8800_v14  ;;  %v9045_v10 = vadd.f32 %v7805_v59, %v8937_v51  ;;  %v1128_v12 = vor.u32 4788187, %v1127_v3  ;;  %v9050_v43 = vand.u32 3, %v1038_v29 }
 0x12f   : > { %v1030_v39 = vsel %vm947_vm0, %v1029_v55, %v1028_v28  ;;  %v9052_v13 = vand.u32 3, %v1142_v63  ;;  %v1215_v53 = vshrl.u32 %v1214_v6, 30  ;;  %v1131_v15 = vcvt.s32.f32 %v1124_v2 }
 0x130   : > { %v1033_v61 = vsel %vm8958_vm2, %v8814_v21, %v1030_v39  ;;  %v1129_v34 = vand.u32 2147483647, %v1128_v12  ;;  %v9060_v51 = vshll.u32 %v1265_v4, 8  ;;  %vm1155_vm13 = vcmp.lt.s32.totalorder %v8821_v24, 0 }
 0x131   : > { %8417 = vcosq.f32 %v1033_v61  ;;  %v1216_v9 = vshll.u32 %v1215_v53, 30  ;;  %v1275_v22 = vshrl.u32 %v8716_v58, %v9038_v57  ;;  %v1278_v16 = vshrl.u32 %v8717_v60, %v9038_v57 }
 0x132   : > { %8419 = vsinq.f32 %v1033_v61  ;;  %v1364_v18 = vand.u32 2139095040, %v9034_v49  ;;  %v1132_v19 = vmul.f32 %v1131_v15, %v1129_v34  ;;  %v1281_v29 = vshrl.u32 %v8718_v62, %v9038_v57 }
 0x133   : > { %v1283_v40 = vshll.u32 %v8718_v62, %v1271_v1  ;;  %v1284_v26 = vshrl.u32 %v8719_v0, %v9038_v57  ;;  %vm1044_vm14 = vcmp.eq.s32.totalorder %v9050_v43, 2  ;;  %v9074_v33 = vsub.s32 %v1213_v27, %v1216_v9 }
 0x134   : > { %v9076_v35 = vshrl.u32 %v1269_v46, 5  ;;  %v1274_v36 = vshll.u32 %v8715_v54, %v1271_v1  ;;  %v1277_v30 = vshll.u32 %v8716_v58, %v1271_v1  ;;  %vm1041_vm15 = vcmp.eq.s32.totalorder %v9050_v43, 0 }
 0x135   : > { %v1133_v52 = vxor.u32 2147483648, %v1132_v19  ;;  %v1280_v32 = vshll.u32 %v8717_v60, %v1271_v1  ;;  %v1285_v5 = vor.u32 %v1284_v26, %v1283_v40  ;;  %v1287_v38 = vshrl.u32 %v8720_v7, %v9038_v57 }
 0x136   : > { %vm1040_vm0 = vcmp.lt.s32.totalorder %v9050_v43, 2  ;;  %v1209_v28 = vadd.s32 %v8994_v17, %v9001_v25  ;;  %v1219_v8 = vsub.s32 0, %v9074_v33  ;;  %v1276_v59 = vor.u32 %v1275_v22, %v1274_v36 }
 0x137   : > { %v1279_v48 = vor.u32 %v1278_v16, %v1277_v30  ;;  %vm1037_vm2 = vweird.f32 %v8814_v21  ;;  %v1134_v41 = vsel %vm1051_vm3, %v1133_v52, %v1132_v19  ;;  %v1239_v50 = vsub.s32 4, %v1215_v53 }
 0x138   : > { %v1282_v46 = vor.u32 %v1281_v29, %v1280_v32  ;;  %v1286_v55 = vshll.u32 %v8719_v0, %v1271_v1  ;;  %v1137_v17 = vsel %vm8974_vm8, %v8819_v23, %v1134_v41  ;;  %v7844_v25 = vmin.u32 %v1219_v8, %v9074_v33 }
 0x139   : > { %vm1292_vm4 = vcmp.lt.s32.totalorder %v9076_v35, 4  ;;  %v1365_v63 = vshrl.u32 %v1364_v18, 23  ;;  %8421 = vcosq.f32 %v1137_v17  ;;  %vm1289_vm3 = vcmp.lt.s32.totalorder %v9076_v35, 1 }
 0x13a   : > { %v1288_v27 = vor.u32 %v1287_v38, %v1286_v55  ;;  %v1298_v2 = vsel %vm1292_vm4, %v1285_v5, 920167782  ;;  %8423 = vsinq.f32 %v1137_v17  ;;  %v1221_v3 = vclz %v7844_v25 }
 0x13b   : > { %v8418_v1 = vpop.eup %8417  ;;  %vm1291_vm5 = vcmp.lt.s32.totalorder %v9076_v35, 3  ;;  %v1297_v37 = vsel %vm1289_vm3, %v1276_v59, %v1279_v48  ;;  %v1240_v6 = vsel %vm1155_vm13, %v1239_v50, %v1215_v53  ;;  %v1273_v61 = vshrl.u32 %v8715_v54, %v9038_v57 }
 0x13c   : > { %v8420_v4 = vpop.eup %8419  ;;  %v1045_v39 = vxor.u32 2147483648, %v8418_v1  ;;  %v1299_v12 = vsel %vm1291_vm5, %v1282_v46, %v1298_v2  ;;  %vm9116_vm6 = vcmp.le.f32.partialorder %v1153_v42, 0.7853982  ;;  %v7845_v9 = vadd.s32 4294967294, %v1221_v3 }
 0x13d   : > { %v1042_v34 = vxor.u32 2147483648, %v8420_v4  ;;  %vm1290_vm7 = vcmp.lt.s32.totalorder %v9076_v35, 2  ;;  %v1294_v22 = vsel %vm1292_vm4, %v1282_v46, 2102212464  ;;  %v1301_v16 = vsel %vm1289_vm3, %v1279_v48, %v1282_v46 }
 0x13e   : > { %v1046_v53 = vsel %vm1044_vm14, %v1045_v39, %v8420_v4  ;;  %v1300_v57 = vsel %vm1290_vm7, %v1297_v37, %v1299_v12  ;;  %v1302_v42 = vsel %vm1292_vm4, %v1288_v27, 1326507024  ;;  %vm7846_vm8 = vcmp.lt.s32.totalorder %v7845_v9, 0 }
 0x13f   : > { %v1043_v18 = vsel %vm1041_vm15, %v8418_v1, %v1042_v34  ;;  %v1303_v19 = vsel %vm1291_vm5, %v1285_v5, %v1302_v42  ;;  %v7851_v29 = vadd.s32 4294967169, %v1365_v63  ;;  %v1224_v26 = vsel %vm7846_vm8, 0, %v7845_v9 }
 0x140   : > { %v1047_v40 = vsel %vm1040_vm0, %v1043_v18, %v1046_v53  ;;  %v1293_v36 = vsel %vm1289_vm3, %v1273_v61, %v1276_v59  ;;  %v1304_v30 = vsel %vm1290_vm7, %v1301_v16, %v1303_v19  ;;  %vm1141_vm9 = vweird.f32 %v8819_v23 }
 0x141   : > { %v1048_v52 = vsel %vm1037_vm2, nan, %v1047_v40  ;;  %v1225_v32 = vsub.s32 32, %v1224_v26  ;;  %v1229_v38 = vsub.s32 4294967266, %v1224_v26  ;;  %v1295_v5 = vsel %vm1291_vm5, %v1279_v48, %v1294_v22 }
 0x142   : > { %v9152_v43 = vmul.u32.u64.low %v9060_v51, %v1304_v30  ;;  %v9153_v8 = vmul.u32.u64.high %v9060_v51, %v1304_v30, %v9152_v43  ;;  %v9156_v41 = vmul.u32.u64.low %v9060_v51, %v1300_v57  ;;  %v9157_v59 = vmul.u32.u64.high %v9060_v51, %v1300_v57, %v9156_v41  ;;  %7601 = vst.msk [vmem:[%s9134_s13] sm:$0xff] %vm266_vm1, %v1048_v52 }
 0x143   : > { %v1226_v21 = vshll.u32 %v9074_v33, %v1224_v26  ;;  %v1227_v50 = vshrl.u32 %v1209_v28, %v1225_v32  ;;  %v1230_v46 = vadd.s32 127, %v1229_v38  ;;  %v1371_v55 = vadd.s32 1, %v7851_v29  ;;  %v8422_v17 = vpop.eup %8421 }
 0x144   : > { %vm1145_vm10 = vcmp.eq.s32.totalorder %v9052_v13, 0  ;;  %vm1148_vm11 = vcmp.eq.s32.totalorder %v9052_v13, 2  ;;  %v1296_v48 = vsel %vm1290_vm7, %v1293_v36, %v1295_v5  ;;  %v1361_v25 = vand.u32 2147483647, %v9034_v49  ;;  %v8424_v63 = vpop.eup %8423 }
 0x145   : > { %v1149_v27 = vxor.u32 2147483648, %v8422_v17  ;;  %v1228_v2 = vor.u32 %v1227_v50, %v1226_v21  ;;  %v1231_v1 = vshll.u32 %v1230_v46, 23  ;;  %vm1372_vm12 = vcmp.gt.s32.totalorder %v1371_v55, 0 }
 0x146   : > { %v1146_v3 = vxor.u32 2147483648, %v8424_v63  ;;  %v1242_v33 = vsel %vm9116_vm6, 0, %v1240_v6  ;;  %vm1314_vm14 = vc.u32 %v9153_v8, %v9156_v41  ;;  %v1315_v28 = vadd.s32 1, %v9157_v59 }
 0x147   : > { %v1150_v37 = vsel %vm1148_vm11, %v1149_v27, %v8424_v63  ;;  %v1232_v4 = vor.u32 4788187, %v1231_v1  ;;  %v1312_v35 = vmul.u32 %v9060_v51, %v1296_v48  ;;  %v1373_v39 = vsel %vm1372_vm12, %v1371_v55, 0 }
 0x148   : > { %vm1144_vm15 = vcmp.lt.s32.totalorder %v9052_v13, 2  ;;  %v1147_v61 = vsel %vm1145_vm10, %v8422_v17, %v1146_v3  ;;  %v1316_v12 = vsel %vm1314_vm14, %v1315_v28, %v9157_v59  ;;  %v1375_v34 = vand.u32 31, %v1373_v39 }
 0x149   : > { %v1151_v6 = vsel %vm1144_vm15, %v1147_v61, %v1150_v37  ;;  %v1233_v9 = vand.u32 2147483647, %v1232_v4  ;;  %v1235_v22 = vcvt.s32.f32 %v1228_v2  ;;  %v1317_v53 = vadd.s32 %v1316_v12, %v1312_v35 }
 0x14a   : > { %v1152_v57 = vsel %vm1141_vm9, nan, %v1151_v6  ;;  %v1246_v16 = vadd.s32 3, %v1242_v33  ;;  %v1368_v51 = vand.u32 8388607, %v1361_v25  ;;  %v1376_v42 = vsub.s32 32, %v1375_v34 }
 0x14b   : > { %v1236_v18 = vmul.f32 %v1235_v22, %v1233_v9  ;;  %v1318_v19 = vadd.s32 536870912, %v1317_v53  ;;  %v1374_v13 = vshrl.u32 %v1373_v39, 5  ;;  %v1378_v29 = vshll.u32 %v8715_v54, %v1375_v34  ;;  %7602 = vst.msk [vmem:[%s9134_s13 + $0x8] sm:$0xff] %vm266_vm1, %v1152_v57 }
 0x14c   : > { %v1379_v40 = vshrl.u32 %v8716_v58, %v1376_v42  ;;  %v1381_v26 = vshll.u32 %v8716_v58, %v1375_v34  ;;  %v1382_v36 = vshrl.u32 %v8717_v60, %v1376_v42  ;;  %v1385_v23 = vshrl.u32 %v8718_v62, %v1376_v42 }
 0x14d   : > { %v1237_v30 = vxor.u32 2147483648, %v1236_v18  ;;  %v1319_v52 = vshrl.u32 %v1318_v19, 30  ;;  %v1384_v32 = vshll.u32 %v8717_v60, %v1375_v34  ;;  %v1388_v38 = vshrl.u32 %v8719_v0, %v1376_v42 }
 0x14e   : > { %v1380_v5 = vor.u32 %v1379_v40, %v1378_v29  ;;  %v1387_v43 = vshll.u32 %v8718_v62, %v1375_v34  ;;  %v1390_v59 = vshll.u32 %v8719_v0, %v1375_v34  ;;  %v1391_v21 = vshrl.u32 %v8720_v7, %v1376_v42 }
 0x14f   : > { %v1238_v50 = vsel %vm1155_vm13, %v1237_v30, %v1236_v18  ;;  %v1320_v46 = vshll.u32 %v1319_v52, 30  ;;  %v1383_v55 = vor.u32 %v1382_v36, %v1381_v26  ;;  %v1386_v17 = vor.u32 %v1385_v23, %v1384_v32 }
 0x150   : > { %v1241_v48 = vsel %vm9116_vm6, %v8821_v24, %v1238_v50  ;;  %v1369_v63 = vor.u32 8388608, %v1368_v51  ;;  %v1389_v27 = vor.u32 %v1388_v38, %v1387_v43  ;;  %v1392_v2 = vor.u32 %v1391_v21, %v1390_v59 }
 0x151   : > { %8425 = vcosq.f32 %v1241_v48  ;;  %v9199_v1 = vand.u32 3, %v1246_v16  ;;  %v9201_v3 = vsub.s32 %v1317_v53, %v1320_v46  ;;  %v1468_v33 = vand.u32 2139095040, %v9045_v10 }
 0x152   : > { %8427 = vsinq.f32 %v1241_v48  ;;  %v1377_v28 = vshrl.u32 %v8715_v54, %v1376_v42  ;;  %vm1393_vm13 = vcmp.lt.s32.totalorder %v1374_v13, 1  ;;  %vm1396_vm0 = vcmp.lt.s32.totalorder %v1374_v13, 4 }
 0x153   : > { %v1323_v37 = vsub.s32 0, %v9201_v3  ;;  %vm1395_vm2 = vcmp.lt.s32.totalorder %v1374_v13, 3  ;;  %v1398_v15 = vsel %vm1396_vm0, %v1386_v17, 2102212464  ;;  %v1401_v4 = vsel %vm1393_vm13, %v1380_v5, %v1383_v55 }
 0x154   : > { %v1397_v35 = vsel %vm1393_vm13, %v1377_v28, %v1380_v5  ;;  %v1399_v39 = vsel %vm1395_vm2, %v1383_v55, %v1398_v15  ;;  %v1402_v61 = vsel %vm1396_vm0, %v1389_v27, 920167782  ;;  %v1406_v12 = vsel %vm1396_vm0, %v1392_v2, 1326507024  ;;  %v7806_v2 = vld [vmem:[%s15038_s3 + $0x3] ss:$0 sm:$0xff] }
 0x155   : > { %v7848_v34 = vmin.u32 %v1323_v37, %v9201_v3  ;;  %vm1394_vm4 = vcmp.lt.s32.totalorder %v1374_v13, 2  ;;  %v1403_v6 = vsel %vm1395_vm2, %v1386_v17, %v1402_v61  ;;  %v1405_v9 = vsel %vm1393_vm13, %v1383_v55, %v1386_v17 }
 0x156   : > { %v1404_v22 = vsel %vm1394_vm4, %v1401_v4, %v1403_v6  ;;  %v1407_v53 = vsel %vm1395_vm2, %v1389_v27, %v1406_v12  ;;  %v1409_v57 = vshll.u32 %v1369_v63, 8  ;;  %v1469_v16 = vshrl.u32 %v1468_v33, 23 }
 0x157   : > { %vm9209_vm3 = vcmp.le.f32.partialorder %v1257_v56, 0.7853982  ;;  %vm1259_vm5 = vcmp.lt.s32.totalorder %v8834_v45, 0  ;;  %v1325_v42 = vclz %v7848_v34  ;;  %v1343_v18 = vsub.s32 4, %v1319_v52 }
 0x158   : > { %v1400_v19 = vsel %vm1394_vm4, %v1397_v35, %v1399_v39  ;;  %vm1245_vm6 = vweird.f32 %v8821_v24  ;;  %v1408_v13 = vsel %vm1394_vm4, %v1405_v9, %v1407_v53  ;;  %v7855_v26 = vadd.s32 4294967169, %v1469_v16  ;;  %v9265_v24 = vld [vmem:[%s15038_s3 + $0x4] ss:$0 sm:$0xff] }
 0x159   : > { %v9215_v29 = vmul.u32.u64.low %v1409_v57, %v1404_v22  ;;  %v9216_v40 = vmul.u32.u64.high %v1409_v57, %v1404_v22, %v9215_v29  ;;  %v7849_v36 = vadd.s32 4294967294, %v1325_v42  ;;  %v1465_v56 = vand.u32 2147483647, %v9045_v10 }
 0x15a   : > { %v9219_v23 = vmul.u32.u64.low %v1409_v57, %v1408_v13  ;;  %v9220_v30 = vmul.u32.u64.high %v1409_v57, %v1408_v13, %v9219_v23  ;;  %vm1248_vm7 = vcmp.lt.s32.totalorder %v9199_v1, 2  ;;  %vm1249_vm8 = vcmp.eq.s32.totalorder %v9199_v1, 0 }
 0x15b   : > { %vm1252_vm9 = vcmp.eq.s32.totalorder %v9199_v1, 2  ;;  %v1475_v32 = vadd.s32 1, %v7855_v26  ;;  %v8426_v38 = vpop.eup %8425  ;;  %v1313_v5 = vadd.s32 %v9156_v41, %v9153_v8  ;;  %vm7850_vm10 = vcmp.lt.s32.totalorder %v7849_v36, 0 }
 0x15c   : > { %v1344_v43 = vsel %vm1259_vm5, %v1343_v18, %v1319_v52  ;;  %v1416_v59 = vmul.u32 %v1409_v57, %v1400_v19  ;;  %v8428_v21 = vpop.eup %8427  ;;  %v1253_v50 = vxor.u32 2147483648, %v8426_v38  ;;  %v1328_v46 = vsel %vm7850_vm10, 0, %v7849_v36 }
 0x15d   : > { %v1419_v55 = vadd.s32 1, %v9216_v40  ;;  %vm1476_vm11 = vcmp.gt.s32.totalorder %v1475_v32, 0  ;;  %v1250_v17 = vxor.u32 2147483648, %v8428_v21  ;;  %v1329_v48 = vsub.s32 32, %v1328_v46 }
 0x15e   : > { %v1333_v63 = vsub.s32 4294967266, %v1328_v46  ;;  %v1472_v27 = vand.u32 8388607, %v1465_v56  ;;  %v1254_v8 = vsel %vm1252_vm9, %v1253_v50, %v8428_v21  ;;  %v1330_v41 = vshll.u32 %v9201_v3, %v1328_v46 }
 0x15f   : > { %vm1418_vm12 = vc.u32 %v9220_v30, %v9215_v29  ;;  %v1477_v52 = vsel %vm1476_vm11, %v1475_v32, 0  ;;  %v1251_v33 = vsel %vm1249_vm8, %v8426_v38, %v1250_v17  ;;  %v1331_v28 = vshrl.u32 %v1313_v5, %v1329_v48 }
 0x160   : > { %v1334_v37 = vadd.s32 127, %v1333_v63  ;;  %v1420_v15 = vsel %vm1418_vm12, %v1419_v55, %v9216_v40  ;;  %v1255_v4 = vsel %vm1248_vm7, %v1251_v33, %v1254_v8  ;;  %v1346_v3 = vsel %vm9209_vm3, 0, %v1344_v43 }
 0x161   : > { %v1421_v35 = vadd.s32 %v1420_v15, %v1416_v59  ;;  %v1479_v39 = vand.u32 31, %v1477_v52  ;;  %v9250_v61 = vmul.f32 %v9013_v20, %v8800_v14  ;;  %v1256_v12 = vsel %vm1245_vm6, nan, %v1255_v4 }
 0x162   : > { %v1332_v34 = vor.u32 %v1331_v28, %v1330_v41  ;;  %v1335_v6 = vshll.u32 %v1334_v37, 23  ;;  %v9255_v9 = vadd.f32 %v7806_v2, %v8931_v44  ;;  %v9258_v1 = vadd.f32 %v7806_v2, %v9042_v47  ;;  %7603 = vst.msk [vmem:[%s9134_s13 + $0x10] sm:$0xff] %vm266_vm1, %v1256_v12 }
 0x163   : > { %v1422_v22 = vadd.s32 536870912, %v1421_v35  ;;  %v1480_v53 = vsub.s32 32, %v1479_v39  ;;  %v1350_v16 = vadd.s32 3, %v1346_v3  ;;  %v1473_v42 = vor.u32 8388608, %v1472_v27 }
 0x164   : > { %v1336_v57 = vor.u32 4788187, %v1335_v6  ;;  %v1478_v20 = vshrl.u32 %v1477_v52, 5  ;;  %v1339_v18 = vcvt.s32.f32 %v1332_v34  ;;  %v1491_v26 = vshll.u32 %v8718_v62, %v1479_v39 }
 0x165   : > { %v1423_v19 = vshrl.u32 %v1422_v22, 30  ;;  %v1483_v44 = vshrl.u32 %v8716_v58, %v1480_v53  ;;  %v1486_v47 = vshrl.u32 %v8717_v60, %v1480_v53  ;;  %v1489_v40 = vshrl.u32 %v8718_v62, %v1480_v53 }
 0x166   : > { %v1337_v13 = vand.u32 2147483647, %v1336_v57  ;;  %v1492_v36 = vshrl.u32 %v8719_v0, %v1480_v53  ;;  %v1482_v32 = vshll.u32 %v8715_v54, %v1479_v39  ;;  %v1485_v38 = vshll.u32 %v8716_v58, %v1479_v39 }
 0x167   : > { %v1424_v23 = vshll.u32 %v1423_v19, 30  ;;  %v1488_v5 = vshll.u32 %v8717_v60, %v1479_v39  ;;  %v9277_v43 = vadd.f32 %v9265_v24, %v9030_v31  ;;  %v1495_v50 = vshrl.u32 %v8720_v7, %v1480_v53 }
 0x168   : > { %v1340_v59 = vmul.f32 %v1339_v18, %v1337_v13  ;;  %v1493_v21 = vor.u32 %v1492_v36, %v1491_v26  ;;  %vm1363_vm14 = vcmp.lt.s32.totalorder %v9034_v49, 0  ;;  %v1484_v55 = vor.u32 %v1483_v44, %v1482_v32 }
 0x169   : > { %v9281_v46 = vsub.s32 %v1421_v35, %v1424_v23  ;;  %v1487_v17 = vor.u32 %v1486_v47, %v1485_v38  ;;  %v1490_v48 = vor.u32 %v1489_v40, %v1488_v5  ;;  %v9283_v27 = vand.u32 3, %v1350_v16 }
 0x16a   : > { %v1341_v63 = vxor.u32 2147483648, %v1340_v59  ;;  %v1494_v8 = vshll.u32 %v8719_v0, %v1479_v39  ;;  %v1572_v41 = vand.u32 2139095040, %v9255_v9  ;;  %vm1497_vm15 = vcmp.lt.s32.totalorder %v1478_v20, 1 }
 0x16b   : > { %v1427_v31 = vsub.s32 0, %v9281_v46  ;;  %vm1500_vm13 = vcmp.lt.s32.totalorder %v1478_v20, 4  ;;  %v1513_v52 = vshll.u32 %v1473_v42, 8  ;;  %vm9292_vm0 = vcmp.le.f32.partialorder %v1361_v25, 0.7853982 }
 0x16c   : > { %v1342_v2 = vsel %vm1259_vm5, %v1341_v63, %v1340_v59  ;;  %v1496_v28 = vor.u32 %v1495_v50, %v1494_v8  ;;  %vm1499_vm2 = vcmp.lt.s32.totalorder %v1478_v20, 3  ;;  %v1506_v37 = vsel %vm1500_vm13, %v1493_v21, 920167782 }
 0x16d   : > { %v1345_v15 = vsel %vm9209_vm3, %v8834_v45, %v1342_v2  ;;  %v7852_v4 = vmin.u32 %v1427_v31, %v9281_v46  ;;  %v1502_v3 = vsel %vm1500_vm13, %v1490_v48, 2102212464  ;;  %v1505_v35 = vsel %vm1497_vm15, %v1484_v55, %v1487_v17 }
 0x16e   : > { %8429 = vcosq.f32 %v1345_v15  ;;  %v1447_v39 = vsub.s32 4, %v1423_v19  ;;  %v1481_v25 = vshrl.u32 %v8715_v54, %v1480_v53  ;;  %v1507_v12 = vsel %vm1499_vm2, %v1490_v48, %v1506_v37 }
 0x16f   : > { %8431 = vsinq.f32 %v1345_v15  ;;  %v1429_v34 = vclz %v7852_v4  ;;  %vm1498_vm4 = vcmp.lt.s32.totalorder %v1478_v20, 2  ;;  %v1509_v6 = vsel %vm1497_vm15, %v1487_v17, %v1490_v48 }
 0x170   : > { %v1501_v51 = vsel %vm1497_vm15, %v1481_v25, %v1484_v55  ;;  %v1503_v22 = vsel %vm1499_vm2, %v1487_v17, %v1502_v3  ;;  %v1508_v57 = vsel %vm1498_vm4, %v1505_v35, %v1507_v12  ;;  %v1510_v16 = vsel %vm1500_vm13, %v1496_v28, 1326507024 }
 0x171   : > { %v7853_v42 = vadd.s32 4294967294, %v1429_v34  ;;  %v1511_v18 = vsel %vm1499_vm2, %v1493_v21, %v1510_v16  ;;  %v9310_v44 = vmul.u32.u64.low %v1513_v52, %v1508_v57  ;;  %v9311_v47 = vmul.u32.u64.high %v1513_v52, %v1508_v57, %v9310_v44 }
 0x172   : > { %v1448_v53 = vsel %vm1363_vm14, %v1447_v39, %v1423_v19  ;;  %v1512_v13 = vsel %vm1498_vm4, %v1509_v6, %v1511_v18  ;;  %v1569_v40 = vand.u32 2147483647, %v9255_v9  ;;  %v1573_v26 = vshrl.u32 %v1572_v41, 23 }
 0x173   : > { %vm7854_vm3 = vcmp.lt.s32.totalorder %v7853_v42, 0  ;;  %v1504_v36 = vsel %vm1498_vm4, %v1501_v51, %v1503_v22  ;;  %v9317_v23 = vmul.u32.u64.low %v1513_v52, %v1512_v13  ;;  %v9318_v32 = vmul.u32.u64.high %v1513_v52, %v1512_v13, %v9317_v23 }
 0x174   : > { %vm1353_vm5 = vcmp.eq.s32.totalorder %v9283_v27, 0  ;;  %v1417_v20 = vadd.s32 %v9215_v29, %v9220_v30  ;;  %v1432_v38 = vsel %vm7854_vm3, 0, %v7853_v42  ;;  %v7859_v5 = vadd.s32 4294967169, %v1573_v26 }
 0x175   : > { %v1433_v59 = vsub.s32 32, %v1432_v38  ;;  %v1437_v21 = vsub.s32 4294967266, %v1432_v38  ;;  %v1450_v19 = vsel %vm9292_vm0, 0, %v1448_v53  ;;  %v1523_v50 = vadd.s32 1, %v9311_v47 }
 0x176   : > { %v1434_v55 = vshll.u32 %v9281_v46, %v1432_v38  ;;  %v1520_v17 = vmul.u32 %v1513_v52, %v1504_v36  ;;  %v1576_v48 = vand.u32 8388607, %v1569_v40  ;;  %v1579_v63 = vadd.s32 1, %v7859_v5 }
 0x177   : > { %v1435_v8 = vshrl.u32 %v1417_v20, %v1433_v59  ;;  %v1438_v41 = vadd.s32 127, %v1437_v21  ;;  %vm1522_vm6 = vc.u32 %v9318_v32, %v9310_v44  ;;  %v1676_v29 = vand.u32 2139095040, %v9258_v1 }
 0x178   : > { %v8430_v30 = vpop.eup %8429  ;;  %vm1356_vm7 = vcmp.eq.s32.totalorder %v9283_v27, 2  ;;  %v1524_v31 = vsel %vm1522_vm6, %v1523_v50, %v9311_v47  ;;  %vm1580_vm8 = vcmp.gt.s32.totalorder %v1579_v63, 0  ;;  %v1673_v46 = vand.u32 2147483647, %v9258_v1 }
 0x179   : > { %v8432_v52 = vpop.eup %8431  ;;  %v1357_v2 = vxor.u32 2147483648, %v8430_v30  ;;  %v1436_v28 = vor.u32 %v1435_v8, %v1434_v55  ;;  %v1439_v37 = vshll.u32 %v1438_v41, 23  ;;  %v1525_v15 = vadd.s32 %v1524_v31, %v1520_v17 }
 0x17a   : > { %v1354_v4 = vxor.u32 2147483648, %v8432_v52  ;;  %v1454_v3 = vadd.s32 3, %v1450_v19  ;;  %v1577_v35 = vor.u32 8388608, %v1576_v48  ;;  %v1581_v39 = vsel %vm1580_vm8, %v1579_v63, 0 }
 0x17b   : > { %v1358_v25 = vsel %vm1356_vm7, %v1357_v2, %v8432_v52  ;;  %v1440_v12 = vor.u32 4788187, %v1439_v37  ;;  %v1526_v34 = vadd.s32 536870912, %v1525_v15  ;;  %v1677_v6 = vshrl.u32 %v1676_v29, 23 }
 0x17c   : > { %vm1349_vm9 = vweird.f32 %v8834_v45  ;;  %vm1352_vm10 = vcmp.lt.s32.totalorder %v9283_v27, 2  ;;  %v1355_v51 = vsel %vm1353_vm5, %v8430_v30, %v1354_v4  ;;  %v1583_v22 = vand.u32 31, %v1581_v39 }
 0x17d   : > { %v1359_v57 = vsel %vm1352_vm10, %v1355_v51, %v1358_v25  ;;  %v1441_v16 = vand.u32 2147483647, %v1440_v12  ;;  %v1443_v42 = vcvt.s32.f32 %v1436_v28  ;;  %v1527_v18 = vshrl.u32 %v1526_v34, 30 }
 0x17e   : > { %v1360_v47 = vsel %vm1349_vm9, nan, %v1359_v57  ;;  %v9339_v53 = vand.u32 3, %v1454_v3  ;;  %vm1467_vm11 = vcmp.lt.s32.totalorder %v9045_v10, 0  ;;  %v1584_v13 = vsub.s32 32, %v1583_v22 }
 0x17f   : > { %v9342_v26 = vshll.u32 %v1577_v35, 8  ;;  %v1444_v45 = vmul.f32 %v1443_v42, %v1441_v16  ;;  %v1528_v36 = vshll.u32 %v1527_v18, 30  ;;  %v7863_v23 = vadd.s32 4294967169, %v1677_v6  ;;  %7604 = vst.msk [vmem:[%s9134_s13 + $0x18] sm:$0xff] %vm266_vm1, %v1360_v47 }
 0x180   : > { %v9346_v27 = vand.u32 8388607, %v1673_v46  ;;  %v1586_v20 = vshll.u32 %v8715_v54, %v1583_v22  ;;  %v1587_v38 = vshrl.u32 %v8716_v58, %v1584_v13  ;;  %v1590_v5 = vshrl.u32 %v8717_v60, %v1584_v13 }
 0x181   : > { %v1593_v59 = vshrl.u32 %v8718_v62, %v1584_v13  ;;  %v1445_v21 = vxor.u32 2147483648, %v1444_v45  ;;  %v9354_v19 = vsub.s32 %v1525_v15, %v1528_v36  ;;  %v9356_v50 = vshrl.u32 %v1581_v39, 5 }
 0x182   : > { %v1589_v55 = vshll.u32 %v8716_v58, %v1583_v22  ;;  %v1551_v17 = vsub.s32 4, %v1527_v18  ;;  %v1588_v48 = vor.u32 %v1587_v38, %v1586_v20  ;;  %v1592_v63 = vshll.u32 %v8717_v60, %v1583_v22 }
 0x183   : > { %v1595_v8 = vshll.u32 %v8718_v62, %v1583_v22  ;;  %v1446_v41 = vsel %vm1363_vm14, %v1445_v21, %v1444_v45  ;;  %v1531_v29 = vsub.s32 0, %v9354_v19  ;;  %v1596_v31 = vshrl.u32 %v8719_v0, %v1584_v13 }
 0x184   : > { %v1591_v30 = vor.u32 %v1590_v5, %v1589_v55  ;;  %v1449_v52 = vsel %vm9292_vm0, %v9034_v49, %v1446_v41  ;;  %v1594_v2 = vor.u32 %v1593_v59, %v1592_v63  ;;  %v1598_v28 = vshll.u32 %v8719_v0, %v1583_v22 }
 0x185   : > { %v1599_v37 = vshrl.u32 %v8720_v7, %v1584_v13  ;;  %8433 = vcosq.f32 %v1449_v52  ;;  %vm9372_vm12 = vcmp.le.f32.partialorder %v1465_v56, 0.7853982  ;;  %v7856_v4 = vmin.u32 %v1531_v29, %v9354_v19 }
 0x186   : > { %v1597_v3 = vor.u32 %v1596_v31, %v1595_v8  ;;  %v1683_v35 = vadd.s32 1, %v7863_v23  ;;  %8435 = vsinq.f32 %v1449_v52  ;;  %v1585_v33 = vshrl.u32 %v8715_v54, %v1584_v13 }
 0x187   : > { %v1600_v39 = vor.u32 %v1599_v37, %v1598_v28  ;;  %v1681_v25 = vor.u32 8388608, %v9346_v27  ;;  %v1533_v12 = vclz %v7856_v4  ;;  %v1552_v34 = vsel %vm1467_vm11, %v1551_v17, %v1527_v18 }
 0x188   : > { %vm1601_vm14 = vcmp.lt.s32.totalorder %v9356_v50, 1  ;;  %vm1602_vm15 = vcmp.lt.s32.totalorder %v9356_v50, 2  ;;  %vm1603_vm13 = vcmp.lt.s32.totalorder %v9356_v50, 3  ;;  %vm1604_vm0 = vcmp.lt.s32.totalorder %v9356_v50, 4 }
 0x189   : > { %v1609_v56 = vsel %vm1601_vm14, %v1588_v48, %v1591_v30  ;;  %v1613_v6 = vsel %vm1601_vm14, %v1591_v30, %v1594_v2  ;;  %v7857_v51 = vadd.s32 4294967294, %v1533_v12  ;;  %v1606_v22 = vsel %vm1604_vm0, %v1594_v2, 2102212464 }
 0x18a   : > { %v1610_v57 = vsel %vm1604_vm0, %v1597_v3, 920167782  ;;  %vm1684_vm2 = vcmp.gt.s32.totalorder %v1683_v35, 0  ;;  %vm1457_vm4 = vcmp.eq.s32.totalorder %v9339_v53, 0  ;;  %v1605_v16 = vsel %vm1601_vm14, %v1585_v33, %v1588_v48 }
 0x18b   : > { %v1607_v42 = vsel %vm1603_vm13, %v1591_v30, %v1606_v22  ;;  %v1611_v18 = vsel %vm1603_vm13, %v1594_v2, %v1610_v57  ;;  %v1614_v47 = vsel %vm1604_vm0, %v1600_v39, 1326507024  ;;  %vm1456_vm3 = vcmp.lt.s32.totalorder %v9339_v53, 2 }
 0x18c   : > { %vm7858_vm5 = vcmp.lt.s32.totalorder %v7857_v51, 0  ;;  %v1612_v13 = vsel %vm1602_vm15, %v1609_v56, %v1611_v18  ;;  %v1615_v45 = vsel %vm1603_vm13, %v1597_v3, %v1614_v47  ;;  %v1685_v36 = vsel %vm1684_vm2, %v1683_v35, 0 }
 0x18d   : > { %vm1453_vm6 = vweird.f32 %v9034_v49  ;;  %v1536_v23 = vsel %vm7858_vm5, 0, %v7857_v51  ;;  %v1616_v27 = vsel %vm1602_vm15, %v1613_v6, %v1615_v45  ;;  %vm1460_vm7 = vcmp.eq.s32.totalorder %v9339_v53, 2 }
 0x18e   : > { %v9399_v20 = vmul.u32.u64.low %v9342_v26, %v1612_v13  ;;  %v9400_v38 = vmul.u32.u64.high %v9342_v26, %v1612_v13, %v9399_v20  ;;  %v1521_v5 = vadd.s32 %v9310_v44, %v9318_v32  ;;  %v1537_v59 = vsub.s32 32, %v1536_v23 }
 0x18f   : > { %v1541_v21 = vsub.s32 4294967266, %v1536_v23  ;;  %v1554_v55 = vsel %vm9372_vm12, 0, %v1552_v34  ;;  %v9409_v17 = vmul.u32.u64.low %v9342_v26, %v1616_v27  ;;  %v9410_v48 = vmul.u32.u64.high %v9342_v26, %v1616_v27, %v9409_v17  ;;  %v8434_v8 = vpop.eup %8433 }
 0x190   : > { %v1687_v63 = vand.u32 31, %v1685_v36  ;;  %v1538_v41 = vshll.u32 %v9354_v19, %v1536_v23  ;;  %v1539_v29 = vshrl.u32 %v1521_v5, %v1537_v59  ;;  %v1608_v31 = vsel %vm1602_vm15, %v1605_v16, %v1607_v42  ;;  %v8436_v52 = vpop.eup %8435 }
 0x191   : > { %v1542_v30 = vadd.s32 127, %v1541_v21  ;;  %v1461_v44 = vxor.u32 2147483648, %v8434_v8  ;;  %v1627_v32 = vadd.s32 1, %v9400_v38  ;;  %v9416_v28 = vshll.u32 %v1681_v25, 8 }
 0x192   : > { %v1688_v2 = vsub.s32 32, %v1687_v63  ;;  %v1458_v37 = vxor.u32 2147483648, %v8436_v52  ;;  %v1540_v4 = vor.u32 %v1539_v29, %v1538_v41  ;;  %v1558_v35 = vadd.s32 3, %v1554_v55 }
 0x193   : > { %v1543_v3 = vshll.u32 %v1542_v30, 23  ;;  %v1462_v33 = vsel %vm1460_vm7, %v1461_v44, %v8436_v52  ;;  %v1624_v19 = vmul.u32 %v9342_v26, %v1608_v31  ;;  %vm1626_vm8 = vc.u32 %v9410_v48, %v9399_v20 }
 0x194   : > { %v1690_v50 = vshll.u32 %v8715_v54, %v1687_v63  ;;  %v1459_v39 = vsel %vm1457_vm4, %v8434_v8, %v1458_v37  ;;  %v1628_v25 = vsel %vm1626_vm8, %v1627_v32, %v9400_v38  ;;  %v1693_v34 = vshll.u32 %v8716_v58, %v1687_v63 }
 0x195   : > { %v1544_v12 = vor.u32 4788187, %v1543_v3  ;;  %v1463_v56 = vsel %vm1456_vm3, %v1459_v39, %v1462_v33  ;;  %v1629_v6 = vadd.s32 %v1628_v25, %v1624_v19  ;;  %v1691_v26 = vshrl.u32 %v8716_v58, %v1688_v2  ;;  %v7776_v19 = vld [vmem:[%s15037_s2 + $0x5] ss:$0 sm:$0xff] }
 0x196   : > { %v1694_v51 = vshrl.u32 %v8717_v60, %v1688_v2  ;;  %v1464_v22 = vsel %vm1453_vm6, nan, %v1463_v56  ;;  %v1547_v16 = vcvt.s32.f32 %v1540_v4  ;;  %vm1571_vm9 = vcmp.lt.s32.totalorder %v9255_v9, 0 }
 0x197   : > { %v1545_v57 = vand.u32 2147483647, %v1544_v12  ;;  %v1697_v42 = vshrl.u32 %v8718_v62, %v1688_v2  ;;  %v1630_v18 = vadd.s32 536870912, %v1629_v6  ;;  %v1686_v47 = vshrl.u32 %v1685_v36, 5  ;;  %7605 = vst.msk [vmem:[%s9134_s13 + $0x20] sm:$0xff] %vm266_vm1, %v1464_v22 }
 0x198   : > { %v1692_v13 = vor.u32 %v1691_v26, %v1690_v50  ;;  %v1696_v53 = vshll.u32 %v8717_v60, %v1687_v63  ;;  %v1695_v23 = vor.u32 %v1694_v51, %v1693_v34  ;;  %v1699_v27 = vshll.u32 %v8718_v62, %v1687_v63 }
 0x199   : > { %v1548_v45 = vmul.f32 %v1547_v16, %v1545_v57  ;;  %v1700_v49 = vshrl.u32 %v8719_v0, %v1688_v2  ;;  %v9441_v38 = vand.u32 3, %v1558_v35  ;;  %v1631_v5 = vshrl.u32 %v1630_v18, 30 }
 0x19a   : > { %v1703_v59 = vshrl.u32 %v8720_v7, %v1688_v2  ;;  %v1777_v21 = vand.u32 2147483647, %v9277_v43  ;;  %v1698_v36 = vor.u32 %v1697_v42, %v1696_v53  ;;  %v1702_v8 = vshll.u32 %v8719_v0, %v1687_v63 }
 0x19b   : > { %v1549_v55 = vxor.u32 2147483648, %v1548_v45  ;;  %v1701_v17 = vor.u32 %v1700_v49, %v1699_v27  ;;  %v1632_v41 = vshll.u32 %v1631_v5, 30  ;;  %v1655_v29 = vsub.s32 4, %v1631_v5 }
 0x19c   : > { %vm1705_vm10 = vcmp.lt.s32.totalorder %v1686_v47, 1  ;;  %vm1708_vm14 = vcmp.lt.s32.totalorder %v1686_v47, 4  ;;  %v1704_v31 = vor.u32 %v1703_v59, %v1702_v8  ;;  %v1689_v63 = vshrl.u32 %v8715_v54, %v1688_v2 }
 0x19d   : > { %v1550_v30 = vsel %vm1467_vm11, %v1549_v55, %v1548_v45  ;;  %v1713_v52 = vsel %vm1705_vm10, %v1692_v13, %v1695_v23  ;;  %v1714_v44 = vsel %vm1708_vm14, %v1701_v17, 920167782  ;;  %v9453_v37 = vsub.s32 %v1629_v6, %v1632_v41 }
 0x19e   : > { %v1553_v32 = vsel %vm9372_vm12, %v9045_v10, %v1550_v30  ;;  %vm1707_vm15 = vcmp.lt.s32.totalorder %v1686_v47, 3  ;;  %vm1706_vm13 = vcmp.lt.s32.totalorder %v1686_v47, 2  ;;  %v1710_v4 = vsel %vm1708_vm14, %v1698_v36, 2102212464 }
 0x19f   : > { %8437 = vcosq.f32 %v1553_v32  ;;  %v1715_v3 = vsel %vm1707_vm15, %v1698_v36, %v1714_v44  ;;  %v1635_v35 = vsub.s32 0, %v9453_v37  ;;  %v1656_v33 = vsel %vm1571_vm9, %v1655_v29, %v1631_v5 }
 0x1a0   : > { %8439 = vsinq.f32 %v1553_v32  ;;  %v1716_v15 = vsel %vm1706_vm13, %v1713_v52, %v1715_v3  ;;  %v1717_v2 = vsel %vm1705_vm10, %v1695_v23, %v1698_v36  ;;  %v1718_v50 = vsel %vm1708_vm14, %v1704_v31, 1326507024 }
 0x1a1   : > { %v9468_v39 = vmul.u32.u64.low %v9416_v28, %v1716_v15  ;;  %v9469_v12 = vmul.u32.u64.high %v9416_v28, %v1716_v15, %v9468_v39  ;;  %v7860_v25 = vmin.u32 %v1635_v35, %v9453_v37  ;;  %v1709_v34 = vsel %vm1705_vm10, %v1689_v63, %v1692_v13 }
 0x1a2   : > { %v1711_v56 = vsel %vm1707_vm15, %v1695_v23, %v1710_v4  ;;  %v1719_v6 = vsel %vm1707_vm15, %v1701_v17, %v1718_v50  ;;  %vm9478_vm11 = vcmp.le.f32.partialorder %v1569_v40, 0.7853982  ;;  %v1780_v22 = vand.u32 2139095040, %v9277_v43 }
 0x1a3   : > { %v1720_v51 = vsel %vm1706_vm13, %v1717_v2, %v1719_v6  ;;  %v635_v57 = vmul.f32 %v7776_v19, %v8798_v11  ;;  %v9487_v16 = vadd.f32 %v9265_v24, %v9250_v61  ;;  %v1637_v42 = vclz %v7860_v25 }
 0x1a4   : > { %v1658_v18 = vsel %vm9478_vm11, 0, %v1656_v33  ;;  %v1712_v13 = vsel %vm1706_vm13, %v1709_v34, %v1711_v56  ;;  %v9493_v40 = vmul.u32.u64.low %v9416_v28, %v1720_v51  ;;  %v9494_v53 = vmul.u32.u64.high %v9416_v28, %v1720_v51, %v9493_v40 }
 0x1a5   : > { %v1781_v45 = vshrl.u32 %v1780_v22, 23  ;;  %vm1557_vm12 = vweird.f32 %v9045_v10  ;;  %vm1560_vm0 = vcmp.lt.s32.totalorder %v9441_v38, 2  ;;  %v7861_v23 = vadd.s32 4294967294, %v1637_v42 }
 0x1a6   : > { %v1784_v61 = vand.u32 8388607, %v1777_v21  ;;  %vm1561_vm2 = vcmp.eq.s32.totalorder %v9441_v38, 0  ;;  %vm1564_vm4 = vcmp.eq.s32.totalorder %v9441_v38, 2  ;;  %v1731_v24 = vadd.s32 1, %v9469_v12 }
 0x1a7   : > { %v7867_v47 = vadd.s32 4294967169, %v1781_v45  ;;  %v1625_v27 = vadd.s32 %v9399_v20, %v9410_v48  ;;  %vm7862_vm3 = vcmp.lt.s32.totalorder %v7861_v23, 0  ;;  %v1662_v49 = vadd.s32 3, %v1658_v18 }
 0x1a8   : > { %v1728_v5 = vmul.u32 %v9416_v28, %v1712_v13  ;;  %v1640_v55 = vsel %vm7862_vm3, 0, %v7861_v23  ;;  %vm1730_vm5 = vc.u32 %v9494_v53, %v9468_v39  ;;  %v1884_v17 = vand.u32 2139095040, %v9487_v16  ;;  %v9514_v28 = vld [vmem:[%s15038_s3 + $0x5] ss:$0 sm:$0xff] }
 0x1a9   : > { %v8438_v59 = vpop.eup %8437  ;;  %v1787_v36 = vadd.s32 1, %v7867_v47  ;;  %v1641_v29 = vsub.s32 32, %v1640_v55  ;;  %v1645_v30 = vsub.s32 4294967266, %v1640_v55  ;;  %v1785_v31 = vor.u32 8388608, %v1784_v61 }
 0x1aa   : > { %v8440_v8 = vpop.eup %8439  ;;  %v1565_v41 = vxor.u32 2147483648, %v8438_v59  ;;  %v1642_v20 = vshll.u32 %v9453_v37, %v1640_v55  ;;  %v1732_v48 = vsel %vm1730_vm5, %v1731_v24, %v9469_v12  ;;  %v1881_v37 = vand.u32 2147483647, %v9487_v16 }
 0x1ab   : > { %v1562_v52 = vxor.u32 2147483648, %v8440_v8  ;;  %vm1788_vm6 = vcmp.gt.s32.totalorder %v1787_v36, 0  ;;  %v1643_v32 = vshrl.u32 %v1625_v27, %v1641_v29  ;;  %v1646_v63 = vadd.s32 127, %v1645_v30 }
 0x1ac   : > { %v1566_v44 = vsel %vm1564_vm4, %v1565_v41, %v8440_v8  ;;  %v1733_v4 = vadd.s32 %v1732_v48, %v1728_v5  ;;  %v1789_v35 = vsel %vm1788_vm6, %v1787_v36, 0  ;;  %v1885_v33 = vshrl.u32 %v1884_v17, 23 }
 0x1ad   : > { %v1563_v3 = vsel %vm1561_vm2, %v8438_v59, %v1562_v52  ;;  %v1644_v2 = vor.u32 %v1643_v32, %v1642_v20  ;;  %v1647_v50 = vshll.u32 %v1646_v63, 23  ;;  %v9524_v25 = vmul.f32 %v7776_v19, %v8800_v14 }
 0x1ae   : > { %v1567_v15 = vsel %vm1560_vm0, %v1563_v3, %v1566_v44  ;;  %v1734_v12 = vadd.s32 536870912, %v1733_v4  ;;  %v9527_v34 = vadd.f32 %v9514_v28, %v635_v57  ;;  %v1791_v6 = vand.u32 31, %v1789_v35 }
 0x1af   : > { %v1568_v56 = vsel %vm1557_vm12, nan, %v1567_v15  ;;  %v1648_v51 = vor.u32 4788187, %v1647_v50  ;;  %v9531_v22 = vand.u32 3, %v1662_v49  ;;  %vm1675_vm7 = vcmp.lt.s32.totalorder %v9258_v1, 0 }
 0x1b0   : > { %v1735_v38 = vshrl.u32 %v1734_v12, 30  ;;  %7606 = vst.msk [vmem:[%s9134_s13 + $0x28] sm:$0xff] %vm266_vm1, %v1568_v56  ;;  %v1792_v42 = vsub.s32 32, %v1791_v6  ;;  %v9536_v18 = vshll.u32 %v1785_v31, 8  ;;  %v7871_v19 = vadd.s32 4294967169, %v1885_v33 }
 0x1b1   : > { %v9540_v57 = vand.u32 8388607, %v1881_v37  ;;  %v1649_v13 = vand.u32 2147483647, %v1648_v51  ;;  %v1651_v10 = vcvt.s32.f32 %v1644_v2  ;;  %v9544_v40 = vadd.s32 %v9468_v39, %v9494_v53 }
 0x1b2   : > { %v1736_v45 = vshll.u32 %v1735_v38, 30  ;;  %v1790_v23 = vshrl.u32 %v1789_v35, 5  ;;  %v1795_v61 = vshrl.u32 %v8716_v58, %v1792_v42  ;;  %v1798_v24 = vshrl.u32 %v8717_v60, %v1792_v42 }
 0x1b3   : > { %v1801_v47 = vshrl.u32 %v8718_v62, %v1792_v42  ;;  %v1652_v27 = vmul.f32 %v1651_v10, %v1649_v13  ;;  %v1794_v5 = vshll.u32 %v8715_v54, %v1791_v6  ;;  %v1804_v59 = vshrl.u32 %v8719_v0, %v1792_v42 }
 0x1b4   : > { %v9549_v49 = vsub.s32 %v1733_v4, %v1736_v45  ;;  %vm9555_vm8 = vcmp.le.f32.partialorder %v1673_v46, 0.7853982  ;;  %v1759_v53 = vsub.s32 4, %v1735_v38  ;;  %v1797_v55 = vshll.u32 %v8716_v58, %v1791_v6 }
 0x1b5   : > { %v1800_v36 = vshll.u32 %v8717_v60, %v1791_v6  ;;  %v1891_v17 = vadd.s32 1, %v7871_v19  ;;  %v1653_v8 = vxor.u32 2147483648, %v1652_v27  ;;  %v1796_v29 = vor.u32 %v1795_v61, %v1794_v5 }
 0x1b6   : > { %v1739_v41 = vsub.s32 0, %v9549_v49  ;;  %v1803_v30 = vshll.u32 %v8718_v62, %v1791_v6  ;;  %v1799_v31 = vor.u32 %v1798_v24, %v1797_v55  ;;  %v1806_v20 = vshll.u32 %v8719_v0, %v1791_v6 }
 0x1b7   : > { %v1802_v52 = vor.u32 %v1801_v47, %v1800_v36  ;;  %v1807_v46 = vshrl.u32 %v8720_v7, %v1792_v42  ;;  %v1654_v48 = vsel %vm1571_vm9, %v1653_v8, %v1652_v27  ;;  %v1793_v32 = vshrl.u32 %v8715_v54, %v1792_v42 }
 0x1b8   : > { %v7864_v44 = vmin.u32 %v1739_v41, %v9549_v49  ;;  %v1805_v63 = vor.u32 %v1804_v59, %v1803_v30  ;;  %v1657_v4 = vsel %vm9478_vm11, %v9255_v9, %v1654_v48  ;;  %v1760_v3 = vsel %vm1675_vm7, %v1759_v53, %v1735_v38 }
 0x1b9   : > { %v1808_v35 = vor.u32 %v1807_v46, %v1806_v20  ;;  %vm1809_vm10 = vcmp.lt.s32.totalorder %v1790_v23, 1  ;;  %8441 = vcosq.f32 %v1657_v4  ;;  %vm1810_vm14 = vcmp.lt.s32.totalorder %v1790_v23, 2 }
 0x1ba   : > { %v1741_v33 = vclz %v7864_v44  ;;  %vm1812_vm15 = vcmp.lt.s32.totalorder %v1790_v23, 4  ;;  %8443 = vsinq.f32 %v1657_v4  ;;  %vm1811_vm9 = vcmp.lt.s32.totalorder %v1790_v23, 3 }
 0x1bb   : > { %v1814_v15 = vsel %vm1812_vm15, %v1802_v52, 2102212464  ;;  %v1817_v2 = vsel %vm1809_vm10, %v1796_v29, %v1799_v31  ;;  %v1813_v12 = vsel %vm1809_vm10, %v1793_v32, %v1796_v29  ;;  %v1818_v56 = vsel %vm1812_vm15, %v1805_v63, 920167782 }
 0x1bc   : > { %v7865_v50 = vadd.s32 4294967294, %v1741_v33  ;;  %v1821_v6 = vsel %vm1809_vm10, %v1799_v31, %v1802_v52  ;;  %v1815_v51 = vsel %vm1811_vm9, %v1799_v31, %v1814_v15  ;;  %v1819_v26 = vsel %vm1811_vm9, %v1802_v52, %v1818_v56 }
 0x1bd   : > { %v1822_v42 = vsel %vm1812_vm15, %v1808_v35, 1326507024  ;;  %vm1892_vm13 = vcmp.gt.s32.totalorder %v1891_v17, 0  ;;  %v1762_v38 = vsel %vm9555_vm8, 0, %v1760_v3  ;;  %v1820_v19 = vsel %vm1810_vm14, %v1817_v2, %v1819_v26 }
 0x1be   : > { %vm7866_vm11 = vcmp.lt.s32.totalorder %v7865_v50, 0  ;;  %v1823_v13 = vsel %vm1811_vm9, %v1805_v63, %v1822_v42  ;;  %vm1665_vm12 = vcmp.eq.s32.totalorder %v9531_v22, 0  ;;  %vm1664_vm0 = vcmp.lt.s32.totalorder %v9531_v22, 2 }
 0x1bf   : > { %v1744_v10 = vsel %vm7866_vm11, 0, %v7865_v50  ;;  %v1824_v45 = vsel %vm1810_vm14, %v1821_v6, %v1823_v13  ;;  %v9580_v61 = vmul.u32.u64.low %v9536_v18, %v1820_v19  ;;  %v9581_v24 = vmul.u32.u64.high %v9536_v18, %v1820_v19, %v9580_v61 }
 0x1c0   : > { %v1745_v47 = vsub.s32 32, %v1744_v10  ;;  %v1749_v27 = vsub.s32 4294967266, %v1744_v10  ;;  %v1816_v5 = vsel %vm1810_vm14, %v1813_v12, %v1815_v51  ;;  %v1893_v59 = vsel %vm1892_vm13, %v1891_v17, 0 }
 0x1c1   : > { %vm1661_vm2 = vweird.f32 %v9255_v9  ;;  %vm1668_vm4 = vcmp.eq.s32.totalorder %v9531_v22, 2  ;;  %v9589_v53 = vmul.u32.u64.low %v9536_v18, %v1824_v45  ;;  %v9590_v55 = vmul.u32.u64.high %v9536_v18, %v1824_v45, %v9589_v53 }
 0x1c2   : > { %v1895_v36 = vand.u32 31, %v1893_v59  ;;  %v1746_v8 = vshll.u32 %v9549_v49, %v1744_v10  ;;  %v1747_v41 = vshrl.u32 %v9544_v40, %v1745_v47  ;;  %v1750_v29 = vadd.s32 127, %v1749_v27 }
 0x1c3   : > { %v1889_v30 = vor.u32 8388608, %v9540_v57  ;;  %v1766_v31 = vadd.s32 3, %v1762_v38  ;;  %v1832_v23 = vmul.u32 %v9536_v18, %v1816_v5  ;;  %v1835_v17 = vadd.s32 1, %v9581_v24  ;;  %v8442_v20 = vpop.eup %8441 }
 0x1c4   : > { %v1896_v52 = vsub.s32 32, %v1895_v36  ;;  %v1748_v46 = vor.u32 %v1747_v41, %v1746_v8  ;;  %v1751_v48 = vshll.u32 %v1750_v29, 23  ;;  %v9597_v44 = vshrl.u32 %v1893_v59, 5  ;;  %v8444_v63 = vpop.eup %8443 }
 0x1c5   : > { %v1898_v32 = vshll.u32 %v8715_v54, %v1895_v36  ;;  %v1669_v49 = vxor.u32 2147483648, %v8442_v20  ;;  %vm1834_vm3 = vc.u32 %v9590_v55, %v9580_v61  ;;  %v1901_v57 = vshll.u32 %v8716_v58, %v1895_v36 }
 0x1c6   : > { %v1907_v40 = vshll.u32 %v8718_v62, %v1895_v36  ;;  %v1666_v18 = vxor.u32 2147483648, %v8444_v63  ;;  %v1752_v4 = vor.u32 4788187, %v1751_v48  ;;  %v1755_v3 = vcvt.s32.f32 %v1748_v46 }
 0x1c7   : > { %v1836_v35 = vsel %vm1834_vm3, %v1835_v17, %v9581_v24  ;;  %v1670_v33 = vsel %vm1668_vm4, %v1669_v49, %v8444_v63  ;;  %v1899_v2 = vshrl.u32 %v8716_v58, %v1896_v52  ;;  %v1902_v50 = vshrl.u32 %v8717_v60, %v1896_v52  ;;  %v7777_v49 = vld [vmem:[%s15037_s2 + $0x6] ss:$0 sm:$0xff] }
 0x1c8   : > { %v1837_v15 = vadd.s32 %v1836_v35, %v1832_v23  ;;  %v1667_v12 = vsel %vm1665_vm12, %v8442_v20, %v1666_v18  ;;  %v1753_v56 = vand.u32 2147483647, %v1752_v4  ;;  %vm1779_vm5 = vcmp.lt.s32.totalorder %v9277_v43, 0 }
 0x1c9   : > { %v1905_v6 = vshrl.u32 %v8718_v62, %v1896_v52  ;;  %v1908_v51 = vshrl.u32 %v8719_v0, %v1896_v52  ;;  %v1671_v26 = vsel %vm1664_vm0, %v1667_v12, %v1670_v33  ;;  %v1900_v38 = vor.u32 %v1899_v2, %v1898_v32 }
 0x1ca   : > { %v1838_v42 = vadd.s32 536870912, %v1837_v15  ;;  %v1904_v19 = vshll.u32 %v8717_v60, %v1895_v36  ;;  %v1672_v13 = vsel %vm1661_vm2, nan, %v1671_v26  ;;  %v1756_v10 = vmul.f32 %v1755_v3, %v1753_v56 }
 0x1cb   : > { %v1903_v45 = vor.u32 %v1902_v50, %v1901_v57  ;;  %v1909_v24 = vor.u32 %v1908_v51, %v1907_v40  ;;  %v9619_v47 = vand.u32 3, %v1766_v31  ;;  %v1911_v5 = vshrl.u32 %v8720_v7, %v1896_v52  ;;  %7607 = vst.msk [vmem:[%s9134_s13 + $0x30] sm:$0xff] %vm266_vm1, %v1672_v13 }
 0x1cc   : > { %v1839_v27 = vshrl.u32 %v1838_v42, 30  ;;  %v9622_v59 = vshll.u32 %v1889_v30, 8  ;;  %v1757_v22 = vxor.u32 2147483648, %v1756_v10  ;;  %v1906_v53 = vor.u32 %v1905_v6, %v1904_v19 }
 0x1cd   : > { %v1910_v8 = vshll.u32 %v8719_v0, %v1895_v36  ;;  %v1985_v41 = vand.u32 2147483647, %v9527_v34  ;;  %vm1913_vm6 = vcmp.lt.s32.totalorder %v9597_v44, 1  ;;  %vm1916_vm10 = vcmp.lt.s32.totalorder %v9597_v44, 4 }
 0x1ce   : > { %v1840_v9 = vshll.u32 %v1839_v27, 30  ;;  %v1863_v29 = vsub.s32 4, %v1839_v27  ;;  %v1758_v31 = vsel %vm1675_vm7, %v1757_v22, %v1756_v10  ;;  %v1921_v30 = vsel %vm1913_vm6, %v1900_v38, %v1903_v45 }
 0x1cf   : > { %v1912_v23 = vor.u32 %v1911_v5, %v1910_v8  ;;  %v1922_v17 = vsel %vm1916_vm10, %v1909_v24, 920167782  ;;  %v1761_v36 = vsel %vm9555_vm8, %v9258_v1, %v1758_v31  ;;  %v1897_v46 = vshrl.u32 %v8715_v54, %v1896_v52 }
 0x1d0   : > { %v9639_v20 = vsub.s32 %v1837_v15, %v1840_v9  ;;  %vm1915_vm14 = vcmp.lt.s32.totalorder %v9597_v44, 3  ;;  %8445 = vcosq.f32 %v1761_v36  ;;  %vm1914_vm7 = vcmp.lt.s32.totalorder %v9597_v44, 2 }
 0x1d1   : > { %v1918_v48 = vsel %vm1916_vm10, %v1906_v53, 2102212464  ;;  %v1923_v32 = vsel %vm1915_vm14, %v1906_v53, %v1922_v17  ;;  %8447 = vsinq.f32 %v1761_v36  ;;  %v1864_v39 = vsel %vm1779_vm5, %v1863_v29, %v1839_v27 }
 0x1d2   : > { %v1843_v63 = vsub.s32 0, %v9639_v20  ;;  %v1924_v52 = vsel %vm1914_vm7, %v1921_v30, %v1923_v32  ;;  %v1925_v57 = vsel %vm1913_vm6, %v1903_v45, %v1906_v53  ;;  %v1926_v40 = vsel %vm1916_vm10, %v1912_v23, 1326507024 }
 0x1d3   : > { %v9661_v18 = vmul.u32.u64.low %v9622_v59, %v1924_v52  ;;  %v9662_v4 = vmul.u32.u64.high %v9622_v59, %v1924_v52, %v9661_v18  ;;  %v1917_v35 = vsel %vm1913_vm6, %v1897_v46, %v1900_v38  ;;  %v1919_v33 = vsel %vm1915_vm14, %v1903_v45, %v1918_v48 }
 0x1d4   : > { %v7868_v3 = vmin.u32 %v1843_v63, %v9639_v20  ;;  %v1927_v15 = vsel %vm1915_vm14, %v1909_v24, %v1926_v40  ;;  %vm9674_vm8 = vcmp.le.f32.partialorder %v1777_v21, 0.7853982  ;;  %v1988_v12 = vand.u32 2139095040, %v9527_v34 }
 0x1d5   : > { %v1928_v50 = vsel %vm1914_vm7, %v1925_v57, %v1927_v15  ;;  %v637_v56 = vmul.f32 %v7777_v49, %v8798_v11  ;;  %v9684_v6 = vadd.f32 %v9514_v28, %v9524_v25  ;;  %v1866_v26 = vsel %vm9674_vm8, 0, %v1864_v39 }
 0x1d6   : > { %v1845_v51 = vclz %v7868_v3  ;;  %v1920_v21 = vsel %vm1914_vm7, %v1917_v35, %v1919_v33  ;;  %v9691_v42 = vmul.u32.u64.low %v9622_v59, %v1928_v50  ;;  %v9692_v38 = vmul.u32.u64.high %v9622_v59, %v1928_v50, %v9691_v42 }
 0x1d7   : > { %v1989_v19 = vshrl.u32 %v1988_v12, 23  ;;  %vm1765_vm15 = vweird.f32 %v9258_v1  ;;  %vm1768_vm9 = vcmp.lt.s32.totalorder %v9619_v47, 2  ;;  %v1992_v28 = vand.u32 8388607, %v1985_v41 }
 0x1d8   : > { %v7869_v13 = vadd.s32 4294967294, %v1845_v51  ;;  %vm1769_vm13 = vcmp.eq.s32.totalorder %v9619_v47, 0  ;;  %vm1772_vm11 = vcmp.eq.s32.totalorder %v9619_v47, 2  ;;  %v1939_v25 = vadd.s32 1, %v9662_v4 }
 0x1d9   : > { %v7875_v44 = vadd.s32 4294967169, %v1989_v19  ;;  %v1833_v10 = vadd.s32 %v9580_v61, %v9590_v55  ;;  %v1870_v45 = vadd.s32 3, %v1866_v26  ;;  %v1936_v24 = vmul.u32 %v9622_v59, %v1920_v21  ;;  %v9712_v59 = vld [vmem:[%s15038_s3 + $0x6] ss:$0 sm:$0xff] }
 0x1da   : > { %vm7870_vm12 = vcmp.lt.s32.totalorder %v7869_v13, 0  ;;  %v8446_v27 = vpop.eup %8445  ;;  %vm1938_vm0 = vc.u32 %v9692_v38, %v9661_v18  ;;  %v2092_v53 = vand.u32 2139095040, %v9684_v6  ;;  %v1993_v23 = vor.u32 8388608, %v1992_v28 }
 0x1db   : > { %v1848_v5 = vsel %vm7870_vm12, 0, %v7869_v13  ;;  %v1995_v22 = vadd.s32 1, %v7875_v44  ;;  %v8448_v8 = vpop.eup %8447  ;;  %v1773_v9 = vxor.u32 2147483648, %v8446_v27  ;;  %v1940_v55 = vsel %vm1938_vm0, %v1939_v25, %v9662_v4 }
 0x1dc   : > { %v1849_v29 = vsub.s32 32, %v1848_v5  ;;  %v1853_v31 = vsub.s32 4294967266, %v1848_v5  ;;  %v1770_v30 = vxor.u32 2147483648, %v8448_v8  ;;  %v1850_v61 = vshll.u32 %v9639_v20, %v1848_v5 }
 0x1dd   : > { %vm1996_vm2 = vcmp.gt.s32.totalorder %v1995_v22, 0  ;;  %v1774_v17 = vsel %vm1772_vm11, %v1773_v9, %v8448_v8  ;;  %v1941_v48 = vadd.s32 %v1940_v55, %v1936_v24  ;;  %v2089_v20 = vand.u32 2147483647, %v9684_v6 }
 0x1de   : > { %v1851_v36 = vshrl.u32 %v1833_v10, %v1849_v29  ;;  %v1854_v46 = vadd.s32 127, %v1853_v31  ;;  %v1771_v32 = vsel %vm1769_vm13, %v8446_v27, %v1770_v30  ;;  %v1997_v63 = vsel %vm1996_vm2, %v1995_v22, 0 }
 0x1df   : > { %v2093_v39 = vshrl.u32 %v2092_v53, 23  ;;  %v1775_v52 = vsel %vm1768_vm9, %v1771_v32, %v1774_v17  ;;  %v1942_v4 = vadd.s32 536870912, %v1941_v48  ;;  %v9722_v3 = vmul.f32 %v7777_v49, %v8800_v14 }
 0x1e0   : > { %v1852_v57 = vor.u32 %v1851_v36, %v1850_v61  ;;  %v1855_v40 = vshll.u32 %v1854_v46, 23  ;;  %v9725_v35 = vadd.f32 %v9712_v59, %v637_v56  ;;  %v1776_v33 = vsel %vm1765_vm15, nan, %v1775_v52 }
 0x1e1   : > { %v1999_v15 = vand.u32 31, %v1997_v63  ;;  %v9729_v12 = vand.u32 3, %v1870_v45  ;;  %vm1883_vm4 = vcmp.lt.s32.totalorder %v9487_v16, 0  ;;  %v1943_v47 = vshrl.u32 %v1942_v4, 30  ;;  %7608 = vst.msk [vmem:[%s9134_s13 + $0x38] sm:$0xff] %vm266_vm1, %v1776_v33 }
 0x1e2   : > { %v1856_v50 = vor.u32 4788187, %v1855_v40  ;;  %v9734_v26 = vshll.u32 %v1993_v23, 8  ;;  %v7879_v49 = vadd.s32 4294967169, %v2093_v39  ;;  %v9738_v56 = vand.u32 8388607, %v2089_v20 }
 0x1e3   : > { %v2000_v51 = vsub.s32 32, %v1999_v15  ;;  %v1859_v1 = vcvt.s32.f32 %v1852_v57  ;;  %v9742_v42 = vadd.s32 %v9661_v18, %v9692_v38  ;;  %v1944_v19 = vshll.u32 %v1943_v47, 30 }
 0x1e4   : > { %v1857_v21 = vand.u32 2147483647, %v1856_v50  ;;  %v1998_v13 = vshrl.u32 %v1997_v63, 5  ;;  %v2002_v24 = vshll.u32 %v8715_v54, %v1999_v15  ;;  %vm9753_vm3 = vcmp.le.f32.partialorder %v1881_v37, 0.7853982 }
 0x1e5   : > { %v2003_v28 = vshrl.u32 %v8716_v58, %v2000_v51  ;;  %v2006_v25 = vshrl.u32 %v8717_v60, %v2000_v51  ;;  %v2009_v44 = vshrl.u32 %v8718_v62, %v2000_v51  ;;  %v9747_v45 = vsub.s32 %v1941_v48, %v1944_v19 }
 0x1e6   : > { %v1860_v10 = vmul.f32 %v1859_v1, %v1857_v21  ;;  %v2012_v27 = vshrl.u32 %v8719_v0, %v2000_v51  ;;  %v1967_v38 = vsub.s32 4, %v1943_v47  ;;  %v2005_v5 = vshll.u32 %v8716_v58, %v1999_v15 }
 0x1e7   : > { %v2008_v22 = vshll.u32 %v8717_v60, %v1999_v15  ;;  %v2099_v53 = vadd.s32 1, %v7879_v49  ;;  %v1947_v9 = vsub.s32 0, %v9747_v45  ;;  %v2004_v29 = vor.u32 %v2003_v28, %v2002_v24 }
 0x1e8   : > { %v1861_v8 = vxor.u32 2147483648, %v1860_v10  ;;  %v2011_v31 = vshll.u32 %v8718_v62, %v1999_v15  ;;  %v2007_v23 = vor.u32 %v2006_v25, %v2005_v5  ;;  %v2014_v61 = vshll.u32 %v8719_v0, %v1999_v15 }
 0x1e9   : > { %v2010_v30 = vor.u32 %v2009_v44, %v2008_v22  ;;  %v2015_v37 = vshrl.u32 %v8720_v7, %v2000_v51  ;;  %v7872_v17 = vmin.u32 %v1947_v9, %v9747_v45  ;;  %v2001_v36 = vshrl.u32 %v8715_v54, %v2000_v51 }
 0x1ea   : > { %v1862_v55 = vsel %vm1779_vm5, %v1861_v8, %v1860_v10  ;;  %v2013_v46 = vor.u32 %v2012_v27, %v2011_v31  ;;  %v1968_v32 = vsel %vm1883_vm4, %v1967_v38, %v1943_v47  ;;  %vm2017_vm6 = vcmp.lt.s32.totalorder %v1998_v13, 1 }
 0x1eb   : > { %v1865_v48 = vsel %vm9674_vm8, %v9277_v43, %v1862_v55  ;;  %v2016_v63 = vor.u32 %v2015_v37, %v2014_v61  ;;  %v1949_v39 = vclz %v7872_v17  ;;  %vm2018_vm10 = vcmp.lt.s32.totalorder %v1998_v13, 2 }
 0x1ec   : > { %8449 = vcosq.f32 %v1865_v48  ;;  %vm2020_vm14 = vcmp.lt.s32.totalorder %v1998_v13, 4  ;;  %vm2019_vm5 = vcmp.lt.s32.totalorder %v1998_v13, 3  ;;  %v2025_v57 = vsel %vm2017_vm6, %v2004_v29, %v2007_v23 }
 0x1ed   : > { %8451 = vsinq.f32 %v1865_v48  ;;  %v2022_v52 = vsel %vm2020_vm14, %v2010_v30, 2102212464  ;;  %v7873_v40 = vadd.s32 4294967294, %v1949_v39  ;;  %v2021_v4 = vsel %vm2017_vm6, %v2001_v36, %v2004_v29 }
 0x1ee   : > { %v2026_v33 = vsel %vm2020_vm14, %v2013_v46, 920167782  ;;  %v2029_v15 = vsel %vm2017_vm6, %v2007_v23, %v2010_v30  ;;  %v2023_v50 = vsel %vm2019_vm5, %v2007_v23, %v2022_v52  ;;  %v2030_v51 = vsel %vm2020_vm14, %v2016_v63, 1326507024 }
 0x1ef   : > { %v2027_v2 = vsel %vm2019_vm5, %v2010_v30, %v2026_v33  ;;  %vm2100_vm7 = vcmp.gt.s32.totalorder %v2099_v53, 0  ;;  %vm7874_vm8 = vcmp.lt.s32.totalorder %v7873_v40, 0  ;;  %v1970_v47 = vsel %vm9753_vm3, 0, %v1968_v32 }
 0x1f0   : > { %v2028_v49 = vsel %vm2018_vm10, %v2025_v57, %v2027_v2  ;;  %v2031_v21 = vsel %vm2019_vm5, %v2013_v46, %v2030_v51  ;;  %vm1873_vm15 = vcmp.eq.s32.totalorder %v9729_v12, 0  ;;  %v1952_v1 = vsel %vm7874_vm8, 0, %v7873_v40 }
 0x1f1   : > { %v2032_v19 = vsel %vm2018_vm10, %v2029_v15, %v2031_v21  ;;  %v9778_v28 = vmul.u32.u64.low %v9734_v26, %v2028_v49  ;;  %v9779_v25 = vmul.u32.u64.high %v9734_v26, %v2028_v49, %v9778_v28  ;;  %vm1872_vm9 = vcmp.lt.s32.totalorder %v9729_v12, 2 }
 0x1f2   : > { %v1953_v44 = vsub.s32 32, %v1952_v1  ;;  %v1957_v10 = vsub.s32 4294967266, %v1952_v1  ;;  %v2024_v24 = vsel %vm2018_vm10, %v2021_v4, %v2023_v50  ;;  %v2101_v27 = vsel %vm2100_vm7, %v2099_v53, 0 }
 0x1f3   : > { %vm1869_vm13 = vweird.f32 %v9277_v43  ;;  %vm1876_vm11 = vcmp.eq.s32.totalorder %v9729_v12, 2  ;;  %v9787_v38 = vmul.u32.u64.low %v9734_v26, %v2032_v19  ;;  %v9788_v5 = vmul.u32.u64.high %v9734_v26, %v2032_v19, %v9787_v38 }
 0x1f4   : > { %v2103_v22 = vand.u32 31, %v2101_v27  ;;  %v1954_v8 = vshll.u32 %v9747_v45, %v1952_v1  ;;  %v1955_v9 = vshrl.u32 %v9742_v42, %v1953_v44  ;;  %v1958_v29 = vadd.s32 127, %v1957_v10 }
 0x1f5   : > { %v2097_v31 = vor.u32 8388608, %v9738_v56  ;;  %v1974_v23 = vadd.s32 3, %v1970_v47  ;;  %v2040_v13 = vmul.u32 %v9734_v26, %v2024_v24  ;;  %v2043_v53 = vadd.s32 1, %v9779_v25 }
 0x1f6   : > { %v2104_v30 = vsub.s32 32, %v2103_v22  ;;  %v8450_v61 = vpop.eup %8449  ;;  %v1956_v37 = vor.u32 %v1955_v9, %v1954_v8  ;;  %v1959_v55 = vshll.u32 %v1958_v29, 23  ;;  %v9795_v17 = vshrl.u32 %v2101_v27, 5 }
 0x1f7   : > { %v2106_v36 = vshll.u32 %v8715_v54, %v2103_v22  ;;  %v8452_v46 = vpop.eup %8451  ;;  %v1877_v45 = vxor.u32 2147483648, %v8450_v61  ;;  %vm2042_vm12 = vc.u32 %v9788_v5, %v9778_v28  ;;  %v2109_v56 = vshll.u32 %v8716_v58, %v2103_v22 }
 0x1f8   : > { %v2115_v42 = vshll.u32 %v8718_v62, %v2103_v22  ;;  %v1874_v26 = vxor.u32 2147483648, %v8452_v46  ;;  %v1960_v48 = vor.u32 4788187, %v1959_v55  ;;  %v1963_v32 = vcvt.s32.f32 %v1956_v37 }
 0x1f9   : > { %v2044_v63 = vsel %vm2042_vm12, %v2043_v53, %v9779_v25  ;;  %v1878_v39 = vsel %vm1876_vm11, %v1877_v45, %v8452_v46  ;;  %v2107_v57 = vshrl.u32 %v8716_v58, %v2104_v30  ;;  %v2110_v40 = vshrl.u32 %v8717_v60, %v2104_v30  ;;  %v7778_v45 = vld [vmem:[%s15037_s2 + $0x7] ss:$0 sm:$0xff] }
 0x1fa   : > { %v2045_v52 = vadd.s32 %v2044_v63, %v2040_v13  ;;  %v1875_v4 = vsel %vm1873_vm15, %v8450_v61, %v1874_v26  ;;  %v1961_v33 = vand.u32 2147483647, %v1960_v48  ;;  %vm1987_vm0 = vcmp.lt.s32.totalorder %v9527_v34, 0 }
 0x1fb   : > { %v2113_v15 = vshrl.u32 %v8718_v62, %v2104_v30  ;;  %v2116_v50 = vshrl.u32 %v8719_v0, %v2104_v30  ;;  %v1879_v2 = vsel %vm1872_vm9, %v1875_v4, %v1878_v39  ;;  %v2108_v47 = vor.u32 %v2107_v57, %v2106_v36 }
 0x1fc   : > { %v2046_v51 = vadd.s32 536870912, %v2045_v52  ;;  %v2112_v49 = vshll.u32 %v8717_v60, %v2103_v22  ;;  %v1880_v21 = vsel %vm1869_vm13, nan, %v1879_v2  ;;  %v1964_v1 = vmul.f32 %v1963_v32, %v1961_v33 }
 0x1fd   : > { %v2111_v19 = vor.u32 %v2110_v40, %v2109_v56  ;;  %v2117_v25 = vor.u32 %v2116_v50, %v2115_v42  ;;  %v9817_v44 = vand.u32 3, %v1974_v23  ;;  %v2119_v24 = vshrl.u32 %v8720_v7, %v2104_v30  ;;  %7609 = vst.msk [vmem:[%s9134_s13 + $0x40] sm:$0xff] %vm266_vm1, %v1880_v21 }
 0x1fe   : > { %v2047_v10 = vshrl.u32 %v2046_v51, 30  ;;  %v9820_v27 = vshll.u32 %v2097_v31, 8  ;;  %v1965_v12 = vxor.u32 2147483648, %v1964_v1  ;;  %v2114_v38 = vor.u32 %v2113_v15, %v2112_v49 }
 0x1ff   : > { %v2118_v8 = vshll.u32 %v8719_v0, %v2103_v22  ;;  %v2193_v9 = vand.u32 2147483647, %v9725_v35  ;;  %vm2121_vm2 = vcmp.lt.s32.totalorder %v9795_v17, 1  ;;  %vm2124_vm6 = vcmp.lt.s32.totalorder %v9795_v17, 4 }
 0x200   : > { %v2048_v43 = vshll.u32 %v2047_v10, 30  ;;  %v2071_v29 = vsub.s32 4, %v2047_v10  ;;  %v1966_v23 = vsel %vm1883_vm4, %v1965_v12, %v1964_v1  ;;  %v2129_v31 = vsel %vm2121_vm2, %v2108_v47, %v2111_v19 }
 0x201   : > { %v2120_v13 = vor.u32 %v2119_v24, %v2118_v8  ;;  %v2130_v53 = vsel %vm2124_vm6, %v2117_v25, 920167782  ;;  %v1969_v22 = vsel %vm9753_vm3, %v9487_v16, %v1966_v23  ;;  %v2105_v37 = vshrl.u32 %v8715_v54, %v2104_v30 }
 0x202   : > { %v9837_v61 = vsub.s32 %v2045_v52, %v2048_v43  ;;  %vm2123_vm10 = vcmp.lt.s32.totalorder %v9795_v17, 3  ;;  %8453 = vcosq.f32 %v1969_v22  ;;  %vm2122_vm4 = vcmp.lt.s32.totalorder %v9795_v17, 2 }
 0x203   : > { %v2126_v55 = vsel %vm2124_vm6, %v2114_v38, 2102212464  ;;  %v2131_v36 = vsel %vm2123_vm10, %v2114_v38, %v2130_v53  ;;  %8455 = vsinq.f32 %v1969_v22  ;;  %v2072_v18 = vsel %vm1987_vm0, %v2071_v29, %v2047_v10 }
 0x204   : > { %v2051_v46 = vsub.s32 0, %v9837_v61  ;;  %v2132_v30 = vsel %vm2122_vm4, %v2129_v31, %v2131_v36  ;;  %v2133_v56 = vsel %vm2121_vm2, %v2111_v19, %v2114_v38  ;;  %v2134_v42 = vsel %vm2124_vm6, %v2120_v13, 1326507024 }
 0x205   : > { %v9859_v26 = vmul.u32.u64.low %v9820_v27, %v2132_v30  ;;  %v9860_v48 = vmul.u32.u64.high %v9820_v27, %v2132_v30, %v9859_v26  ;;  %v2125_v63 = vsel %vm2121_vm2, %v2105_v37, %v2108_v47  ;;  %v2127_v39 = vsel %vm2123_vm10, %v2111_v19, %v2126_v55 }
 0x206   : > { %v7876_v32 = vmin.u32 %v2051_v46, %v9837_v61  ;;  %v2135_v52 = vsel %vm2123_vm10, %v2117_v25, %v2134_v42  ;;  %vm9872_vm3 = vcmp.le.f32.partialorder %v1985_v41, 0.7853982  ;;  %v2196_v4 = vand.u32 2139095040, %v9725_v35 }
 0x207   : > { %v2136_v40 = vsel %vm2122_vm4, %v2133_v56, %v2135_v52  ;;  %v639_v33 = vmul.f32 %v7778_v45, %v8798_v11  ;;  %v9882_v15 = vadd.f32 %v9712_v59, %v9722_v3  ;;  %v2074_v2 = vsel %vm9872_vm3, 0, %v2072_v18 }
 0x208   : > { %v2053_v50 = vclz %v7876_v32  ;;  %v2128_v41 = vsel %vm2122_vm4, %v2125_v63, %v2127_v39  ;;  %v9889_v51 = vmul.u32.u64.low %v9820_v27, %v2136_v40  ;;  %v9890_v47 = vmul.u32.u64.high %v9820_v27, %v2136_v40, %v9889_v51 }
 0x209   : > { %v2197_v49 = vshrl.u32 %v2196_v4, 23  ;;  %vm1973_vm14 = vweird.f32 %v9487_v16  ;;  %vm1976_vm5 = vcmp.lt.s32.totalorder %v9817_v44, 2  ;;  %v2200_v59 = vand.u32 8388607, %v2193_v9 }
 0x20a   : > { %v7877_v21 = vadd.s32 4294967294, %v2053_v50  ;;  %vm1977_vm7 = vcmp.eq.s32.totalorder %v9817_v44, 0  ;;  %vm1980_vm8 = vcmp.eq.s32.totalorder %v9817_v44, 2  ;;  %v2147_v3 = vadd.s32 1, %v9860_v48 }
 0x20b   : > { %v7883_v17 = vadd.s32 4294967169, %v2197_v49  ;;  %v2041_v1 = vadd.s32 %v9778_v28, %v9788_v5  ;;  %v2078_v19 = vadd.s32 3, %v2074_v2  ;;  %v2144_v25 = vmul.u32 %v9820_v27, %v2128_v41  ;;  %v9910_v27 = vld [vmem:[%s15038_s3 + $0x7] ss:$0 sm:$0xff] }
 0x20c   : > { %vm7878_vm15 = vcmp.lt.s32.totalorder %v7877_v21, 0  ;;  %v8454_v10 = vpop.eup %8453  ;;  %vm2146_vm9 = vc.u32 %v9890_v47, %v9859_v26  ;;  %v2300_v38 = vand.u32 2139095040, %v9882_v15  ;;  %v2201_v13 = vor.u32 8388608, %v2200_v59 }
 0x20d   : > { %v2056_v24 = vsel %vm7878_vm15, 0, %v7877_v21  ;;  %v2203_v12 = vadd.s32 1, %v7883_v17  ;;  %v8456_v8 = vpop.eup %8455  ;;  %v1981_v43 = vxor.u32 2147483648, %v8454_v10  ;;  %v2148_v5 = vsel %vm2146_vm9, %v2147_v3, %v9860_v48 }
 0x20e   : > { %v2057_v29 = vsub.s32 32, %v2056_v24  ;;  %v2061_v23 = vsub.s32 4294967266, %v2056_v24  ;;  %v1978_v31 = vxor.u32 2147483648, %v8456_v8  ;;  %v2058_v28 = vshll.u32 %v9837_v61, %v2056_v24 }
 0x20f   : > { %vm2204_vm13 = vcmp.gt.s32.totalorder %v2203_v12, 0  ;;  %v1982_v53 = vsel %vm1980_vm8, %v1981_v43, %v8456_v8  ;;  %v2149_v55 = vadd.s32 %v2148_v5, %v2144_v25  ;;  %v2297_v61 = vand.u32 2147483647, %v9882_v15 }
 0x210   : > { %v2059_v22 = vshrl.u32 %v2041_v1, %v2057_v29  ;;  %v2062_v37 = vadd.s32 127, %v2061_v23  ;;  %v1979_v36 = vsel %vm1977_vm7, %v8454_v10, %v1978_v31  ;;  %v2205_v46 = vsel %vm2204_vm13, %v2203_v12, 0 }
 0x211   : > { %v2301_v18 = vshrl.u32 %v2300_v38, 23  ;;  %v1983_v30 = vsel %vm1976_vm5, %v1979_v36, %v1982_v53  ;;  %v2150_v48 = vadd.s32 536870912, %v2149_v55  ;;  %v9920_v32 = vmul.f32 %v7778_v45, %v8800_v14 }
 0x212   : > { %v2060_v56 = vor.u32 %v2059_v22, %v2058_v28  ;;  %v2063_v42 = vshll.u32 %v2062_v37, 23  ;;  %v9923_v63 = vadd.f32 %v9910_v27, %v639_v33  ;;  %v1984_v39 = vsel %vm1973_vm14, nan, %v1983_v30 }
 0x213   : > { %v2207_v52 = vand.u32 31, %v2205_v46  ;;  %v9927_v4 = vand.u32 3, %v2078_v19  ;;  %vm2091_vm11 = vcmp.lt.s32.totalorder %v9684_v6, 0  ;;  %v2151_v44 = vshrl.u32 %v2150_v48, 30  ;;  %7610 = vst.msk [vmem:[%s9134_s13 + $0x48] sm:$0xff] %vm266_vm1, %v1984_v39 }
 0x214   : > { %v2064_v40 = vor.u32 4788187, %v2063_v42  ;;  %v9932_v2 = vshll.u32 %v2201_v13, 8  ;;  %v7887_v45 = vadd.s32 4294967169, %v2301_v18  ;;  %v9936_v33 = vand.u32 8388607, %v2297_v61 }
 0x215   : > { %v2208_v50 = vsub.s32 32, %v2207_v52  ;;  %v2067_v16 = vcvt.s32.f32 %v2060_v56  ;;  %v9940_v51 = vadd.s32 %v9859_v26, %v9890_v47  ;;  %v2152_v49 = vshll.u32 %v2151_v44, 30 }
 0x216   : > { %v2065_v41 = vand.u32 2147483647, %v2064_v40  ;;  %v2206_v21 = vshrl.u32 %v2205_v46, 5  ;;  %v2210_v25 = vshll.u32 %v8715_v54, %v2207_v52  ;;  %vm9951_vm12 = vcmp.le.f32.partialorder %v2089_v20, 0.7853982 }
 0x217   : > { %v2211_v59 = vshrl.u32 %v8716_v58, %v2208_v50  ;;  %v2214_v3 = vshrl.u32 %v8717_v60, %v2208_v50  ;;  %v2217_v17 = vshrl.u32 %v8718_v62, %v2208_v50  ;;  %v9945_v19 = vsub.s32 %v2149_v55, %v2152_v49 }
 0x218   : > { %v2068_v1 = vmul.f32 %v2067_v16, %v2065_v41  ;;  %v2220_v10 = vshrl.u32 %v8719_v0, %v2208_v50  ;;  %v2175_v47 = vsub.s32 4, %v2151_v44  ;;  %v2213_v24 = vshll.u32 %v8716_v58, %v2207_v52 }
 0x219   : > { %v2216_v12 = vshll.u32 %v8717_v60, %v2207_v52  ;;  %v2307_v38 = vadd.s32 1, %v7887_v45  ;;  %v2155_v43 = vsub.s32 0, %v9945_v19  ;;  %v2212_v29 = vor.u32 %v2211_v59, %v2210_v25 }
 0x21a   : > { %v2069_v8 = vxor.u32 2147483648, %v2068_v1  ;;  %v2219_v23 = vshll.u32 %v8718_v62, %v2207_v52  ;;  %v2215_v13 = vor.u32 %v2214_v3, %v2213_v24  ;;  %v2222_v28 = vshll.u32 %v8719_v0, %v2207_v52 }
 0x21b   : > { %v2218_v31 = vor.u32 %v2217_v17, %v2216_v12  ;;  %v2223_v20 = vshrl.u32 %v8720_v7, %v2208_v50  ;;  %v7880_v53 = vmin.u32 %v2155_v43, %v9945_v19  ;;  %v2209_v22 = vshrl.u32 %v8715_v54, %v2208_v50 }
 0x21c   : > { %v2070_v5 = vsel %vm1987_vm0, %v2069_v8, %v2068_v1  ;;  %v2221_v37 = vor.u32 %v2220_v10, %v2219_v23  ;;  %v2176_v36 = vsel %vm2091_vm11, %v2175_v47, %v2151_v44  ;;  %vm2225_vm2 = vcmp.lt.s32.totalorder %v2206_v21, 1 }
 0x21d   : > { %v2073_v55 = vsel %vm9872_vm3, %v9527_v34, %v2070_v5  ;;  %v2224_v46 = vor.u32 %v2223_v20, %v2222_v28  ;;  %v2157_v18 = vclz %v7880_v53  ;;  %vm2226_vm6 = vcmp.lt.s32.totalorder %v2206_v21, 2 }
 0x21e   : > { %8457 = vcosq.f32 %v2073_v55  ;;  %vm2228_vm10 = vcmp.lt.s32.totalorder %v2206_v21, 4  ;;  %vm2227_vm0 = vcmp.lt.s32.totalorder %v2206_v21, 3  ;;  %v2233_v56 = vsel %vm2225_vm2, %v2212_v29, %v2215_v13 }
 0x21f   : > { %8459 = vsinq.f32 %v2073_v55  ;;  %v2230_v30 = vsel %vm2228_vm10, %v2218_v31, 2102212464  ;;  %v7881_v42 = vadd.s32 4294967294, %v2157_v18  ;;  %v2229_v48 = vsel %vm2225_vm2, %v2209_v22, %v2212_v29 }
 0x220   : > { %v2234_v39 = vsel %vm2228_vm10, %v2221_v37, 920167782  ;;  %v2237_v52 = vsel %vm2225_vm2, %v2215_v13, %v2218_v31  ;;  %v2231_v40 = vsel %vm2227_vm0, %v2215_v13, %v2230_v30  ;;  %v2238_v50 = vsel %vm2228_vm10, %v2224_v46, 1326507024 }
 0x221   : > { %v2235_v57 = vsel %vm2227_vm0, %v2218_v31, %v2234_v39  ;;  %vm2308_vm4 = vcmp.gt.s32.totalorder %v2307_v38, 0  ;;  %vm7882_vm3 = vcmp.lt.s32.totalorder %v7881_v42, 0  ;;  %v2178_v44 = vsel %vm9951_vm12, 0, %v2176_v36 }
 0x222   : > { %v2236_v45 = vsel %vm2226_vm6, %v2233_v56, %v2235_v57  ;;  %v2239_v41 = vsel %vm2227_vm0, %v2221_v37, %v2238_v50  ;;  %vm2081_vm14 = vcmp.eq.s32.totalorder %v9927_v4, 0  ;;  %v2160_v16 = vsel %vm7882_vm3, 0, %v7881_v42 }
 0x223   : > { %v2240_v49 = vsel %vm2226_vm6, %v2237_v52, %v2239_v41  ;;  %v9976_v59 = vmul.u32.u64.low %v9932_v2, %v2236_v45  ;;  %v9977_v3 = vmul.u32.u64.high %v9932_v2, %v2236_v45, %v9976_v59  ;;  %vm2080_vm5 = vcmp.lt.s32.totalorder %v9927_v4, 2 }
 0x224   : > { %v2161_v17 = vsub.s32 32, %v2160_v16  ;;  %v2165_v1 = vsub.s32 4294967266, %v2160_v16  ;;  %v2232_v25 = vsel %vm2226_vm6, %v2229_v48, %v2231_v40  ;;  %v2309_v10 = vsel %vm2308_vm4, %v2307_v38, 0 }
 0x225   : > { %vm2077_vm7 = vweird.f32 %v9527_v34  ;;  %vm2084_vm8 = vcmp.eq.s32.totalorder %v9927_v4, 2  ;;  %v9985_v47 = vmul.u32.u64.low %v9932_v2, %v2240_v49  ;;  %v9986_v24 = vmul.u32.u64.high %v9932_v2, %v2240_v49, %v9985_v47 }
 0x226   : > { %v2311_v12 = vand.u32 31, %v2309_v10  ;;  %v2162_v8 = vshll.u32 %v9945_v19, %v2160_v16  ;;  %v2163_v43 = vshrl.u32 %v9940_v51, %v2161_v17  ;;  %v2166_v29 = vadd.s32 127, %v2165_v1 }
 0x227   : > { %v2305_v23 = vor.u32 8388608, %v9936_v33  ;;  %v2182_v13 = vadd.s32 3, %v2178_v44  ;;  %v2248_v21 = vmul.u32 %v9932_v2, %v2232_v25  ;;  %v2251_v38 = vadd.s32 1, %v9977_v3 }
 0x228   : > { %v2312_v31 = vsub.s32 32, %v2311_v12  ;;  %v8458_v28 = vpop.eup %8457  ;;  %v2164_v20 = vor.u32 %v2163_v43, %v2162_v8  ;;  %v2167_v5 = vshll.u32 %v2166_v29, 23  ;;  %v9993_v53 = vshrl.u32 %v2309_v10, 5 }
 0x229   : > { %v2314_v22 = vshll.u32 %v8715_v54, %v2311_v12  ;;  %v8460_v37 = vpop.eup %8459  ;;  %v2085_v19 = vxor.u32 2147483648, %v8458_v28  ;;  %vm2250_vm15 = vc.u32 %v9986_v24, %v9976_v59  ;;  %v2317_v33 = vshll.u32 %v8716_v58, %v2311_v12 }
 0x22a   : > { %v2323_v51 = vshll.u32 %v8718_v62, %v2311_v12  ;;  %v2082_v2 = vxor.u32 2147483648, %v8460_v37  ;;  %v2168_v55 = vor.u32 4788187, %v2167_v5  ;;  %v2171_v36 = vcvt.s32.f32 %v2164_v20 }
 0x22b   : > { %v2252_v46 = vsel %vm2250_vm15, %v2251_v38, %v9977_v3  ;;  %v2086_v18 = vsel %vm2084_vm8, %v2085_v19, %v8460_v37  ;;  %v2315_v56 = vshrl.u32 %v8716_v58, %v2312_v31  ;;  %v2318_v42 = vshrl.u32 %v8717_v60, %v2312_v31  ;;  %v7779_v19 = vld [vmem:[%s15037_s2 + $0x8] ss:$0 sm:$0xff] }
 0x22c   : > { %v2253_v30 = vadd.s32 %v2252_v46, %v2248_v21  ;;  %v2083_v48 = vsel %vm2081_vm14, %v8458_v28, %v2082_v2  ;;  %v2169_v39 = vand.u32 2147483647, %v2168_v55  ;;  %vm2195_vm9 = vcmp.lt.s32.totalorder %v9725_v35, 0 }
 0x22d   : > { %v2321_v52 = vshrl.u32 %v8718_v62, %v2312_v31  ;;  %v2324_v40 = vshrl.u32 %v8719_v0, %v2312_v31  ;;  %v2087_v57 = vsel %vm2080_vm5, %v2083_v48, %v2086_v18  ;;  %v2316_v44 = vor.u32 %v2315_v56, %v2314_v22 }
 0x22e   : > { %v2254_v50 = vadd.s32 536870912, %v2253_v30  ;;  %v2320_v45 = vshll.u32 %v8717_v60, %v2311_v12  ;;  %v2088_v41 = vsel %vm2077_vm7, nan, %v2087_v57  ;;  %v2172_v16 = vmul.f32 %v2171_v36, %v2169_v39 }
 0x22f   : > { %v2319_v49 = vor.u32 %v2318_v42, %v2317_v33  ;;  %v2325_v3 = vor.u32 %v2324_v40, %v2323_v51  ;;  %v10015_v17 = vand.u32 3, %v2182_v13  ;;  %v2327_v25 = vshrl.u32 %v8720_v7, %v2312_v31  ;;  %7611 = vst.msk [vmem:[%s9134_s13 + $0x50] sm:$0xff] %vm266_vm1, %v2088_v41 }
 0x230   : > { %v2255_v1 = vshrl.u32 %v2254_v50, 30  ;;  %v10018_v10 = vshll.u32 %v2305_v23, 8  ;;  %v2173_v4 = vxor.u32 2147483648, %v2172_v16  ;;  %v2322_v47 = vor.u32 %v2321_v52, %v2320_v45 }
 0x231   : > { %v2326_v8 = vshll.u32 %v8719_v0, %v2311_v12  ;;  %v2401_v43 = vand.u32 2147483647, %v9923_v63  ;;  %vm2329_vm13 = vcmp.lt.s32.totalorder %v9993_v53, 1  ;;  %vm2332_vm2 = vcmp.lt.s32.totalorder %v9993_v53, 4 }
 0x232   : > { %v2256_v34 = vshll.u32 %v2255_v1, 30  ;;  %v2279_v29 = vsub.s32 4, %v2255_v1  ;;  %v2174_v13 = vsel %vm2091_vm11, %v2173_v4, %v2172_v16  ;;  %v2337_v23 = vsel %vm2329_vm13, %v2316_v44, %v2319_v49 }
 0x233   : > { %v2328_v21 = vor.u32 %v2327_v25, %v2326_v8  ;;  %v2338_v38 = vsel %vm2332_vm2, %v2325_v3, 920167782  ;;  %v2177_v12 = vsel %vm9951_vm12, %v9684_v6, %v2174_v13  ;;  %v2313_v20 = vshrl.u32 %v8715_v54, %v2312_v31 }
 0x234   : > { %v10035_v28 = vsub.s32 %v2253_v30, %v2256_v34  ;;  %vm2331_vm6 = vcmp.lt.s32.totalorder %v9993_v53, 3  ;;  %8461 = vcosq.f32 %v2177_v12  ;;  %vm2330_vm11 = vcmp.lt.s32.totalorder %v9993_v53, 2 }
 0x235   : > { %v2334_v5 = vsel %vm2332_vm2, %v2322_v47, 2102212464  ;;  %v2339_v22 = vsel %vm2331_vm6, %v2322_v47, %v2338_v38  ;;  %8463 = vsinq.f32 %v2177_v12  ;;  %v2280_v26 = vsel %vm2195_vm9, %v2279_v29, %v2255_v1 }
 0x236   : > { %v2259_v37 = vsub.s32 0, %v10035_v28  ;;  %v2340_v31 = vsel %vm2330_vm11, %v2337_v23, %v2339_v22  ;;  %v2341_v33 = vsel %vm2329_vm13, %v2319_v49, %v2322_v47  ;;  %v2342_v51 = vsel %vm2332_vm2, %v2328_v21, 1326507024 }
 0x237   : > { %v10057_v2 = vmul.u32.u64.low %v10018_v10, %v2340_v31  ;;  %v10058_v55 = vmul.u32.u64.high %v10018_v10, %v2340_v31, %v10057_v2  ;;  %v2333_v46 = vsel %vm2329_vm13, %v2313_v20, %v2316_v44  ;;  %v2335_v18 = vsel %vm2331_vm6, %v2319_v49, %v2334_v5 }
 0x238   : > { %v7884_v36 = vmin.u32 %v2259_v37, %v10035_v28  ;;  %v2343_v30 = vsel %vm2331_vm6, %v2325_v3, %v2342_v51  ;;  %vm10070_vm12 = vcmp.le.f32.partialorder %v2193_v9, 0.7853982  ;;  %v2404_v48 = vand.u32 2139095040, %v9923_v63 }
 0x239   : > { %v2344_v42 = vsel %vm2330_vm11, %v2341_v33, %v2343_v30  ;;  %v641_v39 = vmul.f32 %v7779_v19, %v8798_v11  ;;  %v10080_v52 = vadd.f32 %v9910_v27, %v9920_v32  ;;  %v2282_v57 = vsel %vm10070_vm12, 0, %v2280_v26 }
 0x23a   : > { %v2261_v40 = vclz %v7884_v36  ;;  %v2336_v9 = vsel %vm2330_vm11, %v2333_v46, %v2335_v18  ;;  %v10087_v50 = vmul.u32.u64.low %v10018_v10, %v2344_v42  ;;  %v10088_v44 = vmul.u32.u64.high %v10018_v10, %v2344_v42, %v10087_v50 }
 0x23b   : > { %v2405_v45 = vshrl.u32 %v2404_v48, 23  ;;  %vm2181_vm10 = vweird.f32 %v9684_v6  ;;  %vm2184_vm0 = vcmp.lt.s32.totalorder %v10015_v17, 2  ;;  %v2408_v27 = vand.u32 8388607, %v2401_v43 }
 0x23c   : > { %v7885_v41 = vadd.s32 4294967294, %v2261_v40  ;;  %vm2185_vm4 = vcmp.eq.s32.totalorder %v10015_v17, 0  ;;  %vm2188_vm3 = vcmp.eq.s32.totalorder %v10015_v17, 2  ;;  %v2355_v32 = vadd.s32 1, %v10058_v55 }
 0x23d   : > { %v7891_v53 = vadd.s32 4294967169, %v2405_v45  ;;  %v2249_v16 = vadd.s32 %v9976_v59, %v9986_v24  ;;  %v2286_v49 = vadd.s32 3, %v2282_v57  ;;  %v2352_v3 = vmul.u32 %v10018_v10, %v2336_v9  ;;  %v10108_v10 = vld [vmem:[%s15038_s3 + $0x8] ss:$0 sm:$0xff] }
 0x23e   : > { %vm7886_vm14 = vcmp.lt.s32.totalorder %v7885_v41, 0  ;;  %v8462_v1 = vpop.eup %8461  ;;  %vm2354_vm5 = vc.u32 %v10088_v44, %v10057_v2  ;;  %v2508_v47 = vand.u32 2139095040, %v10080_v52  ;;  %v2409_v21 = vor.u32 8388608, %v2408_v27 }
 0x23f   : > { %v2264_v25 = vsel %vm7886_vm14, 0, %v7885_v41  ;;  %v2411_v4 = vadd.s32 1, %v7891_v53  ;;  %v8464_v8 = vpop.eup %8463  ;;  %v2189_v34 = vxor.u32 2147483648, %v8462_v1  ;;  %v2356_v24 = vsel %vm2354_vm5, %v2355_v32, %v10058_v55 }
 0x240   : > { %v2265_v29 = vsub.s32 32, %v2264_v25  ;;  %v2269_v13 = vsub.s32 4294967266, %v2264_v25  ;;  %v2186_v23 = vxor.u32 2147483648, %v8464_v8  ;;  %v2266_v59 = vshll.u32 %v10035_v28, %v2264_v25 }
 0x241   : > { %vm2412_vm7 = vcmp.gt.s32.totalorder %v2411_v4, 0  ;;  %v2190_v38 = vsel %vm2188_vm3, %v2189_v34, %v8464_v8  ;;  %v2357_v5 = vadd.s32 %v2356_v24, %v2352_v3  ;;  %v2505_v28 = vand.u32 2147483647, %v10080_v52 }
 0x242   : > { %v2267_v12 = vshrl.u32 %v2249_v16, %v2265_v29  ;;  %v2270_v20 = vadd.s32 127, %v2269_v13  ;;  %v2187_v22 = vsel %vm2185_vm4, %v8462_v1, %v2186_v23  ;;  %v2413_v37 = vsel %vm2412_vm7, %v2411_v4, 0 }
 0x243   : > { %v2509_v26 = vshrl.u32 %v2508_v47, 23  ;;  %v2191_v31 = vsel %vm2184_vm0, %v2187_v22, %v2190_v38  ;;  %v2358_v55 = vadd.s32 536870912, %v2357_v5  ;;  %v10118_v36 = vmul.f32 %v7779_v19, %v8800_v14 }
 0x244   : > { %v2268_v33 = vor.u32 %v2267_v12, %v2266_v59  ;;  %v2271_v51 = vshll.u32 %v2270_v20, 23  ;;  %v10121_v46 = vadd.f32 %v10108_v10, %v641_v39  ;;  %v2192_v18 = vsel %vm2181_vm10, nan, %v2191_v31 }
 0x245   : > { %v2415_v30 = vand.u32 31, %v2413_v37  ;;  %v10125_v48 = vand.u32 3, %v2286_v49  ;;  %vm2299_vm8 = vcmp.lt.s32.totalorder %v9882_v15, 0  ;;  %v2359_v17 = vshrl.u32 %v2358_v55, 30  ;;  %7612 = vst.msk [vmem:[%s9134_s13 + $0x58] sm:$0xff] %vm266_vm1, %v2192_v18 }
 0x246   : > { %v2272_v42 = vor.u32 4788187, %v2271_v51  ;;  %v10130_v57 = vshll.u32 %v2409_v21, 8  ;;  %v7895_v19 = vadd.s32 4294967169, %v2509_v26  ;;  %v10134_v39 = vand.u32 8388607, %v2505_v28 }
 0x247   : > { %v2416_v40 = vsub.s32 32, %v2415_v30  ;;  %v2275_v6 = vcvt.s32.f32 %v2268_v33  ;;  %v10138_v50 = vadd.s32 %v10057_v2, %v10088_v44  ;;  %v2360_v45 = vshll.u32 %v2359_v17, 30 }
 0x248   : > { %v2273_v9 = vand.u32 2147483647, %v2272_v42  ;;  %v2414_v41 = vshrl.u32 %v2413_v37, 5  ;;  %v2418_v3 = vshll.u32 %v8715_v54, %v2415_v30  ;;  %vm10149_vm15 = vcmp.le.f32.partialorder %v2297_v61, 0.7853982 }
 0x249   : > { %v2419_v27 = vshrl.u32 %v8716_v58, %v2416_v40  ;;  %v2422_v32 = vshrl.u32 %v8717_v60, %v2416_v40  ;;  %v2425_v53 = vshrl.u32 %v8718_v62, %v2416_v40  ;;  %v10143_v49 = vsub.s32 %v2357_v5, %v2360_v45 }
 0x24a   : > { %v2276_v16 = vmul.f32 %v2275_v6, %v2273_v9  ;;  %v2428_v1 = vshrl.u32 %v8719_v0, %v2416_v40  ;;  %v2383_v44 = vsub.s32 4, %v2359_v17  ;;  %v2421_v25 = vshll.u32 %v8716_v58, %v2415_v30 }
 0x24b   : > { %v2424_v4 = vshll.u32 %v8717_v60, %v2415_v30  ;;  %v2515_v47 = vadd.s32 1, %v7895_v19  ;;  %v2363_v34 = vsub.s32 0, %v10143_v49  ;;  %v2420_v29 = vor.u32 %v2419_v27, %v2418_v3 }
 0x24c   : > { %v2277_v8 = vxor.u32 2147483648, %v2276_v16  ;;  %v2427_v13 = vshll.u32 %v8718_v62, %v2415_v30  ;;  %v2423_v21 = vor.u32 %v2422_v32, %v2421_v25  ;;  %v2430_v59 = vshll.u32 %v8719_v0, %v2415_v30 }
 0x24d   : > { %v2426_v23 = vor.u32 %v2425_v53, %v2424_v4  ;;  %v2431_v61 = vshrl.u32 %v8720_v7, %v2416_v40  ;;  %v7888_v38 = vmin.u32 %v2363_v34, %v10143_v49  ;;  %v2417_v12 = vshrl.u32 %v8715_v54, %v2416_v40 }
 0x24e   : > { %v2278_v24 = vsel %vm2195_vm9, %v2277_v8, %v2276_v16  ;;  %v2429_v20 = vor.u32 %v2428_v1, %v2427_v13  ;;  %v2384_v22 = vsel %vm2299_vm8, %v2383_v44, %v2359_v17  ;;  %vm2433_vm13 = vcmp.lt.s32.totalorder %v2414_v41, 1 }
 0x24f   : > { %v2281_v5 = vsel %vm10070_vm12, %v9725_v35, %v2278_v24  ;;  %v2432_v37 = vor.u32 %v2431_v61, %v2430_v59  ;;  %v2365_v26 = vclz %v7888_v38  ;;  %vm2434_vm2 = vcmp.lt.s32.totalorder %v2414_v41, 2 }
 0x250   : > { %8465 = vcosq.f32 %v2281_v5  ;;  %vm2436_vm6 = vcmp.lt.s32.totalorder %v2414_v41, 4  ;;  %vm2435_vm9 = vcmp.lt.s32.totalorder %v2414_v41, 3  ;;  %v2441_v33 = vsel %vm2433_vm13, %v2420_v29, %v2423_v21 }
 0x251   : > { %8467 = vsinq.f32 %v2281_v5  ;;  %v2438_v31 = vsel %vm2436_vm6, %v2426_v23, 2102212464  ;;  %v7889_v51 = vadd.s32 4294967294, %v2365_v26  ;;  %v2437_v55 = vsel %vm2433_vm13, %v2417_v12, %v2420_v29 }
 0x252   : > { %v2442_v18 = vsel %vm2436_vm6, %v2429_v20, 920167782  ;;  %v2445_v30 = vsel %vm2433_vm13, %v2423_v21, %v2426_v23  ;;  %v2439_v42 = vsel %vm2435_vm9, %v2423_v21, %v2438_v31  ;;  %v2446_v40 = vsel %vm2436_vm6, %v2432_v37, 1326507024 }
 0x253   : > { %v2443_v56 = vsel %vm2435_vm9, %v2426_v23, %v2442_v18  ;;  %vm2516_vm11 = vcmp.gt.s32.totalorder %v2515_v47, 0  ;;  %vm7890_vm12 = vcmp.lt.s32.totalorder %v7889_v51, 0  ;;  %v2386_v17 = vsel %vm10149_vm15, 0, %v2384_v22 }
 0x254   : > { %v2444_v19 = vsel %vm2434_vm2, %v2441_v33, %v2443_v56  ;;  %v2447_v9 = vsel %vm2435_vm9, %v2429_v20, %v2446_v40  ;;  %vm2289_vm10 = vcmp.eq.s32.totalorder %v10125_v48, 0  ;;  %v2368_v6 = vsel %vm7890_vm12, 0, %v7889_v51 }
 0x255   : > { %v2448_v45 = vsel %vm2434_vm2, %v2445_v30, %v2447_v9  ;;  %v10174_v27 = vmul.u32.u64.low %v10130_v57, %v2444_v19  ;;  %v10175_v32 = vmul.u32.u64.high %v10130_v57, %v2444_v19, %v10174_v27  ;;  %vm2288_vm0 = vcmp.lt.s32.totalorder %v10125_v48, 2 }
 0x256   : > { %v2369_v53 = vsub.s32 32, %v2368_v6  ;;  %v2373_v16 = vsub.s32 4294967266, %v2368_v6  ;;  %v2440_v3 = vsel %vm2434_vm2, %v2437_v55, %v2439_v42  ;;  %v2517_v1 = vsel %vm2516_vm11, %v2515_v47, 0 }
 0x257   : > { %vm2285_vm4 = vweird.f32 %v9725_v35  ;;  %vm2292_vm3 = vcmp.eq.s32.totalorder %v10125_v48, 2  ;;  %v10183_v44 = vmul.u32.u64.low %v10130_v57, %v2448_v45  ;;  %v10184_v25 = vmul.u32.u64.high %v10130_v57, %v2448_v45, %v10183_v44 }
 0x258   : > { %v2519_v4 = vand.u32 31, %v2517_v1  ;;  %v2370_v8 = vshll.u32 %v10143_v49, %v2368_v6  ;;  %v2371_v34 = vshrl.u32 %v10138_v50, %v2369_v53  ;;  %v2374_v29 = vadd.s32 127, %v2373_v16 }
 0x259   : > { %v2513_v13 = vor.u32 8388608, %v10134_v39  ;;  %v2390_v21 = vadd.s32 3, %v2386_v17  ;;  %v2456_v41 = vmul.u32 %v10130_v57, %v2440_v3  ;;  %v2459_v47 = vadd.s32 1, %v10175_v32 }
 0x25a   : > { %v2520_v23 = vsub.s32 32, %v2519_v4  ;;  %v8466_v59 = vpop.eup %8465  ;;  %v2372_v61 = vor.u32 %v2371_v34, %v2370_v8  ;;  %v2375_v24 = vshll.u32 %v2374_v29, 23  ;;  %v10191_v38 = vshrl.u32 %v2517_v1, 5 }
 0x25b   : > { %v2522_v12 = vshll.u32 %v8715_v54, %v2519_v4  ;;  %v8468_v20 = vpop.eup %8467  ;;  %v2293_v49 = vxor.u32 2147483648, %v8466_v59  ;;  %vm2458_vm14 = vc.u32 %v10184_v25, %v10174_v27  ;;  %v2525_v39 = vshll.u32 %v8716_v58, %v2519_v4 }
 0x25c   : > { %v2531_v50 = vshll.u32 %v8718_v62, %v2519_v4  ;;  %v2290_v57 = vxor.u32 2147483648, %v8468_v20  ;;  %v2376_v5 = vor.u32 4788187, %v2375_v24  ;;  %v2379_v22 = vcvt.s32.f32 %v2372_v61 }
 0x25d   : > { %v2460_v37 = vsel %vm2458_vm14, %v2459_v47, %v10175_v32  ;;  %v2294_v26 = vsel %vm2292_vm3, %v2293_v49, %v8468_v20  ;;  %v2523_v33 = vshrl.u32 %v8716_v58, %v2520_v23  ;;  %v2526_v51 = vshrl.u32 %v8717_v60, %v2520_v23  ;;  %v7780_v49 = vld [vmem:[%s15037_s2 + $0x9] ss:$0 sm:$0xff] }
 0x25e   : > { %v2461_v31 = vadd.s32 %v2460_v37, %v2456_v41  ;;  %v2291_v55 = vsel %vm2289_vm10, %v8466_v59, %v2290_v57  ;;  %v2377_v18 = vand.u32 2147483647, %v2376_v5  ;;  %vm2403_vm5 = vcmp.lt.s32.totalorder %v9923_v63, 0 }
 0x25f   : > { %v2529_v30 = vshrl.u32 %v8718_v62, %v2520_v23  ;;  %v2532_v42 = vshrl.u32 %v8719_v0, %v2520_v23  ;;  %v2295_v56 = vsel %vm2288_vm0, %v2291_v55, %v2294_v26  ;;  %v2524_v17 = vor.u32 %v2523_v33, %v2522_v12 }
 0x260   : > { %v2462_v40 = vadd.s32 536870912, %v2461_v31  ;;  %v2528_v19 = vshll.u32 %v8717_v60, %v2519_v4  ;;  %v2296_v9 = vsel %vm2285_vm4, nan, %v2295_v56  ;;  %v2380_v6 = vmul.f32 %v2379_v22, %v2377_v18 }
 0x261   : > { %v2527_v45 = vor.u32 %v2526_v51, %v2525_v39  ;;  %v2533_v32 = vor.u32 %v2532_v42, %v2531_v50  ;;  %v10213_v53 = vand.u32 3, %v2390_v21  ;;  %v2535_v3 = vshrl.u32 %v8720_v7, %v2520_v23  ;;  %7613 = vst.msk [vmem:[%s9134_s13 + $0x60] sm:$0xff] %vm266_vm1, %v2296_v9 }
 0x262   : > { %v2463_v16 = vshrl.u32 %v2462_v40, 30  ;;  %v10216_v1 = vshll.u32 %v2513_v13, 8  ;;  %v2381_v48 = vxor.u32 2147483648, %v2380_v6  ;;  %v2530_v44 = vor.u32 %v2529_v30, %v2528_v19 }
 0x263   : > { %v2534_v8 = vshll.u32 %v8719_v0, %v2519_v4  ;;  %v2609_v34 = vand.u32 2147483647, %v10121_v46  ;;  %vm2537_vm7 = vcmp.lt.s32.totalorder %v10191_v38, 1  ;;  %vm2540_vm13 = vcmp.lt.s32.totalorder %v10191_v38, 4 }
 0x264   : > { %v2464_v35 = vshll.u32 %v2463_v16, 30  ;;  %v2487_v29 = vsub.s32 4, %v2463_v16  ;;  %v2382_v21 = vsel %vm2299_vm8, %v2381_v48, %v2380_v6  ;;  %v2545_v13 = vsel %vm2537_vm7, %v2524_v17, %v2527_v45 }
 0x265   : > { %v2536_v41 = vor.u32 %v2535_v3, %v2534_v8  ;;  %v2546_v47 = vsel %vm2540_vm13, %v2533_v32, 920167782  ;;  %v2385_v4 = vsel %vm10149_vm15, %v9882_v15, %v2382_v21  ;;  %v2521_v61 = vshrl.u32 %v8715_v54, %v2520_v23 }
 0x266   : > { %v10233_v59 = vsub.s32 %v2461_v31, %v2464_v35  ;;  %vm2539_vm2 = vcmp.lt.s32.totalorder %v10191_v38, 3  ;;  %8469 = vcosq.f32 %v2385_v4  ;;  %vm2538_vm8 = vcmp.lt.s32.totalorder %v10191_v38, 2 }
 0x267   : > { %v2542_v24 = vsel %vm2540_vm13, %v2530_v44, 2102212464  ;;  %v2547_v12 = vsel %vm2539_vm2, %v2530_v44, %v2546_v47  ;;  %8471 = vsinq.f32 %v2385_v4  ;;  %v2488_v2 = vsel %vm2403_vm5, %v2487_v29, %v2463_v16 }
 0x268   : > { %v2467_v20 = vsub.s32 0, %v10233_v59  ;;  %v2548_v23 = vsel %vm2538_vm8, %v2545_v13, %v2547_v12  ;;  %v2549_v39 = vsel %vm2537_vm7, %v2527_v45, %v2530_v44  ;;  %v2550_v50 = vsel %vm2540_vm13, %v2536_v41, 1326507024 }
 0x269   : > { %v10255_v57 = vmul.u32.u64.low %v10216_v1, %v2548_v23  ;;  %v10256_v5 = vmul.u32.u64.high %v10216_v1, %v2548_v23, %v10255_v57  ;;  %v2541_v37 = vsel %vm2537_vm7, %v2521_v61, %v2524_v17  ;;  %v2543_v26 = vsel %vm2539_vm2, %v2527_v45, %v2542_v24 }
 0x26a   : > { %v7892_v22 = vmin.u32 %v2467_v20, %v10233_v59  ;;  %v2551_v31 = vsel %vm2539_vm2, %v2533_v32, %v2550_v50  ;;  %vm10268_vm15 = vcmp.le.f32.partialorder %v2401_v43, 0.7853982  ;;  %v2612_v55 = vand.u32 2139095040, %v10121_v46 }
 0x26b   : > { %v2552_v51 = vsel %vm2538_vm8, %v2549_v39, %v2551_v31  ;;  %v643_v18 = vmul.f32 %v7780_v49, %v8798_v11  ;;  %v10278_v30 = vadd.f32 %v10108_v10, %v10118_v36  ;;  %v2490_v56 = vsel %vm10268_vm15, 0, %v2488_v2 }
 0x26c   : > { %v2469_v42 = vclz %v7892_v22  ;;  %v2544_v43 = vsel %vm2538_vm8, %v2541_v37, %v2543_v26  ;;  %v10285_v40 = vmul.u32.u64.low %v10216_v1, %v2552_v51  ;;  %v10286_v17 = vmul.u32.u64.high %v10216_v1, %v2552_v51, %v10285_v40 }
 0x26d   : > { %v2613_v19 = vshrl.u32 %v2612_v55, 23  ;;  %vm2389_vm6 = vweird.f32 %v9882_v15  ;;  %vm2392_vm9 = vcmp.lt.s32.totalorder %v10213_v53, 2  ;;  %v2616_v10 = vand.u32 8388607, %v2609_v34 }
 0x26e   : > { %v7893_v9 = vadd.s32 4294967294, %v2469_v42  ;;  %vm2393_vm11 = vcmp.eq.s32.totalorder %v10213_v53, 0  ;;  %vm2396_vm12 = vcmp.eq.s32.totalorder %v10213_v53, 2  ;;  %v2563_v36 = vadd.s32 1, %v10256_v5 }
 0x26f   : > { %v7899_v38 = vadd.s32 4294967169, %v2613_v19  ;;  %v2457_v6 = vadd.s32 %v10174_v27, %v10184_v25  ;;  %v2494_v45 = vadd.s32 3, %v2490_v56  ;;  %v2560_v32 = vmul.u32 %v10216_v1, %v2544_v43  ;;  %v10306_v1 = vld [vmem:[%s15038_s3 + $0x9] ss:$0 sm:$0xff] }
 0x270   : > { %vm7894_vm10 = vcmp.lt.s32.totalorder %v7893_v9, 0  ;;  %v8470_v16 = vpop.eup %8469  ;;  %vm2562_vm0 = vc.u32 %v10286_v17, %v10255_v57  ;;  %v2716_v44 = vand.u32 2139095040, %v10278_v30  ;;  %v2617_v41 = vor.u32 8388608, %v2616_v10 }
 0x271   : > { %v2472_v3 = vsel %vm7894_vm10, 0, %v7893_v9  ;;  %v2619_v48 = vadd.s32 1, %v7899_v38  ;;  %v8472_v8 = vpop.eup %8471  ;;  %v2397_v35 = vxor.u32 2147483648, %v8470_v16  ;;  %v2564_v25 = vsel %vm2562_vm0, %v2563_v36, %v10256_v5 }
 0x272   : > { %v2473_v29 = vsub.s32 32, %v2472_v3  ;;  %v2477_v21 = vsub.s32 4294967266, %v2472_v3  ;;  %v2394_v13 = vxor.u32 2147483648, %v8472_v8  ;;  %v2474_v27 = vshll.u32 %v10233_v59, %v2472_v3 }
 0x273   : > { %vm2620_vm4 = vcmp.gt.s32.totalorder %v2619_v48, 0  ;;  %v2398_v47 = vsel %vm2396_vm12, %v2397_v35, %v8472_v8  ;;  %v2565_v24 = vadd.s32 %v2564_v25, %v2560_v32  ;;  %v2713_v59 = vand.u32 2147483647, %v10278_v30 }
 0x274   : > { %v2475_v4 = vshrl.u32 %v2457_v6, %v2473_v29  ;;  %v2478_v61 = vadd.s32 127, %v2477_v21  ;;  %v2395_v12 = vsel %vm2393_vm11, %v8470_v16, %v2394_v13  ;;  %v2621_v20 = vsel %vm2620_vm4, %v2619_v48, 0 }
 0x275   : > { %v2717_v2 = vshrl.u32 %v2716_v44, 23  ;;  %v2399_v23 = vsel %vm2392_vm9, %v2395_v12, %v2398_v47  ;;  %v2566_v5 = vadd.s32 536870912, %v2565_v24  ;;  %v10316_v22 = vmul.f32 %v7780_v49, %v8800_v14 }
 0x276   : > { %v2476_v39 = vor.u32 %v2475_v4, %v2474_v27  ;;  %v2479_v50 = vshll.u32 %v2478_v61, 23  ;;  %v10319_v37 = vadd.f32 %v10306_v1, %v643_v18  ;;  %v2400_v26 = vsel %vm2389_vm6, nan, %v2399_v23 }
 0x277   : > { %v2623_v31 = vand.u32 31, %v2621_v20  ;;  %v10323_v55 = vand.u32 3, %v2494_v45  ;;  %vm2507_vm3 = vcmp.lt.s32.totalorder %v10080_v52, 0  ;;  %v2567_v53 = vshrl.u32 %v2566_v5, 30  ;;  %7614 = vst.msk [vmem:[%s9134_s13 + $0x68] sm:$0xff] %vm266_vm1, %v2400_v26 }
 0x278   : > { %v2480_v51 = vor.u32 4788187, %v2479_v50  ;;  %v10328_v56 = vshll.u32 %v2617_v41, 8  ;;  %v7903_v49 = vadd.s32 4294967169, %v2717_v2  ;;  %v10332_v18 = vand.u32 8388607, %v2713_v59 }
 0x279   : > { %v2624_v42 = vsub.s32 32, %v2623_v31  ;;  %v2483_v15 = vcvt.s32.f32 %v2476_v39  ;;  %v10336_v40 = vadd.s32 %v10255_v57, %v10286_v17  ;;  %v2568_v19 = vshll.u32 %v2567_v53, 30 }
 0x27a   : > { %v2481_v43 = vand.u32 2147483647, %v2480_v51  ;;  %v2622_v9 = vshrl.u32 %v2621_v20, 5  ;;  %v2626_v32 = vshll.u32 %v8715_v54, %v2623_v31  ;;  %vm10347_vm14 = vcmp.le.f32.partialorder %v2505_v28, 0.7853982 }
 0x27b   : > { %v2627_v10 = vshrl.u32 %v8716_v58, %v2624_v42  ;;  %v2630_v36 = vshrl.u32 %v8717_v60, %v2624_v42  ;;  %v2633_v38 = vshrl.u32 %v8718_v62, %v2624_v42  ;;  %v10341_v45 = vsub.s32 %v2565_v24, %v2568_v19 }
 0x27c   : > { %v2484_v6 = vmul.f32 %v2483_v15, %v2481_v43  ;;  %v2636_v16 = vshrl.u32 %v8719_v0, %v2624_v42  ;;  %v2591_v17 = vsub.s32 4, %v2567_v53  ;;  %v2629_v3 = vshll.u32 %v8716_v58, %v2623_v31 }
 0x27d   : > { %v2632_v48 = vshll.u32 %v8717_v60, %v2623_v31  ;;  %v2723_v44 = vadd.s32 1, %v7903_v49  ;;  %v2571_v35 = vsub.s32 0, %v10341_v45  ;;  %v2628_v29 = vor.u32 %v2627_v10, %v2626_v32 }
 0x27e   : > { %v2485_v8 = vxor.u32 2147483648, %v2484_v6  ;;  %v2635_v21 = vshll.u32 %v8718_v62, %v2623_v31  ;;  %v2631_v41 = vor.u32 %v2630_v36, %v2629_v3  ;;  %v2638_v27 = vshll.u32 %v8719_v0, %v2623_v31 }
 0x27f   : > { %v2634_v13 = vor.u32 %v2633_v38, %v2632_v48  ;;  %v2639_v28 = vshrl.u32 %v8720_v7, %v2624_v42  ;;  %v7896_v47 = vmin.u32 %v2571_v35, %v10341_v45  ;;  %v2625_v4 = vshrl.u32 %v8715_v54, %v2624_v42 }
 0x280   : > { %v2486_v25 = vsel %vm2403_vm5, %v2485_v8, %v2484_v6  ;;  %v2637_v61 = vor.u32 %v2636_v16, %v2635_v21  ;;  %v2592_v12 = vsel %vm2507_vm3, %v2591_v17, %v2567_v53  ;;  %vm2641_vm7 = vcmp.lt.s32.totalorder %v2622_v9, 1 }
 0x281   : > { %v2489_v24 = vsel %vm10268_vm15, %v9923_v63, %v2486_v25  ;;  %v2640_v20 = vor.u32 %v2639_v28, %v2638_v27  ;;  %v2573_v2 = vclz %v7896_v47  ;;  %vm2642_vm13 = vcmp.lt.s32.totalorder %v2622_v9, 2 }
 0x282   : > { %8473 = vcosq.f32 %v2489_v24  ;;  %vm2644_vm2 = vcmp.lt.s32.totalorder %v2622_v9, 4  ;;  %vm2643_vm5 = vcmp.lt.s32.totalorder %v2622_v9, 3  ;;  %v2649_v39 = vsel %vm2641_vm7, %v2628_v29, %v2631_v41 }
 0x283   : > { %8475 = vsinq.f32 %v2489_v24  ;;  %v2646_v23 = vsel %vm2644_vm2, %v2634_v13, 2102212464  ;;  %v7897_v50 = vadd.s32 4294967294, %v2573_v2  ;;  %v2645_v5 = vsel %vm2641_vm7, %v2625_v4, %v2628_v29 }
 0x284   : > { %v2650_v26 = vsel %vm2644_vm2, %v2637_v61, 920167782  ;;  %v2653_v31 = vsel %vm2641_vm7, %v2631_v41, %v2634_v13  ;;  %v2647_v51 = vsel %vm2643_vm5, %v2631_v41, %v2646_v23  ;;  %v2654_v42 = vsel %vm2644_vm2, %v2640_v20, 1326507024 }
 0x285   : > { %v2651_v33 = vsel %vm2643_vm5, %v2634_v13, %v2650_v26  ;;  %vm2724_vm8 = vcmp.gt.s32.totalorder %v2723_v44, 0  ;;  %vm7898_vm15 = vcmp.lt.s32.totalorder %v7897_v50, 0  ;;  %v2594_v53 = vsel %vm10347_vm14, 0, %v2592_v12 }
 0x286   : > { %v2652_v49 = vsel %vm2642_vm13, %v2649_v39, %v2651_v33  ;;  %v2655_v43 = vsel %vm2643_vm5, %v2637_v61, %v2654_v42  ;;  %vm2497_vm6 = vcmp.eq.s32.totalorder %v10323_v55, 0  ;;  %v2576_v15 = vsel %vm7898_vm15, 0, %v7897_v50 }
 0x287   : > { %v2656_v19 = vsel %vm2642_vm13, %v2653_v31, %v2655_v43  ;;  %v10372_v10 = vmul.u32.u64.low %v10328_v56, %v2652_v49  ;;  %v10373_v36 = vmul.u32.u64.high %v10328_v56, %v2652_v49, %v10372_v10  ;;  %vm2496_vm9 = vcmp.lt.s32.totalorder %v10323_v55, 2 }
 0x288   : > { %v2577_v38 = vsub.s32 32, %v2576_v15  ;;  %v2581_v6 = vsub.s32 4294967266, %v2576_v15  ;;  %v2648_v32 = vsel %vm2642_vm13, %v2645_v5, %v2647_v51  ;;  %v2725_v16 = vsel %vm2724_vm8, %v2723_v44, 0 }
 0x289   : > { %vm2493_vm11 = vweird.f32 %v9923_v63  ;;  %vm2500_vm12 = vcmp.eq.s32.totalorder %v10323_v55, 2  ;;  %v10381_v17 = vmul.u32.u64.low %v10328_v56, %v2656_v19  ;;  %v10382_v3 = vmul.u32.u64.high %v10328_v56, %v2656_v19, %v10381_v17 }
 0x28a   : > { %v2727_v48 = vand.u32 31, %v2725_v16  ;;  %v2578_v8 = vshll.u32 %v10341_v45, %v2576_v15  ;;  %v2579_v35 = vshrl.u32 %v10336_v40, %v2577_v38  ;;  %v2582_v29 = vadd.s32 127, %v2581_v6 }
 0x28b   : > { %v2721_v21 = vor.u32 8388608, %v10332_v18  ;;  %v2598_v41 = vadd.s32 3, %v2594_v53  ;;  %v2664_v9 = vmul.u32 %v10328_v56, %v2648_v32  ;;  %v2667_v44 = vadd.s32 1, %v10373_v36 }
 0x28c   : > { %v2728_v13 = vsub.s32 32, %v2727_v48  ;;  %v8474_v27 = vpop.eup %8473  ;;  %v2580_v28 = vor.u32 %v2579_v35, %v2578_v8  ;;  %v2583_v25 = vshll.u32 %v2582_v29, 23  ;;  %v10389_v47 = vshrl.u32 %v2725_v16, 5 }
 0x28d   : > { %v2730_v4 = vshll.u32 %v8715_v54, %v2727_v48  ;;  %v8476_v61 = vpop.eup %8475  ;;  %v2501_v45 = vxor.u32 2147483648, %v8474_v27  ;;  %vm2666_vm10 = vc.u32 %v10382_v3, %v10372_v10  ;;  %v2733_v18 = vshll.u32 %v8716_v58, %v2727_v48 }
 0x28e   : > { %v2739_v40 = vshll.u32 %v8718_v62, %v2727_v48  ;;  %v2498_v56 = vxor.u32 2147483648, %v8476_v61  ;;  %v2584_v24 = vor.u32 4788187, %v2583_v25  ;;  %v2587_v12 = vcvt.s32.f32 %v2580_v28 }
 0x28f   : > { %v2668_v20 = vsel %vm2666_vm10, %v2667_v44, %v10373_v36  ;;  %v2502_v2 = vsel %vm2500_vm12, %v2501_v45, %v8476_v61  ;;  %v2731_v39 = vshrl.u32 %v8716_v58, %v2728_v13  ;;  %v2734_v50 = vshrl.u32 %v8717_v60, %v2728_v13  ;;  %v7781_v45 = vld [vmem:[%s15037_s2 + $0xa] ss:$0 sm:$0xff] }
 0x290   : > { %v2669_v23 = vadd.s32 %v2668_v20, %v2664_v9  ;;  %v2499_v5 = vsel %vm2497_vm6, %v8474_v27, %v2498_v56  ;;  %v2585_v26 = vand.u32 2147483647, %v2584_v24  ;;  %vm2611_vm0 = vcmp.lt.s32.totalorder %v10121_v46, 0 }
 0x291   : > { %v2737_v31 = vshrl.u32 %v8718_v62, %v2728_v13  ;;  %v2740_v51 = vshrl.u32 %v8719_v0, %v2728_v13  ;;  %v2503_v33 = vsel %vm2496_vm9, %v2499_v5, %v2502_v2  ;;  %v2732_v53 = vor.u32 %v2731_v39, %v2730_v4 }
 0x292   : > { %v2670_v42 = vadd.s32 536870912, %v2669_v23  ;;  %v2736_v49 = vshll.u32 %v8717_v60, %v2727_v48  ;;  %v2504_v43 = vsel %vm2493_vm11, nan, %v2503_v33  ;;  %v2588_v15 = vmul.f32 %v2587_v12, %v2585_v26 }
 0x293   : > { %v2735_v19 = vor.u32 %v2734_v50, %v2733_v18  ;;  %v2741_v36 = vor.u32 %v2740_v51, %v2739_v40  ;;  %v10411_v38 = vand.u32 3, %v2598_v41  ;;  %v2743_v32 = vshrl.u32 %v8720_v7, %v2728_v13  ;;  %7615 = vst.msk [vmem:[%s9134_s13 + $0x70] sm:$0xff] %vm266_vm1, %v2504_v43 }
 0x294   : > { %v2671_v6 = vshrl.u32 %v2670_v42, 30  ;;  %v10414_v16 = vshll.u32 %v2721_v21, 8  ;;  %v2589_v55 = vxor.u32 2147483648, %v2588_v15  ;;  %v2738_v17 = vor.u32 %v2737_v31, %v2736_v49 }
 0x295   : > { %v2742_v8 = vshll.u32 %v8719_v0, %v2727_v48  ;;  %v2817_v35 = vand.u32 2147483647, %v10319_v37  ;;  %vm2745_vm4 = vcmp.lt.s32.totalorder %v10389_v47, 1  ;;  %vm2748_vm7 = vcmp.lt.s32.totalorder %v10389_v47, 4 }
 0x296   : > { %v2672_v63 = vshll.u32 %v2671_v6, 30  ;;  %v2695_v29 = vsub.s32 4, %v2671_v6  ;;  %v2590_v41 = vsel %vm2507_vm3, %v2589_v55, %v2588_v15  ;;  %v2753_v21 = vsel %vm2745_vm4, %v2732_v53, %v2735_v19 }
 0x297   : > { %v2744_v9 = vor.u32 %v2743_v32, %v2742_v8  ;;  %v2754_v44 = vsel %vm2748_vm7, %v2741_v36, 920167782  ;;  %v2593_v48 = vsel %vm10347_vm14, %v10080_v52, %v2590_v41  ;;  %v2729_v28 = vshrl.u32 %v8715_v54, %v2728_v13 }
 0x298   : > { %v10431_v27 = vsub.s32 %v2669_v23, %v2672_v63  ;;  %vm2747_vm13 = vcmp.lt.s32.totalorder %v10389_v47, 3  ;;  %8477 = vcosq.f32 %v2593_v48  ;;  %vm2746_vm3 = vcmp.lt.s32.totalorder %v10389_v47, 2 }
 0x299   : > { %v2750_v25 = vsel %vm2748_vm7, %v2738_v17, 2102212464  ;;  %v2755_v4 = vsel %vm2747_vm13, %v2738_v17, %v2754_v44  ;;  %8479 = vsinq.f32 %v2593_v48  ;;  %v2696_v57 = vsel %vm2611_vm0, %v2695_v29, %v2671_v6 }
 0x29a   : > { %v2675_v61 = vsub.s32 0, %v10431_v27  ;;  %v2756_v13 = vsel %vm2746_vm3, %v2753_v21, %v2755_v4  ;;  %v2757_v18 = vsel %vm2745_vm4, %v2735_v19, %v2738_v17  ;;  %v2758_v40 = vsel %vm2748_vm7, %v2744_v9, 1326507024 }
 0x29b   : > { %v10453_v56 = vmul.u32.u64.low %v10414_v16, %v2756_v13  ;;  %v10454_v24 = vmul.u32.u64.high %v10414_v16, %v2756_v13, %v10453_v56  ;;  %v2749_v20 = vsel %vm2745_vm4, %v2729_v28, %v2732_v53  ;;  %v2751_v2 = vsel %vm2747_vm13, %v2735_v19, %v2750_v25 }
 0x29c   : > { %v7900_v12 = vmin.u32 %v2675_v61, %v10431_v27  ;;  %v2759_v23 = vsel %vm2747_vm13, %v2741_v36, %v2758_v40  ;;  %vm10466_vm14 = vcmp.le.f32.partialorder %v2609_v34, 0.7853982  ;;  %v2820_v5 = vand.u32 2139095040, %v10319_v37 }
 0x29d   : > { %v2760_v50 = vsel %vm2746_vm3, %v2757_v18, %v2759_v23  ;;  %v645_v26 = vmul.f32 %v7781_v45, %v8798_v11  ;;  %v10476_v31 = vadd.f32 %v10306_v1, %v10316_v22  ;;  %v2698_v33 = vsel %vm10466_vm14, 0, %v2696_v57 }
 0x29e   : > { %v2677_v51 = vclz %v7900_v12  ;;  %v2752_v34 = vsel %vm2746_vm3, %v2749_v20, %v2751_v2  ;;  %v10483_v42 = vmul.u32.u64.low %v10414_v16, %v2760_v50  ;;  %v10484_v53 = vmul.u32.u64.high %v10414_v16, %v2760_v50, %v10483_v42 }
 0x29f   : > { %v2821_v49 = vshrl.u32 %v2820_v5, 23  ;;  %vm2597_vm2 = vweird.f32 %v10080_v52  ;;  %vm2600_vm5 = vcmp.lt.s32.totalorder %v10411_v38, 2  ;;  %v2824_v1 = vand.u32 8388607, %v2817_v35 }
 0x2a0   : > { %v7901_v43 = vadd.s32 4294967294, %v2677_v51  ;;  %vm2601_vm8 = vcmp.eq.s32.totalorder %v10411_v38, 0  ;;  %vm2604_vm15 = vcmp.eq.s32.totalorder %v10411_v38, 2  ;;  %v2771_v22 = vadd.s32 1, %v10454_v24 }
 0x2a1   : > { %v7907_v47 = vadd.s32 4294967169, %v2821_v49  ;;  %v2665_v15 = vadd.s32 %v10372_v10, %v10382_v3  ;;  %v2702_v19 = vadd.s32 3, %v2698_v33  ;;  %v2768_v36 = vmul.u32 %v10414_v16, %v2752_v34  ;;  %v10504_v16 = vld [vmem:[%s15038_s3 + $0xa] ss:$0 sm:$0xff] }
 0x2a2   : > { %vm7902_vm6 = vcmp.lt.s32.totalorder %v7901_v43, 0  ;;  %v8478_v6 = vpop.eup %8477  ;;  %vm2770_vm9 = vc.u32 %v10484_v53, %v10453_v56  ;;  %v2924_v17 = vand.u32 2139095040, %v10476_v31  ;;  %v2825_v9 = vor.u32 8388608, %v2824_v1 }
 0x2a3   : > { %v2680_v32 = vsel %vm7902_vm6, 0, %v7901_v43  ;;  %v2827_v55 = vadd.s32 1, %v7907_v47  ;;  %v8480_v8 = vpop.eup %8479  ;;  %v2605_v63 = vxor.u32 2147483648, %v8478_v6  ;;  %v2772_v3 = vsel %vm2770_vm9, %v2771_v22, %v10454_v24 }
 0x2a4   : > { %v2681_v29 = vsub.s32 32, %v2680_v32  ;;  %v2685_v41 = vsub.s32 4294967266, %v2680_v32  ;;  %v2602_v21 = vxor.u32 2147483648, %v8480_v8  ;;  %v2682_v10 = vshll.u32 %v10431_v27, %v2680_v32 }
 0x2a5   : > { %vm2828_vm11 = vcmp.gt.s32.totalorder %v2827_v55, 0  ;;  %v2606_v44 = vsel %vm2604_vm15, %v2605_v63, %v8480_v8  ;;  %v2773_v25 = vadd.s32 %v2772_v3, %v2768_v36  ;;  %v2921_v27 = vand.u32 2147483647, %v10476_v31 }
 0x2a6   : > { %v2683_v48 = vshrl.u32 %v2665_v15, %v2681_v29  ;;  %v2686_v28 = vadd.s32 127, %v2685_v41  ;;  %v2603_v4 = vsel %vm2601_vm8, %v8478_v6, %v2602_v21  ;;  %v2829_v61 = vsel %vm2828_vm11, %v2827_v55, 0 }
 0x2a7   : > { %v2925_v57 = vshrl.u32 %v2924_v17, 23  ;;  %v2607_v13 = vsel %vm2600_vm5, %v2603_v4, %v2606_v44  ;;  %v2774_v24 = vadd.s32 536870912, %v2773_v25  ;;  %v10514_v12 = vmul.f32 %v7781_v45, %v8800_v14 }
 0x2a8   : > { %v2684_v18 = vor.u32 %v2683_v48, %v2682_v10  ;;  %v2687_v40 = vshll.u32 %v2686_v28, 23  ;;  %v10517_v20 = vadd.f32 %v10504_v16, %v645_v26  ;;  %v2608_v2 = vsel %vm2597_vm2, nan, %v2607_v13 }
 0x2a9   : > { %v2831_v23 = vand.u32 31, %v2829_v61  ;;  %v10521_v5 = vand.u32 3, %v2702_v19  ;;  %vm2715_vm12 = vcmp.lt.s32.totalorder %v10278_v30, 0  ;;  %v2775_v38 = vshrl.u32 %v2774_v24, 30  ;;  %7616 = vst.msk [vmem:[%s9134_s13 + $0x78] sm:$0xff] %vm266_vm1, %v2608_v2 }
 0x2aa   : > { %v2688_v50 = vor.u32 4788187, %v2687_v40  ;;  %v10526_v33 = vshll.u32 %v2825_v9, 8  ;;  %v7911_v45 = vadd.s32 4294967169, %v2925_v57  ;;  %v10530_v26 = vand.u32 8388607, %v2921_v27 }
 0x2ab   : > { %v2832_v51 = vsub.s32 32, %v2831_v23  ;;  %v2691_v52 = vcvt.s32.f32 %v2684_v18  ;;  %v10534_v42 = vadd.s32 %v10453_v56, %v10484_v53  ;;  %v2776_v49 = vshll.u32 %v2775_v38, 30 }
 0x2ac   : > { %v2689_v34 = vand.u32 2147483647, %v2688_v50  ;;  %v2830_v43 = vshrl.u32 %v2829_v61, 5  ;;  %v2834_v36 = vshll.u32 %v8715_v54, %v2831_v23  ;;  %vm10545_vm10 = vcmp.le.f32.partialorder %v2713_v59, 0.7853982 }
 0x2ad   : > { %v2835_v1 = vshrl.u32 %v8716_v58, %v2832_v51  ;;  %v2838_v22 = vshrl.u32 %v8717_v60, %v2832_v51  ;;  %v2841_v47 = vshrl.u32 %v8718_v62, %v2832_v51  ;;  %v10539_v19 = vsub.s32 %v2773_v25, %v2776_v49 }
 0x2ae   : > { %v2692_v15 = vmul.f32 %v2691_v52, %v2689_v34  ;;  %v2844_v6 = vshrl.u32 %v8719_v0, %v2832_v51  ;;  %v2799_v53 = vsub.s32 4, %v2775_v38  ;;  %v2837_v32 = vshll.u32 %v8716_v58, %v2831_v23 }
 0x2af   : > { %v2840_v55 = vshll.u32 %v8717_v60, %v2831_v23  ;;  %v2931_v17 = vadd.s32 1, %v7911_v45  ;;  %v2779_v63 = vsub.s32 0, %v10539_v19  ;;  %v2836_v29 = vor.u32 %v2835_v1, %v2834_v36 }
 0x2b0   : > { %v2693_v8 = vxor.u32 2147483648, %v2692_v15  ;;  %v2843_v41 = vshll.u32 %v8718_v62, %v2831_v23  ;;  %v2839_v9 = vor.u32 %v2838_v22, %v2837_v32  ;;  %v2846_v10 = vshll.u32 %v8719_v0, %v2831_v23 }
 0x2b1   : > { %v2842_v21 = vor.u32 %v2841_v47, %v2840_v55  ;;  %v2847_v59 = vshrl.u32 %v8720_v7, %v2832_v51  ;;  %v7904_v44 = vmin.u32 %v2779_v63, %v10539_v19  ;;  %v2833_v48 = vshrl.u32 %v8715_v54, %v2832_v51 }
 0x2b2   : > { %v2694_v3 = vsel %vm2611_vm0, %v2693_v8, %v2692_v15  ;;  %v2845_v28 = vor.u32 %v2844_v6, %v2843_v41  ;;  %v2800_v4 = vsel %vm2715_vm12, %v2799_v53, %v2775_v38  ;;  %vm2849_vm4 = vcmp.lt.s32.totalorder %v2830_v43, 1 }
 0x2b3   : > { %v2697_v25 = vsel %vm10466_vm14, %v10121_v46, %v2694_v3  ;;  %v2848_v61 = vor.u32 %v2847_v59, %v2846_v10  ;;  %v2781_v57 = vclz %v7904_v44  ;;  %vm2850_vm7 = vcmp.lt.s32.totalorder %v2830_v43, 2 }
 0x2b4   : > { %8481 = vcosq.f32 %v2697_v25  ;;  %vm2852_vm13 = vcmp.lt.s32.totalorder %v2830_v43, 4  ;;  %vm2851_vm0 = vcmp.lt.s32.totalorder %v2830_v43, 3  ;;  %v2857_v18 = vsel %vm2849_vm4, %v2836_v29, %v2839_v9 }
 0x2b5   : > { %8483 = vsinq.f32 %v2697_v25  ;;  %v2854_v13 = vsel %vm2852_vm13, %v2842_v21, 2102212464  ;;  %v7905_v40 = vadd.s32 4294967294, %v2781_v57  ;;  %v2853_v24 = vsel %vm2849_vm4, %v2833_v48, %v2836_v29 }
 0x2b6   : > { %v2858_v2 = vsel %vm2852_vm13, %v2845_v28, 920167782  ;;  %v2861_v23 = vsel %vm2849_vm4, %v2839_v9, %v2842_v21  ;;  %v2855_v50 = vsel %vm2851_vm0, %v2839_v9, %v2854_v13  ;;  %v2862_v51 = vsel %vm2852_vm13, %v2848_v61, 1326507024 }
 0x2b7   : > { %v2859_v39 = vsel %vm2851_vm0, %v2842_v21, %v2858_v2  ;;  %vm2932_vm3 = vcmp.gt.s32.totalorder %v2931_v17, 0  ;;  %vm7906_vm14 = vcmp.lt.s32.totalorder %v7905_v40, 0  ;;  %v2802_v38 = vsel %vm10545_vm10, 0, %v2800_v4 }
 0x2b8   : > { %v2860_v45 = vsel %vm2850_vm7, %v2857_v18, %v2859_v39  ;;  %v2863_v34 = vsel %vm2851_vm0, %v2845_v28, %v2862_v51  ;;  %vm2705_vm2 = vcmp.eq.s32.totalorder %v10521_v5, 0  ;;  %v2784_v52 = vsel %vm7906_vm14, 0, %v7905_v40 }
 0x2b9   : > { %v2864_v49 = vsel %vm2850_vm7, %v2861_v23, %v2863_v34  ;;  %v10570_v1 = vmul.u32.u64.low %v10526_v33, %v2860_v45  ;;  %v10571_v22 = vmul.u32.u64.high %v10526_v33, %v2860_v45, %v10570_v1  ;;  %vm2704_vm5 = vcmp.lt.s32.totalorder %v10521_v5, 2 }
 0x2ba   : > { %v2785_v47 = vsub.s32 32, %v2784_v52  ;;  %v2789_v15 = vsub.s32 4294967266, %v2784_v52  ;;  %v2856_v36 = vsel %vm2850_vm7, %v2853_v24, %v2855_v50  ;;  %v2933_v6 = vsel %vm2932_vm3, %v2931_v17, 0 }
 0x2bb   : > { %vm2701_vm8 = vweird.f32 %v10121_v46  ;;  %vm2708_vm15 = vcmp.eq.s32.totalorder %v10521_v5, 2  ;;  %v10579_v53 = vmul.u32.u64.low %v10526_v33, %v2864_v49  ;;  %v10580_v32 = vmul.u32.u64.high %v10526_v33, %v2864_v49, %v10579_v53 }
 0x2bc   : > { %v2935_v55 = vand.u32 31, %v2933_v6  ;;  %v2786_v8 = vshll.u32 %v10539_v19, %v2784_v52  ;;  %v2787_v63 = vshrl.u32 %v10534_v42, %v2785_v47  ;;  %v2790_v29 = vadd.s32 127, %v2789_v15 }
 0x2bd   : > { %v2929_v41 = vor.u32 8388608, %v10530_v26  ;;  %v2806_v9 = vadd.s32 3, %v2802_v38  ;;  %v2872_v43 = vmul.u32 %v10526_v33, %v2856_v36  ;;  %v2875_v17 = vadd.s32 1, %v10571_v22 }
 0x2be   : > { %v2936_v21 = vsub.s32 32, %v2935_v55  ;;  %v8482_v10 = vpop.eup %8481  ;;  %v2788_v59 = vor.u32 %v2787_v63, %v2786_v8  ;;  %v2791_v3 = vshll.u32 %v2790_v29, 23  ;;  %v10587_v44 = vshrl.u32 %v2933_v6, 5 }
 0x2bf   : > { %v2938_v48 = vshll.u32 %v8715_v54, %v2935_v55  ;;  %v8484_v28 = vpop.eup %8483  ;;  %v2709_v19 = vxor.u32 2147483648, %v8482_v10  ;;  %vm2874_vm6 = vc.u32 %v10580_v32, %v10570_v1  ;;  %v2941_v26 = vshll.u32 %v8716_v58, %v2935_v55 }
 0x2c0   : > { %v2947_v42 = vshll.u32 %v8718_v62, %v2935_v55  ;;  %v2706_v33 = vxor.u32 2147483648, %v8484_v28  ;;  %v2792_v25 = vor.u32 4788187, %v2791_v3  ;;  %v2795_v4 = vcvt.s32.f32 %v2788_v59 }
 0x2c1   : > { %v2876_v61 = vsel %vm2874_vm6, %v2875_v17, %v10571_v22  ;;  %v2710_v57 = vsel %vm2708_vm15, %v2709_v19, %v8484_v28  ;;  %v2939_v18 = vshrl.u32 %v8716_v58, %v2936_v21  ;;  %v2942_v40 = vshrl.u32 %v8717_v60, %v2936_v21  ;;  %v7782_v19 = vld [vmem:[%s15037_s2 + $0xb] ss:$0 sm:$0xff] }
 0x2c2   : > { %v2877_v13 = vadd.s32 %v2876_v61, %v2872_v43  ;;  %v2707_v24 = vsel %vm2705_vm2, %v8482_v10, %v2706_v33  ;;  %v2793_v2 = vand.u32 2147483647, %v2792_v25  ;;  %vm2819_vm9 = vcmp.lt.s32.totalorder %v10319_v37, 0 }
 0x2c3   : > { %v2945_v23 = vshrl.u32 %v8718_v62, %v2936_v21  ;;  %v2948_v50 = vshrl.u32 %v8719_v0, %v2936_v21  ;;  %v2711_v39 = vsel %vm2704_vm5, %v2707_v24, %v2710_v57  ;;  %v2940_v38 = vor.u32 %v2939_v18, %v2938_v48 }
 0x2c4   : > { %v2878_v51 = vadd.s32 536870912, %v2877_v13  ;;  %v2944_v45 = vshll.u32 %v8717_v60, %v2935_v55  ;;  %v2712_v34 = vsel %vm2701_vm8, nan, %v2711_v39  ;;  %v2796_v52 = vmul.f32 %v2795_v4, %v2793_v2 }
 0x2c5   : > { %v2943_v49 = vor.u32 %v2942_v40, %v2941_v26  ;;  %v2949_v22 = vor.u32 %v2948_v50, %v2947_v42  ;;  %v10609_v47 = vand.u32 3, %v2806_v9  ;;  %v2951_v36 = vshrl.u32 %v8720_v7, %v2936_v21  ;;  %7617 = vst.msk [vmem:[%s9134_s13 + $0x80] sm:$0xff] %vm266_vm1, %v2712_v34 }
 0x2c6   : > { %v2879_v15 = vshrl.u32 %v2878_v51, 30  ;;  %v10612_v6 = vshll.u32 %v2929_v41, 8  ;;  %v2797_v5 = vxor.u32 2147483648, %v2796_v52  ;;  %v2946_v53 = vor.u32 %v2945_v23, %v2944_v45 }
 0x2c7   : > { %v2950_v8 = vshll.u32 %v8719_v0, %v2935_v55  ;;  %v3025_v63 = vand.u32 2147483647, %v10517_v20  ;;  %vm2953_vm11 = vcmp.lt.s32.totalorder %v10587_v44, 1  ;;  %vm2956_vm4 = vcmp.lt.s32.totalorder %v10587_v44, 4 }
 0x2c8   : > { %v2880_v46 = vshll.u32 %v2879_v15, 30  ;;  %v2903_v29 = vsub.s32 4, %v2879_v15  ;;  %v2798_v9 = vsel %vm2715_vm12, %v2797_v5, %v2796_v52  ;;  %v2961_v41 = vsel %vm2953_vm11, %v2940_v38, %v2943_v49 }
 0x2c9   : > { %v2952_v43 = vor.u32 %v2951_v36, %v2950_v8  ;;  %v2962_v17 = vsel %vm2956_vm4, %v2949_v22, 920167782  ;;  %v2801_v55 = vsel %vm10545_vm10, %v10278_v30, %v2798_v9  ;;  %v2937_v59 = vshrl.u32 %v8715_v54, %v2936_v21 }
 0x2ca   : > { %v10629_v10 = vsub.s32 %v2877_v13, %v2880_v46  ;;  %vm2955_vm7 = vcmp.lt.s32.totalorder %v10587_v44, 3  ;;  %8485 = vcosq.f32 %v2801_v55  ;;  %vm2954_vm12 = vcmp.lt.s32.totalorder %v10587_v44, 2 }
 0x2cb   : > { %v2958_v3 = vsel %vm2956_vm4, %v2946_v53, 2102212464  ;;  %v2963_v48 = vsel %vm2955_vm7, %v2946_v53, %v2962_v17  ;;  %8487 = vsinq.f32 %v2801_v55  ;;  %v2904_v56 = vsel %vm2819_vm9, %v2903_v29, %v2879_v15 }
 0x2cc   : > { %v2883_v28 = vsub.s32 0, %v10629_v10  ;;  %v2964_v21 = vsel %vm2954_vm12, %v2961_v41, %v2963_v48  ;;  %v2965_v26 = vsel %vm2953_vm11, %v2943_v49, %v2946_v53  ;;  %v2966_v42 = vsel %vm2956_vm4, %v2952_v43, 1326507024 }
 0x2cd   : > { %v10651_v33 = vmul.u32.u64.low %v10612_v6, %v2964_v21  ;;  %v10652_v25 = vmul.u32.u64.high %v10612_v6, %v2964_v21, %v10651_v33  ;;  %v2957_v61 = vsel %vm2953_vm11, %v2937_v59, %v2940_v38  ;;  %v2959_v57 = vsel %vm2955_vm7, %v2943_v49, %v2958_v3 }
 0x2ce   : > { %v7908_v4 = vmin.u32 %v2883_v28, %v10629_v10  ;;  %v2967_v13 = vsel %vm2955_vm7, %v2949_v22, %v2966_v42  ;;  %vm10664_vm10 = vcmp.le.f32.partialorder %v2817_v35, 0.7853982  ;;  %v3028_v24 = vand.u32 2139095040, %v10517_v20 }
 0x2cf   : > { %v2968_v40 = vsel %vm2954_vm12, %v2965_v26, %v2967_v13  ;;  %v647_v2 = vmul.f32 %v7782_v19, %v8798_v11  ;;  %v10674_v23 = vadd.f32 %v10504_v16, %v10514_v12  ;;  %v2906_v39 = vsel %vm10664_vm10, 0, %v2904_v56 }
 0x2d0   : > { %v2885_v50 = vclz %v7908_v4  ;;  %v2960_v35 = vsel %vm2954_vm12, %v2957_v61, %v2959_v57  ;;  %v10681_v51 = vmul.u32.u64.low %v10612_v6, %v2968_v40  ;;  %v10682_v38 = vmul.u32.u64.high %v10612_v6, %v2968_v40, %v10681_v51 }
 0x2d1   : > { %v3029_v45 = vshrl.u32 %v3028_v24, 23  ;;  %vm2805_vm13 = vweird.f32 %v10278_v30  ;;  %vm2808_vm0 = vcmp.lt.s32.totalorder %v10609_v47, 2  ;;  %v3032_v16 = vand.u32 8388607, %v3025_v63 }
 0x2d2   : > { %v7909_v34 = vadd.s32 4294967294, %v2885_v50  ;;  %vm2809_vm3 = vcmp.eq.s32.totalorder %v10609_v47, 0  ;;  %vm2812_vm14 = vcmp.eq.s32.totalorder %v10609_v47, 2  ;;  %v2979_v12 = vadd.s32 1, %v10652_v25 }
 0x2d3   : > { %v7915_v44 = vadd.s32 4294967169, %v3029_v45  ;;  %v2873_v52 = vadd.s32 %v10570_v1, %v10580_v32  ;;  %v2910_v49 = vadd.s32 3, %v2906_v39  ;;  %v2976_v22 = vmul.u32 %v10612_v6, %v2960_v35  ;;  %v10702_v6 = vld [vmem:[%s15038_s3 + $0xb] ss:$0 sm:$0xff] }
 0x2d4   : > { %vm7910_vm2 = vcmp.lt.s32.totalorder %v7909_v34, 0  ;;  %v8486_v15 = vpop.eup %8485  ;;  %vm2978_vm5 = vc.u32 %v10682_v38, %v10651_v33  ;;  %v3132_v53 = vand.u32 2139095040, %v10674_v23  ;;  %v3033_v43 = vor.u32 8388608, %v3032_v16 }
 0x2d5   : > { %v2888_v36 = vsel %vm7910_vm2, 0, %v7909_v34  ;;  %v3035_v5 = vadd.s32 1, %v7915_v44  ;;  %v8488_v8 = vpop.eup %8487  ;;  %v2813_v46 = vxor.u32 2147483648, %v8486_v15  ;;  %v2980_v32 = vsel %vm2978_vm5, %v2979_v12, %v10652_v25 }
 0x2d6   : > { %v2889_v29 = vsub.s32 32, %v2888_v36  ;;  %v2893_v9 = vsub.s32 4294967266, %v2888_v36  ;;  %v2810_v41 = vxor.u32 2147483648, %v8488_v8  ;;  %v2890_v1 = vshll.u32 %v10629_v10, %v2888_v36 }
 0x2d7   : > { %vm3036_vm8 = vcmp.gt.s32.totalorder %v3035_v5, 0  ;;  %v2814_v17 = vsel %vm2812_vm14, %v2813_v46, %v8488_v8  ;;  %v2981_v3 = vadd.s32 %v2980_v32, %v2976_v22  ;;  %v3129_v10 = vand.u32 2147483647, %v10674_v23 }
 0x2d8   : > { %v2891_v55 = vshrl.u32 %v2873_v52, %v2889_v29  ;;  %v2894_v59 = vadd.s32 127, %v2893_v9  ;;  %v2811_v48 = vsel %vm2809_vm3, %v8486_v15, %v2810_v41  ;;  %v3037_v28 = vsel %vm3036_vm8, %v3035_v5, 0 }
 0x2d9   : > { %v3133_v56 = vshrl.u32 %v3132_v53, 23  ;;  %v2815_v21 = vsel %vm2808_vm0, %v2811_v48, %v2814_v17  ;;  %v2982_v25 = vadd.s32 536870912, %v2981_v3  ;;  %v10712_v4 = vmul.f32 %v7782_v19, %v8800_v14 }
 0x2da   : > { %v2892_v26 = vor.u32 %v2891_v55, %v2890_v1  ;;  %v2895_v42 = vshll.u32 %v2894_v59, 23  ;;  %v10715_v61 = vadd.f32 %v10702_v6, %v647_v2  ;;  %v2816_v57 = vsel %vm2805_vm13, nan, %v2815_v21 }
 0x2db   : > { %v3039_v13 = vand.u32 31, %v3037_v28  ;;  %v10719_v24 = vand.u32 3, %v2910_v49  ;;  %vm2923_vm15 = vcmp.lt.s32.totalorder %v10476_v31, 0  ;;  %v2983_v47 = vshrl.u32 %v2982_v25, 30  ;;  %7618 = vst.msk [vmem:[%s9134_s13 + $0x88] sm:$0xff] %vm266_vm1, %v2816_v57 }
 0x2dc   : > { %v2896_v40 = vor.u32 4788187, %v2895_v42  ;;  %v10724_v39 = vshll.u32 %v3033_v43, 8  ;;  %v7919_v19 = vadd.s32 4294967169, %v3133_v56  ;;  %v10728_v2 = vand.u32 8388607, %v3129_v10 }
 0x2dd   : > { %v3040_v50 = vsub.s32 32, %v3039_v13  ;;  %v2899_v30 = vcvt.s32.f32 %v2892_v26  ;;  %v10732_v51 = vadd.s32 %v10651_v33, %v10682_v38  ;;  %v2984_v45 = vshll.u32 %v2983_v47, 30 }
 0x2de   : > { %v2897_v35 = vand.u32 2147483647, %v2896_v40  ;;  %v3038_v34 = vshrl.u32 %v3037_v28, 5  ;;  %v3042_v22 = vshll.u32 %v8715_v54, %v3039_v13  ;;  %vm10743_vm6 = vcmp.le.f32.partialorder %v2921_v27, 0.7853982 }
 0x2df   : > { %v3043_v16 = vshrl.u32 %v8716_v58, %v3040_v50  ;;  %v3046_v12 = vshrl.u32 %v8717_v60, %v3040_v50  ;;  %v3049_v44 = vshrl.u32 %v8718_v62, %v3040_v50  ;;  %v10737_v49 = vsub.s32 %v2981_v3, %v2984_v45 }
 0x2e0   : > { %v2900_v52 = vmul.f32 %v2899_v30, %v2897_v35  ;;  %v3052_v15 = vshrl.u32 %v8719_v0, %v3040_v50  ;;  %v3007_v38 = vsub.s32 4, %v2983_v47  ;;  %v3045_v36 = vshll.u32 %v8716_v58, %v3039_v13 }
 0x2e1   : > { %v3048_v5 = vshll.u32 %v8717_v60, %v3039_v13  ;;  %v3139_v53 = vadd.s32 1, %v7919_v19  ;;  %v2987_v46 = vsub.s32 0, %v10737_v49  ;;  %v3044_v29 = vor.u32 %v3043_v16, %v3042_v22 }
 0x2e2   : > { %v2901_v8 = vxor.u32 2147483648, %v2900_v52  ;;  %v3051_v9 = vshll.u32 %v8718_v62, %v3039_v13  ;;  %v3047_v43 = vor.u32 %v3046_v12, %v3045_v36  ;;  %v3054_v1 = vshll.u32 %v8719_v0, %v3039_v13 }
 0x2e3   : > { %v3050_v41 = vor.u32 %v3049_v44, %v3048_v5  ;;  %v3055_v27 = vshrl.u32 %v8720_v7, %v3040_v50  ;;  %v7912_v17 = vmin.u32 %v2987_v46, %v10737_v49  ;;  %v3041_v55 = vshrl.u32 %v8715_v54, %v3040_v50 }
 0x2e4   : > { %v2902_v32 = vsel %vm2819_vm9, %v2901_v8, %v2900_v52  ;;  %v3053_v59 = vor.u32 %v3052_v15, %v3051_v9  ;;  %v3008_v48 = vsel %vm2923_vm15, %v3007_v38, %v2983_v47  ;;  %vm3057_vm11 = vcmp.lt.s32.totalorder %v3038_v34, 1 }
 0x2e5   : > { %v2905_v3 = vsel %vm10664_vm10, %v10319_v37, %v2902_v32  ;;  %v3056_v28 = vor.u32 %v3055_v27, %v3054_v1  ;;  %v2989_v56 = vclz %v7912_v17  ;;  %vm3058_vm4 = vcmp.lt.s32.totalorder %v3038_v34, 2 }
 0x2e6   : > { %8489 = vcosq.f32 %v2905_v3  ;;  %vm3060_vm7 = vcmp.lt.s32.totalorder %v3038_v34, 4  ;;  %vm3059_vm9 = vcmp.lt.s32.totalorder %v3038_v34, 3  ;;  %v3065_v26 = vsel %vm3057_vm11, %v3044_v29, %v3047_v43 }
 0x2e7   : > { %8491 = vsinq.f32 %v2905_v3  ;;  %v3062_v21 = vsel %vm3060_vm7, %v3050_v41, 2102212464  ;;  %v7913_v42 = vadd.s32 4294967294, %v2989_v56  ;;  %v3061_v25 = vsel %vm3057_vm11, %v3041_v55, %v3044_v29 }
 0x2e8   : > { %v3066_v57 = vsel %vm3060_vm7, %v3053_v59, 920167782  ;;  %v3069_v13 = vsel %vm3057_vm11, %v3047_v43, %v3050_v41  ;;  %v3063_v40 = vsel %vm3059_vm9, %v3047_v43, %v3062_v21  ;;  %v3070_v50 = vsel %vm3060_vm7, %v3056_v28, 1326507024 }
 0x2e9   : > { %v3067_v18 = vsel %vm3059_vm9, %v3050_v41, %v3066_v57  ;;  %vm3140_vm12 = vcmp.gt.s32.totalorder %v3139_v53, 0  ;;  %vm7914_vm10 = vcmp.lt.s32.totalorder %v7913_v42, 0  ;;  %v3010_v47 = vsel %vm10743_vm6, 0, %v3008_v48 }
 0x2ea   : > { %v3068_v19 = vsel %vm3058_vm4, %v3065_v26, %v3067_v18  ;;  %v3071_v35 = vsel %vm3059_vm9, %v3053_v59, %v3070_v50  ;;  %vm2913_vm13 = vcmp.eq.s32.totalorder %v10719_v24, 0  ;;  %v2992_v30 = vsel %vm7914_vm10, 0, %v7913_v42 }
 0x2eb   : > { %v3072_v45 = vsel %vm3058_vm4, %v3069_v13, %v3071_v35  ;;  %v10768_v16 = vmul.u32.u64.low %v10724_v39, %v3068_v19  ;;  %v10769_v12 = vmul.u32.u64.high %v10724_v39, %v3068_v19, %v10768_v16  ;;  %vm2912_vm0 = vcmp.lt.s32.totalorder %v10719_v24, 2 }
 0x2ec   : > { %v2993_v44 = vsub.s32 32, %v2992_v30  ;;  %v2997_v52 = vsub.s32 4294967266, %v2992_v30  ;;  %v3064_v22 = vsel %vm3058_vm4, %v3061_v25, %v3063_v40  ;;  %v3141_v15 = vsel %vm3140_vm12, %v3139_v53, 0 }
 0x2ed   : > { %vm2909_vm3 = vweird.f32 %v10319_v37  ;;  %vm2916_vm14 = vcmp.eq.s32.totalorder %v10719_v24, 2  ;;  %v10777_v38 = vmul.u32.u64.low %v10724_v39, %v3072_v45  ;;  %v10778_v36 = vmul.u32.u64.high %v10724_v39, %v3072_v45, %v10777_v38 }
 0x2ee   : > { %v3143_v5 = vand.u32 31, %v3141_v15  ;;  %v2994_v8 = vshll.u32 %v10737_v49, %v2992_v30  ;;  %v2995_v46 = vshrl.u32 %v10732_v51, %v2993_v44  ;;  %v2998_v29 = vadd.s32 127, %v2997_v52 }
 0x2ef   : > { %v3137_v9 = vor.u32 8388608, %v10728_v2  ;;  %v3014_v43 = vadd.s32 3, %v3010_v47  ;;  %v3080_v34 = vmul.u32 %v10724_v39, %v3064_v22  ;;  %v3083_v53 = vadd.s32 1, %v10769_v12 }
 0x2f0   : > { %v3144_v41 = vsub.s32 32, %v3143_v5  ;;  %v8490_v1 = vpop.eup %8489  ;;  %v2996_v27 = vor.u32 %v2995_v46, %v2994_v8  ;;  %v2999_v32 = vshll.u32 %v2998_v29, 23  ;;  %v10785_v17 = vshrl.u32 %v3141_v15, 5 }
 0x2f1   : > { %v3146_v55 = vshll.u32 %v8715_v54, %v3143_v5  ;;  %v8492_v59 = vpop.eup %8491  ;;  %v2917_v49 = vxor.u32 2147483648, %v8490_v1  ;;  %vm3082_vm2 = vc.u32 %v10778_v36, %v10768_v16  ;;  %v3149_v2 = vshll.u32 %v8716_v58, %v3143_v5 }
 0x2f2   : > { %v3155_v51 = vshll.u32 %v8718_v62, %v3143_v5  ;;  %v2914_v39 = vxor.u32 2147483648, %v8492_v59  ;;  %v3000_v3 = vor.u32 4788187, %v2999_v32  ;;  %v3003_v48 = vcvt.s32.f32 %v2996_v27 }
 0x2f3   : > { %v3084_v28 = vsel %vm3082_vm2, %v3083_v53, %v10769_v12  ;;  %v2918_v56 = vsel %vm2916_vm14, %v2917_v49, %v8492_v59  ;;  %v3147_v26 = vshrl.u32 %v8716_v58, %v3144_v41  ;;  %v3150_v42 = vshrl.u32 %v8717_v60, %v3144_v41  ;;  %v7783_v49 = vld [vmem:[%s15037_s2 + $0xc] ss:$0 sm:$0xff] }
 0x2f4   : > { %v3085_v21 = vadd.s32 %v3084_v28, %v3080_v34  ;;  %v2915_v25 = vsel %vm2913_vm13, %v8490_v1, %v2914_v39  ;;  %v3001_v57 = vand.u32 2147483647, %v3000_v3  ;;  %vm3027_vm5 = vcmp.lt.s32.totalorder %v10517_v20, 0 }
 0x2f5   : > { %v3153_v13 = vshrl.u32 %v8718_v62, %v3144_v41  ;;  %v3156_v40 = vshrl.u32 %v8719_v0, %v3144_v41  ;;  %v2919_v18 = vsel %vm2912_vm0, %v2915_v25, %v2918_v56  ;;  %v3148_v47 = vor.u32 %v3147_v26, %v3146_v55 }
 0x2f6   : > { %v3086_v50 = vadd.s32 536870912, %v3085_v21  ;;  %v3152_v19 = vshll.u32 %v8717_v60, %v3143_v5  ;;  %v2920_v35 = vsel %vm2909_vm3, nan, %v2919_v18  ;;  %v3004_v30 = vmul.f32 %v3003_v48, %v3001_v57 }
 0x2f7   : > { %v3151_v45 = vor.u32 %v3150_v42, %v3149_v2  ;;  %v3157_v12 = vor.u32 %v3156_v40, %v3155_v51  ;;  %v10807_v44 = vand.u32 3, %v3014_v43  ;;  %v3159_v22 = vshrl.u32 %v8720_v7, %v3144_v41  ;;  %7619 = vst.msk [vmem:[%s9134_s13 + $0x90] sm:$0xff] %vm266_vm1, %v2920_v35 }
 0x2f8   : > { %v3087_v52 = vshrl.u32 %v3086_v50, 30  ;;  %v10810_v15 = vshll.u32 %v3137_v9, 8  ;;  %v3005_v24 = vxor.u32 2147483648, %v3004_v30  ;;  %v3154_v38 = vor.u32 %v3153_v13, %v3152_v19 }
 0x2f9   : > { %v3158_v8 = vshll.u32 %v8719_v0, %v3143_v5  ;;  %v3233_v46 = vand.u32 2147483647, %v10715_v61  ;;  %vm3161_vm8 = vcmp.lt.s32.totalorder %v10785_v17, 1  ;;  %vm3164_vm11 = vcmp.lt.s32.totalorder %v10785_v17, 4 }
 0x2fa   : > { %v3088_v37 = vshll.u32 %v3087_v52, 30  ;;  %v3111_v29 = vsub.s32 4, %v3087_v52  ;;  %v3006_v43 = vsel %vm2923_vm15, %v3005_v24, %v3004_v30  ;;  %v3169_v9 = vsel %vm3161_vm8, %v3148_v47, %v3151_v45 }
 0x2fb   : > { %v3160_v34 = vor.u32 %v3159_v22, %v3158_v8  ;;  %v3170_v53 = vsel %vm3164_vm11, %v3157_v12, 920167782  ;;  %v3009_v5 = vsel %vm10743_vm6, %v10476_v31, %v3006_v43  ;;  %v3145_v27 = vshrl.u32 %v8715_v54, %v3144_v41 }
 0x2fc   : > { %v10827_v1 = vsub.s32 %v3085_v21, %v3088_v37  ;;  %vm3163_vm4 = vcmp.lt.s32.totalorder %v10785_v17, 3  ;;  %8493 = vcosq.f32 %v3009_v5  ;;  %vm3162_vm15 = vcmp.lt.s32.totalorder %v10785_v17, 2 }
 0x2fd   : > { %v3166_v32 = vsel %vm3164_vm11, %v3154_v38, 2102212464  ;;  %v3171_v55 = vsel %vm3163_vm4, %v3154_v38, %v3170_v53  ;;  %8495 = vsinq.f32 %v3009_v5  ;;  %v3112_v33 = vsel %vm3027_vm5, %v3111_v29, %v3087_v52 }
 0x2fe   : > { %v3091_v59 = vsub.s32 0, %v10827_v1  ;;  %v3172_v41 = vsel %vm3162_vm15, %v3169_v9, %v3171_v55  ;;  %v3173_v2 = vsel %vm3161_vm8, %v3151_v45, %v3154_v38  ;;  %v3174_v51 = vsel %vm3164_vm11, %v3160_v34, 1326507024 }
 0x2ff   : > { %v10849_v39 = vmul.u32.u64.low %v10810_v15, %v3172_v41  ;;  %v10850_v3 = vmul.u32.u64.high %v10810_v15, %v3172_v41, %v10849_v39  ;;  %v3165_v28 = vsel %vm3161_vm8, %v3145_v27, %v3148_v47  ;;  %v3167_v56 = vsel %vm3163_vm4, %v3151_v45, %v3166_v32 }
 0x300   : > { %v7916_v48 = vmin.u32 %v3091_v59, %v10827_v1  ;;  %v3175_v21 = vsel %vm3163_vm4, %v3157_v12, %v3174_v51  ;;  %vm10862_vm6 = vcmp.le.f32.partialorder %v3025_v63, 0.7853982  ;;  %v3236_v25 = vand.u32 2139095040, %v10715_v61 }
 0x301   : > { %v3176_v42 = vsel %vm3162_vm15, %v3173_v2, %v3175_v21  ;;  %v649_v57 = vmul.f32 %v7783_v49, %v8798_v11  ;;  %v10872_v13 = vadd.f32 %v10702_v6, %v10712_v4  ;;  %v3114_v18 = vsel %vm10862_vm6, 0, %v3112_v33 }
 0x302   : > { %v3093_v40 = vclz %v7916_v48  ;;  %v3168_v63 = vsel %vm3162_vm15, %v3165_v28, %v3167_v56  ;;  %v10879_v50 = vmul.u32.u64.low %v10810_v15, %v3176_v42  ;;  %v10880_v47 = vmul.u32.u64.high %v10810_v15, %v3176_v42, %v10879_v50 }
 0x303   : > { %v3237_v19 = vshrl.u32 %v3236_v25, 23  ;;  %vm3013_vm7 = vweird.f32 %v10476_v31  ;;  %vm3016_vm9 = vcmp.lt.s32.totalorder %v10807_v44, 2  ;;  %v3240_v6 = vand.u32 8388607, %v3233_v46 }
 0x304   : > { %v7917_v35 = vadd.s32 4294967294, %v3093_v40  ;;  %vm3017_vm12 = vcmp.eq.s32.totalorder %v10807_v44, 0  ;;  %vm3020_vm10 = vcmp.eq.s32.totalorder %v10807_v44, 2  ;;  %v3187_v4 = vadd.s32 1, %v10850_v3 }
 0x305   : > { %v7923_v17 = vadd.s32 4294967169, %v3237_v19  ;;  %v3081_v30 = vadd.s32 %v10768_v16, %v10778_v36  ;;  %v3118_v45 = vadd.s32 3, %v3114_v18  ;;  %v3184_v12 = vmul.u32 %v10810_v15, %v3168_v63  ;;  %v10900_v15 = vld [vmem:[%s15038_s3 + $0xc] ss:$0 sm:$0xff] }
 0x306   : > { %vm7918_vm13 = vcmp.lt.s32.totalorder %v7917_v35, 0  ;;  %v8494_v52 = vpop.eup %8493  ;;  %vm3186_vm0 = vc.u32 %v10880_v47, %v10849_v39  ;;  %v3340_v38 = vand.u32 2139095040, %v10872_v13  ;;  %v3241_v34 = vor.u32 8388608, %v3240_v6 }
 0x307   : > { %v3096_v22 = vsel %vm7918_vm13, 0, %v7917_v35  ;;  %v3243_v24 = vadd.s32 1, %v7923_v17  ;;  %v8496_v8 = vpop.eup %8495  ;;  %v3021_v37 = vxor.u32 2147483648, %v8494_v52  ;;  %v3188_v36 = vsel %vm3186_vm0, %v3187_v4, %v10850_v3 }
 0x308   : > { %v3097_v29 = vsub.s32 32, %v3096_v22  ;;  %v3101_v43 = vsub.s32 4294967266, %v3096_v22  ;;  %v3018_v9 = vxor.u32 2147483648, %v8496_v8  ;;  %v3098_v16 = vshll.u32 %v10827_v1, %v3096_v22 }
 0x309   : > { %vm3244_vm3 = vcmp.gt.s32.totalorder %v3243_v24, 0  ;;  %v3022_v53 = vsel %vm3020_vm10, %v3021_v37, %v8496_v8  ;;  %v3189_v32 = vadd.s32 %v3188_v36, %v3184_v12  ;;  %v3337_v1 = vand.u32 2147483647, %v10872_v13 }
 0x30a   : > { %v3099_v5 = vshrl.u32 %v3081_v30, %v3097_v29  ;;  %v3102_v27 = vadd.s32 127, %v3101_v43  ;;  %v3019_v55 = vsel %vm3017_vm12, %v8494_v52, %v3018_v9  ;;  %v3245_v59 = vsel %vm3244_vm3, %v3243_v24, 0 }
 0x30b   : > { %v3341_v33 = vshrl.u32 %v3340_v38, 23  ;;  %v3023_v41 = vsel %vm3016_vm9, %v3019_v55, %v3022_v53  ;;  %v3190_v3 = vadd.s32 536870912, %v3189_v32  ;;  %v10910_v48 = vmul.f32 %v7783_v49, %v8800_v14 }
 0x30c   : > { %v3100_v2 = vor.u32 %v3099_v5, %v3098_v16  ;;  %v3103_v51 = vshll.u32 %v3102_v27, 23  ;;  %v10913_v28 = vadd.f32 %v10900_v15, %v649_v57  ;;  %v3024_v56 = vsel %vm3013_vm7, nan, %v3023_v41 }
 0x30d   : > { %v3247_v21 = vand.u32 31, %v3245_v59  ;;  %v10917_v25 = vand.u32 3, %v3118_v45  ;;  %vm3131_vm14 = vcmp.lt.s32.totalorder %v10674_v23, 0  ;;  %v3191_v44 = vshrl.u32 %v3190_v3, 30  ;;  %7620 = vst.msk [vmem:[%s9134_s13 + $0x98] sm:$0xff] %vm266_vm1, %v3024_v56 }
 0x30e   : > { %v3104_v42 = vor.u32 4788187, %v3103_v51  ;;  %v10922_v18 = vshll.u32 %v3241_v34, 8  ;;  %v7927_v49 = vadd.s32 4294967169, %v3341_v33  ;;  %v10926_v57 = vand.u32 8388607, %v3337_v1 }
 0x30f   : > { %v3248_v40 = vsub.s32 32, %v3247_v21  ;;  %v3107_v31 = vcvt.s32.f32 %v3100_v2  ;;  %v10930_v50 = vadd.s32 %v10849_v39, %v10880_v47  ;;  %v3192_v19 = vshll.u32 %v3191_v44, 30 }
 0x310   : > { %v3105_v63 = vand.u32 2147483647, %v3104_v42  ;;  %v3246_v35 = vshrl.u32 %v3245_v59, 5  ;;  %v3250_v12 = vshll.u32 %v8715_v54, %v3247_v21  ;;  %vm10941_vm2 = vcmp.le.f32.partialorder %v3129_v10, 0.7853982 }
 0x311   : > { %v3251_v6 = vshrl.u32 %v8716_v58, %v3248_v40  ;;  %v3254_v4 = vshrl.u32 %v8717_v60, %v3248_v40  ;;  %v3257_v17 = vshrl.u32 %v8718_v62, %v3248_v40  ;;  %v10935_v45 = vsub.s32 %v3189_v32, %v3192_v19 }
 0x312   : > { %v3108_v30 = vmul.f32 %v3107_v31, %v3105_v63  ;;  %v3260_v52 = vshrl.u32 %v8719_v0, %v3248_v40  ;;  %v3215_v47 = vsub.s32 4, %v3191_v44  ;;  %v3253_v22 = vshll.u32 %v8716_v58, %v3247_v21 }
 0x313   : > { %v3256_v24 = vshll.u32 %v8717_v60, %v3247_v21  ;;  %v3347_v38 = vadd.s32 1, %v7927_v49  ;;  %v3195_v37 = vsub.s32 0, %v10935_v45  ;;  %v3252_v29 = vor.u32 %v3251_v6, %v3250_v12 }
 0x314   : > { %v3109_v8 = vxor.u32 2147483648, %v3108_v30  ;;  %v3259_v43 = vshll.u32 %v8718_v62, %v3247_v21  ;;  %v3255_v34 = vor.u32 %v3254_v4, %v3253_v22  ;;  %v3262_v16 = vshll.u32 %v8719_v0, %v3247_v21 }
 0x315   : > { %v3258_v9 = vor.u32 %v3257_v17, %v3256_v24  ;;  %v3263_v10 = vshrl.u32 %v8720_v7, %v3248_v40  ;;  %v7920_v53 = vmin.u32 %v3195_v37, %v10935_v45  ;;  %v3249_v5 = vshrl.u32 %v8715_v54, %v3248_v40 }
 0x316   : > { %v3110_v36 = vsel %vm3027_vm5, %v3109_v8, %v3108_v30  ;;  %v3261_v27 = vor.u32 %v3260_v52, %v3259_v43  ;;  %v3216_v55 = vsel %vm3131_vm14, %v3215_v47, %v3191_v44  ;;  %vm3265_vm8 = vcmp.lt.s32.totalorder %v3246_v35, 1 }
 0x317   : > { %v3113_v32 = vsel %vm10862_vm6, %v10517_v20, %v3110_v36  ;;  %v3264_v59 = vor.u32 %v3263_v10, %v3262_v16  ;;  %v3197_v33 = vclz %v7920_v53  ;;  %vm3266_vm11 = vcmp.lt.s32.totalorder %v3246_v35, 2 }
 0x318   : > { %8497 = vcosq.f32 %v3113_v32  ;;  %vm3268_vm4 = vcmp.lt.s32.totalorder %v3246_v35, 4  ;;  %vm3267_vm5 = vcmp.lt.s32.totalorder %v3246_v35, 3  ;;  %v3273_v2 = vsel %vm3265_vm8, %v3252_v29, %v3255_v34 }
 0x319   : > { %8499 = vsinq.f32 %v3113_v32  ;;  %v3270_v41 = vsel %vm3268_vm4, %v3258_v9, 2102212464  ;;  %v7921_v51 = vadd.s32 4294967294, %v3197_v33  ;;  %v3269_v3 = vsel %vm3265_vm8, %v3249_v5, %v3252_v29 }
 0x31a   : > { %v3274_v56 = vsel %vm3268_vm4, %v3261_v27, 920167782  ;;  %v3277_v21 = vsel %vm3265_vm8, %v3255_v34, %v3258_v9  ;;  %v3271_v42 = vsel %vm3267_vm5, %v3255_v34, %v3270_v41  ;;  %v3278_v40 = vsel %vm3268_vm4, %v3264_v59, 1326507024 }
 0x31b   : > { %v3275_v26 = vsel %vm3267_vm5, %v3258_v9, %v3274_v56  ;;  %vm3348_vm15 = vcmp.gt.s32.totalorder %v3347_v38, 0  ;;  %vm7922_vm6 = vcmp.lt.s32.totalorder %v7921_v51, 0  ;;  %v3218_v44 = vsel %vm10941_vm2, 0, %v3216_v55 }
 0x31c   : > { %v3276_v49 = vsel %vm3266_vm11, %v3273_v2, %v3275_v26  ;;  %v3279_v63 = vsel %vm3267_vm5, %v3261_v27, %v3278_v40  ;;  %vm3121_vm7 = vcmp.eq.s32.totalorder %v10917_v25, 0  ;;  %v3200_v31 = vsel %vm7922_vm6, 0, %v7921_v51 }
 0x31d   : > { %v3280_v19 = vsel %vm3266_vm11, %v3277_v21, %v3279_v63  ;;  %v10966_v6 = vmul.u32.u64.low %v10922_v18, %v3276_v49  ;;  %v10967_v4 = vmul.u32.u64.high %v10922_v18, %v3276_v49, %v10966_v6  ;;  %vm3120_vm9 = vcmp.lt.s32.totalorder %v10917_v25, 2 }
 0x31e   : > { %v3201_v17 = vsub.s32 32, %v3200_v31  ;;  %v3205_v30 = vsub.s32 4294967266, %v3200_v31  ;;  %v3272_v12 = vsel %vm3266_vm11, %v3269_v3, %v3271_v42  ;;  %v3349_v52 = vsel %vm3348_vm15, %v3347_v38, 0 }
 0x31f   : > { %vm3117_vm12 = vweird.f32 %v10517_v20  ;;  %vm3124_vm10 = vcmp.eq.s32.totalorder %v10917_v25, 2  ;;  %v10975_v47 = vmul.u32.u64.low %v10922_v18, %v3280_v19  ;;  %v10976_v22 = vmul.u32.u64.high %v10922_v18, %v3280_v19, %v10975_v47 }
 0x320   : > { %v3351_v24 = vand.u32 31, %v3349_v52  ;;  %v3202_v8 = vshll.u32 %v10935_v45, %v3200_v31  ;;  %v3203_v37 = vshrl.u32 %v10930_v50, %v3201_v17  ;;  %v3206_v29 = vadd.s32 127, %v3205_v30 }
 0x321   : > { %v3345_v43 = vor.u32 8388608, %v10926_v57  ;;  %v3222_v34 = vadd.s32 3, %v3218_v44  ;;  %v3288_v35 = vmul.u32 %v10922_v18, %v3272_v12  ;;  %v3291_v38 = vadd.s32 1, %v10967_v4 }
 0x322   : > { %v3352_v9 = vsub.s32 32, %v3351_v24  ;;  %v8498_v16 = vpop.eup %8497  ;;  %v3204_v10 = vor.u32 %v3203_v37, %v3202_v8  ;;  %v3207_v36 = vshll.u32 %v3206_v29, 23  ;;  %v10983_v53 = vshrl.u32 %v3349_v52, 5 }
 0x323   : > { %v3354_v5 = vshll.u32 %v8715_v54, %v3351_v24  ;;  %v8500_v27 = vpop.eup %8499  ;;  %v3125_v45 = vxor.u32 2147483648, %v8498_v16  ;;  %vm3290_vm13 = vc.u32 %v10976_v22, %v10966_v6  ;;  %v3357_v57 = vshll.u32 %v8716_v58, %v3351_v24 }
 0x324   : > { %v3363_v50 = vshll.u32 %v8718_v62, %v3351_v24  ;;  %v3122_v18 = vxor.u32 2147483648, %v8500_v27  ;;  %v3208_v32 = vor.u32 4788187, %v3207_v36  ;;  %v3211_v55 = vcvt.s32.f32 %v3204_v10 }
 0x325   : > { %v3292_v59 = vsel %vm3290_vm13, %v3291_v38, %v10967_v4  ;;  %v3126_v33 = vsel %vm3124_vm10, %v3125_v45, %v8500_v27  ;;  %v3355_v2 = vshrl.u32 %v8716_v58, %v3352_v9  ;;  %v3358_v51 = vshrl.u32 %v8717_v60, %v3352_v9  ;;  %v7784_v45 = vld [vmem:[%s15037_s2 + $0xd] ss:$0 sm:$0xff] }
 0x326   : > { %v3293_v41 = vadd.s32 %v3292_v59, %v3288_v35  ;;  %v3123_v3 = vsel %vm3121_vm7, %v8498_v16, %v3122_v18  ;;  %v3209_v56 = vand.u32 2147483647, %v3208_v32  ;;  %vm3235_vm0 = vcmp.lt.s32.totalorder %v10715_v61, 0 }
 0x327   : > { %v3361_v21 = vshrl.u32 %v8718_v62, %v3352_v9  ;;  %v3364_v42 = vshrl.u32 %v8719_v0, %v3352_v9  ;;  %v3127_v26 = vsel %vm3120_vm9, %v3123_v3, %v3126_v33  ;;  %v3356_v44 = vor.u32 %v3355_v2, %v3354_v5 }
 0x328   : > { %v3294_v40 = vadd.s32 536870912, %v3293_v41  ;;  %v3360_v49 = vshll.u32 %v8717_v60, %v3351_v24  ;;  %v3128_v63 = vsel %vm3117_vm12, nan, %v3127_v26  ;;  %v3212_v31 = vmul.f32 %v3211_v55, %v3209_v56 }
 0x329   : > { %v3359_v19 = vor.u32 %v3358_v51, %v3357_v57  ;;  %v3365_v4 = vor.u32 %v3364_v42, %v3363_v50  ;;  %v11005_v17 = vand.u32 3, %v3222_v34  ;;  %v3367_v12 = vshrl.u32 %v8720_v7, %v3352_v9  ;;  %7621 = vst.msk [vmem:[%s9134_s13 + $0xa0] sm:$0xff] %vm266_vm1, %v3128_v63 }
 0x32a   : > { %v3295_v30 = vshrl.u32 %v3294_v40, 30  ;;  %v11008_v52 = vshll.u32 %v3345_v43, 8  ;;  %v3213_v25 = vxor.u32 2147483648, %v3212_v31  ;;  %v3362_v47 = vor.u32 %v3361_v21, %v3360_v49 }
 0x32b   : > { %v3366_v8 = vshll.u32 %v8719_v0, %v3351_v24  ;;  %v3441_v37 = vand.u32 2147483647, %v10913_v28  ;;  %vm3369_vm3 = vcmp.lt.s32.totalorder %v10983_v53, 1  ;;  %vm3372_vm8 = vcmp.lt.s32.totalorder %v10983_v53, 4 }
 0x32c   : > { %v3296_v20 = vshll.u32 %v3295_v30, 30  ;;  %v3319_v29 = vsub.s32 4, %v3295_v30  ;;  %v3214_v34 = vsel %vm3131_vm14, %v3213_v25, %v3212_v31  ;;  %v3377_v43 = vsel %vm3369_vm3, %v3356_v44, %v3359_v19 }
 0x32d   : > { %v3368_v35 = vor.u32 %v3367_v12, %v3366_v8  ;;  %v3378_v38 = vsel %vm3372_vm8, %v3365_v4, 920167782  ;;  %v3217_v24 = vsel %vm10941_vm2, %v10674_v23, %v3214_v34  ;;  %v3353_v10 = vshrl.u32 %v8715_v54, %v3352_v9 }
 0x32e   : > { %v11025_v16 = vsub.s32 %v3293_v41, %v3296_v20  ;;  %vm3371_vm11 = vcmp.lt.s32.totalorder %v10983_v53, 3  ;;  %8501 = vcosq.f32 %v3217_v24  ;;  %vm3370_vm14 = vcmp.lt.s32.totalorder %v10983_v53, 2 }
 0x32f   : > { %v3374_v36 = vsel %vm3372_vm8, %v3362_v47, 2102212464  ;;  %v3379_v5 = vsel %vm3371_vm11, %v3362_v47, %v3378_v38  ;;  %8503 = vsinq.f32 %v3217_v24  ;;  %v3320_v39 = vsel %vm3235_vm0, %v3319_v29, %v3295_v30 }
 0x330   : > { %v3299_v27 = vsub.s32 0, %v11025_v16  ;;  %v3380_v9 = vsel %vm3370_vm14, %v3377_v43, %v3379_v5  ;;  %v3381_v57 = vsel %vm3369_vm3, %v3359_v19, %v3362_v47  ;;  %v3382_v50 = vsel %vm3372_vm8, %v3368_v35, 1326507024 }
 0x331   : > { %v11047_v18 = vmul.u32.u64.low %v11008_v52, %v3380_v9  ;;  %v11048_v32 = vmul.u32.u64.high %v11008_v52, %v3380_v9, %v11047_v18  ;;  %v3373_v59 = vsel %vm3369_vm3, %v3353_v10, %v3356_v44  ;;  %v3375_v33 = vsel %vm3371_vm11, %v3359_v19, %v3374_v36 }
 0x332   : > { %v7924_v55 = vmin.u32 %v3299_v27, %v11025_v16  ;;  %v3383_v41 = vsel %vm3371_vm11, %v3365_v4, %v3382_v50  ;;  %vm11060_vm2 = vcmp.le.f32.partialorder %v3233_v46, 0.7853982  ;;  %v3444_v3 = vand.u32 2139095040, %v10913_v28 }
 0x333   : > { %v3384_v51 = vsel %vm3370_vm14, %v3381_v57, %v3383_v41  ;;  %v651_v56 = vmul.f32 %v7784_v45, %v8798_v11  ;;  %v11070_v21 = vadd.f32 %v10900_v15, %v10910_v48  ;;  %v3322_v26 = vsel %vm11060_vm2, 0, %v3320_v39 }
 0x334   : > { %v3301_v42 = vclz %v7924_v55  ;;  %v3376_v46 = vsel %vm3370_vm14, %v3373_v59, %v3375_v33  ;;  %v11077_v40 = vmul.u32.u64.low %v11008_v52, %v3384_v51  ;;  %v11078_v44 = vmul.u32.u64.high %v11008_v52, %v3384_v51, %v11077_v40 }
 0x335   : > { %v3445_v49 = vshrl.u32 %v3444_v3, 23  ;;  %vm3221_vm4 = vweird.f32 %v10674_v23  ;;  %vm3224_vm5 = vcmp.lt.s32.totalorder %v11005_v17, 2  ;;  %v3448_v15 = vand.u32 8388607, %v3441_v37 }
 0x336   : > { %v7925_v63 = vadd.s32 4294967294, %v3301_v42  ;;  %vm3225_vm15 = vcmp.eq.s32.totalorder %v11005_v17, 0  ;;  %vm3228_vm6 = vcmp.eq.s32.totalorder %v11005_v17, 2  ;;  %v3395_v48 = vadd.s32 1, %v11048_v32 }
 0x337   : > { %v7931_v53 = vadd.s32 4294967169, %v3445_v49  ;;  %v3289_v31 = vadd.s32 %v10966_v6, %v10976_v22  ;;  %v3326_v19 = vadd.s32 3, %v3322_v26  ;;  %v3392_v4 = vmul.u32 %v11008_v52, %v3376_v46  ;;  %v11098_v52 = vld [vmem:[%s15038_s3 + $0xd] ss:$0 sm:$0xff] }
 0x338   : > { %vm7926_vm7 = vcmp.lt.s32.totalorder %v7925_v63, 0  ;;  %v8502_v30 = vpop.eup %8501  ;;  %vm3394_vm9 = vc.u32 %v11078_v44, %v11047_v18  ;;  %v3548_v47 = vand.u32 2139095040, %v11070_v21  ;;  %v3449_v35 = vor.u32 8388608, %v3448_v15 }
 0x339   : > { %v3304_v12 = vsel %vm7926_vm7, 0, %v7925_v63  ;;  %v3451_v25 = vadd.s32 1, %v7931_v53  ;;  %v8504_v8 = vpop.eup %8503  ;;  %v3229_v20 = vxor.u32 2147483648, %v8502_v30  ;;  %v3396_v22 = vsel %vm3394_vm9, %v3395_v48, %v11048_v32 }
 0x33a   : > { %v3305_v29 = vsub.s32 32, %v3304_v12  ;;  %v3309_v34 = vsub.s32 4294967266, %v3304_v12  ;;  %v3226_v43 = vxor.u32 2147483648, %v8504_v8  ;;  %v3306_v6 = vshll.u32 %v11025_v16, %v3304_v12 }
 0x33b   : > { %vm3452_vm12 = vcmp.gt.s32.totalorder %v3451_v25, 0  ;;  %v3230_v38 = vsel %vm3228_vm6, %v3229_v20, %v8504_v8  ;;  %v3397_v36 = vadd.s32 %v3396_v22, %v3392_v4  ;;  %v3545_v16 = vand.u32 2147483647, %v11070_v21 }
 0x33c   : > { %v3307_v24 = vshrl.u32 %v3289_v31, %v3305_v29  ;;  %v3310_v10 = vadd.s32 127, %v3309_v34  ;;  %v3227_v5 = vsel %vm3225_vm15, %v8502_v30, %v3226_v43  ;;  %v3453_v27 = vsel %vm3452_vm12, %v3451_v25, 0 }
 0x33d   : > { %v3549_v39 = vshrl.u32 %v3548_v47, 23  ;;  %v3231_v9 = vsel %vm3224_vm5, %v3227_v5, %v3230_v38  ;;  %v3398_v32 = vadd.s32 536870912, %v3397_v36  ;;  %v11108_v55 = vmul.f32 %v7784_v45, %v8800_v14 }
 0x33e   : > { %v3308_v57 = vor.u32 %v3307_v24, %v3306_v6  ;;  %v3311_v50 = vshll.u32 %v3310_v10, 23  ;;  %v11111_v59 = vadd.f32 %v11098_v52, %v651_v56  ;;  %v3232_v33 = vsel %vm3221_vm4, nan, %v3231_v9 }
 0x33f   : > { %v3455_v41 = vand.u32 31, %v3453_v27  ;;  %v11115_v3 = vand.u32 3, %v3326_v19  ;;  %vm3339_vm10 = vcmp.lt.s32.totalorder %v10872_v13, 0  ;;  %v3399_v17 = vshrl.u32 %v3398_v32, 30  ;;  %7622 = vst.msk [vmem:[%s9134_s13 + $0xa8] sm:$0xff] %vm266_vm1, %v3232_v33 }
 0x340   : > { %v3312_v51 = vor.u32 4788187, %v3311_v50  ;;  %v11120_v26 = vshll.u32 %v3449_v35, 8  ;;  %v7935_v45 = vadd.s32 4294967169, %v3549_v39  ;;  %v11124_v56 = vand.u32 8388607, %v3545_v16 }
 0x341   : > { %v3456_v42 = vsub.s32 32, %v3455_v41  ;;  %v3315_v23 = vcvt.s32.f32 %v3308_v57  ;;  %v11128_v40 = vadd.s32 %v11047_v18, %v11078_v44  ;;  %v3400_v49 = vshll.u32 %v3399_v17, 30 }
 0x342   : > { %v3313_v46 = vand.u32 2147483647, %v3312_v51  ;;  %v3454_v63 = vshrl.u32 %v3453_v27, 5  ;;  %v3458_v4 = vshll.u32 %v8715_v54, %v3455_v41  ;;  %vm11139_vm13 = vcmp.le.f32.partialorder %v3337_v1, 0.7853982 }
 0x343   : > { %v3459_v15 = vshrl.u32 %v8716_v58, %v3456_v42  ;;  %v3462_v48 = vshrl.u32 %v8717_v60, %v3456_v42  ;;  %v3465_v53 = vshrl.u32 %v8718_v62, %v3456_v42  ;;  %v11133_v19 = vsub.s32 %v3397_v36, %v3400_v49 }
 0x344   : > { %v3316_v31 = vmul.f32 %v3315_v23, %v3313_v46  ;;  %v3468_v30 = vshrl.u32 %v8719_v0, %v3456_v42  ;;  %v3423_v44 = vsub.s32 4, %v3399_v17  ;;  %v3461_v12 = vshll.u32 %v8716_v58, %v3455_v41 }
 0x345   : > { %v3464_v25 = vshll.u32 %v8717_v60, %v3455_v41  ;;  %v3555_v47 = vadd.s32 1, %v7935_v45  ;;  %v3403_v20 = vsub.s32 0, %v11133_v19  ;;  %v3460_v29 = vor.u32 %v3459_v15, %v3458_v4 }
 0x346   : > { %v3317_v8 = vxor.u32 2147483648, %v3316_v31  ;;  %v3467_v34 = vshll.u32 %v8718_v62, %v3455_v41  ;;  %v3463_v35 = vor.u32 %v3462_v48, %v3461_v12  ;;  %v3470_v6 = vshll.u32 %v8719_v0, %v3455_v41 }
 0x347   : > { %v3466_v43 = vor.u32 %v3465_v53, %v3464_v25  ;;  %v3471_v1 = vshrl.u32 %v8720_v7, %v3456_v42  ;;  %v7928_v38 = vmin.u32 %v3403_v20, %v11133_v19  ;;  %v3457_v24 = vshrl.u32 %v8715_v54, %v3456_v42 }
 0x348   : > { %v3318_v22 = vsel %vm3235_vm0, %v3317_v8, %v3316_v31  ;;  %v3469_v10 = vor.u32 %v3468_v30, %v3467_v34  ;;  %v3424_v5 = vsel %vm3339_vm10, %v3423_v44, %v3399_v17  ;;  %vm3473_vm3 = vcmp.lt.s32.totalorder %v3454_v63, 1 }
 0x349   : > { %v3321_v36 = vsel %vm11060_vm2, %v10715_v61, %v3318_v22  ;;  %v3472_v27 = vor.u32 %v3471_v1, %v3470_v6  ;;  %v3405_v39 = vclz %v7928_v38  ;;  %vm3474_vm8 = vcmp.lt.s32.totalorder %v3454_v63, 2 }
 0x34a   : > { %8505 = vcosq.f32 %v3321_v36  ;;  %vm3476_vm11 = vcmp.lt.s32.totalorder %v3454_v63, 4  ;;  %vm3475_vm0 = vcmp.lt.s32.totalorder %v3454_v63, 3  ;;  %v3481_v57 = vsel %vm3473_vm3, %v3460_v29, %v3463_v35 }
 0x34b   : > { %8507 = vsinq.f32 %v3321_v36  ;;  %v3478_v9 = vsel %vm3476_vm11, %v3466_v43, 2102212464  ;;  %v7929_v50 = vadd.s32 4294967294, %v3405_v39  ;;  %v3477_v32 = vsel %vm3473_vm3, %v3457_v24, %v3460_v29 }
 0x34c   : > { %v3482_v33 = vsel %vm3476_vm11, %v3469_v10, 920167782  ;;  %v3485_v41 = vsel %vm3473_vm3, %v3463_v35, %v3466_v43  ;;  %v3479_v51 = vsel %vm3475_vm0, %v3463_v35, %v3478_v9  ;;  %v3486_v42 = vsel %vm3476_vm11, %v3472_v27, 1326507024 }
 0x34d   : > { %v3483_v2 = vsel %vm3475_vm0, %v3466_v43, %v3482_v33  ;;  %vm3556_vm14 = vcmp.gt.s32.totalorder %v3555_v47, 0  ;;  %vm7930_vm2 = vcmp.lt.s32.totalorder %v7929_v50, 0  ;;  %v3426_v17 = vsel %vm11139_vm13, 0, %v3424_v5 }
 0x34e   : > { %v3484_v45 = vsel %vm3474_vm8, %v3481_v57, %v3483_v2  ;;  %v3487_v46 = vsel %vm3475_vm0, %v3469_v10, %v3486_v42  ;;  %vm3329_vm4 = vcmp.eq.s32.totalorder %v11115_v3, 0  ;;  %v3408_v23 = vsel %vm7930_vm2, 0, %v7929_v50 }
 0x34f   : > { %v3488_v49 = vsel %vm3474_vm8, %v3485_v41, %v3487_v46  ;;  %v11164_v15 = vmul.u32.u64.low %v11120_v26, %v3484_v45  ;;  %v11165_v48 = vmul.u32.u64.high %v11120_v26, %v3484_v45, %v11164_v15  ;;  %vm3328_vm5 = vcmp.lt.s32.totalorder %v11115_v3, 2 }
 0x350   : > { %v3409_v53 = vsub.s32 32, %v3408_v23  ;;  %v3413_v31 = vsub.s32 4294967266, %v3408_v23  ;;  %v3480_v4 = vsel %vm3474_vm8, %v3477_v32, %v3479_v51  ;;  %v3557_v30 = vsel %vm3556_vm14, %v3555_v47, 0 }
 0x351   : > { %vm3325_vm15 = vweird.f32 %v10715_v61  ;;  %vm3332_vm6 = vcmp.eq.s32.totalorder %v11115_v3, 2  ;;  %v11173_v44 = vmul.u32.u64.low %v11120_v26, %v3488_v49  ;;  %v11174_v12 = vmul.u32.u64.high %v11120_v26, %v3488_v49, %v11173_v44 }
 0x352   : > { %v3559_v25 = vand.u32 31, %v3557_v30  ;;  %v3410_v8 = vshll.u32 %v11133_v19, %v3408_v23  ;;  %v3411_v20 = vshrl.u32 %v11128_v40, %v3409_v53  ;;  %v3414_v29 = vadd.s32 127, %v3413_v31 }
 0x353   : > { %v3553_v34 = vor.u32 8388608, %v11124_v56  ;;  %v3430_v35 = vadd.s32 3, %v3426_v17  ;;  %v3496_v63 = vmul.u32 %v11120_v26, %v3480_v4  ;;  %v3499_v47 = vadd.s32 1, %v11165_v48 }
 0x354   : > { %v3560_v43 = vsub.s32 32, %v3559_v25  ;;  %v8506_v6 = vpop.eup %8505  ;;  %v3412_v1 = vor.u32 %v3411_v20, %v3410_v8  ;;  %v3415_v22 = vshll.u32 %v3414_v29, 23  ;;  %v11181_v38 = vshrl.u32 %v3557_v30, 5 }
 0x355   : > { %v3562_v24 = vshll.u32 %v8715_v54, %v3559_v25  ;;  %v8508_v10 = vpop.eup %8507  ;;  %v3333_v19 = vxor.u32 2147483648, %v8506_v6  ;;  %vm3498_vm7 = vc.u32 %v11174_v12, %v11164_v15  ;;  %v3565_v56 = vshll.u32 %v8716_v58, %v3559_v25 }
 0x356   : > { %v3571_v40 = vshll.u32 %v8718_v62, %v3559_v25  ;;  %v3330_v26 = vxor.u32 2147483648, %v8508_v10  ;;  %v3416_v36 = vor.u32 4788187, %v3415_v22  ;;  %v3419_v5 = vcvt.s32.f32 %v3412_v1 }
 0x357   : > { %v3500_v27 = vsel %vm3498_vm7, %v3499_v47, %v11165_v48  ;;  %v3334_v39 = vsel %vm3332_vm6, %v3333_v19, %v8508_v10  ;;  %v3563_v57 = vshrl.u32 %v8716_v58, %v3560_v43  ;;  %v3566_v50 = vshrl.u32 %v8717_v60, %v3560_v43  ;;  %v7785_v19 = vld [vmem:[%s15037_s2 + $0xe] ss:$0 sm:$0xff] }
 0x358   : > { %v3501_v9 = vadd.s32 %v3500_v27, %v3496_v63  ;;  %v3331_v32 = vsel %vm3329_vm4, %v8506_v6, %v3330_v26  ;;  %v3417_v33 = vand.u32 2147483647, %v3416_v36  ;;  %vm3443_vm9 = vcmp.lt.s32.totalorder %v10913_v28, 0 }
 0x359   : > { %v3569_v41 = vshrl.u32 %v8718_v62, %v3560_v43  ;;  %v3572_v51 = vshrl.u32 %v8719_v0, %v3560_v43  ;;  %v3335_v2 = vsel %vm3328_vm5, %v3331_v32, %v3334_v39  ;;  %v3564_v17 = vor.u32 %v3563_v57, %v3562_v24 }
 0x35a   : > { %v3502_v42 = vadd.s32 536870912, %v3501_v9  ;;  %v3568_v45 = vshll.u32 %v8717_v60, %v3559_v25  ;;  %v3336_v46 = vsel %vm3325_vm15, nan, %v3335_v2  ;;  %v3420_v23 = vmul.f32 %v3419_v5, %v3417_v33 }
 0x35b   : > { %v3567_v49 = vor.u32 %v3566_v50, %v3565_v56  ;;  %v3573_v48 = vor.u32 %v3572_v51, %v3571_v40  ;;  %v11203_v53 = vand.u32 3, %v3430_v35  ;;  %v3575_v4 = vshrl.u32 %v8720_v7, %v3560_v43  ;;  %7623 = vst.msk [vmem:[%s9134_s13 + $0xb0] sm:$0xff] %vm266_vm1, %v3336_v46 }
 0x35c   : > { %v3503_v31 = vshrl.u32 %v3502_v42, 30  ;;  %v11206_v30 = vshll.u32 %v3553_v34, 8  ;;  %v3421_v3 = vxor.u32 2147483648, %v3420_v23  ;;  %v3570_v44 = vor.u32 %v3569_v41, %v3568_v45 }
 0x35d   : > { %v3574_v8 = vshll.u32 %v8719_v0, %v3559_v25  ;;  %v3649_v20 = vand.u32 2147483647, %v11111_v59  ;;  %vm3577_vm12 = vcmp.lt.s32.totalorder %v11181_v38, 1  ;;  %vm3580_vm3 = vcmp.lt.s32.totalorder %v11181_v38, 4 }
 0x35e   : > { %v3504_v61 = vshll.u32 %v3503_v31, 30  ;;  %v3527_v29 = vsub.s32 4, %v3503_v31  ;;  %v3422_v35 = vsel %vm3339_vm10, %v3421_v3, %v3420_v23  ;;  %v3585_v34 = vsel %vm3577_vm12, %v3564_v17, %v3567_v49 }
 0x35f   : > { %v3576_v63 = vor.u32 %v3575_v4, %v3574_v8  ;;  %v3586_v47 = vsel %vm3580_vm3, %v3573_v48, 920167782  ;;  %v3425_v25 = vsel %vm11139_vm13, %v10872_v13, %v3422_v35  ;;  %v3561_v1 = vshrl.u32 %v8715_v54, %v3560_v43 }
 0x360   : > { %v11223_v6 = vsub.s32 %v3501_v9, %v3504_v61  ;;  %vm3579_vm8 = vcmp.lt.s32.totalorder %v11181_v38, 3  ;;  %8509 = vcosq.f32 %v3425_v25  ;;  %vm3578_vm10 = vcmp.lt.s32.totalorder %v11181_v38, 2 }
 0x361   : > { %v3582_v22 = vsel %vm3580_vm3, %v3570_v44, 2102212464  ;;  %v3587_v24 = vsel %vm3579_vm8, %v3570_v44, %v3586_v47  ;;  %8511 = vsinq.f32 %v3425_v25  ;;  %v3528_v18 = vsel %vm3443_vm9, %v3527_v29, %v3503_v31 }
 0x362   : > { %v3507_v10 = vsub.s32 0, %v11223_v6  ;;  %v3588_v43 = vsel %vm3578_vm10, %v3585_v34, %v3587_v24  ;;  %v3589_v56 = vsel %vm3577_vm12, %v3567_v49, %v3570_v44  ;;  %v3590_v40 = vsel %vm3580_vm3, %v3576_v63, 1326507024 }
 0x363   : > { %v11245_v26 = vmul.u32.u64.low %v11206_v30, %v3588_v43  ;;  %v11246_v36 = vmul.u32.u64.high %v11206_v30, %v3588_v43, %v11245_v26  ;;  %v3581_v27 = vsel %vm3577_vm12, %v3561_v1, %v3564_v17  ;;  %v3583_v39 = vsel %vm3579_vm8, %v3567_v49, %v3582_v22 }
 0x364   : > { %v7932_v5 = vmin.u32 %v3507_v10, %v11223_v6  ;;  %v3591_v9 = vsel %vm3579_vm8, %v3573_v48, %v3590_v40  ;;  %vm11258_vm13 = vcmp.le.f32.partialorder %v3441_v37, 0.7853982  ;;  %v3652_v32 = vand.u32 2139095040, %v11111_v59 }
 0x365   : > { %v3592_v50 = vsel %vm3578_vm10, %v3589_v56, %v3591_v9  ;;  %v653_v33 = vmul.f32 %v7785_v19, %v8798_v11  ;;  %v11268_v41 = vadd.f32 %v11098_v52, %v11108_v55  ;;  %v3530_v2 = vsel %vm11258_vm13, 0, %v3528_v18 }
 0x366   : > { %v3509_v51 = vclz %v7932_v5  ;;  %v3584_v37 = vsel %vm3578_vm10, %v3581_v27, %v3583_v39  ;;  %v11275_v42 = vmul.u32.u64.low %v11206_v30, %v3592_v50  ;;  %v11276_v17 = vmul.u32.u64.high %v11206_v30, %v3592_v50, %v11275_v42 }
 0x367   : > { %v3653_v45 = vshrl.u32 %v3652_v32, 23  ;;  %vm3429_vm11 = vweird.f32 %v10872_v13  ;;  %vm3432_vm0 = vcmp.lt.s32.totalorder %v11203_v53, 2  ;;  %v3656_v52 = vand.u32 8388607, %v3649_v20 }
 0x368   : > { %v7933_v46 = vadd.s32 4294967294, %v3509_v51  ;;  %vm3433_vm14 = vcmp.eq.s32.totalorder %v11203_v53, 0  ;;  %vm3436_vm2 = vcmp.eq.s32.totalorder %v11203_v53, 2  ;;  %v3603_v55 = vadd.s32 1, %v11246_v36 }
 0x369   : > { %v7939_v38 = vadd.s32 4294967169, %v3653_v45  ;;  %v3497_v23 = vadd.s32 %v11164_v15, %v11174_v12  ;;  %v3534_v49 = vadd.s32 3, %v3530_v2  ;;  %v3600_v48 = vmul.u32 %v11206_v30, %v3584_v37  ;;  %v11296_v30 = vld [vmem:[%s15038_s3 + $0xe] ss:$0 sm:$0xff] }
 0x36a   : > { %vm7934_vm4 = vcmp.lt.s32.totalorder %v7933_v46, 0  ;;  %v8510_v31 = vpop.eup %8509  ;;  %vm3602_vm5 = vc.u32 %v11276_v17, %v11245_v26  ;;  %v3756_v44 = vand.u32 2139095040, %v11268_v41  ;;  %v3657_v63 = vor.u32 8388608, %v3656_v52 }
 0x36b   : > { %v3512_v4 = vsel %vm7934_vm4, 0, %v7933_v46  ;;  %v3659_v3 = vadd.s32 1, %v7939_v38  ;;  %v8512_v8 = vpop.eup %8511  ;;  %v3437_v61 = vxor.u32 2147483648, %v8510_v31  ;;  %v3604_v12 = vsel %vm3602_vm5, %v3603_v55, %v11246_v36 }
 0x36c   : > { %v3513_v29 = vsub.s32 32, %v3512_v4  ;;  %v3517_v35 = vsub.s32 4294967266, %v3512_v4  ;;  %v3434_v34 = vxor.u32 2147483648, %v8512_v8  ;;  %v3514_v15 = vshll.u32 %v11223_v6, %v3512_v4 }
 0x36d   : > { %vm3660_vm15 = vcmp.gt.s32.totalorder %v3659_v3, 0  ;;  %v3438_v47 = vsel %vm3436_vm2, %v3437_v61, %v8512_v8  ;;  %v3605_v22 = vadd.s32 %v3604_v12, %v3600_v48  ;;  %v3753_v6 = vand.u32 2147483647, %v11268_v41 }
 0x36e   : > { %v3515_v25 = vshrl.u32 %v3497_v23, %v3513_v29  ;;  %v3518_v1 = vadd.s32 127, %v3517_v35  ;;  %v3435_v24 = vsel %vm3433_vm14, %v8510_v31, %v3434_v34  ;;  %v3661_v10 = vsel %vm3660_vm15, %v3659_v3, 0 }
 0x36f   : > { %v3757_v18 = vshrl.u32 %v3756_v44, 23  ;;  %v3439_v43 = vsel %vm3432_vm0, %v3435_v24, %v3438_v47  ;;  %v3606_v36 = vadd.s32 536870912, %v3605_v22  ;;  %v11306_v5 = vmul.f32 %v7785_v19, %v8800_v14 }
 0x370   : > { %v3516_v56 = vor.u32 %v3515_v25, %v3514_v15  ;;  %v3519_v40 = vshll.u32 %v3518_v1, 23  ;;  %v11309_v27 = vadd.f32 %v11296_v30, %v653_v33  ;;  %v3440_v39 = vsel %vm3429_vm11, nan, %v3439_v43 }
 0x371   : > { %v3663_v9 = vand.u32 31, %v3661_v10  ;;  %v11313_v32 = vand.u32 3, %v3534_v49  ;;  %vm3547_vm6 = vcmp.lt.s32.totalorder %v11070_v21, 0  ;;  %v3607_v53 = vshrl.u32 %v3606_v36, 30  ;;  %7624 = vst.msk [vmem:[%s9134_s13 + $0xb8] sm:$0xff] %vm266_vm1, %v3440_v39 }
 0x372   : > { %v3520_v50 = vor.u32 4788187, %v3519_v40  ;;  %v11318_v2 = vshll.u32 %v3657_v63, 8  ;;  %v7943_v19 = vadd.s32 4294967169, %v3757_v18  ;;  %v11322_v33 = vand.u32 8388607, %v3753_v6 }
 0x373   : > { %v3664_v51 = vsub.s32 32, %v3663_v9  ;;  %v3523_v13 = vcvt.s32.f32 %v3516_v56  ;;  %v11326_v42 = vadd.s32 %v11245_v26, %v11276_v17  ;;  %v3608_v45 = vshll.u32 %v3607_v53, 30 }
 0x374   : > { %v3521_v37 = vand.u32 2147483647, %v3520_v50  ;;  %v3662_v46 = vshrl.u32 %v3661_v10, 5  ;;  %v3666_v48 = vshll.u32 %v8715_v54, %v3663_v9  ;;  %vm11337_vm7 = vcmp.le.f32.partialorder %v3545_v16, 0.7853982 }
 0x375   : > { %v3667_v52 = vshrl.u32 %v8716_v58, %v3664_v51  ;;  %v3670_v55 = vshrl.u32 %v8717_v60, %v3664_v51  ;;  %v3673_v38 = vshrl.u32 %v8718_v62, %v3664_v51  ;;  %v11331_v49 = vsub.s32 %v3605_v22, %v3608_v45 }
 0x376   : > { %v3524_v23 = vmul.f32 %v3523_v13, %v3521_v37  ;;  %v3676_v31 = vshrl.u32 %v8719_v0, %v3664_v51  ;;  %v3631_v17 = vsub.s32 4, %v3607_v53  ;;  %v3669_v4 = vshll.u32 %v8716_v58, %v3663_v9 }
 0x377   : > { %v3672_v3 = vshll.u32 %v8717_v60, %v3663_v9  ;;  %v3763_v44 = vadd.s32 1, %v7943_v19  ;;  %v3611_v61 = vsub.s32 0, %v11331_v49  ;;  %v3668_v29 = vor.u32 %v3667_v52, %v3666_v48 }
 0x378   : > { %v3525_v8 = vxor.u32 2147483648, %v3524_v23  ;;  %v3675_v35 = vshll.u32 %v8718_v62, %v3663_v9  ;;  %v3671_v63 = vor.u32 %v3670_v55, %v3669_v4  ;;  %v3678_v15 = vshll.u32 %v8719_v0, %v3663_v9 }
 0x379   : > { %v3674_v34 = vor.u32 %v3673_v38, %v3672_v3  ;;  %v3679_v16 = vshrl.u32 %v8720_v7, %v3664_v51  ;;  %v7936_v47 = vmin.u32 %v3611_v61, %v11331_v49  ;;  %v3665_v25 = vshrl.u32 %v8715_v54, %v3664_v51 }
 0x37a   : > { %v3526_v12 = vsel %vm3443_vm9, %v3525_v8, %v3524_v23  ;;  %v3677_v1 = vor.u32 %v3676_v31, %v3675_v35  ;;  %v3632_v24 = vsel %vm3547_vm6, %v3631_v17, %v3607_v53  ;;  %vm3681_vm12 = vcmp.lt.s32.totalorder %v3662_v46, 1 }
 0x37b   : > { %v3529_v22 = vsel %vm11258_vm13, %v10913_v28, %v3526_v12  ;;  %v3680_v10 = vor.u32 %v3679_v16, %v3678_v15  ;;  %v3613_v18 = vclz %v7936_v47  ;;  %vm3682_vm3 = vcmp.lt.s32.totalorder %v3662_v46, 2 }
 0x37c   : > { %8513 = vcosq.f32 %v3529_v22  ;;  %vm3684_vm8 = vcmp.lt.s32.totalorder %v3662_v46, 4  ;;  %vm3683_vm9 = vcmp.lt.s32.totalorder %v3662_v46, 3  ;;  %v3689_v56 = vsel %vm3681_vm12, %v3668_v29, %v3671_v63 }
 0x37d   : > { %8515 = vsinq.f32 %v3529_v22  ;;  %v3686_v43 = vsel %vm3684_vm8, %v3674_v34, 2102212464  ;;  %v7937_v40 = vadd.s32 4294967294, %v3613_v18  ;;  %v3685_v36 = vsel %vm3681_vm12, %v3665_v25, %v3668_v29 }
 0x37e   : > { %v3690_v39 = vsel %vm3684_vm8, %v3677_v1, 920167782  ;;  %v3693_v9 = vsel %vm3681_vm12, %v3671_v63, %v3674_v34  ;;  %v3687_v50 = vsel %vm3683_vm9, %v3671_v63, %v3686_v43  ;;  %v3694_v51 = vsel %vm3684_vm8, %v3680_v10, 1326507024 }
 0x37f   : > { %v3691_v57 = vsel %vm3683_vm9, %v3674_v34, %v3690_v39  ;;  %vm3764_vm10 = vcmp.gt.s32.totalorder %v3763_v44, 0  ;;  %vm7938_vm13 = vcmp.lt.s32.totalorder %v7937_v40, 0  ;;  %v3634_v53 = vsel %vm11337_vm7, 0, %v3632_v24 }
 0x380   : > { %v3692_v19 = vsel %vm3682_vm3, %v3689_v56, %v3691_v57  ;;  %v3695_v37 = vsel %vm3683_vm9, %v3677_v1, %v3694_v51  ;;  %vm3537_vm11 = vcmp.eq.s32.totalorder %v11313_v32, 0  ;;  %v3616_v13 = vsel %vm7938_vm13, 0, %v7937_v40 }
 0x381   : > { %v3696_v45 = vsel %vm3682_vm3, %v3693_v9, %v3695_v37  ;;  %v11362_v52 = vmul.u32.u64.low %v11318_v2, %v3692_v19  ;;  %v11363_v55 = vmul.u32.u64.high %v11318_v2, %v3692_v19, %v11362_v52  ;;  %vm3536_vm0 = vcmp.lt.s32.totalorder %v11313_v32, 2 }
 0x382   : > { %v3617_v38 = vsub.s32 32, %v3616_v13  ;;  %v3621_v23 = vsub.s32 4294967266, %v3616_v13  ;;  %v3688_v48 = vsel %vm3682_vm3, %v3685_v36, %v3687_v50  ;;  %v3765_v31 = vsel %vm3764_vm10, %v3763_v44, 0 }
 0x383   : > { %vm3533_vm14 = vweird.f32 %v10913_v28  ;;  %vm3540_vm2 = vcmp.eq.s32.totalorder %v11313_v32, 2  ;;  %v11371_v17 = vmul.u32.u64.low %v11318_v2, %v3696_v45  ;;  %v11372_v4 = vmul.u32.u64.high %v11318_v2, %v3696_v45, %v11371_v17 }
 0x384   : > { %v3767_v3 = vand.u32 31, %v3765_v31  ;;  %v3618_v8 = vshll.u32 %v11331_v49, %v3616_v13  ;;  %v3619_v61 = vshrl.u32 %v11326_v42, %v3617_v38  ;;  %v3622_v29 = vadd.s32 127, %v3621_v23 }
 0x385   : > { %v3761_v35 = vor.u32 8388608, %v11322_v33  ;;  %v3638_v63 = vadd.s32 3, %v3634_v53  ;;  %v3704_v46 = vmul.u32 %v11318_v2, %v3688_v48  ;;  %v3707_v44 = vadd.s32 1, %v11363_v55 }
 0x386   : > { %v3768_v34 = vsub.s32 32, %v3767_v3  ;;  %v8514_v15 = vpop.eup %8513  ;;  %v3620_v16 = vor.u32 %v3619_v61, %v3618_v8  ;;  %v3623_v12 = vshll.u32 %v3622_v29, 23  ;;  %v11379_v47 = vshrl.u32 %v3765_v31, 5 }
 0x387   : > { %v3770_v25 = vshll.u32 %v8715_v54, %v3767_v3  ;;  %v8516_v1 = vpop.eup %8515  ;;  %v3541_v49 = vxor.u32 2147483648, %v8514_v15  ;;  %vm3706_vm4 = vc.u32 %v11372_v4, %v11362_v52  ;;  %v3773_v33 = vshll.u32 %v8716_v58, %v3767_v3 }
 0x388   : > { %v3779_v42 = vshll.u32 %v8718_v62, %v3767_v3  ;;  %v3538_v2 = vxor.u32 2147483648, %v8516_v1  ;;  %v3624_v22 = vor.u32 4788187, %v3623_v12  ;;  %v3627_v24 = vcvt.s32.f32 %v3620_v16 }
 0x389   : > { %v3708_v10 = vsel %vm3706_vm4, %v3707_v44, %v11363_v55  ;;  %v3542_v18 = vsel %vm3540_vm2, %v3541_v49, %v8516_v1  ;;  %v3771_v56 = vshrl.u32 %v8716_v58, %v3768_v34  ;;  %v3774_v40 = vshrl.u32 %v8717_v60, %v3768_v34  ;;  %v7786_v49 = vld [vmem:[%s15037_s2 + $0xf] ss:$0 sm:$0xff] }
 0x38a   : > { %v3709_v43 = vadd.s32 %v3708_v10, %v3704_v46  ;;  %v3539_v36 = vsel %vm3537_vm11, %v8514_v15, %v3538_v2  ;;  %v3625_v39 = vand.u32 2147483647, %v3624_v22  ;;  %vm3651_vm5 = vcmp.lt.s32.totalorder %v11111_v59, 0 }
 0x38b   : > { %v3777_v9 = vshrl.u32 %v8718_v62, %v3768_v34  ;;  %v3780_v50 = vshrl.u32 %v8719_v0, %v3768_v34  ;;  %v3543_v57 = vsel %vm3536_vm0, %v3539_v36, %v3542_v18  ;;  %v3772_v53 = vor.u32 %v3771_v56, %v3770_v25 }
 0x38c   : > { %v3710_v51 = vadd.s32 536870912, %v3709_v43  ;;  %v3776_v19 = vshll.u32 %v8717_v60, %v3767_v3  ;;  %v3544_v37 = vsel %vm3533_vm14, nan, %v3543_v57  ;;  %v3628_v13 = vmul.f32 %v3627_v24, %v3625_v39 }
 0x38d   : > { %v3775_v45 = vor.u32 %v3774_v40, %v3773_v33  ;;  %v3781_v55 = vor.u32 %v3780_v50, %v3779_v42  ;;  %v11401_v38 = vand.u32 3, %v3638_v63  ;;  %v3783_v48 = vshrl.u32 %v8720_v7, %v3768_v34  ;;  %7625 = vst.msk [vmem:[%s9134_s13 + $0xc0] sm:$0xff] %vm266_vm1, %v3544_v37 }
 0x38e   : > { %v3711_v23 = vshrl.u32 %v3710_v51, 30  ;;  %v11404_v31 = vshll.u32 %v3761_v35, 8  ;;  %v3629_v32 = vxor.u32 2147483648, %v3628_v13  ;;  %v3778_v17 = vor.u32 %v3777_v9, %v3776_v19 }
 0x38f   : > { %v3782_v8 = vshll.u32 %v8719_v0, %v3767_v3  ;;  %v3857_v61 = vand.u32 2147483647, %v11309_v27  ;;  %vm3785_vm15 = vcmp.lt.s32.totalorder %v11379_v47, 1  ;;  %vm3788_vm12 = vcmp.lt.s32.totalorder %v11379_v47, 4 }
 0x390   : > { %v3712_v28 = vshll.u32 %v3711_v23, 30  ;;  %v3735_v29 = vsub.s32 4, %v3711_v23  ;;  %v3630_v63 = vsel %vm3547_vm6, %v3629_v32, %v3628_v13  ;;  %v3793_v35 = vsel %vm3785_vm15, %v3772_v53, %v3775_v45 }
 0x391   : > { %v3784_v46 = vor.u32 %v3783_v48, %v3782_v8  ;;  %v3794_v44 = vsel %vm3788_vm12, %v3781_v55, 920167782  ;;  %v3633_v3 = vsel %vm11337_vm7, %v11070_v21, %v3630_v63  ;;  %v3769_v16 = vshrl.u32 %v8715_v54, %v3768_v34 }
 0x392   : > { %v11421_v15 = vsub.s32 %v3709_v43, %v3712_v28  ;;  %vm3787_vm3 = vcmp.lt.s32.totalorder %v11379_v47, 3  ;;  %8517 = vcosq.f32 %v3633_v3  ;;  %vm3786_vm6 = vcmp.lt.s32.totalorder %v11379_v47, 2 }
 0x393   : > { %v3790_v12 = vsel %vm3788_vm12, %v3778_v17, 2102212464  ;;  %v3795_v25 = vsel %vm3787_vm3, %v3778_v17, %v3794_v44  ;;  %8519 = vsinq.f32 %v3633_v3  ;;  %v3736_v26 = vsel %vm3651_vm5, %v3735_v29, %v3711_v23 }
 0x394   : > { %v3715_v1 = vsub.s32 0, %v11421_v15  ;;  %v3796_v34 = vsel %vm3786_vm6, %v3793_v35, %v3795_v25  ;;  %v3797_v33 = vsel %vm3785_vm15, %v3775_v45, %v3778_v17  ;;  %v3798_v42 = vsel %vm3788_vm12, %v3784_v46, 1326507024 }
 0x395   : > { %v11443_v2 = vmul.u32.u64.low %v11404_v31, %v3796_v34  ;;  %v11444_v22 = vmul.u32.u64.high %v11404_v31, %v3796_v34, %v11443_v2  ;;  %v3789_v10 = vsel %vm3785_vm15, %v3769_v16, %v3772_v53  ;;  %v3791_v18 = vsel %vm3787_vm3, %v3775_v45, %v3790_v12 }
 0x396   : > { %v7940_v24 = vmin.u32 %v3715_v1, %v11421_v15  ;;  %v3799_v43 = vsel %vm3787_vm3, %v3781_v55, %v3798_v42  ;;  %vm11456_vm7 = vcmp.le.f32.partialorder %v3649_v20, 0.7853982  ;;  %v3860_v36 = vand.u32 2139095040, %v11309_v27 }
 0x397   : > { %v3800_v40 = vsel %vm3786_vm6, %v3797_v33, %v3799_v43  ;;  %v655_v39 = vmul.f32 %v7786_v49, %v8798_v11  ;;  %v11466_v9 = vadd.f32 %v11296_v30, %v11306_v5  ;;  %v3738_v57 = vsel %vm11456_vm7, 0, %v3736_v26 }
 0x398   : > { %v3717_v50 = vclz %v7940_v24  ;;  %v3792_v20 = vsel %vm3786_vm6, %v3789_v10, %v3791_v18  ;;  %v11473_v51 = vmul.u32.u64.low %v11404_v31, %v3800_v40  ;;  %v11474_v53 = vmul.u32.u64.high %v11404_v31, %v3800_v40, %v11473_v51 }
 0x399   : > { %v3861_v19 = vshrl.u32 %v3860_v36, 23  ;;  %vm3637_vm8 = vweird.f32 %v11070_v21  ;;  %vm3640_vm9 = vcmp.lt.s32.totalorder %v11401_v38, 2  ;;  %v3864_v30 = vand.u32 8388607, %v3857_v61 }
 0x39a   : > { %v7941_v37 = vadd.s32 4294967294, %v3717_v50  ;;  %vm3641_vm10 = vcmp.eq.s32.totalorder %v11401_v38, 0  ;;  %vm3644_vm13 = vcmp.eq.s32.totalorder %v11401_v38, 2  ;;  %v3811_v5 = vadd.s32 1, %v11444_v22 }
 0x39b   : > { %v7947_v47 = vadd.s32 4294967169, %v3861_v19  ;;  %v3705_v13 = vadd.s32 %v11362_v52, %v11372_v4  ;;  %v3742_v45 = vadd.s32 3, %v3738_v57  ;;  %v3808_v55 = vmul.u32 %v11404_v31, %v3792_v20  ;;  %v11494_v31 = vld [vmem:[%s15038_s3 + $0xf] ss:$0 sm:$0xff] }
 0x39c   : > { %vm7942_vm11 = vcmp.lt.s32.totalorder %v7941_v37, 0  ;;  %v8518_v23 = vpop.eup %8517  ;;  %vm3810_vm0 = vc.u32 %v11474_v53, %v11443_v2  ;;  %v3964_v17 = vand.u32 2139095040, %v11466_v9  ;;  %v3865_v46 = vor.u32 8388608, %v3864_v30 }
 0x39d   : > { %v3720_v48 = vsel %vm7942_vm11, 0, %v7941_v37  ;;  %v3867_v32 = vadd.s32 1, %v7947_v47  ;;  %v8520_v8 = vpop.eup %8519  ;;  %v3645_v28 = vxor.u32 2147483648, %v8518_v23  ;;  %v3812_v4 = vsel %vm3810_vm0, %v3811_v5, %v11444_v22 }
 0x39e   : > { %v3721_v29 = vsub.s32 32, %v3720_v48  ;;  %v3725_v63 = vsub.s32 4294967266, %v3720_v48  ;;  %v3642_v35 = vxor.u32 2147483648, %v8520_v8  ;;  %v3722_v52 = vshll.u32 %v11421_v15, %v3720_v48 }
 0x39f   : > { %vm3868_vm14 = vcmp.gt.s32.totalorder %v3867_v32, 0  ;;  %v3646_v44 = vsel %vm3644_vm13, %v3645_v28, %v8520_v8  ;;  %v3813_v12 = vadd.s32 %v3812_v4, %v3808_v55  ;;  %v3961_v15 = vand.u32 2147483647, %v11466_v9 }
 0x3a0   : > { %v3723_v3 = vshrl.u32 %v3705_v13, %v3721_v29  ;;  %v3726_v16 = vadd.s32 127, %v3725_v63  ;;  %v3643_v25 = vsel %vm3641_vm10, %v8518_v23, %v3642_v35  ;;  %v3869_v1 = vsel %vm3868_vm14, %v3867_v32, 0 }
 0x3a1   : > { %v3965_v26 = vshrl.u32 %v3964_v17, 23  ;;  %v3647_v34 = vsel %vm3640_vm9, %v3643_v25, %v3646_v44  ;;  %v3814_v22 = vadd.s32 536870912, %v3813_v12  ;;  %v11504_v24 = vmul.f32 %v7786_v49, %v8800_v14 }
 0x3a2   : > { %v3724_v33 = vor.u32 %v3723_v3, %v3722_v52  ;;  %v3727_v42 = vshll.u32 %v3726_v16, 23  ;;  %v11507_v10 = vadd.f32 %v11494_v31, %v655_v39  ;;  %v3648_v18 = vsel %vm3637_vm8, nan, %v3647_v34 }
 0x3a3   : > { %v3871_v43 = vand.u32 31, %v3869_v1  ;;  %v11511_v36 = vand.u32 3, %v3742_v45  ;;  %vm3755_vm2 = vcmp.lt.s32.totalorder %v11268_v41, 0  ;;  %v3815_v38 = vshrl.u32 %v3814_v22, 30  ;;  %7626 = vst.msk [vmem:[%s9134_s13 + $0xc8] sm:$0xff] %vm266_vm1, %v3648_v18 }
 0x3a4   : > { %v3728_v40 = vor.u32 4788187, %v3727_v42  ;;  %v11516_v57 = vshll.u32 %v3865_v46, 8  ;;  %v7951_v49 = vadd.s32 4294967169, %v3965_v26  ;;  %v11520_v39 = vand.u32 8388607, %v3961_v15 }
 0x3a5   : > { %v3872_v50 = vsub.s32 32, %v3871_v43  ;;  %v3731_v21 = vcvt.s32.f32 %v3724_v33  ;;  %v11524_v51 = vadd.s32 %v11443_v2, %v11474_v53  ;;  %v3816_v19 = vshll.u32 %v3815_v38, 30 }
 0x3a6   : > { %v3729_v20 = vand.u32 2147483647, %v3728_v40  ;;  %v3870_v37 = vshrl.u32 %v3869_v1, 5  ;;  %v3874_v55 = vshll.u32 %v8715_v54, %v3871_v43  ;;  %vm11535_vm4 = vcmp.le.f32.partialorder %v3753_v6, 0.7853982 }
 0x3a7   : > { %v3875_v30 = vshrl.u32 %v8716_v58, %v3872_v50  ;;  %v3878_v5 = vshrl.u32 %v8717_v60, %v3872_v50  ;;  %v3881_v47 = vshrl.u32 %v8718_v62, %v3872_v50  ;;  %v11529_v45 = vsub.s32 %v3813_v12, %v3816_v19 }
 0x3a8   : > { %v3732_v13 = vmul.f32 %v3731_v21, %v3729_v20  ;;  %v3884_v23 = vshrl.u32 %v8719_v0, %v3872_v50  ;;  %v3839_v53 = vsub.s32 4, %v3815_v38  ;;  %v3877_v48 = vshll.u32 %v8716_v58, %v3871_v43 }
 0x3a9   : > { %v3880_v32 = vshll.u32 %v8717_v60, %v3871_v43  ;;  %v3971_v17 = vadd.s32 1, %v7951_v49  ;;  %v3819_v28 = vsub.s32 0, %v11529_v45  ;;  %v3876_v29 = vor.u32 %v3875_v30, %v3874_v55 }
 0x3aa   : > { %v3733_v8 = vxor.u32 2147483648, %v3732_v13  ;;  %v3883_v63 = vshll.u32 %v8718_v62, %v3871_v43  ;;  %v3879_v46 = vor.u32 %v3878_v5, %v3877_v48  ;;  %v3886_v52 = vshll.u32 %v8719_v0, %v3871_v43 }
 0x3ab   : > { %v3882_v35 = vor.u32 %v3881_v47, %v3880_v32  ;;  %v3887_v6 = vshrl.u32 %v8720_v7, %v3872_v50  ;;  %v7944_v44 = vmin.u32 %v3819_v28, %v11529_v45  ;;  %v3873_v3 = vshrl.u32 %v8715_v54, %v3872_v50 }
 0x3ac   : > { %v3734_v4 = vsel %vm3651_vm5, %v3733_v8, %v3732_v13  ;;  %v3885_v16 = vor.u32 %v3884_v23, %v3883_v63  ;;  %v3840_v25 = vsel %vm3755_vm2, %v3839_v53, %v3815_v38  ;;  %vm3889_vm15 = vcmp.lt.s32.totalorder %v3870_v37, 1 }
 0x3ad   : > { %v3737_v12 = vsel %vm11456_vm7, %v11111_v59, %v3734_v4  ;;  %v3888_v1 = vor.u32 %v3887_v6, %v3886_v52  ;;  %v3821_v26 = vclz %v7944_v44  ;;  %vm3890_vm12 = vcmp.lt.s32.totalorder %v3870_v37, 2 }
 0x3ae   : > { %8521 = vcosq.f32 %v3737_v12  ;;  %vm3892_vm3 = vcmp.lt.s32.totalorder %v3870_v37, 4  ;;  %vm3891_vm5 = vcmp.lt.s32.totalorder %v3870_v37, 3  ;;  %v3897_v33 = vsel %vm3889_vm15, %v3876_v29, %v3879_v46 }
 0x3af   : > { %8523 = vsinq.f32 %v3737_v12  ;;  %v3894_v34 = vsel %vm3892_vm3, %v3882_v35, 2102212464  ;;  %v7945_v42 = vadd.s32 4294967294, %v3821_v26  ;;  %v3893_v22 = vsel %vm3889_vm15, %v3873_v3, %v3876_v29 }
 0x3b0   : > { %v3898_v18 = vsel %vm3892_vm3, %v3885_v16, 920167782  ;;  %v3901_v43 = vsel %vm3889_vm15, %v3879_v46, %v3882_v35  ;;  %v3895_v40 = vsel %vm3891_vm5, %v3879_v46, %v3894_v34  ;;  %v3902_v50 = vsel %vm3892_vm3, %v3888_v1, 1326507024 }
 0x3b1   : > { %v3899_v56 = vsel %vm3891_vm5, %v3882_v35, %v3898_v18  ;;  %vm3972_vm6 = vcmp.gt.s32.totalorder %v3971_v17, 0  ;;  %vm7946_vm7 = vcmp.lt.s32.totalorder %v7945_v42, 0  ;;  %v3842_v38 = vsel %vm11535_vm4, 0, %v3840_v25 }
 0x3b2   : > { %v3900_v49 = vsel %vm3890_vm12, %v3897_v33, %v3899_v56  ;;  %v3903_v20 = vsel %vm3891_vm5, %v3885_v16, %v3902_v50  ;;  %vm3745_vm8 = vcmp.eq.s32.totalorder %v11511_v36, 0  ;;  %v3824_v21 = vsel %vm7946_vm7, 0, %v7945_v42 }
 0x3b3   : > { %v3904_v19 = vsel %vm3890_vm12, %v3901_v43, %v3903_v20  ;;  %v11560_v30 = vmul.u32.u64.low %v11516_v57, %v3900_v49  ;;  %v11561_v5 = vmul.u32.u64.high %v11516_v57, %v3900_v49, %v11560_v30  ;;  %vm3744_vm9 = vcmp.lt.s32.totalorder %v11511_v36, 2 }
 0x3b4   : > { %v3825_v47 = vsub.s32 32, %v3824_v21  ;;  %v3829_v13 = vsub.s32 4294967266, %v3824_v21  ;;  %v3896_v55 = vsel %vm3890_vm12, %v3893_v22, %v3895_v40  ;;  %v3973_v23 = vsel %vm3972_vm6, %v3971_v17, 0 }
 0x3b5   : > { %vm3741_vm10 = vweird.f32 %v11111_v59  ;;  %vm3748_vm13 = vcmp.eq.s32.totalorder %v11511_v36, 2  ;;  %v11569_v53 = vmul.u32.u64.low %v11516_v57, %v3904_v19  ;;  %v11570_v48 = vmul.u32.u64.high %v11516_v57, %v3904_v19, %v11569_v53 }
 0x3b6   : > { %v3975_v32 = vand.u32 31, %v3973_v23  ;;  %v3826_v8 = vshll.u32 %v11529_v45, %v3824_v21  ;;  %v3827_v28 = vshrl.u32 %v11524_v51, %v3825_v47  ;;  %v3830_v29 = vadd.s32 127, %v3829_v13 }
 0x3b7   : > { %v3969_v63 = vor.u32 8388608, %v11520_v39  ;;  %v3846_v46 = vadd.s32 3, %v3842_v38  ;;  %v3912_v37 = vmul.u32 %v11516_v57, %v3896_v55  ;;  %v3915_v17 = vadd.s32 1, %v11561_v5 }
 0x3b8   : > { %v3976_v35 = vsub.s32 32, %v3975_v32  ;;  %v8522_v52 = vpop.eup %8521  ;;  %v3828_v6 = vor.u32 %v3827_v28, %v3826_v8  ;;  %v3831_v4 = vshll.u32 %v3830_v29, 23  ;;  %v11577_v44 = vshrl.u32 %v3973_v23, 5 }
 0x3b9   : > { %v3978_v3 = vshll.u32 %v8715_v54, %v3975_v32  ;;  %v8524_v16 = vpop.eup %8523  ;;  %v3749_v45 = vxor.u32 2147483648, %v8522_v52  ;;  %vm3914_vm11 = vc.u32 %v11570_v48, %v11560_v30  ;;  %v3981_v39 = vshll.u32 %v8716_v58, %v3975_v32 }
 0x3ba   : > { %v3987_v51 = vshll.u32 %v8718_v62, %v3975_v32  ;;  %v3746_v57 = vxor.u32 2147483648, %v8524_v16  ;;  %v3832_v12 = vor.u32 4788187, %v3831_v4  ;;  %v3835_v25 = vcvt.s32.f32 %v3828_v6 }
 0x3bb   : > { %v3916_v1 = vsel %vm3914_vm11, %v3915_v17, %v11561_v5  ;;  %v3750_v26 = vsel %vm3748_vm13, %v3749_v45, %v8524_v16  ;;  %v3979_v33 = vshrl.u32 %v8716_v58, %v3976_v35  ;;  %v3982_v42 = vshrl.u32 %v8717_v60, %v3976_v35  ;;  %v7787_v45 = vld [vmem:[%s15037_s2 + $0x10] ss:$0 sm:$0xff] }
 0x3bc   : > { %v3917_v34 = vadd.s32 %v3916_v1, %v3912_v37  ;;  %v3747_v22 = vsel %vm3745_vm8, %v8522_v52, %v3746_v57  ;;  %v3833_v18 = vand.u32 2147483647, %v3832_v12  ;;  %vm3859_vm0 = vcmp.lt.s32.totalorder %v11309_v27, 0 }
 0x3bd   : > { %v3985_v43 = vshrl.u32 %v8718_v62, %v3976_v35  ;;  %v3988_v40 = vshrl.u32 %v8719_v0, %v3976_v35  ;;  %v3751_v56 = vsel %vm3744_vm9, %v3747_v22, %v3750_v26  ;;  %v3980_v38 = vor.u32 %v3979_v33, %v3978_v3 }
 0x3be   : > { %v3918_v50 = vadd.s32 536870912, %v3917_v34  ;;  %v3984_v49 = vshll.u32 %v8717_v60, %v3975_v32  ;;  %v3752_v20 = vsel %vm3741_vm10, nan, %v3751_v56  ;;  %v3836_v21 = vmul.f32 %v3835_v25, %v3833_v18 }
 0x3bf   : > { %v3983_v19 = vor.u32 %v3982_v42, %v3981_v39  ;;  %v3989_v5 = vor.u32 %v3988_v40, %v3987_v51  ;;  %v11599_v47 = vand.u32 3, %v3846_v46  ;;  %v3991_v55 = vshrl.u32 %v8720_v7, %v3976_v35  ;;  %7627 = vst.msk [vmem:[%s9134_s13 + $0xd0] sm:$0xff] %vm266_vm1, %v3752_v20 }
 0x3c0   : > { %v3919_v13 = vshrl.u32 %v3918_v50, 30  ;;  %v11602_v23 = vshll.u32 %v3969_v63, 8  ;;  %v3837_v36 = vxor.u32 2147483648, %v3836_v21  ;;  %v3986_v53 = vor.u32 %v3985_v43, %v3984_v49 }
 0x3c1   : > { %v3990_v8 = vshll.u32 %v8719_v0, %v3975_v32  ;;  %v4065_v28 = vand.u32 2147483647, %v11507_v10  ;;  %vm3993_vm14 = vcmp.lt.s32.totalorder %v11577_v44, 1  ;;  %vm3996_vm15 = vcmp.lt.s32.totalorder %v11577_v44, 4 }
 0x3c2   : > { %v3920_v59 = vshll.u32 %v3919_v13, 30  ;;  %v3943_v29 = vsub.s32 4, %v3919_v13  ;;  %v3838_v46 = vsel %vm3755_vm2, %v3837_v36, %v3836_v21  ;;  %v4001_v63 = vsel %vm3993_vm14, %v3980_v38, %v3983_v19 }
 0x3c3   : > { %v3992_v37 = vor.u32 %v3991_v55, %v3990_v8  ;;  %v4002_v17 = vsel %vm3996_vm15, %v3989_v5, 920167782  ;;  %v3841_v32 = vsel %vm11535_vm4, %v11268_v41, %v3838_v46  ;;  %v3977_v6 = vshrl.u32 %v8715_v54, %v3976_v35 }
 0x3c4   : > { %v11619_v52 = vsub.s32 %v3917_v34, %v3920_v59  ;;  %vm3995_vm12 = vcmp.lt.s32.totalorder %v11577_v44, 3  ;;  %8525 = vcosq.f32 %v3841_v32  ;;  %vm3994_vm2 = vcmp.lt.s32.totalorder %v11577_v44, 2 }
 0x3c5   : > { %v3998_v4 = vsel %vm3996_vm15, %v3986_v53, 2102212464  ;;  %v4003_v3 = vsel %vm3995_vm12, %v3986_v53, %v4002_v17  ;;  %8527 = vsinq.f32 %v3841_v32  ;;  %v3944_v2 = vsel %vm3859_vm0, %v3943_v29, %v3919_v13 }
 0x3c6   : > { %v3923_v16 = vsub.s32 0, %v11619_v52  ;;  %v4004_v35 = vsel %vm3994_vm2, %v4001_v63, %v4003_v3  ;;  %v4005_v39 = vsel %vm3993_vm14, %v3983_v19, %v3986_v53  ;;  %v4006_v51 = vsel %vm3996_vm15, %v3992_v37, 1326507024 }
 0x3c7   : > { %v11641_v57 = vmul.u32.u64.low %v11602_v23, %v4004_v35  ;;  %v11642_v12 = vmul.u32.u64.high %v11602_v23, %v4004_v35, %v11641_v57  ;;  %v3997_v1 = vsel %vm3993_vm14, %v3977_v6, %v3980_v38  ;;  %v3999_v26 = vsel %vm3995_vm12, %v3983_v19, %v3998_v4 }
 0x3c8   : > { %v7948_v25 = vmin.u32 %v3923_v16, %v11619_v52  ;;  %v4007_v34 = vsel %vm3995_vm12, %v3989_v5, %v4006_v51  ;;  %vm11654_vm4 = vcmp.le.f32.partialorder %v3857_v61, 0.7853982  ;;  %v4068_v22 = vand.u32 2139095040, %v11507_v10 }
 0x3c9   : > { %v4008_v42 = vsel %vm3994_vm2, %v4005_v39, %v4007_v34  ;;  %v657_v18 = vmul.f32 %v7787_v45, %v8798_v11  ;;  %v11664_v43 = vadd.f32 %v11494_v31, %v11504_v24  ;;  %v3946_v56 = vsel %vm11654_vm4, 0, %v3944_v2 }
 0x3ca   : > { %v3925_v40 = vclz %v7948_v25  ;;  %v4000_v61 = vsel %vm3994_vm2, %v3997_v1, %v3999_v26  ;;  %v11671_v50 = vmul.u32.u64.low %v11602_v23, %v4008_v42  ;;  %v11672_v38 = vmul.u32.u64.high %v11602_v23, %v4008_v42, %v11671_v50 }
 0x3cb   : > { %v4069_v49 = vshrl.u32 %v4068_v22, 23  ;;  %vm3845_vm3 = vweird.f32 %v11268_v41  ;;  %vm3848_vm5 = vcmp.lt.s32.totalorder %v11599_v47, 2  ;;  %v4072_v31 = vand.u32 8388607, %v4065_v28 }
 0x3cc   : > { %v7949_v20 = vadd.s32 4294967294, %v3925_v40  ;;  %vm3849_vm6 = vcmp.eq.s32.totalorder %v11599_v47, 0  ;;  %vm3852_vm7 = vcmp.eq.s32.totalorder %v11599_v47, 2  ;;  %v4019_v24 = vadd.s32 1, %v11642_v12 }
 0x3cd   : > { %v7955_v44 = vadd.s32 4294967169, %v4069_v49  ;;  %v3913_v21 = vadd.s32 %v11560_v30, %v11570_v48  ;;  %v3950_v19 = vadd.s32 3, %v3946_v56  ;;  %v4016_v5 = vmul.u32 %v11602_v23, %v4000_v61  ;;  %v11692_v23 = vld [vmem:[%s15038_s3 + $0x10] ss:$0 sm:$0xff] }
 0x3ce   : > { %vm7950_vm8 = vcmp.lt.s32.totalorder %v7949_v20, 0  ;;  %v8526_v13 = vpop.eup %8525  ;;  %vm4018_vm9 = vc.u32 %v11672_v38, %v11641_v57  ;;  %v4172_v53 = vand.u32 2139095040, %v11664_v43  ;;  %v4073_v37 = vor.u32 8388608, %v4072_v31 }
 0x3cf   : > { %v3928_v55 = vsel %vm7950_vm8, 0, %v7949_v20  ;;  %v4075_v36 = vadd.s32 1, %v7955_v44  ;;  %v8528_v8 = vpop.eup %8527  ;;  %v3853_v59 = vxor.u32 2147483648, %v8526_v13  ;;  %v4020_v48 = vsel %vm4018_vm9, %v4019_v24, %v11642_v12 }
 0x3d0   : > { %v3929_v29 = vsub.s32 32, %v3928_v55  ;;  %v3933_v46 = vsub.s32 4294967266, %v3928_v55  ;;  %v3850_v63 = vxor.u32 2147483648, %v8528_v8  ;;  %v3930_v30 = vshll.u32 %v11619_v52, %v3928_v55 }
 0x3d1   : > { %vm4076_vm10 = vcmp.gt.s32.totalorder %v4075_v36, 0  ;;  %v3854_v17 = vsel %vm3852_vm7, %v3853_v59, %v8528_v8  ;;  %v4021_v4 = vadd.s32 %v4020_v48, %v4016_v5  ;;  %v4169_v52 = vand.u32 2147483647, %v11664_v43 }
 0x3d2   : > { %v3931_v32 = vshrl.u32 %v3913_v21, %v3929_v29  ;;  %v3934_v6 = vadd.s32 127, %v3933_v46  ;;  %v3851_v3 = vsel %vm3849_vm6, %v8526_v13, %v3850_v63  ;;  %v4077_v16 = vsel %vm4076_vm10, %v4075_v36, 0 }
 0x3d3   : > { %v4173_v2 = vshrl.u32 %v4172_v53, 23  ;;  %v3855_v35 = vsel %vm3848_vm5, %v3851_v3, %v3854_v17  ;;  %v4022_v12 = vadd.s32 536870912, %v4021_v4  ;;  %v11702_v25 = vmul.f32 %v7787_v45, %v8800_v14 }
 0x3d4   : > { %v3932_v39 = vor.u32 %v3931_v32, %v3930_v30  ;;  %v3935_v51 = vshll.u32 %v3934_v6, 23  ;;  %v11705_v1 = vadd.f32 %v11692_v23, %v657_v18  ;;  %v3856_v26 = vsel %vm3845_vm3, nan, %v3855_v35 }
 0x3d5   : > { %v4079_v34 = vand.u32 31, %v4077_v16  ;;  %v11709_v22 = vand.u32 3, %v3950_v19  ;;  %vm3963_vm13 = vcmp.lt.s32.totalorder %v11466_v9, 0  ;;  %v4023_v47 = vshrl.u32 %v4022_v12, 30  ;;  %7628 = vst.msk [vmem:[%s9134_s13 + $0xd8] sm:$0xff] %vm266_vm1, %v3856_v26 }
 0x3d6   : > { %v3936_v42 = vor.u32 4788187, %v3935_v51  ;;  %v11714_v56 = vshll.u32 %v4073_v37, 8  ;;  %v7959_v45 = vadd.s32 4294967169, %v4173_v2  ;;  %v11718_v18 = vand.u32 8388607, %v4169_v52 }
 0x3d7   : > { %v4080_v40 = vsub.s32 32, %v4079_v34  ;;  %v3939_v41 = vcvt.s32.f32 %v3932_v39  ;;  %v11722_v50 = vadd.s32 %v11641_v57, %v11672_v38  ;;  %v4024_v49 = vshll.u32 %v4023_v47, 30 }
 0x3d8   : > { %v3937_v61 = vand.u32 2147483647, %v3936_v42  ;;  %v4078_v20 = vshrl.u32 %v4077_v16, 5  ;;  %v4082_v5 = vshll.u32 %v8715_v54, %v4079_v34  ;;  %vm11733_vm11 = vcmp.le.f32.partialorder %v3961_v15, 0.7853982 }
 0x3d9   : > { %v4083_v31 = vshrl.u32 %v8716_v58, %v4080_v40  ;;  %v4086_v24 = vshrl.u32 %v8717_v60, %v4080_v40  ;;  %v4089_v44 = vshrl.u32 %v8718_v62, %v4080_v40  ;;  %v11727_v19 = vsub.s32 %v4021_v4, %v4024_v49 }
 0x3da   : > { %v3940_v21 = vmul.f32 %v3939_v41, %v3937_v61  ;;  %v4092_v13 = vshrl.u32 %v8719_v0, %v4080_v40  ;;  %v4047_v38 = vsub.s32 4, %v4023_v47  ;;  %v4085_v55 = vshll.u32 %v8716_v58, %v4079_v34 }
 0x3db   : > { %v4088_v36 = vshll.u32 %v8717_v60, %v4079_v34  ;;  %v4179_v53 = vadd.s32 1, %v7959_v45  ;;  %v4027_v59 = vsub.s32 0, %v11727_v19  ;;  %v4084_v29 = vor.u32 %v4083_v31, %v4082_v5 }
 0x3dc   : > { %v3941_v8 = vxor.u32 2147483648, %v3940_v21  ;;  %v4091_v46 = vshll.u32 %v8718_v62, %v4079_v34  ;;  %v4087_v37 = vor.u32 %v4086_v24, %v4085_v55  ;;  %v4094_v30 = vshll.u32 %v8719_v0, %v4079_v34 }
 0x3dd   : > { %v4090_v63 = vor.u32 %v4089_v44, %v4088_v36  ;;  %v4095_v15 = vshrl.u32 %v8720_v7, %v4080_v40  ;;  %v7952_v17 = vmin.u32 %v4027_v59, %v11727_v19  ;;  %v4081_v32 = vshrl.u32 %v8715_v54, %v4080_v40 }
 0x3de   : > { %v3942_v48 = vsel %vm3859_vm0, %v3941_v8, %v3940_v21  ;;  %v4093_v6 = vor.u32 %v4092_v13, %v4091_v46  ;;  %v4048_v3 = vsel %vm3963_vm13, %v4047_v38, %v4023_v47  ;;  %vm4097_vm14 = vcmp.lt.s32.totalorder %v4078_v20, 1 }
 0x3df   : > { %v3945_v4 = vsel %vm11654_vm4, %v11309_v27, %v3942_v48  ;;  %v4096_v16 = vor.u32 %v4095_v15, %v4094_v30  ;;  %v4029_v2 = vclz %v7952_v17  ;;  %vm4098_vm15 = vcmp.lt.s32.totalorder %v4078_v20, 2 }
 0x3e0   : > { %8529 = vcosq.f32 %v3945_v4  ;;  %vm4100_vm12 = vcmp.lt.s32.totalorder %v4078_v20, 4  ;;  %vm4099_vm0 = vcmp.lt.s32.totalorder %v4078_v20, 3  ;;  %v4105_v39 = vsel %vm4097_vm14, %v4084_v29, %v4087_v37 }
 0x3e1   : > { %8531 = vsinq.f32 %v3945_v4  ;;  %v4102_v35 = vsel %vm4100_vm12, %v4090_v63, 2102212464  ;;  %v7953_v51 = vadd.s32 4294967294, %v4029_v2  ;;  %v4101_v12 = vsel %vm4097_vm14, %v4081_v32, %v4084_v29 }
 0x3e2   : > { %v4106_v26 = vsel %vm4100_vm12, %v4093_v6, 920167782  ;;  %v4109_v34 = vsel %vm4097_vm14, %v4087_v37, %v4090_v63  ;;  %v4103_v42 = vsel %vm4099_vm0, %v4087_v37, %v4102_v35  ;;  %v4110_v40 = vsel %vm4100_vm12, %v4096_v16, 1326507024 }
 0x3e3   : > { %v4107_v33 = vsel %vm4099_vm0, %v4090_v63, %v4106_v26  ;;  %vm4180_vm2 = vcmp.gt.s32.totalorder %v4179_v53, 0  ;;  %vm7954_vm4 = vcmp.lt.s32.totalorder %v7953_v51, 0  ;;  %v4050_v47 = vsel %vm11733_vm11, 0, %v4048_v3 }
 0x3e4   : > { %v4108_v45 = vsel %vm4098_vm15, %v4105_v39, %v4107_v33  ;;  %v4111_v61 = vsel %vm4099_vm0, %v4093_v6, %v4110_v40  ;;  %vm3953_vm3 = vcmp.eq.s32.totalorder %v11709_v22, 0  ;;  %v4032_v41 = vsel %vm7954_vm4, 0, %v7953_v51 }
 0x3e5   : > { %v4112_v49 = vsel %vm4098_vm15, %v4109_v34, %v4111_v61  ;;  %v11758_v31 = vmul.u32.u64.low %v11714_v56, %v4108_v45  ;;  %v11759_v24 = vmul.u32.u64.high %v11714_v56, %v4108_v45, %v11758_v31  ;;  %vm3952_vm5 = vcmp.lt.s32.totalorder %v11709_v22, 2 }
 0x3e6   : > { %v4033_v44 = vsub.s32 32, %v4032_v41  ;;  %v4037_v21 = vsub.s32 4294967266, %v4032_v41  ;;  %v4104_v5 = vsel %vm4098_vm15, %v4101_v12, %v4103_v42  ;;  %v4181_v13 = vsel %vm4180_vm2, %v4179_v53, 0 }
 0x3e7   : > { %vm3949_vm6 = vweird.f32 %v11309_v27  ;;  %vm3956_vm7 = vcmp.eq.s32.totalorder %v11709_v22, 2  ;;  %v11767_v38 = vmul.u32.u64.low %v11714_v56, %v4112_v49  ;;  %v11768_v55 = vmul.u32.u64.high %v11714_v56, %v4112_v49, %v11767_v38 }
 0x3e8   : > { %v4183_v36 = vand.u32 31, %v4181_v13  ;;  %v4034_v8 = vshll.u32 %v11727_v19, %v4032_v41  ;;  %v4035_v59 = vshrl.u32 %v11722_v50, %v4033_v44  ;;  %v4038_v29 = vadd.s32 127, %v4037_v21 }
 0x3e9   : > { %v4177_v46 = vor.u32 8388608, %v11718_v18  ;;  %v4054_v37 = vadd.s32 3, %v4050_v47  ;;  %v4120_v20 = vmul.u32 %v11714_v56, %v4104_v5  ;;  %v4123_v53 = vadd.s32 1, %v11759_v24 }
 0x3ea   : > { %v4184_v63 = vsub.s32 32, %v4183_v36  ;;  %v8530_v30 = vpop.eup %8529  ;;  %v4036_v15 = vor.u32 %v4035_v59, %v4034_v8  ;;  %v4039_v48 = vshll.u32 %v4038_v29, 23  ;;  %v11775_v17 = vshrl.u32 %v4181_v13, 5 }
 0x3eb   : > { %v4186_v32 = vshll.u32 %v8715_v54, %v4183_v36  ;;  %v8532_v6 = vpop.eup %8531  ;;  %v3957_v19 = vxor.u32 2147483648, %v8530_v30  ;;  %vm4122_vm8 = vc.u32 %v11768_v55, %v11758_v31  ;;  %v4189_v18 = vshll.u32 %v8716_v58, %v4183_v36 }
 0x3ec   : > { %v4195_v50 = vshll.u32 %v8718_v62, %v4183_v36  ;;  %v3954_v56 = vxor.u32 2147483648, %v8532_v6  ;;  %v4040_v4 = vor.u32 4788187, %v4039_v48  ;;  %v4043_v3 = vcvt.s32.f32 %v4036_v15 }
 0x3ed   : > { %v4124_v16 = vsel %vm4122_vm8, %v4123_v53, %v11759_v24  ;;  %v3958_v2 = vsel %vm3956_vm7, %v3957_v19, %v8532_v6  ;;  %v4187_v39 = vshrl.u32 %v8716_v58, %v4184_v63  ;;  %v4190_v51 = vshrl.u32 %v8717_v60, %v4184_v63  ;;  %v7788_v19 = vld [vmem:[%s15037_s2 + $0x11] ss:$0 sm:$0xff] }
 0x3ee   : > { %v4125_v35 = vadd.s32 %v4124_v16, %v4120_v20  ;;  %v3955_v12 = vsel %vm3953_vm3, %v8530_v30, %v3954_v56  ;;  %v4041_v26 = vand.u32 2147483647, %v4040_v4  ;;  %vm4067_vm9 = vcmp.lt.s32.totalorder %v11507_v10, 0 }
 0x3ef   : > { %v4193_v34 = vshrl.u32 %v8718_v62, %v4184_v63  ;;  %v4196_v42 = vshrl.u32 %v8719_v0, %v4184_v63  ;;  %v3959_v33 = vsel %vm3952_vm5, %v3955_v12, %v3958_v2  ;;  %v4188_v47 = vor.u32 %v4187_v39, %v4186_v32 }
 0x3f0   : > { %v4126_v40 = vadd.s32 536870912, %v4125_v35  ;;  %v4192_v45 = vshll.u32 %v8717_v60, %v4183_v36  ;;  %v3960_v61 = vsel %vm3949_vm6, nan, %v3959_v33  ;;  %v4044_v41 = vmul.f32 %v4043_v3, %v4041_v26 }
 0x3f1   : > { %v4191_v49 = vor.u32 %v4190_v51, %v4189_v18  ;;  %v4197_v24 = vor.u32 %v4196_v42, %v4195_v50  ;;  %v11797_v44 = vand.u32 3, %v4054_v37  ;;  %v4199_v5 = vshrl.u32 %v8720_v7, %v4184_v63  ;;  %7629 = vst.msk [vmem:[%s9134_s13 + $0xe0] sm:$0xff] %vm266_vm1, %v3960_v61 }
 0x3f2   : > { %v4127_v21 = vshrl.u32 %v4126_v40, 30  ;;  %v11800_v13 = vshll.u32 %v4177_v46, 8  ;;  %v4045_v22 = vxor.u32 2147483648, %v4044_v41  ;;  %v4194_v38 = vor.u32 %v4193_v34, %v4192_v45 }
 0x3f3   : > { %v4198_v8 = vshll.u32 %v8719_v0, %v4183_v36  ;;  %v4273_v59 = vand.u32 2147483647, %v11705_v1  ;;  %vm4201_vm10 = vcmp.lt.s32.totalorder %v11775_v17, 1  ;;  %vm4204_vm14 = vcmp.lt.s32.totalorder %v11775_v17, 4 }
 0x3f4   : > { %v4128_v27 = vshll.u32 %v4127_v21, 30  ;;  %v4151_v29 = vsub.s32 4, %v4127_v21  ;;  %v4046_v37 = vsel %vm3963_vm13, %v4045_v22, %v4044_v41  ;;  %v4209_v46 = vsel %vm4201_vm10, %v4188_v47, %v4191_v49 }
 0x3f5   : > { %v4200_v20 = vor.u32 %v4199_v5, %v4198_v8  ;;  %v4210_v53 = vsel %vm4204_vm14, %v4197_v24, 920167782  ;;  %v4049_v36 = vsel %vm11733_vm11, %v11466_v9, %v4046_v37  ;;  %v4185_v15 = vshrl.u32 %v8715_v54, %v4184_v63 }
 0x3f6   : > { %v11817_v30 = vsub.s32 %v4125_v35, %v4128_v27  ;;  %vm4203_vm15 = vcmp.lt.s32.totalorder %v11775_v17, 3  ;;  %8533 = vcosq.f32 %v4049_v36  ;;  %vm4202_vm13 = vcmp.lt.s32.totalorder %v11775_v17, 2 }
 0x3f7   : > { %v4206_v48 = vsel %vm4204_vm14, %v4194_v38, 2102212464  ;;  %v4211_v32 = vsel %vm4203_vm15, %v4194_v38, %v4210_v53  ;;  %8535 = vsinq.f32 %v4049_v36  ;;  %v4152_v57 = vsel %vm4067_vm9, %v4151_v29, %v4127_v21 }
 0x3f8   : > { %v4131_v6 = vsub.s32 0, %v11817_v30  ;;  %v4212_v63 = vsel %vm4202_vm13, %v4209_v46, %v4211_v32  ;;  %v4213_v18 = vsel %vm4201_vm10, %v4191_v49, %v4194_v38  ;;  %v4214_v50 = vsel %vm4204_vm14, %v4200_v20, 1326507024 }
 0x3f9   : > { %v11839_v56 = vmul.u32.u64.low %v11800_v13, %v4212_v63  ;;  %v11840_v4 = vmul.u32.u64.high %v11800_v13, %v4212_v63, %v11839_v56  ;;  %v4205_v16 = vsel %vm4201_vm10, %v4185_v15, %v4188_v47  ;;  %v4207_v2 = vsel %vm4203_vm15, %v4191_v49, %v4206_v48 }
 0x3fa   : > { %v7956_v3 = vmin.u32 %v4131_v6, %v11817_v30  ;;  %v4215_v35 = vsel %vm4203_vm15, %v4197_v24, %v4214_v50  ;;  %vm11852_vm11 = vcmp.le.f32.partialorder %v4065_v28, 0.7853982  ;;  %v4276_v12 = vand.u32 2139095040, %v11705_v1 }
 0x3fb   : > { %v4216_v51 = vsel %vm4202_vm13, %v4213_v18, %v4215_v35  ;;  %v659_v26 = vmul.f32 %v7788_v19, %v8798_v11  ;;  %v11862_v34 = vadd.f32 %v11692_v23, %v11702_v25  ;;  %v4154_v33 = vsel %vm11852_vm11, 0, %v4152_v57 }
 0x3fc   : > { %v4133_v42 = vclz %v7956_v3  ;;  %v4208_v28 = vsel %vm4202_vm13, %v4205_v16, %v4207_v2  ;;  %v11869_v40 = vmul.u32.u64.low %v11800_v13, %v4216_v51  ;;  %v11870_v47 = vmul.u32.u64.high %v11800_v13, %v4216_v51, %v11869_v40 }
 0x3fd   : > { %v4277_v45 = vshrl.u32 %v4276_v12, 23  ;;  %vm4053_vm12 = vweird.f32 %v11466_v9  ;;  %vm4056_vm0 = vcmp.lt.s32.totalorder %v11797_v44, 2  ;;  %v4280_v23 = vand.u32 8388607, %v4273_v59 }
 0x3fe   : > { %v7957_v61 = vadd.s32 4294967294, %v4133_v42  ;;  %vm4057_vm2 = vcmp.eq.s32.totalorder %v11797_v44, 0  ;;  %vm4060_vm4 = vcmp.eq.s32.totalorder %v11797_v44, 2  ;;  %v4227_v25 = vadd.s32 1, %v11840_v4 }
 0x3ff   : > { %v7963_v17 = vadd.s32 4294967169, %v4277_v45  ;;  %v4121_v41 = vadd.s32 %v11758_v31, %v11768_v55  ;;  %v4158_v49 = vadd.s32 3, %v4154_v33  ;;  %v4224_v24 = vmul.u32 %v11800_v13, %v4208_v28  ;;  %v11890_v13 = vld [vmem:[%s15038_s3 + $0x11] ss:$0 sm:$0xff] }
 0x400   : > { %vm7958_vm3 = vcmp.lt.s32.totalorder %v7957_v61, 0  ;;  %v8534_v21 = vpop.eup %8533  ;;  %vm4226_vm5 = vc.u32 %v11870_v47, %v11839_v56  ;;  %v4380_v38 = vand.u32 2139095040, %v11862_v34  ;;  %v4281_v20 = vor.u32 8388608, %v4280_v23 }
 0x401   : > { %v4136_v5 = vsel %vm7958_vm3, 0, %v7957_v61  ;;  %v4283_v22 = vadd.s32 1, %v7963_v17  ;;  %v8536_v8 = vpop.eup %8535  ;;  %v4061_v27 = vxor.u32 2147483648, %v8534_v21  ;;  %v4228_v55 = vsel %vm4226_vm5, %v4227_v25, %v11840_v4 }
 0x402   : > { %v4137_v29 = vsub.s32 32, %v4136_v5  ;;  %v4141_v37 = vsub.s32 4294967266, %v4136_v5  ;;  %v4058_v46 = vxor.u32 2147483648, %v8536_v8  ;;  %v4138_v31 = vshll.u32 %v11817_v30, %v4136_v5 }
 0x403   : > { %vm4284_vm6 = vcmp.gt.s32.totalorder %v4283_v22, 0  ;;  %v4062_v53 = vsel %vm4060_vm4, %v4061_v27, %v8536_v8  ;;  %v4229_v48 = vadd.s32 %v4228_v55, %v4224_v24  ;;  %v4377_v30 = vand.u32 2147483647, %v11862_v34 }
 0x404   : > { %v4139_v36 = vshrl.u32 %v4121_v41, %v4137_v29  ;;  %v4142_v15 = vadd.s32 127, %v4141_v37  ;;  %v4059_v32 = vsel %vm4057_vm2, %v8534_v21, %v4058_v46  ;;  %v4285_v6 = vsel %vm4284_vm6, %v4283_v22, 0 }
 0x405   : > { %v4381_v57 = vshrl.u32 %v4380_v38, 23  ;;  %v4063_v63 = vsel %vm4056_vm0, %v4059_v32, %v4062_v53  ;;  %v4230_v4 = vadd.s32 536870912, %v4229_v48  ;;  %v11900_v3 = vmul.f32 %v7788_v19, %v8800_v14 }
 0x406   : > { %v4140_v18 = vor.u32 %v4139_v36, %v4138_v31  ;;  %v4143_v50 = vshll.u32 %v4142_v15, 23  ;;  %v11903_v16 = vadd.f32 %v11890_v13, %v659_v26  ;;  %v4064_v2 = vsel %vm4053_vm12, nan, %v4063_v63 }
 0x407   : > { %v4287_v35 = vand.u32 31, %v4285_v6  ;;  %v11907_v12 = vand.u32 3, %v4158_v49  ;;  %vm4171_vm7 = vcmp.lt.s32.totalorder %v11664_v43, 0  ;;  %v4231_v44 = vshrl.u32 %v4230_v4, 30  ;;  %7630 = vst.msk [vmem:[%s9134_s13 + $0xe8] sm:$0xff] %vm266_vm1, %v4064_v2 }
 0x408   : > { %v4144_v51 = vor.u32 4788187, %v4143_v50  ;;  %v11912_v33 = vshll.u32 %v4281_v20, 8  ;;  %v7967_v19 = vadd.s32 4294967169, %v4381_v57  ;;  %v11916_v26 = vand.u32 8388607, %v4377_v30 }
 0x409   : > { %v4288_v42 = vsub.s32 32, %v4287_v35  ;;  %v4147_v9 = vcvt.s32.f32 %v4140_v18  ;;  %v11920_v40 = vadd.s32 %v11839_v56, %v11870_v47  ;;  %v4232_v45 = vshll.u32 %v4231_v44, 30 }
 0x40a   : > { %v4145_v28 = vand.u32 2147483647, %v4144_v51  ;;  %v4286_v61 = vshrl.u32 %v4285_v6, 5  ;;  %v4290_v24 = vshll.u32 %v8715_v54, %v4287_v35  ;;  %vm11931_vm8 = vcmp.le.f32.partialorder %v4169_v52, 0.7853982 }
 0x40b   : > { %v4291_v23 = vshrl.u32 %v8716_v58, %v4288_v42  ;;  %v4294_v25 = vshrl.u32 %v8717_v60, %v4288_v42  ;;  %v4297_v17 = vshrl.u32 %v8718_v62, %v4288_v42  ;;  %v11925_v49 = vsub.s32 %v4229_v48, %v4232_v45 }
 0x40c   : > { %v4148_v41 = vmul.f32 %v4147_v9, %v4145_v28  ;;  %v4300_v21 = vshrl.u32 %v8719_v0, %v4288_v42  ;;  %v4255_v47 = vsub.s32 4, %v4231_v44  ;;  %v4293_v5 = vshll.u32 %v8716_v58, %v4287_v35 }
 0x40d   : > { %v4296_v22 = vshll.u32 %v8717_v60, %v4287_v35  ;;  %v4387_v38 = vadd.s32 1, %v7967_v19  ;;  %v4235_v27 = vsub.s32 0, %v11925_v49  ;;  %v4292_v29 = vor.u32 %v4291_v23, %v4290_v24 }
 0x40e   : > { %v4149_v8 = vxor.u32 2147483648, %v4148_v41  ;;  %v4299_v37 = vshll.u32 %v8718_v62, %v4287_v35  ;;  %v4295_v20 = vor.u32 %v4294_v25, %v4293_v5  ;;  %v4302_v31 = vshll.u32 %v8719_v0, %v4287_v35 }
 0x40f   : > { %v4298_v46 = vor.u32 %v4297_v17, %v4296_v22  ;;  %v4303_v52 = vshrl.u32 %v8720_v7, %v4288_v42  ;;  %v7960_v53 = vmin.u32 %v4235_v27, %v11925_v49  ;;  %v4289_v36 = vshrl.u32 %v8715_v54, %v4288_v42 }
 0x410   : > { %v4150_v55 = vsel %vm4067_vm9, %v4149_v8, %v4148_v41  ;;  %v4301_v15 = vor.u32 %v4300_v21, %v4299_v37  ;;  %v4256_v32 = vsel %vm4171_vm7, %v4255_v47, %v4231_v44  ;;  %vm4305_vm10 = vcmp.lt.s32.totalorder %v4286_v61, 1 }
 0x411   : > { %v4153_v48 = vsel %vm11852_vm11, %v11507_v10, %v4150_v55  ;;  %v4304_v6 = vor.u32 %v4303_v52, %v4302_v31  ;;  %v4237_v57 = vclz %v7960_v53  ;;  %vm4306_vm14 = vcmp.lt.s32.totalorder %v4286_v61, 2 }
 0x412   : > { %8537 = vcosq.f32 %v4153_v48  ;;  %vm4308_vm15 = vcmp.lt.s32.totalorder %v4286_v61, 4  ;;  %vm4307_vm9 = vcmp.lt.s32.totalorder %v4286_v61, 3  ;;  %v4313_v18 = vsel %vm4305_vm10, %v4292_v29, %v4295_v20 }
 0x413   : > { %8539 = vsinq.f32 %v4153_v48  ;;  %v4310_v63 = vsel %vm4308_vm15, %v4298_v46, 2102212464  ;;  %v7961_v50 = vadd.s32 4294967294, %v4237_v57  ;;  %v4309_v4 = vsel %vm4305_vm10, %v4289_v36, %v4292_v29 }
 0x414   : > { %v4314_v2 = vsel %vm4308_vm15, %v4301_v15, 920167782  ;;  %v4317_v35 = vsel %vm4305_vm10, %v4295_v20, %v4298_v46  ;;  %v4311_v51 = vsel %vm4307_vm9, %v4295_v20, %v4310_v63  ;;  %v4318_v42 = vsel %vm4308_vm15, %v4304_v6, 1326507024 }
 0x415   : > { %v4315_v39 = vsel %vm4307_vm9, %v4298_v46, %v4314_v2  ;;  %vm4388_vm13 = vcmp.gt.s32.totalorder %v4387_v38, 0  ;;  %vm7962_vm11 = vcmp.lt.s32.totalorder %v7961_v50, 0  ;;  %v4258_v44 = vsel %vm11931_vm8, 0, %v4256_v32 }
 0x416   : > { %v4316_v19 = vsel %vm4306_vm14, %v4313_v18, %v4315_v39  ;;  %v4319_v28 = vsel %vm4307_vm9, %v4301_v15, %v4318_v42  ;;  %vm4161_vm12 = vcmp.eq.s32.totalorder %v11907_v12, 0  ;;  %v4240_v9 = vsel %vm7962_vm11, 0, %v7961_v50 }
 0x417   : > { %v4320_v45 = vsel %vm4306_vm14, %v4317_v35, %v4319_v28  ;;  %v11956_v23 = vmul.u32.u64.low %v11912_v33, %v4316_v19  ;;  %v11957_v25 = vmul.u32.u64.high %v11912_v33, %v4316_v19, %v11956_v23  ;;  %vm4160_vm0 = vcmp.lt.s32.totalorder %v11907_v12, 2 }
 0x418   : > { %v4241_v17 = vsub.s32 32, %v4240_v9  ;;  %v4245_v41 = vsub.s32 4294967266, %v4240_v9  ;;  %v4312_v24 = vsel %vm4306_vm14, %v4309_v4, %v4311_v51  ;;  %v4389_v21 = vsel %vm4388_vm13, %v4387_v38, 0 }
 0x419   : > { %vm4157_vm2 = vweird.f32 %v11507_v10  ;;  %vm4164_vm4 = vcmp.eq.s32.totalorder %v11907_v12, 2  ;;  %v11965_v47 = vmul.u32.u64.low %v11912_v33, %v4320_v45  ;;  %v11966_v5 = vmul.u32.u64.high %v11912_v33, %v4320_v45, %v11965_v47 }
 0x41a   : > { %v4391_v22 = vand.u32 31, %v4389_v21  ;;  %v4242_v8 = vshll.u32 %v11925_v49, %v4240_v9  ;;  %v4243_v27 = vshrl.u32 %v11920_v40, %v4241_v17  ;;  %v4246_v29 = vadd.s32 127, %v4245_v41 }
 0x41b   : > { %v4385_v37 = vor.u32 8388608, %v11916_v26  ;;  %v4262_v20 = vadd.s32 3, %v4258_v44  ;;  %v4328_v61 = vmul.u32 %v11912_v33, %v4312_v24  ;;  %v4331_v38 = vadd.s32 1, %v11957_v25 }
 0x41c   : > { %v4392_v46 = vsub.s32 32, %v4391_v22  ;;  %v8538_v31 = vpop.eup %8537  ;;  %v4244_v52 = vor.u32 %v4243_v27, %v4242_v8  ;;  %v4247_v55 = vshll.u32 %v4246_v29, 23  ;;  %v11973_v53 = vshrl.u32 %v4389_v21, 5 }
 0x41d   : > { %v4394_v36 = vshll.u32 %v8715_v54, %v4391_v22  ;;  %v8540_v15 = vpop.eup %8539  ;;  %v4165_v49 = vxor.u32 2147483648, %v8538_v31  ;;  %vm4330_vm3 = vc.u32 %v11966_v5, %v11956_v23  ;;  %v4397_v26 = vshll.u32 %v8716_v58, %v4391_v22 }
 0x41e   : > { %v4403_v40 = vshll.u32 %v8718_v62, %v4391_v22  ;;  %v4162_v33 = vxor.u32 2147483648, %v8540_v15  ;;  %v4248_v48 = vor.u32 4788187, %v4247_v55  ;;  %v4251_v32 = vcvt.s32.f32 %v4244_v52 }
 0x41f   : > { %v4332_v6 = vsel %vm4330_vm3, %v4331_v38, %v11957_v25  ;;  %v4166_v57 = vsel %vm4164_vm4, %v4165_v49, %v8540_v15  ;;  %v4395_v18 = vshrl.u32 %v8716_v58, %v4392_v46  ;;  %v4398_v50 = vshrl.u32 %v8717_v60, %v4392_v46  ;;  %v7789_v49 = vld [vmem:[%s15037_s2 + $0x12] ss:$0 sm:$0xff] }
 0x420   : > { %v4333_v63 = vadd.s32 %v4332_v6, %v4328_v61  ;;  %v4163_v4 = vsel %vm4161_vm12, %v8538_v31, %v4162_v33  ;;  %v4249_v2 = vand.u32 2147483647, %v4248_v48  ;;  %vm4275_vm5 = vcmp.lt.s32.totalorder %v11705_v1, 0 }
 0x421   : > { %v4401_v35 = vshrl.u32 %v8718_v62, %v4392_v46  ;;  %v4404_v51 = vshrl.u32 %v8719_v0, %v4392_v46  ;;  %v4167_v39 = vsel %vm4160_vm0, %v4163_v4, %v4166_v57  ;;  %v4396_v44 = vor.u32 %v4395_v18, %v4394_v36 }
 0x422   : > { %v4334_v42 = vadd.s32 536870912, %v4333_v63  ;;  %v4400_v19 = vshll.u32 %v8717_v60, %v4391_v22  ;;  %v4168_v28 = vsel %vm4157_vm2, nan, %v4167_v39  ;;  %v4252_v9 = vmul.f32 %v4251_v32, %v4249_v2 }
 0x423   : > { %v4399_v45 = vor.u32 %v4398_v50, %v4397_v26  ;;  %v4405_v25 = vor.u32 %v4404_v51, %v4403_v40  ;;  %v11995_v17 = vand.u32 3, %v4262_v20  ;;  %v4407_v24 = vshrl.u32 %v8720_v7, %v4392_v46  ;;  %7631 = vst.msk [vmem:[%s9134_s13 + $0xf0] sm:$0xff] %vm266_vm1, %v4168_v28 }
 0x424   : > { %v4335_v41 = vshrl.u32 %v4334_v42, 30  ;;  %v11998_v21 = vshll.u32 %v4385_v37, 8  ;;  %v4253_v12 = vxor.u32 2147483648, %v4252_v9  ;;  %v4402_v47 = vor.u32 %v4401_v35, %v4400_v19 }
 0x425   : > { %v4406_v8 = vshll.u32 %v8719_v0, %v4391_v22  ;;  %v4481_v27 = vand.u32 2147483647, %v11903_v16  ;;  %vm4409_vm6 = vcmp.lt.s32.totalorder %v11973_v53, 1  ;;  %vm4412_vm10 = vcmp.lt.s32.totalorder %v11973_v53, 4 }
 0x426   : > { %v4336_v10 = vshll.u32 %v4335_v41, 30  ;;  %v4359_v29 = vsub.s32 4, %v4335_v41  ;;  %v4254_v20 = vsel %vm4171_vm7, %v4253_v12, %v4252_v9  ;;  %v4417_v37 = vsel %vm4409_vm6, %v4396_v44, %v4399_v45 }
 0x427   : > { %v4408_v61 = vor.u32 %v4407_v24, %v4406_v8  ;;  %v4418_v38 = vsel %vm4412_vm10, %v4405_v25, 920167782  ;;  %v4257_v22 = vsel %vm11931_vm8, %v11664_v43, %v4254_v20  ;;  %v4393_v52 = vshrl.u32 %v8715_v54, %v4392_v46 }
 0x428   : > { %v12015_v31 = vsub.s32 %v4333_v63, %v4336_v10  ;;  %vm4411_vm14 = vcmp.lt.s32.totalorder %v11973_v53, 3  ;;  %8541 = vcosq.f32 %v4257_v22  ;;  %vm4410_vm7 = vcmp.lt.s32.totalorder %v11973_v53, 2 }
 0x429   : > { %v4414_v55 = vsel %vm4412_vm10, %v4402_v47, 2102212464  ;;  %v4419_v36 = vsel %vm4411_vm14, %v4402_v47, %v4418_v38  ;;  %8543 = vsinq.f32 %v4257_v22  ;;  %v4360_v56 = vsel %vm4275_vm5, %v4359_v29, %v4335_v41 }
 0x42a   : > { %v4339_v15 = vsub.s32 0, %v12015_v31  ;;  %v4420_v46 = vsel %vm4410_vm7, %v4417_v37, %v4419_v36  ;;  %v4421_v26 = vsel %vm4409_vm6, %v4399_v45, %v4402_v47  ;;  %v4422_v40 = vsel %vm4412_vm10, %v4408_v61, 1326507024 }
 0x42b   : > { %v12037_v33 = vmul.u32.u64.low %v11998_v21, %v4420_v46  ;;  %v12038_v48 = vmul.u32.u64.high %v11998_v21, %v4420_v46, %v12037_v33  ;;  %v4413_v6 = vsel %vm4409_vm6, %v4393_v52, %v4396_v44  ;;  %v4415_v57 = vsel %vm4411_vm14, %v4399_v45, %v4414_v55 }
 0x42c   : > { %v7964_v32 = vmin.u32 %v4339_v15, %v12015_v31  ;;  %v4423_v63 = vsel %vm4411_vm14, %v4405_v25, %v4422_v40  ;;  %vm12050_vm8 = vcmp.le.f32.partialorder %v4273_v59, 0.7853982  ;;  %v4484_v4 = vand.u32 2139095040, %v11903_v16 }
 0x42d   : > { %v4424_v50 = vsel %vm4410_vm7, %v4421_v26, %v4423_v63  ;;  %v661_v2 = vmul.f32 %v7789_v49, %v8798_v11  ;;  %v12060_v35 = vadd.f32 %v11890_v13, %v11900_v3  ;;  %v4362_v39 = vsel %vm12050_vm8, 0, %v4360_v56 }
 0x42e   : > { %v4341_v51 = vclz %v7964_v32  ;;  %v4416_v59 = vsel %vm4410_vm7, %v4413_v6, %v4415_v57  ;;  %v12067_v42 = vmul.u32.u64.low %v11998_v21, %v4424_v50  ;;  %v12068_v44 = vmul.u32.u64.high %v11998_v21, %v4424_v50, %v12067_v42 }
 0x42f   : > { %v4485_v19 = vshrl.u32 %v4484_v4, 23  ;;  %vm4261_vm15 = vweird.f32 %v11664_v43  ;;  %vm4264_vm9 = vcmp.lt.s32.totalorder %v11995_v17, 2  ;;  %v4488_v13 = vand.u32 8388607, %v4481_v27 }
 0x430   : > { %v7965_v28 = vadd.s32 4294967294, %v4341_v51  ;;  %vm4265_vm13 = vcmp.eq.s32.totalorder %v11995_v17, 0  ;;  %vm4268_vm11 = vcmp.eq.s32.totalorder %v11995_v17, 2  ;;  %v4435_v3 = vadd.s32 1, %v12038_v48 }
 0x431   : > { %v7971_v53 = vadd.s32 4294967169, %v4485_v19  ;;  %v4329_v9 = vadd.s32 %v11956_v23, %v11966_v5  ;;  %v4366_v45 = vadd.s32 3, %v4362_v39  ;;  %v4432_v25 = vmul.u32 %v11998_v21, %v4416_v59  ;;  %v12088_v21 = vld [vmem:[%s15038_s3 + $0x12] ss:$0 sm:$0xff] }
 0x432   : > { %vm7966_vm12 = vcmp.lt.s32.totalorder %v7965_v28, 0  ;;  %v8542_v41 = vpop.eup %8541  ;;  %vm4434_vm0 = vc.u32 %v12068_v44, %v12037_v33  ;;  %v4588_v47 = vand.u32 2139095040, %v12060_v35  ;;  %v4489_v61 = vor.u32 8388608, %v4488_v13 }
 0x433   : > { %v4344_v24 = vsel %vm7966_vm12, 0, %v7965_v28  ;;  %v4491_v12 = vadd.s32 1, %v7971_v53  ;;  %v8544_v8 = vpop.eup %8543  ;;  %v4269_v10 = vxor.u32 2147483648, %v8542_v41  ;;  %v4436_v5 = vsel %vm4434_vm0, %v4435_v3, %v12038_v48 }
 0x434   : > { %v4345_v29 = vsub.s32 32, %v4344_v24  ;;  %v4349_v20 = vsub.s32 4294967266, %v4344_v24  ;;  %v4266_v37 = vxor.u32 2147483648, %v8544_v8  ;;  %v4346_v23 = vshll.u32 %v12015_v31, %v4344_v24 }
 0x435   : > { %vm4492_vm2 = vcmp.gt.s32.totalorder %v4491_v12, 0  ;;  %v4270_v38 = vsel %vm4268_vm11, %v4269_v10, %v8544_v8  ;;  %v4437_v55 = vadd.s32 %v4436_v5, %v4432_v25  ;;  %v4585_v31 = vand.u32 2147483647, %v12060_v35 }
 0x436   : > { %v4347_v22 = vshrl.u32 %v4329_v9, %v4345_v29  ;;  %v4350_v52 = vadd.s32 127, %v4349_v20  ;;  %v4267_v36 = vsel %vm4265_vm13, %v8542_v41, %v4266_v37  ;;  %v4493_v15 = vsel %vm4492_vm2, %v4491_v12, 0 }
 0x437   : > { %v4589_v56 = vshrl.u32 %v4588_v47, 23  ;;  %v4271_v46 = vsel %vm4264_vm9, %v4267_v36, %v4270_v38  ;;  %v4438_v48 = vadd.s32 536870912, %v4437_v55  ;;  %v12098_v32 = vmul.f32 %v7789_v49, %v8800_v14 }
 0x438   : > { %v4348_v26 = vor.u32 %v4347_v22, %v4346_v23  ;;  %v4351_v40 = vshll.u32 %v4350_v52, 23  ;;  %v12101_v6 = vadd.f32 %v12088_v21, %v661_v2  ;;  %v4272_v57 = vsel %vm4261_vm15, nan, %v4271_v46 }
 0x439   : > { %v4495_v63 = vand.u32 31, %v4493_v15  ;;  %v12105_v4 = vand.u32 3, %v4366_v45  ;;  %vm4379_vm4 = vcmp.lt.s32.totalorder %v11862_v34, 0  ;;  %v4439_v17 = vshrl.u32 %v4438_v48, 30  ;;  %7632 = vst.msk [vmem:[%s9134_s13 + $0xf8] sm:$0xff] %vm266_vm1, %v4272_v57 }
 0x43a   : > { %v4352_v50 = vor.u32 4788187, %v4351_v40  ;;  %v12110_v39 = vshll.u32 %v4489_v61, 8  ;;  %v7975_v49 = vadd.s32 4294967169, %v4589_v56  ;;  %v12114_v2 = vand.u32 8388607, %v4585_v31 }
 0x43b   : > { %v4496_v51 = vsub.s32 32, %v4495_v63  ;;  %v4355_v43 = vcvt.s32.f32 %v4348_v26  ;;  %v12118_v42 = vadd.s32 %v12037_v33, %v12068_v44  ;;  %v4440_v19 = vshll.u32 %v4439_v17, 30 }
 0x43c   : > { %v4353_v59 = vand.u32 2147483647, %v4352_v50  ;;  %v4494_v28 = vshrl.u32 %v4493_v15, 5  ;;  %v4498_v25 = vshll.u32 %v8715_v54, %v4495_v63  ;;  %vm12129_vm3 = vcmp.le.f32.partialorder %v4377_v30, 0.7853982 }
 0x43d   : > { %v4499_v13 = vshrl.u32 %v8716_v58, %v4496_v51  ;;  %v4502_v3 = vshrl.u32 %v8717_v60, %v4496_v51  ;;  %v4505_v53 = vshrl.u32 %v8718_v62, %v4496_v51  ;;  %v12123_v45 = vsub.s32 %v4437_v55, %v4440_v19 }
 0x43e   : > { %v4356_v9 = vmul.f32 %v4355_v43, %v4353_v59  ;;  %v4508_v41 = vshrl.u32 %v8719_v0, %v4496_v51  ;;  %v4463_v44 = vsub.s32 4, %v4439_v17  ;;  %v4501_v24 = vshll.u32 %v8716_v58, %v4495_v63 }
 0x43f   : > { %v4504_v12 = vshll.u32 %v8717_v60, %v4495_v63  ;;  %v4595_v47 = vadd.s32 1, %v7975_v49  ;;  %v4443_v10 = vsub.s32 0, %v12123_v45  ;;  %v4500_v29 = vor.u32 %v4499_v13, %v4498_v25 }
 0x440   : > { %v4357_v8 = vxor.u32 2147483648, %v4356_v9  ;;  %v4507_v20 = vshll.u32 %v8718_v62, %v4495_v63  ;;  %v4503_v61 = vor.u32 %v4502_v3, %v4501_v24  ;;  %v4510_v23 = vshll.u32 %v8719_v0, %v4495_v63 }
 0x441   : > { %v4506_v37 = vor.u32 %v4505_v53, %v4504_v12  ;;  %v4511_v30 = vshrl.u32 %v8720_v7, %v4496_v51  ;;  %v7968_v38 = vmin.u32 %v4443_v10, %v12123_v45  ;;  %v4497_v22 = vshrl.u32 %v8715_v54, %v4496_v51 }
 0x442   : > { %v4358_v5 = vsel %vm4275_vm5, %v4357_v8, %v4356_v9  ;;  %v4509_v52 = vor.u32 %v4508_v41, %v4507_v20  ;;  %v4464_v36 = vsel %vm4379_vm4, %v4463_v44, %v4439_v17  ;;  %vm4513_vm6 = vcmp.lt.s32.totalorder %v4494_v28, 1 }
 0x443   : > { %v4361_v55 = vsel %vm12050_vm8, %v11705_v1, %v4358_v5  ;;  %v4512_v15 = vor.u32 %v4511_v30, %v4510_v23  ;;  %v4445_v56 = vclz %v7968_v38  ;;  %vm4514_vm10 = vcmp.lt.s32.totalorder %v4494_v28, 2 }
 0x444   : > { %8545 = vcosq.f32 %v4361_v55  ;;  %vm4516_vm14 = vcmp.lt.s32.totalorder %v4494_v28, 4  ;;  %vm4515_vm5 = vcmp.lt.s32.totalorder %v4494_v28, 3  ;;  %v4521_v26 = vsel %vm4513_vm6, %v4500_v29, %v4503_v61 }
 0x445   : > { %8547 = vsinq.f32 %v4361_v55  ;;  %v4518_v46 = vsel %vm4516_vm14, %v4506_v37, 2102212464  ;;  %v7969_v40 = vadd.s32 4294967294, %v4445_v56  ;;  %v4517_v48 = vsel %vm4513_vm6, %v4497_v22, %v4500_v29 }
 0x446   : > { %v4522_v57 = vsel %vm4516_vm14, %v4509_v52, 920167782  ;;  %v4525_v63 = vsel %vm4513_vm6, %v4503_v61, %v4506_v37  ;;  %v4519_v50 = vsel %vm4515_vm5, %v4503_v61, %v4518_v46  ;;  %v4526_v51 = vsel %vm4516_vm14, %v4512_v15, 1326507024 }
 0x447   : > { %v4523_v18 = vsel %vm4515_vm5, %v4506_v37, %v4522_v57  ;;  %vm4596_vm7 = vcmp.gt.s32.totalorder %v4595_v47, 0  ;;  %vm7970_vm8 = vcmp.lt.s32.totalorder %v7969_v40, 0  ;;  %v4466_v17 = vsel %vm12129_vm3, 0, %v4464_v36 }
 0x448   : > { %v4524_v49 = vsel %vm4514_vm10, %v4521_v26, %v4523_v18  ;;  %v4527_v59 = vsel %vm4515_vm5, %v4509_v52, %v4526_v51  ;;  %vm4369_vm15 = vcmp.eq.s32.totalorder %v12105_v4, 0  ;;  %v4448_v43 = vsel %vm7970_vm8, 0, %v7969_v40 }
 0x449   : > { %v4528_v19 = vsel %vm4514_vm10, %v4525_v63, %v4527_v59  ;;  %v12154_v13 = vmul.u32.u64.low %v12110_v39, %v4524_v49  ;;  %v12155_v3 = vmul.u32.u64.high %v12110_v39, %v4524_v49, %v12154_v13  ;;  %vm4368_vm9 = vcmp.lt.s32.totalorder %v12105_v4, 2 }
 0x44a   : > { %v4449_v53 = vsub.s32 32, %v4448_v43  ;;  %v4453_v9 = vsub.s32 4294967266, %v4448_v43  ;;  %v4520_v25 = vsel %vm4514_vm10, %v4517_v48, %v4519_v50  ;;  %v4597_v41 = vsel %vm4596_vm7, %v4595_v47, 0 }
 0x44b   : > { %vm4365_vm13 = vweird.f32 %v11705_v1  ;;  %vm4372_vm11 = vcmp.eq.s32.totalorder %v12105_v4, 2  ;;  %v12163_v44 = vmul.u32.u64.low %v12110_v39, %v4528_v19  ;;  %v12164_v24 = vmul.u32.u64.high %v12110_v39, %v4528_v19, %v12163_v44 }
 0x44c   : > { %v4599_v12 = vand.u32 31, %v4597_v41  ;;  %v4450_v8 = vshll.u32 %v12123_v45, %v4448_v43  ;;  %v4451_v10 = vshrl.u32 %v12118_v42, %v4449_v53  ;;  %v4454_v29 = vadd.s32 127, %v4453_v9 }
 0x44d   : > { %v4593_v20 = vor.u32 8388608, %v12114_v2  ;;  %v4470_v61 = vadd.s32 3, %v4466_v17  ;;  %v4536_v28 = vmul.u32 %v12110_v39, %v4520_v25  ;;  %v4539_v47 = vadd.s32 1, %v12155_v3 }
 0x44e   : > { %v4600_v37 = vsub.s32 32, %v4599_v12  ;;  %v8546_v23 = vpop.eup %8545  ;;  %v4452_v30 = vor.u32 %v4451_v10, %v4450_v8  ;;  %v4455_v5 = vshll.u32 %v4454_v29, 23  ;;  %v12171_v38 = vshrl.u32 %v4597_v41, 5 }
 0x44f   : > { %v4602_v22 = vshll.u32 %v8715_v54, %v4599_v12  ;;  %v8548_v52 = vpop.eup %8547  ;;  %v4373_v45 = vxor.u32 2147483648, %v8546_v23  ;;  %vm4538_vm12 = vc.u32 %v12164_v24, %v12154_v13  ;;  %v4605_v2 = vshll.u32 %v8716_v58, %v4599_v12 }
 0x450   : > { %v4611_v42 = vshll.u32 %v8718_v62, %v4599_v12  ;;  %v4370_v39 = vxor.u32 2147483648, %v8548_v52  ;;  %v4456_v55 = vor.u32 4788187, %v4455_v5  ;;  %v4459_v36 = vcvt.s32.f32 %v4452_v30 }
 0x451   : > { %v4540_v15 = vsel %vm4538_vm12, %v4539_v47, %v12155_v3  ;;  %v4374_v56 = vsel %vm4372_vm11, %v4373_v45, %v8548_v52  ;;  %v4603_v26 = vshrl.u32 %v8716_v58, %v4600_v37  ;;  %v4606_v40 = vshrl.u32 %v8717_v60, %v4600_v37  ;;  %v7790_v45 = vld [vmem:[%s15037_s2 + $0x13] ss:$0 sm:$0xff] }
 0x452   : > { %v4541_v46 = vadd.s32 %v4540_v15, %v4536_v28  ;;  %v4371_v48 = vsel %vm4369_vm15, %v8546_v23, %v4370_v39  ;;  %v4457_v57 = vand.u32 2147483647, %v4456_v55  ;;  %vm4483_vm0 = vcmp.lt.s32.totalorder %v11903_v16, 0 }
 0x453   : > { %v4609_v63 = vshrl.u32 %v8718_v62, %v4600_v37  ;;  %v4612_v50 = vshrl.u32 %v8719_v0, %v4600_v37  ;;  %v4375_v18 = vsel %vm4368_vm9, %v4371_v48, %v4374_v56  ;;  %v4604_v17 = vor.u32 %v4603_v26, %v4602_v22 }
 0x454   : > { %v4542_v51 = vadd.s32 536870912, %v4541_v46  ;;  %v4608_v49 = vshll.u32 %v8717_v60, %v4599_v12  ;;  %v4376_v59 = vsel %vm4365_vm13, nan, %v4375_v18  ;;  %v4460_v43 = vmul.f32 %v4459_v36, %v4457_v57 }
 0x455   : > { %v4607_v19 = vor.u32 %v4606_v40, %v4605_v2  ;;  %v4613_v3 = vor.u32 %v4612_v50, %v4611_v42  ;;  %v12193_v53 = vand.u32 3, %v4470_v61  ;;  %v4615_v25 = vshrl.u32 %v8720_v7, %v4600_v37  ;;  %7633 = vst.msk [vmem:[%s9134_s13 + $0x100] sm:$0xff] %vm266_vm1, %v4376_v59 }
 0x456   : > { %v4543_v9 = vshrl.u32 %v4542_v51, 30  ;;  %v12196_v41 = vshll.u32 %v4593_v20, 8  ;;  %v4461_v4 = vxor.u32 2147483648, %v4460_v43  ;;  %v4610_v44 = vor.u32 %v4609_v63, %v4608_v49 }
 0x457   : > { %v4614_v8 = vshll.u32 %v8719_v0, %v4599_v12  ;;  %v4689_v10 = vand.u32 2147483647, %v12101_v6  ;;  %vm4617_vm2 = vcmp.lt.s32.totalorder %v12171_v38, 1  ;;  %vm4620_vm6 = vcmp.lt.s32.totalorder %v12171_v38, 4 }
 0x458   : > { %v4544_v1 = vshll.u32 %v4543_v9, 30  ;;  %v4567_v29 = vsub.s32 4, %v4543_v9  ;;  %v4462_v61 = vsel %vm4379_vm4, %v4461_v4, %v4460_v43  ;;  %v4625_v20 = vsel %vm4617_vm2, %v4604_v17, %v4607_v19 }
 0x459   : > { %v4616_v28 = vor.u32 %v4615_v25, %v4614_v8  ;;  %v4626_v47 = vsel %vm4620_vm6, %v4613_v3, 920167782  ;;  %v4465_v12 = vsel %vm12129_vm3, %v11862_v34, %v4462_v61  ;;  %v4601_v30 = vshrl.u32 %v8715_v54, %v4600_v37 }
 0x45a   : > { %v12213_v23 = vsub.s32 %v4541_v46, %v4544_v1  ;;  %vm4619_vm10 = vcmp.lt.s32.totalorder %v12171_v38, 3  ;;  %8549 = vcosq.f32 %v4465_v12  ;;  %vm4618_vm4 = vcmp.lt.s32.totalorder %v12171_v38, 2 }
 0x45b   : > { %v4622_v5 = vsel %vm4620_vm6, %v4610_v44, 2102212464  ;;  %v4627_v22 = vsel %vm4619_vm10, %v4610_v44, %v4626_v47  ;;  %8551 = vsinq.f32 %v4465_v12  ;;  %v4568_v33 = vsel %vm4483_vm0, %v4567_v29, %v4543_v9 }
 0x45c   : > { %v4547_v52 = vsub.s32 0, %v12213_v23  ;;  %v4628_v37 = vsel %vm4618_vm4, %v4625_v20, %v4627_v22  ;;  %v4629_v2 = vsel %vm4617_vm2, %v4607_v19, %v4610_v44  ;;  %v4630_v42 = vsel %vm4620_vm6, %v4616_v28, 1326507024 }
 0x45d   : > { %v12235_v39 = vmul.u32.u64.low %v12196_v41, %v4628_v37  ;;  %v12236_v55 = vmul.u32.u64.high %v12196_v41, %v4628_v37, %v12235_v39  ;;  %v4621_v15 = vsel %vm4617_vm2, %v4601_v30, %v4604_v17  ;;  %v4623_v56 = vsel %vm4619_vm10, %v4607_v19, %v4622_v5 }
 0x45e   : > { %v7972_v36 = vmin.u32 %v4547_v52, %v12213_v23  ;;  %v4631_v46 = vsel %vm4619_vm10, %v4613_v3, %v4630_v42  ;;  %vm12248_vm3 = vcmp.le.f32.partialorder %v4481_v27, 0.7853982  ;;  %v4692_v48 = vand.u32 2139095040, %v12101_v6 }
 0x45f   : > { %v4632_v40 = vsel %vm4618_vm4, %v4629_v2, %v4631_v46  ;;  %v663_v57 = vmul.f32 %v7790_v45, %v8798_v11  ;;  %v12258_v63 = vadd.f32 %v12088_v21, %v12098_v32  ;;  %v4570_v18 = vsel %vm12248_vm3, 0, %v4568_v33 }
 0x460   : > { %v4549_v50 = vclz %v7972_v36  ;;  %v4624_v27 = vsel %vm4618_vm4, %v4621_v15, %v4623_v56  ;;  %v12265_v51 = vmul.u32.u64.low %v12196_v41, %v4632_v40  ;;  %v12266_v17 = vmul.u32.u64.high %v12196_v41, %v4632_v40, %v12265_v51 }
 0x461   : > { %v4693_v49 = vshrl.u32 %v4692_v48, 23  ;;  %vm4469_vm14 = vweird.f32 %v11862_v34  ;;  %vm4472_vm5 = vcmp.lt.s32.totalorder %v12193_v53, 2  ;;  %v4696_v21 = vand.u32 8388607, %v4689_v10 }
 0x462   : > { %v7973_v59 = vadd.s32 4294967294, %v4549_v50  ;;  %vm4473_vm7 = vcmp.eq.s32.totalorder %v12193_v53, 0  ;;  %vm4476_vm8 = vcmp.eq.s32.totalorder %v12193_v53, 2  ;;  %v4643_v32 = vadd.s32 1, %v12236_v55 }
 0x463   : > { %v7979_v38 = vadd.s32 4294967169, %v4693_v49  ;;  %v4537_v43 = vadd.s32 %v12154_v13, %v12164_v24  ;;  %v4574_v19 = vadd.s32 3, %v4570_v18  ;;  %v4640_v3 = vmul.u32 %v12196_v41, %v4624_v27  ;;  %v12286_v41 = vld [vmem:[%s15038_s3 + $0x13] ss:$0 sm:$0xff] }
 0x464   : > { %vm7974_vm15 = vcmp.lt.s32.totalorder %v7973_v59, 0  ;;  %v8550_v9 = vpop.eup %8549  ;;  %vm4642_vm9 = vc.u32 %v12266_v17, %v12235_v39  ;;  %v4796_v44 = vand.u32 2139095040, %v12258_v63  ;;  %v4697_v28 = vor.u32 8388608, %v4696_v21 }
 0x465   : > { %v4552_v25 = vsel %vm7974_vm15, 0, %v7973_v59  ;;  %v4699_v4 = vadd.s32 1, %v7979_v38  ;;  %v8552_v8 = vpop.eup %8551  ;;  %v4477_v1 = vxor.u32 2147483648, %v8550_v9  ;;  %v4644_v24 = vsel %vm4642_vm9, %v4643_v32, %v12236_v55 }
 0x466   : > { %v4553_v29 = vsub.s32 32, %v4552_v25  ;;  %v4557_v61 = vsub.s32 4294967266, %v4552_v25  ;;  %v4474_v20 = vxor.u32 2147483648, %v8552_v8  ;;  %v4554_v13 = vshll.u32 %v12213_v23, %v4552_v25 }
 0x467   : > { %vm4700_vm13 = vcmp.gt.s32.totalorder %v4699_v4, 0  ;;  %v4478_v47 = vsel %vm4476_vm8, %v4477_v1, %v8552_v8  ;;  %v4645_v5 = vadd.s32 %v4644_v24, %v4640_v3  ;;  %v4793_v23 = vand.u32 2147483647, %v12258_v63 }
 0x468   : > { %v4555_v12 = vshrl.u32 %v4537_v43, %v4553_v29  ;;  %v4558_v30 = vadd.s32 127, %v4557_v61  ;;  %v4475_v22 = vsel %vm4473_vm7, %v8550_v9, %v4474_v20  ;;  %v4701_v52 = vsel %vm4700_vm13, %v4699_v4, 0 }
 0x469   : > { %v4797_v33 = vshrl.u32 %v4796_v44, 23  ;;  %v4479_v37 = vsel %vm4472_vm5, %v4475_v22, %v4478_v47  ;;  %v4646_v55 = vadd.s32 536870912, %v4645_v5  ;;  %v12296_v36 = vmul.f32 %v7790_v45, %v8800_v14 }
 0x46a   : > { %v4556_v2 = vor.u32 %v4555_v12, %v4554_v13  ;;  %v4559_v42 = vshll.u32 %v4558_v30, 23  ;;  %v12299_v15 = vadd.f32 %v12286_v41, %v663_v57  ;;  %v4480_v56 = vsel %vm4469_vm14, nan, %v4479_v37 }
 0x46b   : > { %v4703_v46 = vand.u32 31, %v4701_v52  ;;  %v12303_v48 = vand.u32 3, %v4574_v19  ;;  %vm4587_vm11 = vcmp.lt.s32.totalorder %v12060_v35, 0  ;;  %v4647_v53 = vshrl.u32 %v4646_v55, 30  ;;  %7634 = vst.msk [vmem:[%s9134_s13 + $0x108] sm:$0xff] %vm266_vm1, %v4480_v56 }
 0x46c   : > { %v4560_v40 = vor.u32 4788187, %v4559_v42  ;;  %v12308_v18 = vshll.u32 %v4697_v28, 8  ;;  %v7983_v45 = vadd.s32 4294967169, %v4797_v33  ;;  %v12312_v57 = vand.u32 8388607, %v4793_v23 }
 0x46d   : > { %v4704_v50 = vsub.s32 32, %v4703_v46  ;;  %v4563_v34 = vcvt.s32.f32 %v4556_v2  ;;  %v12316_v51 = vadd.s32 %v12235_v39, %v12266_v17  ;;  %v4648_v49 = vshll.u32 %v4647_v53, 30 }
 0x46e   : > { %v4561_v27 = vand.u32 2147483647, %v4560_v40  ;;  %v4702_v59 = vshrl.u32 %v4701_v52, 5  ;;  %v4706_v3 = vshll.u32 %v8715_v54, %v4703_v46  ;;  %vm12327_vm12 = vcmp.le.f32.partialorder %v4585_v31, 0.7853982 }
 0x46f   : > { %v4707_v21 = vshrl.u32 %v8716_v58, %v4704_v50  ;;  %v4710_v32 = vshrl.u32 %v8717_v60, %v4704_v50  ;;  %v4713_v38 = vshrl.u32 %v8718_v62, %v4704_v50  ;;  %v12321_v19 = vsub.s32 %v4645_v5, %v4648_v49 }
 0x470   : > { %v4564_v43 = vmul.f32 %v4563_v34, %v4561_v27  ;;  %v4716_v9 = vshrl.u32 %v8719_v0, %v4704_v50  ;;  %v4671_v17 = vsub.s32 4, %v4647_v53  ;;  %v4709_v25 = vshll.u32 %v8716_v58, %v4703_v46 }
 0x471   : > { %v4712_v4 = vshll.u32 %v8717_v60, %v4703_v46  ;;  %v4803_v44 = vadd.s32 1, %v7983_v45  ;;  %v4651_v1 = vsub.s32 0, %v12321_v19  ;;  %v4708_v29 = vor.u32 %v4707_v21, %v4706_v3 }
 0x472   : > { %v4565_v8 = vxor.u32 2147483648, %v4564_v43  ;;  %v4715_v61 = vshll.u32 %v8718_v62, %v4703_v46  ;;  %v4711_v28 = vor.u32 %v4710_v32, %v4709_v25  ;;  %v4718_v13 = vshll.u32 %v8719_v0, %v4703_v46 }
 0x473   : > { %v4714_v20 = vor.u32 %v4713_v38, %v4712_v4  ;;  %v4719_v31 = vshrl.u32 %v8720_v7, %v4704_v50  ;;  %v7976_v47 = vmin.u32 %v4651_v1, %v12321_v19  ;;  %v4705_v12 = vshrl.u32 %v8715_v54, %v4704_v50 }
 0x474   : > { %v4566_v24 = vsel %vm4483_vm0, %v4565_v8, %v4564_v43  ;;  %v4717_v30 = vor.u32 %v4716_v9, %v4715_v61  ;;  %v4672_v22 = vsel %vm4587_vm11, %v4671_v17, %v4647_v53  ;;  %vm4721_vm2 = vcmp.lt.s32.totalorder %v4702_v59, 1 }
 0x475   : > { %v4569_v5 = vsel %vm12248_vm3, %v11903_v16, %v4566_v24  ;;  %v4720_v52 = vor.u32 %v4719_v31, %v4718_v13  ;;  %v4653_v33 = vclz %v7976_v47  ;;  %vm4722_vm6 = vcmp.lt.s32.totalorder %v4702_v59, 2 }
 0x476   : > { %8553 = vcosq.f32 %v4569_v5  ;;  %vm4724_vm10 = vcmp.lt.s32.totalorder %v4702_v59, 4  ;;  %vm4723_vm0 = vcmp.lt.s32.totalorder %v4702_v59, 3  ;;  %v4729_v2 = vsel %vm4721_vm2, %v4708_v29, %v4711_v28 }
 0x477   : > { %8555 = vsinq.f32 %v4569_v5  ;;  %v4726_v37 = vsel %vm4724_vm10, %v4714_v20, 2102212464  ;;  %v7977_v42 = vadd.s32 4294967294, %v4653_v33  ;;  %v4725_v55 = vsel %vm4721_vm2, %v4705_v12, %v4708_v29 }
 0x478   : > { %v4730_v56 = vsel %vm4724_vm10, %v4717_v30, 920167782  ;;  %v4733_v46 = vsel %vm4721_vm2, %v4711_v28, %v4714_v20  ;;  %v4727_v40 = vsel %vm4723_vm0, %v4711_v28, %v4726_v37  ;;  %v4734_v50 = vsel %vm4724_vm10, %v4720_v52, 1326507024 }
 0x479   : > { %v4731_v26 = vsel %vm4723_vm0, %v4714_v20, %v4730_v56  ;;  %vm4804_vm4 = vcmp.gt.s32.totalorder %v4803_v44, 0  ;;  %vm7978_vm3 = vcmp.lt.s32.totalorder %v7977_v42, 0  ;;  %v4674_v53 = vsel %vm12327_vm12, 0, %v4672_v22 }
 0x47a   : > { %v4732_v45 = vsel %vm4722_vm6, %v4729_v2, %v4731_v26  ;;  %v4735_v27 = vsel %vm4723_vm0, %v4717_v30, %v4734_v50  ;;  %vm4577_vm14 = vcmp.eq.s32.totalorder %v12303_v48, 0  ;;  %v4656_v34 = vsel %vm7978_vm3, 0, %v7977_v42 }
 0x47b   : > { %v4736_v49 = vsel %vm4722_vm6, %v4733_v46, %v4735_v27  ;;  %v12352_v21 = vmul.u32.u64.low %v12308_v18, %v4732_v45  ;;  %v12353_v32 = vmul.u32.u64.high %v12308_v18, %v4732_v45, %v12352_v21  ;;  %vm4576_vm5 = vcmp.lt.s32.totalorder %v12303_v48, 2 }
 0x47c   : > { %v4657_v38 = vsub.s32 32, %v4656_v34  ;;  %v4661_v43 = vsub.s32 4294967266, %v4656_v34  ;;  %v4728_v3 = vsel %vm4722_vm6, %v4725_v55, %v4727_v40  ;;  %v4805_v9 = vsel %vm4804_vm4, %v4803_v44, 0 }
 0x47d   : > { %vm4573_vm7 = vweird.f32 %v11903_v16  ;;  %vm4580_vm8 = vcmp.eq.s32.totalorder %v12303_v48, 2  ;;  %v12361_v17 = vmul.u32.u64.low %v12308_v18, %v4736_v49  ;;  %v12362_v25 = vmul.u32.u64.high %v12308_v18, %v4736_v49, %v12361_v17 }
 0x47e   : > { %v4807_v4 = vand.u32 31, %v4805_v9  ;;  %v4658_v8 = vshll.u32 %v12321_v19, %v4656_v34  ;;  %v4659_v1 = vshrl.u32 %v12316_v51, %v4657_v38  ;;  %v4662_v29 = vadd.s32 127, %v4661_v43 }
 0x47f   : > { %v4801_v61 = vor.u32 8388608, %v12312_v57  ;;  %v4678_v28 = vadd.s32 3, %v4674_v53  ;;  %v4744_v59 = vmul.u32 %v12308_v18, %v4728_v3  ;;  %v4747_v44 = vadd.s32 1, %v12353_v32 }
 0x480   : > { %v4808_v20 = vsub.s32 32, %v4807_v4  ;;  %v8554_v13 = vpop.eup %8553  ;;  %v4660_v31 = vor.u32 %v4659_v1, %v4658_v8  ;;  %v4663_v24 = vshll.u32 %v4662_v29, 23  ;;  %v12369_v47 = vshrl.u32 %v4805_v9, 5 }
 0x481   : > { %v4810_v12 = vshll.u32 %v8715_v54, %v4807_v4  ;;  %v8556_v30 = vpop.eup %8555  ;;  %v4581_v19 = vxor.u32 2147483648, %v8554_v13  ;;  %vm4746_vm15 = vc.u32 %v12362_v25, %v12352_v21  ;;  %v4813_v57 = vshll.u32 %v8716_v58, %v4807_v4 }
 0x482   : > { %v4819_v51 = vshll.u32 %v8718_v62, %v4807_v4  ;;  %v4578_v18 = vxor.u32 2147483648, %v8556_v30  ;;  %v4664_v5 = vor.u32 4788187, %v4663_v24  ;;  %v4667_v22 = vcvt.s32.f32 %v4660_v31 }
 0x483   : > { %v4748_v52 = vsel %vm4746_vm15, %v4747_v44, %v12353_v32  ;;  %v4582_v33 = vsel %vm4580_vm8, %v4581_v19, %v8556_v30  ;;  %v4811_v2 = vshrl.u32 %v8716_v58, %v4808_v20  ;;  %v4814_v42 = vshrl.u32 %v8717_v60, %v4808_v20  ;;  %v7791_v19 = vld [vmem:[%s15037_s2 + $0x14] ss:$0 sm:$0xff] }
 0x484   : > { %v4749_v37 = vadd.s32 %v4748_v52, %v4744_v59  ;;  %v4579_v55 = vsel %vm4577_vm14, %v8554_v13, %v4578_v18  ;;  %v4665_v56 = vand.u32 2147483647, %v4664_v5  ;;  %vm4691_vm9 = vcmp.lt.s32.totalorder %v12101_v6, 0 }
 0x485   : > { %v4817_v46 = vshrl.u32 %v8718_v62, %v4808_v20  ;;  %v4820_v40 = vshrl.u32 %v8719_v0, %v4808_v20  ;;  %v4583_v26 = vsel %vm4576_vm5, %v4579_v55, %v4582_v33  ;;  %v4812_v53 = vor.u32 %v4811_v2, %v4810_v12 }
 0x486   : > { %v4750_v50 = vadd.s32 536870912, %v4749_v37  ;;  %v4816_v45 = vshll.u32 %v8717_v60, %v4807_v4  ;;  %v4584_v27 = vsel %vm4573_vm7, nan, %v4583_v26  ;;  %v4668_v34 = vmul.f32 %v4667_v22, %v4665_v56 }
 0x487   : > { %v4815_v49 = vor.u32 %v4814_v42, %v4813_v57  ;;  %v4821_v32 = vor.u32 %v4820_v40, %v4819_v51  ;;  %v12391_v38 = vand.u32 3, %v4678_v28  ;;  %v4823_v3 = vshrl.u32 %v8720_v7, %v4808_v20  ;;  %7635 = vst.msk [vmem:[%s9134_s13 + $0x110] sm:$0xff] %vm266_vm1, %v4584_v27 }
 0x488   : > { %v4751_v43 = vshrl.u32 %v4750_v50, 30  ;;  %v12394_v9 = vshll.u32 %v4801_v61, 8  ;;  %v4669_v48 = vxor.u32 2147483648, %v4668_v34  ;;  %v4818_v17 = vor.u32 %v4817_v46, %v4816_v45 }
 0x489   : > { %v4822_v8 = vshll.u32 %v8719_v0, %v4807_v4  ;;  %v4897_v1 = vand.u32 2147483647, %v12299_v15  ;;  %vm4825_vm13 = vcmp.lt.s32.totalorder %v12369_v47, 1  ;;  %vm4828_vm2 = vcmp.lt.s32.totalorder %v12369_v47, 4 }
 0x48a   : > { %v4752_v16 = vshll.u32 %v4751_v43, 30  ;;  %v4775_v29 = vsub.s32 4, %v4751_v43  ;;  %v4670_v28 = vsel %vm4587_vm11, %v4669_v48, %v4668_v34  ;;  %v4833_v61 = vsel %vm4825_vm13, %v4812_v53, %v4815_v49 }
 0x48b   : > { %v4824_v59 = vor.u32 %v4823_v3, %v4822_v8  ;;  %v4834_v44 = vsel %vm4828_vm2, %v4821_v32, 920167782  ;;  %v4673_v4 = vsel %vm12327_vm12, %v12060_v35, %v4670_v28  ;;  %v4809_v31 = vshrl.u32 %v8715_v54, %v4808_v20 }
 0x48c   : > { %v12411_v13 = vsub.s32 %v4749_v37, %v4752_v16  ;;  %vm4827_vm6 = vcmp.lt.s32.totalorder %v12369_v47, 3  ;;  %8557 = vcosq.f32 %v4673_v4  ;;  %vm4826_vm11 = vcmp.lt.s32.totalorder %v12369_v47, 2 }
 0x48d   : > { %v4830_v24 = vsel %vm4828_vm2, %v4818_v17, 2102212464  ;;  %v4835_v12 = vsel %vm4827_vm6, %v4818_v17, %v4834_v44  ;;  %8559 = vsinq.f32 %v4673_v4  ;;  %v4776_v39 = vsel %vm4691_vm9, %v4775_v29, %v4751_v43 }
 0x48e   : > { %v4755_v30 = vsub.s32 0, %v12411_v13  ;;  %v4836_v20 = vsel %vm4826_vm11, %v4833_v61, %v4835_v12  ;;  %v4837_v57 = vsel %vm4825_vm13, %v4815_v49, %v4818_v17  ;;  %v4838_v51 = vsel %vm4828_vm2, %v4824_v59, 1326507024 }
 0x48f   : > { %v12433_v18 = vmul.u32.u64.low %v12394_v9, %v4836_v20  ;;  %v12434_v5 = vmul.u32.u64.high %v12394_v9, %v4836_v20, %v12433_v18  ;;  %v4829_v52 = vsel %vm4825_vm13, %v4809_v31, %v4812_v53  ;;  %v4831_v33 = vsel %vm4827_vm6, %v4815_v49, %v4830_v24 }
 0x490   : > { %v7980_v22 = vmin.u32 %v4755_v30, %v12411_v13  ;;  %v4839_v37 = vsel %vm4827_vm6, %v4821_v32, %v4838_v51  ;;  %vm12446_vm12 = vcmp.le.f32.partialorder %v4689_v10, 0.7853982  ;;  %v4900_v55 = vand.u32 2139095040, %v12299_v15 }
 0x491   : > { %v4840_v42 = vsel %vm4826_vm11, %v4837_v57, %v4839_v37  ;;  %v665_v56 = vmul.f32 %v7791_v19, %v8798_v11  ;;  %v12456_v46 = vadd.f32 %v12286_v41, %v12296_v36  ;;  %v4778_v26 = vsel %vm12446_vm12, 0, %v4776_v39 }
 0x492   : > { %v4757_v40 = vclz %v7980_v22  ;;  %v4832_v10 = vsel %vm4826_vm11, %v4829_v52, %v4831_v33  ;;  %v12463_v50 = vmul.u32.u64.low %v12394_v9, %v4840_v42  ;;  %v12464_v53 = vmul.u32.u64.high %v12394_v9, %v4840_v42, %v12463_v50 }
 0x493   : > { %v4901_v45 = vshrl.u32 %v4900_v55, 23  ;;  %vm4677_vm10 = vweird.f32 %v12060_v35  ;;  %vm4680_vm0 = vcmp.lt.s32.totalorder %v12391_v38, 2  ;;  %v4904_v41 = vand.u32 8388607, %v4897_v1 }
 0x494   : > { %v7981_v27 = vadd.s32 4294967294, %v4757_v40  ;;  %vm4681_vm4 = vcmp.eq.s32.totalorder %v12391_v38, 0  ;;  %vm4684_vm3 = vcmp.eq.s32.totalorder %v12391_v38, 2  ;;  %v4851_v36 = vadd.s32 1, %v12434_v5 }
 0x495   : > { %v7987_v47 = vadd.s32 4294967169, %v4901_v45  ;;  %v4745_v34 = vadd.s32 %v12352_v21, %v12362_v25  ;;  %v4782_v49 = vadd.s32 3, %v4778_v26  ;;  %v4848_v32 = vmul.u32 %v12394_v9, %v4832_v10  ;;  %v12484_v9 = vld [vmem:[%s15038_s3 + $0x14] ss:$0 sm:$0xff] }
 0x496   : > { %vm7982_vm14 = vcmp.lt.s32.totalorder %v7981_v27, 0  ;;  %v8558_v43 = vpop.eup %8557  ;;  %vm4850_vm5 = vc.u32 %v12464_v53, %v12433_v18  ;;  %v5004_v17 = vand.u32 2139095040, %v12456_v46  ;;  %v4905_v59 = vor.u32 8388608, %v4904_v41 }
 0x497   : > { %v4760_v3 = vsel %vm7982_vm14, 0, %v7981_v27  ;;  %v4907_v48 = vadd.s32 1, %v7987_v47  ;;  %v8560_v8 = vpop.eup %8559  ;;  %v4685_v16 = vxor.u32 2147483648, %v8558_v43  ;;  %v4852_v25 = vsel %vm4850_vm5, %v4851_v36, %v12434_v5 }
 0x498   : > { %v4761_v29 = vsub.s32 32, %v4760_v3  ;;  %v4765_v28 = vsub.s32 4294967266, %v4760_v3  ;;  %v4682_v61 = vxor.u32 2147483648, %v8560_v8  ;;  %v4762_v21 = vshll.u32 %v12411_v13, %v4760_v3 }
 0x499   : > { %vm4908_vm7 = vcmp.gt.s32.totalorder %v4907_v48, 0  ;;  %v4686_v44 = vsel %vm4684_vm3, %v4685_v16, %v8560_v8  ;;  %v4853_v24 = vadd.s32 %v4852_v25, %v4848_v32  ;;  %v5001_v13 = vand.u32 2147483647, %v12456_v46 }
 0x49a   : > { %v4763_v4 = vshrl.u32 %v4745_v34, %v4761_v29  ;;  %v4766_v31 = vadd.s32 127, %v4765_v28  ;;  %v4683_v12 = vsel %vm4681_vm4, %v8558_v43, %v4682_v61  ;;  %v4909_v30 = vsel %vm4908_vm7, %v4907_v48, 0 }
 0x49b   : > { %v5005_v39 = vshrl.u32 %v5004_v17, 23  ;;  %v4687_v20 = vsel %vm4680_vm0, %v4683_v12, %v4686_v44  ;;  %v4854_v5 = vadd.s32 536870912, %v4853_v24  ;;  %v12494_v22 = vmul.f32 %v7791_v19, %v8800_v14 }
 0x49c   : > { %v4764_v57 = vor.u32 %v4763_v4, %v4762_v21  ;;  %v4767_v51 = vshll.u32 %v4766_v31, 23  ;;  %v12497_v52 = vadd.f32 %v12484_v9, %v665_v56  ;;  %v4688_v33 = vsel %vm4677_vm10, nan, %v4687_v20 }
 0x49d   : > { %v4911_v37 = vand.u32 31, %v4909_v30  ;;  %v12501_v55 = vand.u32 3, %v4782_v49  ;;  %vm4795_vm8 = vcmp.lt.s32.totalorder %v12258_v63, 0  ;;  %v4855_v38 = vshrl.u32 %v4854_v5, 30  ;;  %7636 = vst.msk [vmem:[%s9134_s13 + $0x118] sm:$0xff] %vm266_vm1, %v4688_v33 }
 0x49e   : > { %v4768_v42 = vor.u32 4788187, %v4767_v51  ;;  %v12506_v26 = vshll.u32 %v4905_v59, 8  ;;  %v7991_v19 = vadd.s32 4294967169, %v5005_v39  ;;  %v12510_v56 = vand.u32 8388607, %v5001_v13 }
 0x49f   : > { %v4912_v40 = vsub.s32 32, %v4911_v37  ;;  %v4771_v35 = vcvt.s32.f32 %v4764_v57  ;;  %v12514_v50 = vadd.s32 %v12433_v18, %v12464_v53  ;;  %v4856_v45 = vshll.u32 %v4855_v38, 30 }
 0x4a0   : > { %v4769_v10 = vand.u32 2147483647, %v4768_v42  ;;  %v4910_v27 = vshrl.u32 %v4909_v30, 5  ;;  %v4914_v32 = vshll.u32 %v8715_v54, %v4911_v37  ;;  %vm12525_vm15 = vcmp.le.f32.partialorder %v4793_v23, 0.7853982 }
 0x4a1   : > { %v4915_v41 = vshrl.u32 %v8716_v58, %v4912_v40  ;;  %v4918_v36 = vshrl.u32 %v8717_v60, %v4912_v40  ;;  %v4921_v47 = vshrl.u32 %v8718_v62, %v4912_v40  ;;  %v12519_v49 = vsub.s32 %v4853_v24, %v4856_v45 }
 0x4a2   : > { %v4772_v34 = vmul.f32 %v4771_v35, %v4769_v10  ;;  %v4924_v43 = vshrl.u32 %v8719_v0, %v4912_v40  ;;  %v4879_v53 = vsub.s32 4, %v4855_v38  ;;  %v4917_v3 = vshll.u32 %v8716_v58, %v4911_v37 }
 0x4a3   : > { %v4920_v48 = vshll.u32 %v8717_v60, %v4911_v37  ;;  %v5011_v17 = vadd.s32 1, %v7991_v19  ;;  %v4859_v16 = vsub.s32 0, %v12519_v49  ;;  %v4916_v29 = vor.u32 %v4915_v41, %v4914_v32 }
 0x4a4   : > { %v4773_v8 = vxor.u32 2147483648, %v4772_v34  ;;  %v4923_v28 = vshll.u32 %v8718_v62, %v4911_v37  ;;  %v4919_v59 = vor.u32 %v4918_v36, %v4917_v3  ;;  %v4926_v21 = vshll.u32 %v8719_v0, %v4911_v37 }
 0x4a5   : > { %v4922_v61 = vor.u32 %v4921_v47, %v4920_v48  ;;  %v4927_v23 = vshrl.u32 %v8720_v7, %v4912_v40  ;;  %v7984_v44 = vmin.u32 %v4859_v16, %v12519_v49  ;;  %v4913_v4 = vshrl.u32 %v8715_v54, %v4912_v40 }
 0x4a6   : > { %v4774_v25 = vsel %vm4691_vm9, %v4773_v8, %v4772_v34  ;;  %v4925_v31 = vor.u32 %v4924_v43, %v4923_v28  ;;  %v4880_v12 = vsel %vm4795_vm8, %v4879_v53, %v4855_v38  ;;  %vm4929_vm13 = vcmp.lt.s32.totalorder %v4910_v27, 1 }
 0x4a7   : > { %v4777_v24 = vsel %vm12446_vm12, %v12101_v6, %v4774_v25  ;;  %v4928_v30 = vor.u32 %v4927_v23, %v4926_v21  ;;  %v4861_v39 = vclz %v7984_v44  ;;  %vm4930_vm2 = vcmp.lt.s32.totalorder %v4910_v27, 2 }
 0x4a8   : > { %8561 = vcosq.f32 %v4777_v24  ;;  %vm4932_vm6 = vcmp.lt.s32.totalorder %v4910_v27, 4  ;;  %vm4931_vm9 = vcmp.lt.s32.totalorder %v4910_v27, 3  ;;  %v4937_v57 = vsel %vm4929_vm13, %v4916_v29, %v4919_v59 }
 0x4a9   : > { %8563 = vsinq.f32 %v4777_v24  ;;  %v4934_v20 = vsel %vm4932_vm6, %v4922_v61, 2102212464  ;;  %v7985_v51 = vadd.s32 4294967294, %v4861_v39  ;;  %v4933_v5 = vsel %vm4929_vm13, %v4913_v4, %v4916_v29 }
 0x4aa   : > { %v4938_v33 = vsel %vm4932_vm6, %v4925_v31, 920167782  ;;  %v4941_v37 = vsel %vm4929_vm13, %v4919_v59, %v4922_v61  ;;  %v4935_v42 = vsel %vm4931_vm9, %v4919_v59, %v4934_v20  ;;  %v4942_v40 = vsel %vm4932_vm6, %v4928_v30, 1326507024 }
 0x4ab   : > { %v4939_v2 = vsel %vm4931_vm9, %v4922_v61, %v4938_v33  ;;  %vm5012_vm11 = vcmp.gt.s32.totalorder %v5011_v17, 0  ;;  %vm7986_vm12 = vcmp.lt.s32.totalorder %v7985_v51, 0  ;;  %v4882_v38 = vsel %vm12525_vm15, 0, %v4880_v12 }
 0x4ac   : > { %v4940_v19 = vsel %vm4930_vm2, %v4937_v57, %v4939_v2  ;;  %v4943_v10 = vsel %vm4931_vm9, %v4925_v31, %v4942_v40  ;;  %vm4785_vm10 = vcmp.eq.s32.totalorder %v12501_v55, 0  ;;  %v4864_v35 = vsel %vm7986_vm12, 0, %v7985_v51 }
 0x4ad   : > { %v4944_v45 = vsel %vm4930_vm2, %v4941_v37, %v4943_v10  ;;  %v12550_v41 = vmul.u32.u64.low %v12506_v26, %v4940_v19  ;;  %v12551_v36 = vmul.u32.u64.high %v12506_v26, %v4940_v19, %v12550_v41  ;;  %vm4784_vm0 = vcmp.lt.s32.totalorder %v12501_v55, 2 }
 0x4ae   : > { %v4865_v47 = vsub.s32 32, %v4864_v35  ;;  %v4869_v34 = vsub.s32 4294967266, %v4864_v35  ;;  %v4936_v32 = vsel %vm4930_vm2, %v4933_v5, %v4935_v42  ;;  %v5013_v43 = vsel %vm5012_vm11, %v5011_v17, 0 }
 0x4af   : > { %vm4781_vm4 = vweird.f32 %v12101_v6  ;;  %vm4788_vm3 = vcmp.eq.s32.totalorder %v12501_v55, 2  ;;  %v12559_v53 = vmul.u32.u64.low %v12506_v26, %v4944_v45  ;;  %v12560_v3 = vmul.u32.u64.high %v12506_v26, %v4944_v45, %v12559_v53 }
 0x4b0   : > { %v5015_v48 = vand.u32 31, %v5013_v43  ;;  %v4866_v8 = vshll.u32 %v12519_v49, %v4864_v35  ;;  %v4867_v16 = vshrl.u32 %v12514_v50, %v4865_v47  ;;  %v4870_v29 = vadd.s32 127, %v4869_v34 }
 0x4b1   : > { %v5009_v28 = vor.u32 8388608, %v12510_v56  ;;  %v4886_v59 = vadd.s32 3, %v4882_v38  ;;  %v4952_v27 = vmul.u32 %v12506_v26, %v4936_v32  ;;  %v4955_v17 = vadd.s32 1, %v12551_v36 }
 0x4b2   : > { %v5016_v61 = vsub.s32 32, %v5015_v48  ;;  %v8562_v21 = vpop.eup %8561  ;;  %v4868_v23 = vor.u32 %v4867_v16, %v4866_v8  ;;  %v4871_v25 = vshll.u32 %v4870_v29, 23  ;;  %v12567_v44 = vshrl.u32 %v5013_v43, 5 }
 0x4b3   : > { %v5018_v4 = vshll.u32 %v8715_v54, %v5015_v48  ;;  %v8564_v31 = vpop.eup %8563  ;;  %v4789_v49 = vxor.u32 2147483648, %v8562_v21  ;;  %vm4954_vm14 = vc.u32 %v12560_v3, %v12550_v41  ;;  %v5021_v56 = vshll.u32 %v8716_v58, %v5015_v48 }
 0x4b4   : > { %v5027_v50 = vshll.u32 %v8718_v62, %v5015_v48  ;;  %v4786_v26 = vxor.u32 2147483648, %v8564_v31  ;;  %v4872_v24 = vor.u32 4788187, %v4871_v25  ;;  %v4875_v12 = vcvt.s32.f32 %v4868_v23 }
 0x4b5   : > { %v4956_v30 = vsel %vm4954_vm14, %v4955_v17, %v12551_v36  ;;  %v4790_v39 = vsel %vm4788_vm3, %v4789_v49, %v8564_v31  ;;  %v5019_v57 = vshrl.u32 %v8716_v58, %v5016_v61  ;;  %v5022_v51 = vshrl.u32 %v8717_v60, %v5016_v61  ;;  %v7792_v49 = vld [vmem:[%s15037_s2 + $0x15] ss:$0 sm:$0xff] }
 0x4b6   : > { %v4957_v20 = vadd.s32 %v4956_v30, %v4952_v27  ;;  %v4787_v5 = vsel %vm4785_vm10, %v8562_v21, %v4786_v26  ;;  %v4873_v33 = vand.u32 2147483647, %v4872_v24  ;;  %vm4899_vm5 = vcmp.lt.s32.totalorder %v12299_v15, 0 }
 0x4b7   : > { %v5025_v37 = vshrl.u32 %v8718_v62, %v5016_v61  ;;  %v5028_v42 = vshrl.u32 %v8719_v0, %v5016_v61  ;;  %v4791_v2 = vsel %vm4784_vm0, %v4787_v5, %v4790_v39  ;;  %v5020_v38 = vor.u32 %v5019_v57, %v5018_v4 }
 0x4b8   : > { %v4958_v40 = vadd.s32 536870912, %v4957_v20  ;;  %v5024_v19 = vshll.u32 %v8717_v60, %v5015_v48  ;;  %v4792_v10 = vsel %vm4781_vm4, nan, %v4791_v2  ;;  %v4876_v35 = vmul.f32 %v4875_v12, %v4873_v33 }
 0x4b9   : > { %v5023_v45 = vor.u32 %v5022_v51, %v5021_v56  ;;  %v5029_v36 = vor.u32 %v5028_v42, %v5027_v50  ;;  %v12589_v47 = vand.u32 3, %v4886_v59  ;;  %v5031_v32 = vshrl.u32 %v8720_v7, %v5016_v61  ;;  %7637 = vst.msk [vmem:[%s9134_s13 + $0x120] sm:$0xff] %vm266_vm1, %v4792_v10 }
 0x4ba   : > { %v4959_v34 = vshrl.u32 %v4958_v40, 30  ;;  %v12592_v43 = vshll.u32 %v5009_v28, 8  ;;  %v4877_v55 = vxor.u32 2147483648, %v4876_v35  ;;  %v5026_v53 = vor.u32 %v5025_v37, %v5024_v19 }
 0x4bb   : > { %v5030_v8 = vshll.u32 %v8719_v0, %v5015_v48  ;;  %v5105_v16 = vand.u32 2147483647, %v12497_v52  ;;  %vm5033_vm7 = vcmp.lt.s32.totalorder %v12567_v44, 1  ;;  %vm5036_vm13 = vcmp.lt.s32.totalorder %v12567_v44, 4 }
 0x4bc   : > { %v4960_v6 = vshll.u32 %v4959_v34, 30  ;;  %v4983_v29 = vsub.s32 4, %v4959_v34  ;;  %v4878_v59 = vsel %vm4795_vm8, %v4877_v55, %v4876_v35  ;;  %v5041_v28 = vsel %vm5033_vm7, %v5020_v38, %v5023_v45 }
 0x4bd   : > { %v5032_v27 = vor.u32 %v5031_v32, %v5030_v8  ;;  %v5042_v17 = vsel %vm5036_vm13, %v5029_v36, 920167782  ;;  %v4881_v48 = vsel %vm12525_vm15, %v12258_v63, %v4878_v59  ;;  %v5017_v23 = vshrl.u32 %v8715_v54, %v5016_v61 }
 0x4be   : > { %v12609_v21 = vsub.s32 %v4957_v20, %v4960_v6  ;;  %vm5035_vm2 = vcmp.lt.s32.totalorder %v12567_v44, 3  ;;  %8565 = vcosq.f32 %v4881_v48  ;;  %vm5034_vm8 = vcmp.lt.s32.totalorder %v12567_v44, 2 }
 0x4bf   : > { %v5038_v25 = vsel %vm5036_vm13, %v5026_v53, 2102212464  ;;  %v5043_v4 = vsel %vm5035_vm2, %v5026_v53, %v5042_v17  ;;  %8567 = vsinq.f32 %v4881_v48  ;;  %v4984_v18 = vsel %vm4899_vm5, %v4983_v29, %v4959_v34 }
 0x4c0   : > { %v4963_v31 = vsub.s32 0, %v12609_v21  ;;  %v5044_v61 = vsel %vm5034_vm8, %v5041_v28, %v5043_v4  ;;  %v5045_v56 = vsel %vm5033_vm7, %v5023_v45, %v5026_v53  ;;  %v5046_v50 = vsel %vm5036_vm13, %v5032_v27, 1326507024 }
 0x4c1   : > { %v12631_v26 = vmul.u32.u64.low %v12592_v43, %v5044_v61  ;;  %v12632_v24 = vmul.u32.u64.high %v12592_v43, %v5044_v61, %v12631_v26  ;;  %v5037_v30 = vsel %vm5033_vm7, %v5017_v23, %v5020_v38  ;;  %v5039_v39 = vsel %vm5035_vm2, %v5023_v45, %v5038_v25 }
 0x4c2   : > { %v7988_v12 = vmin.u32 %v4963_v31, %v12609_v21  ;;  %v5047_v20 = vsel %vm5035_vm2, %v5029_v36, %v5046_v50  ;;  %vm12644_vm15 = vcmp.le.f32.partialorder %v4897_v1, 0.7853982  ;;  %v5108_v5 = vand.u32 2139095040, %v12497_v52 }
 0x4c3   : > { %v5048_v51 = vsel %vm5034_vm8, %v5045_v56, %v5047_v20  ;;  %v667_v33 = vmul.f32 %v7792_v49, %v8798_v11  ;;  %v12654_v37 = vadd.f32 %v12484_v9, %v12494_v22  ;;  %v4986_v2 = vsel %vm12644_vm15, 0, %v4984_v18 }
 0x4c4   : > { %v4965_v42 = vclz %v7988_v12  ;;  %v5040_v1 = vsel %vm5034_vm8, %v5037_v30, %v5039_v39  ;;  %v12661_v40 = vmul.u32.u64.low %v12592_v43, %v5048_v51  ;;  %v12662_v38 = vmul.u32.u64.high %v12592_v43, %v5048_v51, %v12661_v40 }
 0x4c5   : > { %v5109_v19 = vshrl.u32 %v5108_v5, 23  ;;  %vm4885_vm6 = vweird.f32 %v12258_v63  ;;  %vm4888_vm9 = vcmp.lt.s32.totalorder %v12589_v47, 2  ;;  %v5112_v9 = vand.u32 8388607, %v5105_v16 }
 0x4c6   : > { %v7989_v10 = vadd.s32 4294967294, %v4965_v42  ;;  %vm4889_vm11 = vcmp.eq.s32.totalorder %v12589_v47, 0  ;;  %vm4892_vm12 = vcmp.eq.s32.totalorder %v12589_v47, 2  ;;  %v5059_v22 = vadd.s32 1, %v12632_v24 }
 0x4c7   : > { %v7995_v44 = vadd.s32 4294967169, %v5109_v19  ;;  %v4953_v35 = vadd.s32 %v12550_v41, %v12560_v3  ;;  %v4990_v45 = vadd.s32 3, %v4986_v2  ;;  %v5056_v36 = vmul.u32 %v12592_v43, %v5040_v1  ;;  %v12682_v43 = vld [vmem:[%s15038_s3 + $0x15] ss:$0 sm:$0xff] }
 0x4c8   : > { %vm7990_vm10 = vcmp.lt.s32.totalorder %v7989_v10, 0  ;;  %v8566_v34 = vpop.eup %8565  ;;  %vm5058_vm0 = vc.u32 %v12662_v38, %v12631_v26  ;;  %v5212_v53 = vand.u32 2139095040, %v12654_v37  ;;  %v5113_v27 = vor.u32 8388608, %v5112_v9 }
 0x4c9   : > { %v4968_v32 = vsel %vm7990_vm10, 0, %v7989_v10  ;;  %v5115_v55 = vadd.s32 1, %v7995_v44  ;;  %v8568_v8 = vpop.eup %8567  ;;  %v4893_v6 = vxor.u32 2147483648, %v8566_v34  ;;  %v5060_v3 = vsel %vm5058_vm0, %v5059_v22, %v12632_v24 }
 0x4ca   : > { %v4969_v29 = vsub.s32 32, %v4968_v32  ;;  %v4973_v59 = vsub.s32 4294967266, %v4968_v32  ;;  %v4890_v28 = vxor.u32 2147483648, %v8568_v8  ;;  %v4970_v41 = vshll.u32 %v12609_v21, %v4968_v32 }
 0x4cb   : > { %vm5116_vm4 = vcmp.gt.s32.totalorder %v5115_v55, 0  ;;  %v4894_v17 = vsel %vm4892_vm12, %v4893_v6, %v8568_v8  ;;  %v5061_v25 = vadd.s32 %v5060_v3, %v5056_v36  ;;  %v5209_v21 = vand.u32 2147483647, %v12654_v37 }
 0x4cc   : > { %v4971_v48 = vshrl.u32 %v4953_v35, %v4969_v29  ;;  %v4974_v23 = vadd.s32 127, %v4973_v59  ;;  %v4891_v4 = vsel %vm4889_vm11, %v8566_v34, %v4890_v28  ;;  %v5117_v31 = vsel %vm5116_vm4, %v5115_v55, 0 }
 0x4cd   : > { %v5213_v18 = vshrl.u32 %v5212_v53, 23  ;;  %v4895_v61 = vsel %vm4888_vm9, %v4891_v4, %v4894_v17  ;;  %v5062_v24 = vadd.s32 536870912, %v5061_v25  ;;  %v12692_v12 = vmul.f32 %v7792_v49, %v8800_v14 }
 0x4ce   : > { %v4972_v56 = vor.u32 %v4971_v48, %v4970_v41  ;;  %v4975_v50 = vshll.u32 %v4974_v23, 23  ;;  %v12695_v30 = vadd.f32 %v12682_v43, %v667_v33  ;;  %v4896_v39 = vsel %vm4885_vm6, nan, %v4895_v61 }
 0x4cf   : > { %v5119_v20 = vand.u32 31, %v5117_v31  ;;  %v12699_v5 = vand.u32 3, %v4990_v45  ;;  %vm5003_vm3 = vcmp.lt.s32.totalorder %v12456_v46, 0  ;;  %v5063_v47 = vshrl.u32 %v5062_v24, 30  ;;  %7638 = vst.msk [vmem:[%s9134_s13 + $0x128] sm:$0xff] %vm266_vm1, %v4896_v39 }
 0x4d0   : > { %v4976_v51 = vor.u32 4788187, %v4975_v50  ;;  %v12704_v2 = vshll.u32 %v5113_v27, 8  ;;  %v7999_v49 = vadd.s32 4294967169, %v5213_v18  ;;  %v12708_v33 = vand.u32 8388607, %v5209_v21 }
 0x4d1   : > { %v5120_v42 = vsub.s32 32, %v5119_v20  ;;  %v4979_v63 = vcvt.s32.f32 %v4972_v56  ;;  %v12712_v40 = vadd.s32 %v12631_v26, %v12662_v38  ;;  %v5064_v19 = vshll.u32 %v5063_v47, 30 }
 0x4d2   : > { %v4977_v1 = vand.u32 2147483647, %v4976_v51  ;;  %v5118_v10 = vshrl.u32 %v5117_v31, 5  ;;  %v5122_v36 = vshll.u32 %v8715_v54, %v5119_v20  ;;  %vm12723_vm14 = vcmp.le.f32.partialorder %v5001_v13, 0.7853982 }
 0x4d3   : > { %v5123_v9 = vshrl.u32 %v8716_v58, %v5120_v42  ;;  %v5126_v22 = vshrl.u32 %v8717_v60, %v5120_v42  ;;  %v5129_v44 = vshrl.u32 %v8718_v62, %v5120_v42  ;;  %v12717_v45 = vsub.s32 %v5061_v25, %v5064_v19 }
 0x4d4   : > { %v4980_v35 = vmul.f32 %v4979_v63, %v4977_v1  ;;  %v5132_v34 = vshrl.u32 %v8719_v0, %v5120_v42  ;;  %v5087_v38 = vsub.s32 4, %v5063_v47  ;;  %v5125_v32 = vshll.u32 %v8716_v58, %v5119_v20 }
 0x4d5   : > { %v5128_v55 = vshll.u32 %v8717_v60, %v5119_v20  ;;  %v5219_v53 = vadd.s32 1, %v7999_v49  ;;  %v5067_v6 = vsub.s32 0, %v12717_v45  ;;  %v5124_v29 = vor.u32 %v5123_v9, %v5122_v36 }
 0x4d6   : > { %v4981_v8 = vxor.u32 2147483648, %v4980_v35  ;;  %v5131_v59 = vshll.u32 %v8718_v62, %v5119_v20  ;;  %v5127_v27 = vor.u32 %v5126_v22, %v5125_v32  ;;  %v5134_v41 = vshll.u32 %v8719_v0, %v5119_v20 }
 0x4d7   : > { %v5130_v28 = vor.u32 %v5129_v44, %v5128_v55  ;;  %v5135_v13 = vshrl.u32 %v8720_v7, %v5120_v42  ;;  %v7992_v17 = vmin.u32 %v5067_v6, %v12717_v45  ;;  %v5121_v48 = vshrl.u32 %v8715_v54, %v5120_v42 }
 0x4d8   : > { %v4982_v3 = vsel %vm4899_vm5, %v4981_v8, %v4980_v35  ;;  %v5133_v23 = vor.u32 %v5132_v34, %v5131_v59  ;;  %v5088_v4 = vsel %vm5003_vm3, %v5087_v38, %v5063_v47  ;;  %vm5137_vm7 = vcmp.lt.s32.totalorder %v5118_v10, 1 }
 0x4d9   : > { %v4985_v25 = vsel %vm12644_vm15, %v12299_v15, %v4982_v3  ;;  %v5136_v31 = vor.u32 %v5135_v13, %v5134_v41  ;;  %v5069_v18 = vclz %v7992_v17  ;;  %vm5138_vm13 = vcmp.lt.s32.totalorder %v5118_v10, 2 }
 0x4da   : > { %8569 = vcosq.f32 %v4985_v25  ;;  %vm5140_vm2 = vcmp.lt.s32.totalorder %v5118_v10, 4  ;;  %vm5139_vm5 = vcmp.lt.s32.totalorder %v5118_v10, 3  ;;  %v5145_v56 = vsel %vm5137_vm7, %v5124_v29, %v5127_v27 }
 0x4db   : > { %8571 = vsinq.f32 %v4985_v25  ;;  %v5142_v61 = vsel %vm5140_vm2, %v5130_v28, 2102212464  ;;  %v7993_v50 = vadd.s32 4294967294, %v5069_v18  ;;  %v5141_v24 = vsel %vm5137_vm7, %v5121_v48, %v5124_v29 }
 0x4dc   : > { %v5146_v39 = vsel %vm5140_vm2, %v5133_v23, 920167782  ;;  %v5149_v20 = vsel %vm5137_vm7, %v5127_v27, %v5130_v28  ;;  %v5143_v51 = vsel %vm5139_vm5, %v5127_v27, %v5142_v61  ;;  %v5150_v42 = vsel %vm5140_vm2, %v5136_v31, 1326507024 }
 0x4dd   : > { %v5147_v57 = vsel %vm5139_vm5, %v5130_v28, %v5146_v39  ;;  %vm5220_vm8 = vcmp.gt.s32.totalorder %v5219_v53, 0  ;;  %vm7994_vm15 = vcmp.lt.s32.totalorder %v7993_v50, 0  ;;  %v5090_v47 = vsel %vm12723_vm14, 0, %v5088_v4 }
 0x4de   : > { %v5148_v49 = vsel %vm5138_vm13, %v5145_v56, %v5147_v57  ;;  %v5151_v1 = vsel %vm5139_vm5, %v5133_v23, %v5150_v42  ;;  %vm4993_vm6 = vcmp.eq.s32.totalorder %v12699_v5, 0  ;;  %v5072_v63 = vsel %vm7994_vm15, 0, %v7993_v50 }
 0x4df   : > { %v5152_v19 = vsel %vm5138_vm13, %v5149_v20, %v5151_v1  ;;  %v12748_v9 = vmul.u32.u64.low %v12704_v2, %v5148_v49  ;;  %v12749_v22 = vmul.u32.u64.high %v12704_v2, %v5148_v49, %v12748_v9  ;;  %vm4992_vm9 = vcmp.lt.s32.totalorder %v12699_v5, 2 }
 0x4e0   : > { %v5073_v44 = vsub.s32 32, %v5072_v63  ;;  %v5077_v35 = vsub.s32 4294967266, %v5072_v63  ;;  %v5144_v36 = vsel %vm5138_vm13, %v5141_v24, %v5143_v51  ;;  %v5221_v34 = vsel %vm5220_vm8, %v5219_v53, 0 }
 0x4e1   : > { %vm4989_vm11 = vweird.f32 %v12299_v15  ;;  %vm4996_vm12 = vcmp.eq.s32.totalorder %v12699_v5, 2  ;;  %v12757_v38 = vmul.u32.u64.low %v12704_v2, %v5152_v19  ;;  %v12758_v32 = vmul.u32.u64.high %v12704_v2, %v5152_v19, %v12757_v38 }
 0x4e2   : > { %v5223_v55 = vand.u32 31, %v5221_v34  ;;  %v5074_v8 = vshll.u32 %v12717_v45, %v5072_v63  ;;  %v5075_v6 = vshrl.u32 %v12712_v40, %v5073_v44  ;;  %v5078_v29 = vadd.s32 127, %v5077_v35 }
 0x4e3   : > { %v5217_v59 = vor.u32 8388608, %v12708_v33  ;;  %v5094_v27 = vadd.s32 3, %v5090_v47  ;;  %v5160_v10 = vmul.u32 %v12704_v2, %v5144_v36  ;;  %v5163_v53 = vadd.s32 1, %v12749_v22 }
 0x4e4   : > { %v5224_v28 = vsub.s32 32, %v5223_v55  ;;  %v8570_v41 = vpop.eup %8569  ;;  %v5076_v13 = vor.u32 %v5075_v6, %v5074_v8  ;;  %v5079_v3 = vshll.u32 %v5078_v29, 23  ;;  %v12765_v17 = vshrl.u32 %v5221_v34, 5 }
 0x4e5   : > { %v5226_v48 = vshll.u32 %v8715_v54, %v5223_v55  ;;  %v8572_v23 = vpop.eup %8571  ;;  %v4997_v45 = vxor.u32 2147483648, %v8570_v41  ;;  %vm5162_vm10 = vc.u32 %v12758_v32, %v12748_v9  ;;  %v5229_v33 = vshll.u32 %v8716_v58, %v5223_v55 }
 0x4e6   : > { %v5235_v40 = vshll.u32 %v8718_v62, %v5223_v55  ;;  %v4994_v2 = vxor.u32 2147483648, %v8572_v23  ;;  %v5080_v25 = vor.u32 4788187, %v5079_v3  ;;  %v5083_v4 = vcvt.s32.f32 %v5076_v13 }
 0x4e7   : > { %v5164_v31 = vsel %vm5162_vm10, %v5163_v53, %v12749_v22  ;;  %v4998_v18 = vsel %vm4996_vm12, %v4997_v45, %v8572_v23  ;;  %v5227_v56 = vshrl.u32 %v8716_v58, %v5224_v28  ;;  %v5230_v50 = vshrl.u32 %v8717_v60, %v5224_v28  ;;  %v7793_v45 = vld [vmem:[%s15037_s2 + $0x16] ss:$0 sm:$0xff] }
 0x4e8   : > { %v5165_v61 = vadd.s32 %v5164_v31, %v5160_v10  ;;  %v4995_v24 = vsel %vm4993_vm6, %v8570_v41, %v4994_v2  ;;  %v5081_v39 = vand.u32 2147483647, %v5080_v25  ;;  %vm5107_vm0 = vcmp.lt.s32.totalorder %v12497_v52, 0 }
 0x4e9   : > { %v5233_v20 = vshrl.u32 %v8718_v62, %v5224_v28  ;;  %v5236_v51 = vshrl.u32 %v8719_v0, %v5224_v28  ;;  %v4999_v57 = vsel %vm4992_vm9, %v4995_v24, %v4998_v18  ;;  %v5228_v47 = vor.u32 %v5227_v56, %v5226_v48 }
 0x4ea   : > { %v5166_v42 = vadd.s32 536870912, %v5165_v61  ;;  %v5232_v49 = vshll.u32 %v8717_v60, %v5223_v55  ;;  %v5000_v1 = vsel %vm4989_vm11, nan, %v4999_v57  ;;  %v5084_v63 = vmul.f32 %v5083_v4, %v5081_v39 }
 0x4eb   : > { %v5231_v19 = vor.u32 %v5230_v50, %v5229_v33  ;;  %v5237_v22 = vor.u32 %v5236_v51, %v5235_v40  ;;  %v12787_v44 = vand.u32 3, %v5094_v27  ;;  %v5239_v36 = vshrl.u32 %v8720_v7, %v5224_v28  ;;  %7639 = vst.msk [vmem:[%s9134_s13 + $0x130] sm:$0xff] %vm266_vm1, %v5000_v1 }
 0x4ec   : > { %v5167_v35 = vshrl.u32 %v5166_v42, 30  ;;  %v12790_v34 = vshll.u32 %v5217_v59, 8  ;;  %v5085_v5 = vxor.u32 2147483648, %v5084_v63  ;;  %v5234_v38 = vor.u32 %v5233_v20, %v5232_v49 }
 0x4ed   : > { %v5238_v8 = vshll.u32 %v8719_v0, %v5223_v55  ;;  %v5313_v6 = vand.u32 2147483647, %v12695_v30  ;;  %vm5241_vm4 = vcmp.lt.s32.totalorder %v12765_v17, 1  ;;  %vm5244_vm7 = vcmp.lt.s32.totalorder %v12765_v17, 4 }
 0x4ee   : > { %v5168_v15 = vshll.u32 %v5167_v35, 30  ;;  %v5191_v29 = vsub.s32 4, %v5167_v35  ;;  %v5086_v27 = vsel %vm5003_vm3, %v5085_v5, %v5084_v63  ;;  %v5249_v59 = vsel %vm5241_vm4, %v5228_v47, %v5231_v19 }
 0x4ef   : > { %v5240_v10 = vor.u32 %v5239_v36, %v5238_v8  ;;  %v5250_v53 = vsel %vm5244_vm7, %v5237_v22, 920167782  ;;  %v5089_v55 = vsel %vm12723_vm14, %v12456_v46, %v5086_v27  ;;  %v5225_v13 = vshrl.u32 %v8715_v54, %v5224_v28 }
 0x4f0   : > { %v12807_v41 = vsub.s32 %v5165_v61, %v5168_v15  ;;  %vm5243_vm13 = vcmp.lt.s32.totalorder %v12765_v17, 3  ;;  %8573 = vcosq.f32 %v5089_v55  ;;  %vm5242_vm3 = vcmp.lt.s32.totalorder %v12765_v17, 2 }
 0x4f1   : > { %v5246_v3 = vsel %vm5244_vm7, %v5234_v38, 2102212464  ;;  %v5251_v48 = vsel %vm5243_vm13, %v5234_v38, %v5250_v53  ;;  %8575 = vsinq.f32 %v5089_v55  ;;  %v5192_v26 = vsel %vm5107_vm0, %v5191_v29, %v5167_v35 }
 0x4f2   : > { %v5171_v23 = vsub.s32 0, %v12807_v41  ;;  %v5252_v28 = vsel %vm5242_vm3, %v5249_v59, %v5251_v48  ;;  %v5253_v33 = vsel %vm5241_vm4, %v5231_v19, %v5234_v38  ;;  %v5254_v40 = vsel %vm5244_vm7, %v5240_v10, 1326507024 }
 0x4f3   : > { %v12829_v2 = vmul.u32.u64.low %v12790_v34, %v5252_v28  ;;  %v12830_v25 = vmul.u32.u64.high %v12790_v34, %v5252_v28, %v12829_v2  ;;  %v5245_v31 = vsel %vm5241_vm4, %v5225_v13, %v5228_v47  ;;  %v5247_v18 = vsel %vm5243_vm13, %v5231_v19, %v5246_v3 }
 0x4f4   : > { %v7996_v4 = vmin.u32 %v5171_v23, %v12807_v41  ;;  %v5255_v61 = vsel %vm5243_vm13, %v5237_v22, %v5254_v40  ;;  %vm12842_vm14 = vcmp.le.f32.partialorder %v5105_v16, 0.7853982  ;;  %v5316_v24 = vand.u32 2139095040, %v12695_v30 }
 0x4f5   : > { %v5256_v50 = vsel %vm5242_vm3, %v5253_v33, %v5255_v61  ;;  %v669_v39 = vmul.f32 %v7793_v45, %v8798_v11  ;;  %v12852_v20 = vadd.f32 %v12682_v43, %v12692_v12  ;;  %v5194_v57 = vsel %vm12842_vm14, 0, %v5192_v26 }
 0x4f6   : > { %v5173_v51 = vclz %v7996_v4  ;;  %v5248_v16 = vsel %vm5242_vm3, %v5245_v31, %v5247_v18  ;;  %v12859_v42 = vmul.u32.u64.low %v12790_v34, %v5256_v50  ;;  %v12860_v47 = vmul.u32.u64.high %v12790_v34, %v5256_v50, %v12859_v42 }
 0x4f7   : > { %v5317_v49 = vshrl.u32 %v5316_v24, 23  ;;  %vm5093_vm2 = vweird.f32 %v12456_v46  ;;  %vm5096_vm5 = vcmp.lt.s32.totalorder %v12787_v44, 2  ;;  %v5320_v43 = vand.u32 8388607, %v5313_v6 }
 0x4f8   : > { %v7997_v1 = vadd.s32 4294967294, %v5173_v51  ;;  %vm5097_vm8 = vcmp.eq.s32.totalorder %v12787_v44, 0  ;;  %vm5100_vm15 = vcmp.eq.s32.totalorder %v12787_v44, 2  ;;  %v5267_v12 = vadd.s32 1, %v12830_v25 }
 0x4f9   : > { %v8003_v17 = vadd.s32 4294967169, %v5317_v49  ;;  %v5161_v63 = vadd.s32 %v12748_v9, %v12758_v32  ;;  %v5198_v19 = vadd.s32 3, %v5194_v57  ;;  %v5264_v22 = vmul.u32 %v12790_v34, %v5248_v16  ;;  %v12880_v34 = vld [vmem:[%s15038_s3 + $0x16] ss:$0 sm:$0xff] }
 0x4fa   : > { %vm7998_vm6 = vcmp.lt.s32.totalorder %v7997_v1, 0  ;;  %v8574_v35 = vpop.eup %8573  ;;  %vm5266_vm9 = vc.u32 %v12860_v47, %v12829_v2  ;;  %v5420_v38 = vand.u32 2139095040, %v12852_v20  ;;  %v5321_v10 = vor.u32 8388608, %v5320_v43 }
 0x4fb   : > { %v5176_v36 = vsel %vm7998_vm6, 0, %v7997_v1  ;;  %v5323_v5 = vadd.s32 1, %v8003_v17  ;;  %v8576_v8 = vpop.eup %8575  ;;  %v5101_v15 = vxor.u32 2147483648, %v8574_v35  ;;  %v5268_v32 = vsel %vm5266_vm9, %v5267_v12, %v12830_v25 }
 0x4fc   : > { %v5177_v29 = vsub.s32 32, %v5176_v36  ;;  %v5181_v27 = vsub.s32 4294967266, %v5176_v36  ;;  %v5098_v59 = vxor.u32 2147483648, %v8576_v8  ;;  %v5178_v9 = vshll.u32 %v12807_v41, %v5176_v36 }
 0x4fd   : > { %vm5324_vm11 = vcmp.gt.s32.totalorder %v5323_v5, 0  ;;  %v5102_v53 = vsel %vm5100_vm15, %v5101_v15, %v8576_v8  ;;  %v5269_v3 = vadd.s32 %v5268_v32, %v5264_v22  ;;  %v5417_v41 = vand.u32 2147483647, %v12852_v20 }
 0x4fe   : > { %v5179_v55 = vshrl.u32 %v5161_v63, %v5177_v29  ;;  %v5182_v13 = vadd.s32 127, %v5181_v27  ;;  %v5099_v48 = vsel %vm5097_vm8, %v8574_v35, %v5098_v59  ;;  %v5325_v23 = vsel %vm5324_vm11, %v5323_v5, 0 }
 0x4ff   : > { %v5421_v26 = vshrl.u32 %v5420_v38, 23  ;;  %v5103_v28 = vsel %vm5096_vm5, %v5099_v48, %v5102_v53  ;;  %v5270_v25 = vadd.s32 536870912, %v5269_v3  ;;  %v12890_v4 = vmul.f32 %v7793_v45, %v8800_v14 }
 0x500   : > { %v5180_v33 = vor.u32 %v5179_v55, %v5178_v9  ;;  %v5183_v40 = vshll.u32 %v5182_v13, 23  ;;  %v12893_v31 = vadd.f32 %v12880_v34, %v669_v39  ;;  %v5104_v18 = vsel %vm5093_vm2, nan, %v5103_v28 }
 0x501   : > { %v5327_v61 = vand.u32 31, %v5325_v23  ;;  %v12897_v24 = vand.u32 3, %v5198_v19  ;;  %vm5211_vm12 = vcmp.lt.s32.totalorder %v12654_v37, 0  ;;  %v5271_v44 = vshrl.u32 %v5270_v25, 30  ;;  %7640 = vst.msk [vmem:[%s9134_s13 + $0x138] sm:$0xff] %vm266_vm1, %v5104_v18 }
 0x502   : > { %v5184_v50 = vor.u32 4788187, %v5183_v40  ;;  %v12902_v57 = vshll.u32 %v5321_v10, 8  ;;  %v8007_v45 = vadd.s32 4294967169, %v5421_v26  ;;  %v12906_v39 = vand.u32 8388607, %v5417_v41 }
 0x503   : > { %v5328_v51 = vsub.s32 32, %v5327_v61  ;;  %v5187_v46 = vcvt.s32.f32 %v5180_v33  ;;  %v12910_v42 = vadd.s32 %v12829_v2, %v12860_v47  ;;  %v5272_v49 = vshll.u32 %v5271_v44, 30 }
 0x504   : > { %v5185_v16 = vand.u32 2147483647, %v5184_v50  ;;  %v5326_v1 = vshrl.u32 %v5325_v23, 5  ;;  %v5330_v22 = vshll.u32 %v8715_v54, %v5327_v61  ;;  %vm12921_vm10 = vcmp.le.f32.partialorder %v5209_v21, 0.7853982 }
 0x505   : > { %v5331_v43 = vshrl.u32 %v8716_v58, %v5328_v51  ;;  %v5334_v12 = vshrl.u32 %v8717_v60, %v5328_v51  ;;  %v5337_v17 = vshrl.u32 %v8718_v62, %v5328_v51  ;;  %v12915_v19 = vsub.s32 %v5269_v3, %v5272_v49 }
 0x506   : > { %v5188_v63 = vmul.f32 %v5187_v46, %v5185_v16  ;;  %v5340_v35 = vshrl.u32 %v8719_v0, %v5328_v51  ;;  %v5295_v47 = vsub.s32 4, %v5271_v44  ;;  %v5333_v36 = vshll.u32 %v8716_v58, %v5327_v61 }
 0x507   : > { %v5336_v5 = vshll.u32 %v8717_v60, %v5327_v61  ;;  %v5427_v38 = vadd.s32 1, %v8007_v45  ;;  %v5275_v15 = vsub.s32 0, %v12915_v19  ;;  %v5332_v29 = vor.u32 %v5331_v43, %v5330_v22 }
 0x508   : > { %v5189_v8 = vxor.u32 2147483648, %v5188_v63  ;;  %v5339_v27 = vshll.u32 %v8718_v62, %v5327_v61  ;;  %v5335_v10 = vor.u32 %v5334_v12, %v5333_v36  ;;  %v5342_v9 = vshll.u32 %v8719_v0, %v5327_v61 }
 0x509   : > { %v5338_v59 = vor.u32 %v5337_v17, %v5336_v5  ;;  %v5343_v21 = vshrl.u32 %v8720_v7, %v5328_v51  ;;  %v8000_v53 = vmin.u32 %v5275_v15, %v12915_v19  ;;  %v5329_v55 = vshrl.u32 %v8715_v54, %v5328_v51 }
 0x50a   : > { %v5190_v32 = vsel %vm5107_vm0, %v5189_v8, %v5188_v63  ;;  %v5341_v13 = vor.u32 %v5340_v35, %v5339_v27  ;;  %v5296_v48 = vsel %vm5211_vm12, %v5295_v47, %v5271_v44  ;;  %vm5345_vm4 = vcmp.lt.s32.totalorder %v5326_v1, 1 }
 0x50b   : > { %v5193_v3 = vsel %vm12842_vm14, %v12497_v52, %v5190_v32  ;;  %v5344_v23 = vor.u32 %v5343_v21, %v5342_v9  ;;  %v5277_v26 = vclz %v8000_v53  ;;  %vm5346_vm7 = vcmp.lt.s32.totalorder %v5326_v1, 2 }
 0x50c   : > { %8577 = vcosq.f32 %v5193_v3  ;;  %vm5348_vm13 = vcmp.lt.s32.totalorder %v5326_v1, 4  ;;  %vm5347_vm0 = vcmp.lt.s32.totalorder %v5326_v1, 3  ;;  %v5353_v33 = vsel %vm5345_vm4, %v5332_v29, %v5335_v10 }
 0x50d   : > { %8579 = vsinq.f32 %v5193_v3  ;;  %v5350_v28 = vsel %vm5348_vm13, %v5338_v59, 2102212464  ;;  %v8001_v40 = vadd.s32 4294967294, %v5277_v26  ;;  %v5349_v25 = vsel %vm5345_vm4, %v5329_v55, %v5332_v29 }
 0x50e   : > { %v5354_v18 = vsel %vm5348_vm13, %v5341_v13, 920167782  ;;  %v5357_v61 = vsel %vm5345_vm4, %v5335_v10, %v5338_v59  ;;  %v5351_v50 = vsel %vm5347_vm0, %v5335_v10, %v5350_v28  ;;  %v5358_v51 = vsel %vm5348_vm13, %v5344_v23, 1326507024 }
 0x50f   : > { %v5355_v56 = vsel %vm5347_vm0, %v5338_v59, %v5354_v18  ;;  %vm5428_vm3 = vcmp.gt.s32.totalorder %v5427_v38, 0  ;;  %vm8002_vm14 = vcmp.lt.s32.totalorder %v8001_v40, 0  ;;  %v5298_v44 = vsel %vm12921_vm10, 0, %v5296_v48 }
 0x510   : > { %v5356_v45 = vsel %vm5346_vm7, %v5353_v33, %v5355_v56  ;;  %v5359_v16 = vsel %vm5347_vm0, %v5341_v13, %v5358_v51  ;;  %vm5201_vm2 = vcmp.eq.s32.totalorder %v12897_v24, 0  ;;  %v5280_v46 = vsel %vm8002_vm14, 0, %v8001_v40 }
 0x511   : > { %v5360_v49 = vsel %vm5346_vm7, %v5357_v61, %v5359_v16  ;;  %v12946_v43 = vmul.u32.u64.low %v12902_v57, %v5356_v45  ;;  %v12947_v12 = vmul.u32.u64.high %v12902_v57, %v5356_v45, %v12946_v43  ;;  %vm5200_vm5 = vcmp.lt.s32.totalorder %v12897_v24, 2 }
 0x512   : > { %v5281_v17 = vsub.s32 32, %v5280_v46  ;;  %v5285_v63 = vsub.s32 4294967266, %v5280_v46  ;;  %v5352_v22 = vsel %vm5346_vm7, %v5349_v25, %v5351_v50  ;;  %v5429_v35 = vsel %vm5428_vm3, %v5427_v38, 0 }
 0x513   : > { %vm5197_vm8 = vweird.f32 %v12497_v52  ;;  %vm5204_vm15 = vcmp.eq.s32.totalorder %v12897_v24, 2  ;;  %v12955_v47 = vmul.u32.u64.low %v12902_v57, %v5360_v49  ;;  %v12956_v36 = vmul.u32.u64.high %v12902_v57, %v5360_v49, %v12955_v47 }
 0x514   : > { %v5431_v5 = vand.u32 31, %v5429_v35  ;;  %v5282_v8 = vshll.u32 %v12915_v19, %v5280_v46  ;;  %v5283_v15 = vshrl.u32 %v12910_v42, %v5281_v17  ;;  %v5286_v29 = vadd.s32 127, %v5285_v63 }
 0x515   : > { %v5425_v27 = vor.u32 8388608, %v12906_v39  ;;  %v5302_v10 = vadd.s32 3, %v5298_v44  ;;  %v5368_v1 = vmul.u32 %v12902_v57, %v5352_v22  ;;  %v5371_v38 = vadd.s32 1, %v12947_v12 }
 0x516   : > { %v5432_v59 = vsub.s32 32, %v5431_v5  ;;  %v8578_v9 = vpop.eup %8577  ;;  %v5284_v21 = vor.u32 %v5283_v15, %v5282_v8  ;;  %v5287_v32 = vshll.u32 %v5286_v29, 23  ;;  %v12963_v53 = vshrl.u32 %v5429_v35, 5 }
 0x517   : > { %v5434_v55 = vshll.u32 %v8715_v54, %v5431_v5  ;;  %v8580_v13 = vpop.eup %8579  ;;  %v5205_v19 = vxor.u32 2147483648, %v8578_v9  ;;  %vm5370_vm6 = vc.u32 %v12956_v36, %v12946_v43  ;;  %v5437_v39 = vshll.u32 %v8716_v58, %v5431_v5 }
 0x518   : > { %v5443_v42 = vshll.u32 %v8718_v62, %v5431_v5  ;;  %v5202_v57 = vxor.u32 2147483648, %v8580_v13  ;;  %v5288_v3 = vor.u32 4788187, %v5287_v32  ;;  %v5291_v48 = vcvt.s32.f32 %v5284_v21 }
 0x519   : > { %v5372_v23 = vsel %vm5370_vm6, %v5371_v38, %v12947_v12  ;;  %v5206_v26 = vsel %vm5204_vm15, %v5205_v19, %v8580_v13  ;;  %v5435_v33 = vshrl.u32 %v8716_v58, %v5432_v59  ;;  %v5438_v40 = vshrl.u32 %v8717_v60, %v5432_v59  ;;  %v7794_v19 = vld [vmem:[%s15037_s2 + $0x17] ss:$0 sm:$0xff] }
 0x51a   : > { %v5373_v28 = vadd.s32 %v5372_v23, %v5368_v1  ;;  %v5203_v25 = vsel %vm5201_vm2, %v8578_v9, %v5202_v57  ;;  %v5289_v18 = vand.u32 2147483647, %v5288_v3  ;;  %vm5315_vm9 = vcmp.lt.s32.totalorder %v12695_v30, 0 }
 0x51b   : > { %v5441_v61 = vshrl.u32 %v8718_v62, %v5432_v59  ;;  %v5444_v50 = vshrl.u32 %v8719_v0, %v5432_v59  ;;  %v5207_v56 = vsel %vm5200_vm5, %v5203_v25, %v5206_v26  ;;  %v5436_v44 = vor.u32 %v5435_v33, %v5434_v55 }
 0x51c   : > { %v5374_v51 = vadd.s32 536870912, %v5373_v28  ;;  %v5440_v45 = vshll.u32 %v8717_v60, %v5431_v5  ;;  %v5208_v16 = vsel %vm5197_vm8, nan, %v5207_v56  ;;  %v5292_v46 = vmul.f32 %v5291_v48, %v5289_v18 }
 0x51d   : > { %v5439_v49 = vor.u32 %v5438_v40, %v5437_v39  ;;  %v5445_v12 = vor.u32 %v5444_v50, %v5443_v42  ;;  %v12985_v17 = vand.u32 3, %v5302_v10  ;;  %v5447_v22 = vshrl.u32 %v8720_v7, %v5432_v59  ;;  %7641 = vst.msk [vmem:[%s9134_s13 + $0x140] sm:$0xff] %vm266_vm1, %v5208_v16 }
 0x51e   : > { %v5375_v63 = vshrl.u32 %v5374_v51, 30  ;;  %v12988_v35 = vshll.u32 %v5425_v27, 8  ;;  %v5293_v24 = vxor.u32 2147483648, %v5292_v46  ;;  %v5442_v47 = vor.u32 %v5441_v61, %v5440_v45 }
 0x51f   : > { %v5446_v8 = vshll.u32 %v8719_v0, %v5431_v5  ;;  %v5521_v15 = vand.u32 2147483647, %v12893_v31  ;;  %vm5449_vm11 = vcmp.lt.s32.totalorder %v12963_v53, 1  ;;  %vm5452_vm4 = vcmp.lt.s32.totalorder %v12963_v53, 4 }
 0x520   : > { %v5376_v52 = vshll.u32 %v5375_v63, 30  ;;  %v5399_v29 = vsub.s32 4, %v5375_v63  ;;  %v5294_v10 = vsel %vm5211_vm12, %v5293_v24, %v5292_v46  ;;  %v5457_v27 = vsel %vm5449_vm11, %v5436_v44, %v5439_v49 }
 0x521   : > { %v5448_v1 = vor.u32 %v5447_v22, %v5446_v8  ;;  %v5458_v38 = vsel %vm5452_vm4, %v5445_v12, 920167782  ;;  %v5297_v5 = vsel %vm12921_vm10, %v12654_v37, %v5294_v10  ;;  %v5433_v21 = vshrl.u32 %v8715_v54, %v5432_v59 }
 0x522   : > { %v13005_v9 = vsub.s32 %v5373_v28, %v5376_v52  ;;  %vm5451_vm7 = vcmp.lt.s32.totalorder %v12963_v53, 3  ;;  %8581 = vcosq.f32 %v5297_v5  ;;  %vm5450_vm12 = vcmp.lt.s32.totalorder %v12963_v53, 2 }
 0x523   : > { %v5454_v32 = vsel %vm5452_vm4, %v5442_v47, 2102212464  ;;  %v5459_v55 = vsel %vm5451_vm7, %v5442_v47, %v5458_v38  ;;  %8583 = vsinq.f32 %v5297_v5  ;;  %v5400_v2 = vsel %vm5315_vm9, %v5399_v29, %v5375_v63 }
 0x524   : > { %v5379_v13 = vsub.s32 0, %v13005_v9  ;;  %v5460_v59 = vsel %vm5450_vm12, %v5457_v27, %v5459_v55  ;;  %v5461_v39 = vsel %vm5449_vm11, %v5439_v49, %v5442_v47  ;;  %v5462_v42 = vsel %vm5452_vm4, %v5448_v1, 1326507024 }
 0x525   : > { %v13027_v57 = vmul.u32.u64.low %v12988_v35, %v5460_v59  ;;  %v13028_v3 = vmul.u32.u64.high %v12988_v35, %v5460_v59, %v13027_v57  ;;  %v5453_v23 = vsel %vm5449_vm11, %v5433_v21, %v5436_v44  ;;  %v5455_v26 = vsel %vm5451_vm7, %v5439_v49, %v5454_v32 }
 0x526   : > { %v8004_v48 = vmin.u32 %v5379_v13, %v13005_v9  ;;  %v5463_v28 = vsel %vm5451_vm7, %v5445_v12, %v5462_v42  ;;  %vm13040_vm10 = vcmp.le.f32.partialorder %v5313_v6, 0.7853982  ;;  %v5524_v25 = vand.u32 2139095040, %v12893_v31 }
 0x527   : > { %v5464_v40 = vsel %vm5450_vm12, %v5461_v39, %v5463_v28  ;;  %v671_v18 = vmul.f32 %v7794_v19, %v8798_v11  ;;  %v13050_v61 = vadd.f32 %v12880_v34, %v12890_v4  ;;  %v5402_v56 = vsel %vm13040_vm10, 0, %v5400_v2 }
 0x528   : > { %v5381_v50 = vclz %v8004_v48  ;;  %v5456_v6 = vsel %vm5450_vm12, %v5453_v23, %v5455_v26  ;;  %v13057_v51 = vmul.u32.u64.low %v12988_v35, %v5464_v40  ;;  %v13058_v44 = vmul.u32.u64.high %v12988_v35, %v5464_v40, %v13057_v51 }
 0x529   : > { %v5525_v45 = vshrl.u32 %v5524_v25, 23  ;;  %vm5301_vm13 = vweird.f32 %v12654_v37  ;;  %vm5304_vm0 = vcmp.lt.s32.totalorder %v12985_v17, 2  ;;  %v5528_v34 = vand.u32 8388607, %v5521_v15 }
 0x52a   : > { %v8005_v16 = vadd.s32 4294967294, %v5381_v50  ;;  %vm5305_vm3 = vcmp.eq.s32.totalorder %v12985_v17, 0  ;;  %vm5308_vm14 = vcmp.eq.s32.totalorder %v12985_v17, 2  ;;  %v5475_v4 = vadd.s32 1, %v13028_v3 }
 0x52b   : > { %v8011_v53 = vadd.s32 4294967169, %v5525_v45  ;;  %v5369_v46 = vadd.s32 %v12946_v43, %v12956_v36  ;;  %v5406_v49 = vadd.s32 3, %v5402_v56  ;;  %v5472_v12 = vmul.u32 %v12988_v35, %v5456_v6  ;;  %v13078_v35 = vld [vmem:[%s15038_s3 + $0x17] ss:$0 sm:$0xff] }
 0x52c   : > { %vm8006_vm2 = vcmp.lt.s32.totalorder %v8005_v16, 0  ;;  %v8582_v63 = vpop.eup %8581  ;;  %vm5474_vm5 = vc.u32 %v13058_v44, %v13027_v57  ;;  %v5628_v47 = vand.u32 2139095040, %v13050_v61  ;;  %v5529_v1 = vor.u32 8388608, %v5528_v34 }
 0x52d   : > { %v5384_v22 = vsel %vm8006_vm2, 0, %v8005_v16  ;;  %v5531_v24 = vadd.s32 1, %v8011_v53  ;;  %v8584_v8 = vpop.eup %8583  ;;  %v5309_v52 = vxor.u32 2147483648, %v8582_v63  ;;  %v5476_v36 = vsel %vm5474_vm5, %v5475_v4, %v13028_v3 }
 0x52e   : > { %v5385_v29 = vsub.s32 32, %v5384_v22  ;;  %v5389_v10 = vsub.s32 4294967266, %v5384_v22  ;;  %v5306_v27 = vxor.u32 2147483648, %v8584_v8  ;;  %v5386_v43 = vshll.u32 %v13005_v9, %v5384_v22 }
 0x52f   : > { %vm5532_vm8 = vcmp.gt.s32.totalorder %v5531_v24, 0  ;;  %v5310_v38 = vsel %vm5308_vm14, %v5309_v52, %v8584_v8  ;;  %v5477_v32 = vadd.s32 %v5476_v36, %v5472_v12  ;;  %v5625_v9 = vand.u32 2147483647, %v13050_v61 }
 0x530   : > { %v5387_v5 = vshrl.u32 %v5369_v46, %v5385_v29  ;;  %v5390_v21 = vadd.s32 127, %v5389_v10  ;;  %v5307_v55 = vsel %vm5305_vm3, %v8582_v63, %v5306_v27  ;;  %v5533_v13 = vsel %vm5532_vm8, %v5531_v24, 0 }
 0x531   : > { %v5629_v2 = vshrl.u32 %v5628_v47, 23  ;;  %v5311_v59 = vsel %vm5304_vm0, %v5307_v55, %v5310_v38  ;;  %v5478_v3 = vadd.s32 536870912, %v5477_v32  ;;  %v13088_v48 = vmul.f32 %v7794_v19, %v8800_v14 }
 0x532   : > { %v5388_v39 = vor.u32 %v5387_v5, %v5386_v43  ;;  %v5391_v42 = vshll.u32 %v5390_v21, 23  ;;  %v13091_v23 = vadd.f32 %v13078_v35, %v671_v18  ;;  %v5312_v26 = vsel %vm5301_vm13, nan, %v5311_v59 }
 0x533   : > { %v5535_v28 = vand.u32 31, %v5533_v13  ;;  %v13095_v25 = vand.u32 3, %v5406_v49  ;;  %vm5419_vm15 = vcmp.lt.s32.totalorder %v12852_v20, 0  ;;  %v5479_v17 = vshrl.u32 %v5478_v3, 30  ;;  %7642 = vst.msk [vmem:[%s9134_s13 + $0x148] sm:$0xff] %vm266_vm1, %v5312_v26 }
 0x534   : > { %v5392_v40 = vor.u32 4788187, %v5391_v42  ;;  %v13100_v56 = vshll.u32 %v5529_v1, 8  ;;  %v8015_v19 = vadd.s32 4294967169, %v5629_v2  ;;  %v13104_v18 = vand.u32 8388607, %v5625_v9 }
 0x535   : > { %v5536_v50 = vsub.s32 32, %v5535_v28  ;;  %v5395_v37 = vcvt.s32.f32 %v5388_v39  ;;  %v13108_v51 = vadd.s32 %v13027_v57, %v13058_v44  ;;  %v5480_v45 = vshll.u32 %v5479_v17, 30 }
 0x536   : > { %v5393_v6 = vand.u32 2147483647, %v5392_v40  ;;  %v5534_v16 = vshrl.u32 %v5533_v13, 5  ;;  %v5538_v12 = vshll.u32 %v8715_v54, %v5535_v28  ;;  %vm13119_vm6 = vcmp.le.f32.partialorder %v5417_v41, 0.7853982 }
 0x537   : > { %v5539_v34 = vshrl.u32 %v8716_v58, %v5536_v50  ;;  %v5542_v4 = vshrl.u32 %v8717_v60, %v5536_v50  ;;  %v5545_v53 = vshrl.u32 %v8718_v62, %v5536_v50  ;;  %v13113_v49 = vsub.s32 %v5477_v32, %v5480_v45 }
 0x538   : > { %v5396_v46 = vmul.f32 %v5395_v37, %v5393_v6  ;;  %v5548_v63 = vshrl.u32 %v8719_v0, %v5536_v50  ;;  %v5503_v44 = vsub.s32 4, %v5479_v17  ;;  %v5541_v22 = vshll.u32 %v8716_v58, %v5535_v28 }
 0x539   : > { %v5544_v24 = vshll.u32 %v8717_v60, %v5535_v28  ;;  %v5635_v47 = vadd.s32 1, %v8015_v19  ;;  %v5483_v52 = vsub.s32 0, %v13113_v49  ;;  %v5540_v29 = vor.u32 %v5539_v34, %v5538_v12 }
 0x53a   : > { %v5397_v8 = vxor.u32 2147483648, %v5396_v46  ;;  %v5547_v10 = vshll.u32 %v8718_v62, %v5535_v28  ;;  %v5543_v1 = vor.u32 %v5542_v4, %v5541_v22  ;;  %v5550_v43 = vshll.u32 %v8719_v0, %v5535_v28 }
 0x53b   : > { %v5546_v27 = vor.u32 %v5545_v53, %v5544_v24  ;;  %v5551_v41 = vshrl.u32 %v8720_v7, %v5536_v50  ;;  %v8008_v38 = vmin.u32 %v5483_v52, %v13113_v49  ;;  %v5537_v5 = vshrl.u32 %v8715_v54, %v5536_v50 }
 0x53c   : > { %v5398_v36 = vsel %vm5315_vm9, %v5397_v8, %v5396_v46  ;;  %v5549_v21 = vor.u32 %v5548_v63, %v5547_v10  ;;  %v5504_v55 = vsel %vm5419_vm15, %v5503_v44, %v5479_v17  ;;  %vm5553_vm11 = vcmp.lt.s32.totalorder %v5534_v16, 1 }
 0x53d   : > { %v5401_v32 = vsel %vm13040_vm10, %v12695_v30, %v5398_v36  ;;  %v5552_v13 = vor.u32 %v5551_v41, %v5550_v43  ;;  %v5485_v2 = vclz %v8008_v38  ;;  %vm5554_vm4 = vcmp.lt.s32.totalorder %v5534_v16, 2 }
 0x53e   : > { %8585 = vcosq.f32 %v5401_v32  ;;  %vm5556_vm7 = vcmp.lt.s32.totalorder %v5534_v16, 4  ;;  %vm5555_vm9 = vcmp.lt.s32.totalorder %v5534_v16, 3  ;;  %v5561_v39 = vsel %vm5553_vm11, %v5540_v29, %v5543_v1 }
 0x53f   : > { %8587 = vsinq.f32 %v5401_v32  ;;  %v5558_v59 = vsel %vm5556_vm7, %v5546_v27, 2102212464  ;;  %v8009_v42 = vadd.s32 4294967294, %v5485_v2  ;;  %v5557_v3 = vsel %vm5553_vm11, %v5537_v5, %v5540_v29 }
 0x540   : > { %v5562_v26 = vsel %vm5556_vm7, %v5549_v21, 920167782  ;;  %v5565_v28 = vsel %vm5553_vm11, %v5543_v1, %v5546_v27  ;;  %v5559_v40 = vsel %vm5555_vm9, %v5543_v1, %v5558_v59  ;;  %v5566_v50 = vsel %vm5556_vm7, %v5552_v13, 1326507024 }
 0x541   : > { %v5563_v33 = vsel %vm5555_vm9, %v5546_v27, %v5562_v26  ;;  %vm5636_vm12 = vcmp.gt.s32.totalorder %v5635_v47, 0  ;;  %vm8010_vm10 = vcmp.lt.s32.totalorder %v8009_v42, 0  ;;  %v5506_v17 = vsel %vm13119_vm6, 0, %v5504_v55 }
 0x542   : > { %v5564_v19 = vsel %vm5554_vm4, %v5561_v39, %v5563_v33  ;;  %v5567_v6 = vsel %vm5555_vm9, %v5549_v21, %v5566_v50  ;;  %vm5409_vm13 = vcmp.eq.s32.totalorder %v13095_v25, 0  ;;  %v5488_v37 = vsel %vm8010_vm10, 0, %v8009_v42 }
 0x543   : > { %v5568_v45 = vsel %vm5554_vm4, %v5565_v28, %v5567_v6  ;;  %v13144_v34 = vmul.u32.u64.low %v13100_v56, %v5564_v19  ;;  %v13145_v4 = vmul.u32.u64.high %v13100_v56, %v5564_v19, %v13144_v34  ;;  %vm5408_vm0 = vcmp.lt.s32.totalorder %v13095_v25, 2 }
 0x544   : > { %v5489_v53 = vsub.s32 32, %v5488_v37  ;;  %v5493_v46 = vsub.s32 4294967266, %v5488_v37  ;;  %v5560_v12 = vsel %vm5554_vm4, %v5557_v3, %v5559_v40  ;;  %v5637_v63 = vsel %vm5636_vm12, %v5635_v47, 0 }
 0x545   : > { %vm5405_vm3 = vweird.f32 %v12695_v30  ;;  %vm5412_vm14 = vcmp.eq.s32.totalorder %v13095_v25, 2  ;;  %v13153_v44 = vmul.u32.u64.low %v13100_v56, %v5568_v45  ;;  %v13154_v22 = vmul.u32.u64.high %v13100_v56, %v5568_v45, %v13153_v44 }
 0x546   : > { %v5639_v24 = vand.u32 31, %v5637_v63  ;;  %v5490_v8 = vshll.u32 %v13113_v49, %v5488_v37  ;;  %v5491_v52 = vshrl.u32 %v13108_v51, %v5489_v53  ;;  %v5494_v29 = vadd.s32 127, %v5493_v46 }
 0x547   : > { %v5633_v10 = vor.u32 8388608, %v13104_v18  ;;  %v5510_v1 = vadd.s32 3, %v5506_v17  ;;  %v5576_v16 = vmul.u32 %v13100_v56, %v5560_v12  ;;  %v5579_v47 = vadd.s32 1, %v13145_v4 }
 0x548   : > { %v5640_v27 = vsub.s32 32, %v5639_v24  ;;  %v8586_v43 = vpop.eup %8585  ;;  %v5492_v41 = vor.u32 %v5491_v52, %v5490_v8  ;;  %v5495_v36 = vshll.u32 %v5494_v29, 23  ;;  %v13161_v38 = vshrl.u32 %v5637_v63, 5 }
 0x549   : > { %v5642_v5 = vshll.u32 %v8715_v54, %v5639_v24  ;;  %v8588_v21 = vpop.eup %8587  ;;  %v5413_v49 = vxor.u32 2147483648, %v8586_v43  ;;  %vm5578_vm2 = vc.u32 %v13154_v22, %v13144_v34  ;;  %v5645_v18 = vshll.u32 %v8716_v58, %v5639_v24 }
 0x54a   : > { %v5651_v51 = vshll.u32 %v8718_v62, %v5639_v24  ;;  %v5410_v56 = vxor.u32 2147483648, %v8588_v21  ;;  %v5496_v32 = vor.u32 4788187, %v5495_v36  ;;  %v5499_v55 = vcvt.s32.f32 %v5492_v41 }
 0x54b   : > { %v5580_v13 = vsel %vm5578_vm2, %v5579_v47, %v13145_v4  ;;  %v5414_v2 = vsel %vm5412_vm14, %v5413_v49, %v8588_v21  ;;  %v5643_v39 = vshrl.u32 %v8716_v58, %v5640_v27  ;;  %v5646_v42 = vshrl.u32 %v8717_v60, %v5640_v27  ;;  %v7795_v49 = vld [vmem:[%s15037_s2 + $0x18] ss:$0 sm:$0xff] }
 0x54c   : > { %v5581_v59 = vadd.s32 %v5580_v13, %v5576_v16  ;;  %v5411_v3 = vsel %vm5409_vm13, %v8586_v43, %v5410_v56  ;;  %v5497_v26 = vand.u32 2147483647, %v5496_v32  ;;  %vm5523_vm5 = vcmp.lt.s32.totalorder %v12893_v31, 0 }
 0x54d   : > { %v5649_v28 = vshrl.u32 %v8718_v62, %v5640_v27  ;;  %v5652_v40 = vshrl.u32 %v8719_v0, %v5640_v27  ;;  %v5415_v33 = vsel %vm5408_vm0, %v5411_v3, %v5414_v2  ;;  %v5644_v17 = vor.u32 %v5643_v39, %v5642_v5 }
 0x54e   : > { %v5582_v50 = vadd.s32 536870912, %v5581_v59  ;;  %v5648_v19 = vshll.u32 %v8717_v60, %v5639_v24  ;;  %v5416_v6 = vsel %vm5405_vm3, nan, %v5415_v33  ;;  %v5500_v37 = vmul.f32 %v5499_v55, %v5497_v26 }
 0x54f   : > { %v5647_v45 = vor.u32 %v5646_v42, %v5645_v18  ;;  %v5653_v4 = vor.u32 %v5652_v40, %v5651_v51  ;;  %v13183_v53 = vand.u32 3, %v5510_v1  ;;  %v5655_v12 = vshrl.u32 %v8720_v7, %v5640_v27  ;;  %7643 = vst.msk [vmem:[%s9134_s13 + $0x150] sm:$0xff] %vm266_vm1, %v5416_v6 }
 0x550   : > { %v5583_v46 = vshrl.u32 %v5582_v50, 30  ;;  %v13186_v63 = vshll.u32 %v5633_v10, 8  ;;  %v5501_v25 = vxor.u32 2147483648, %v5500_v37  ;;  %v5650_v44 = vor.u32 %v5649_v28, %v5648_v19 }
 0x551   : > { %v5654_v8 = vshll.u32 %v8719_v0, %v5639_v24  ;;  %v5729_v52 = vand.u32 2147483647, %v13091_v23  ;;  %vm5657_vm8 = vcmp.lt.s32.totalorder %v13161_v38, 1  ;;  %vm5660_vm11 = vcmp.lt.s32.totalorder %v13161_v38, 4 }
 0x552   : > { %v5584_v30 = vshll.u32 %v5583_v46, 30  ;;  %v5607_v29 = vsub.s32 4, %v5583_v46  ;;  %v5502_v1 = vsel %vm5419_vm15, %v5501_v25, %v5500_v37  ;;  %v5665_v10 = vsel %vm5657_vm8, %v5644_v17, %v5647_v45 }
 0x553   : > { %v5656_v16 = vor.u32 %v5655_v12, %v5654_v8  ;;  %v5666_v47 = vsel %vm5660_vm11, %v5653_v4, 920167782  ;;  %v5505_v24 = vsel %vm13119_vm6, %v12852_v20, %v5502_v1  ;;  %v5641_v41 = vshrl.u32 %v8715_v54, %v5640_v27 }
 0x554   : > { %v13203_v43 = vsub.s32 %v5581_v59, %v5584_v30  ;;  %vm5659_vm4 = vcmp.lt.s32.totalorder %v13161_v38, 3  ;;  %8589 = vcosq.f32 %v5505_v24  ;;  %vm5658_vm15 = vcmp.lt.s32.totalorder %v13161_v38, 2 }
 0x555   : > { %v5662_v36 = vsel %vm5660_vm11, %v5650_v44, 2102212464  ;;  %v5667_v5 = vsel %vm5659_vm4, %v5650_v44, %v5666_v47  ;;  %8591 = vsinq.f32 %v5505_v24  ;;  %v5608_v57 = vsel %vm5523_vm5, %v5607_v29, %v5583_v46 }
 0x556   : > { %v5587_v21 = vsub.s32 0, %v13203_v43  ;;  %v5668_v27 = vsel %vm5658_vm15, %v5665_v10, %v5667_v5  ;;  %v5669_v18 = vsel %vm5657_vm8, %v5647_v45, %v5650_v44  ;;  %v5670_v51 = vsel %vm5660_vm11, %v5656_v16, 1326507024 }
 0x557   : > { %v13225_v56 = vmul.u32.u64.low %v13186_v63, %v5668_v27  ;;  %v13226_v32 = vmul.u32.u64.high %v13186_v63, %v5668_v27, %v13225_v56  ;;  %v5661_v13 = vsel %vm5657_vm8, %v5641_v41, %v5644_v17  ;;  %v5663_v2 = vsel %vm5659_vm4, %v5647_v45, %v5662_v36 }
 0x558   : > { %v8012_v55 = vmin.u32 %v5587_v21, %v13203_v43  ;;  %v5671_v59 = vsel %vm5659_vm4, %v5653_v4, %v5670_v51  ;;  %vm13238_vm6 = vcmp.le.f32.partialorder %v5521_v15, 0.7853982  ;;  %v5732_v3 = vand.u32 2139095040, %v13091_v23 }
 0x559   : > { %v5672_v42 = vsel %vm5658_vm15, %v5669_v18, %v5671_v59  ;;  %v673_v26 = vmul.f32 %v7795_v49, %v8798_v11  ;;  %v13248_v28 = vadd.f32 %v13078_v35, %v13088_v48  ;;  %v5610_v33 = vsel %vm13238_vm6, 0, %v5608_v57 }
 0x55a   : > { %v5589_v40 = vclz %v8012_v55  ;;  %v5664_v15 = vsel %vm5658_vm15, %v5661_v13, %v5663_v2  ;;  %v13255_v50 = vmul.u32.u64.low %v13186_v63, %v5672_v42  ;;  %v13256_v17 = vmul.u32.u64.high %v13186_v63, %v5672_v42, %v13255_v50 }
 0x55b   : > { %v5733_v19 = vshrl.u32 %v5732_v3, 23  ;;  %vm5509_vm7 = vweird.f32 %v12852_v20  ;;  %vm5512_vm9 = vcmp.lt.s32.totalorder %v13183_v53, 2  ;;  %v5736_v35 = vand.u32 8388607, %v5729_v52 }
 0x55c   : > { %v8013_v6 = vadd.s32 4294967294, %v5589_v40  ;;  %vm5513_vm12 = vcmp.eq.s32.totalorder %v13183_v53, 0  ;;  %vm5516_vm10 = vcmp.eq.s32.totalorder %v13183_v53, 2  ;;  %v5683_v48 = vadd.s32 1, %v13226_v32 }
 0x55d   : > { %v8019_v38 = vadd.s32 4294967169, %v5733_v19  ;;  %v5577_v37 = vadd.s32 %v13144_v34, %v13154_v22  ;;  %v5614_v45 = vadd.s32 3, %v5610_v33  ;;  %v5680_v4 = vmul.u32 %v13186_v63, %v5664_v15  ;;  %v13276_v63 = vld [vmem:[%s15038_s3 + $0x18] ss:$0 sm:$0xff] }
 0x55e   : > { %vm8014_vm13 = vcmp.lt.s32.totalorder %v8013_v6, 0  ;;  %v8590_v46 = vpop.eup %8589  ;;  %vm5682_vm0 = vc.u32 %v13256_v17, %v13225_v56  ;;  %v5836_v44 = vand.u32 2139095040, %v13248_v28  ;;  %v5737_v16 = vor.u32 8388608, %v5736_v35 }
 0x55f   : > { %v5592_v12 = vsel %vm8014_vm13, 0, %v8013_v6  ;;  %v5739_v25 = vadd.s32 1, %v8019_v38  ;;  %v8592_v8 = vpop.eup %8591  ;;  %v5517_v30 = vxor.u32 2147483648, %v8590_v46  ;;  %v5684_v22 = vsel %vm5682_vm0, %v5683_v48, %v13226_v32 }
 0x560   : > { %v5593_v29 = vsub.s32 32, %v5592_v12  ;;  %v5597_v1 = vsub.s32 4294967266, %v5592_v12  ;;  %v5514_v10 = vxor.u32 2147483648, %v8592_v8  ;;  %v5594_v34 = vshll.u32 %v13203_v43, %v5592_v12 }
 0x561   : > { %vm5740_vm3 = vcmp.gt.s32.totalorder %v5739_v25, 0  ;;  %v5518_v47 = vsel %vm5516_vm10, %v5517_v30, %v8592_v8  ;;  %v5685_v36 = vadd.s32 %v5684_v22, %v5680_v4  ;;  %v5833_v43 = vand.u32 2147483647, %v13248_v28 }
 0x562   : > { %v5595_v24 = vshrl.u32 %v5577_v37, %v5593_v29  ;;  %v5598_v41 = vadd.s32 127, %v5597_v1  ;;  %v5515_v5 = vsel %vm5513_vm12, %v8590_v46, %v5514_v10  ;;  %v5741_v21 = vsel %vm5740_vm3, %v5739_v25, 0 }
 0x563   : > { %v5837_v57 = vshrl.u32 %v5836_v44, 23  ;;  %v5519_v27 = vsel %vm5512_vm9, %v5515_v5, %v5518_v47  ;;  %v5686_v32 = vadd.s32 536870912, %v5685_v36  ;;  %v13286_v55 = vmul.f32 %v7795_v49, %v8800_v14 }
 0x564   : > { %v5596_v18 = vor.u32 %v5595_v24, %v5594_v34  ;;  %v5599_v51 = vshll.u32 %v5598_v41, 23  ;;  %v13289_v13 = vadd.f32 %v13276_v63, %v673_v26  ;;  %v5520_v2 = vsel %vm5509_vm7, nan, %v5519_v27 }
 0x565   : > { %v5743_v59 = vand.u32 31, %v5741_v21  ;;  %v13293_v3 = vand.u32 3, %v5614_v45  ;;  %vm5627_vm14 = vcmp.lt.s32.totalorder %v13050_v61, 0  ;;  %v5687_v53 = vshrl.u32 %v5686_v32, 30  ;;  %7644 = vst.msk [vmem:[%s9134_s13 + $0x158] sm:$0xff] %vm266_vm1, %v5520_v2 }
 0x566   : > { %v5600_v42 = vor.u32 4788187, %v5599_v51  ;;  %v13298_v33 = vshll.u32 %v5737_v16, 8  ;;  %v8023_v49 = vadd.s32 4294967169, %v5837_v57  ;;  %v13302_v26 = vand.u32 8388607, %v5833_v43 }
 0x567   : > { %v5744_v40 = vsub.s32 32, %v5743_v59  ;;  %v5603_v20 = vcvt.s32.f32 %v5596_v18  ;;  %v13306_v50 = vadd.s32 %v13225_v56, %v13256_v17  ;;  %v5688_v19 = vshll.u32 %v5687_v53, 30 }
 0x568   : > { %v5601_v15 = vand.u32 2147483647, %v5600_v42  ;;  %v5742_v6 = vshrl.u32 %v5741_v21, 5  ;;  %v5746_v4 = vshll.u32 %v8715_v54, %v5743_v59  ;;  %vm13317_vm2 = vcmp.le.f32.partialorder %v5625_v9, 0.7853982 }
 0x569   : > { %v5747_v35 = vshrl.u32 %v8716_v58, %v5744_v40  ;;  %v5750_v48 = vshrl.u32 %v8717_v60, %v5744_v40  ;;  %v5753_v38 = vshrl.u32 %v8718_v62, %v5744_v40  ;;  %v13311_v45 = vsub.s32 %v5685_v36, %v5688_v19 }
 0x56a   : > { %v5604_v37 = vmul.f32 %v5603_v20, %v5601_v15  ;;  %v5756_v46 = vshrl.u32 %v8719_v0, %v5744_v40  ;;  %v5711_v17 = vsub.s32 4, %v5687_v53  ;;  %v5749_v12 = vshll.u32 %v8716_v58, %v5743_v59 }
 0x56b   : > { %v5752_v25 = vshll.u32 %v8717_v60, %v5743_v59  ;;  %v5843_v44 = vadd.s32 1, %v8023_v49  ;;  %v5691_v30 = vsub.s32 0, %v13311_v45  ;;  %v5748_v29 = vor.u32 %v5747_v35, %v5746_v4 }
 0x56c   : > { %v5605_v8 = vxor.u32 2147483648, %v5604_v37  ;;  %v5755_v1 = vshll.u32 %v8718_v62, %v5743_v59  ;;  %v5751_v16 = vor.u32 %v5750_v48, %v5749_v12  ;;  %v5758_v34 = vshll.u32 %v8719_v0, %v5743_v59 }
 0x56d   : > { %v5754_v10 = vor.u32 %v5753_v38, %v5752_v25  ;;  %v5759_v9 = vshrl.u32 %v8720_v7, %v5744_v40  ;;  %v8016_v47 = vmin.u32 %v5691_v30, %v13311_v45  ;;  %v5745_v24 = vshrl.u32 %v8715_v54, %v5744_v40 }
 0x56e   : > { %v5606_v22 = vsel %vm5523_vm5, %v5605_v8, %v5604_v37  ;;  %v5757_v41 = vor.u32 %v5756_v46, %v5755_v1  ;;  %v5712_v5 = vsel %vm5627_vm14, %v5711_v17, %v5687_v53  ;;  %vm5761_vm8 = vcmp.lt.s32.totalorder %v5742_v6, 1 }
 0x56f   : > { %v5609_v36 = vsel %vm13238_vm6, %v12893_v31, %v5606_v22  ;;  %v5760_v21 = vor.u32 %v5759_v9, %v5758_v34  ;;  %v5693_v57 = vclz %v8016_v47  ;;  %vm5762_vm11 = vcmp.lt.s32.totalorder %v5742_v6, 2 }
 0x570   : > { %8593 = vcosq.f32 %v5609_v36  ;;  %vm5764_vm4 = vcmp.lt.s32.totalorder %v5742_v6, 4  ;;  %vm5763_vm5 = vcmp.lt.s32.totalorder %v5742_v6, 3  ;;  %v5769_v18 = vsel %vm5761_vm8, %v5748_v29, %v5751_v16 }
 0x571   : > { %8595 = vsinq.f32 %v5609_v36  ;;  %v5766_v27 = vsel %vm5764_vm4, %v5754_v10, 2102212464  ;;  %v8017_v51 = vadd.s32 4294967294, %v5693_v57  ;;  %v5765_v32 = vsel %vm5761_vm8, %v5745_v24, %v5748_v29 }
 0x572   : > { %v5770_v2 = vsel %vm5764_vm4, %v5757_v41, 920167782  ;;  %v5773_v59 = vsel %vm5761_vm8, %v5751_v16, %v5754_v10  ;;  %v5767_v42 = vsel %vm5763_vm5, %v5751_v16, %v5766_v27  ;;  %v5774_v40 = vsel %vm5764_vm4, %v5760_v21, 1326507024 }
 0x573   : > { %v5771_v39 = vsel %vm5763_vm5, %v5754_v10, %v5770_v2  ;;  %vm5844_vm15 = vcmp.gt.s32.totalorder %v5843_v44, 0  ;;  %vm8018_vm6 = vcmp.lt.s32.totalorder %v8017_v51, 0  ;;  %v5714_v53 = vsel %vm13317_vm2, 0, %v5712_v5 }
 0x574   : > { %v5772_v49 = vsel %vm5762_vm11, %v5769_v18, %v5771_v39  ;;  %v5775_v15 = vsel %vm5763_vm5, %v5757_v41, %v5774_v40  ;;  %vm5617_vm7 = vcmp.eq.s32.totalorder %v13293_v3, 0  ;;  %v5696_v20 = vsel %vm8018_vm6, 0, %v8017_v51 }
 0x575   : > { %v5776_v19 = vsel %vm5762_vm11, %v5773_v59, %v5775_v15  ;;  %v13342_v35 = vmul.u32.u64.low %v13298_v33, %v5772_v49  ;;  %v13343_v48 = vmul.u32.u64.high %v13298_v33, %v5772_v49, %v13342_v35  ;;  %vm5616_vm9 = vcmp.lt.s32.totalorder %v13293_v3, 2 }
 0x576   : > { %v5697_v38 = vsub.s32 32, %v5696_v20  ;;  %v5701_v37 = vsub.s32 4294967266, %v5696_v20  ;;  %v5768_v4 = vsel %vm5762_vm11, %v5765_v32, %v5767_v42  ;;  %v5845_v46 = vsel %vm5844_vm15, %v5843_v44, 0 }
 0x577   : > { %vm5613_vm12 = vweird.f32 %v12893_v31  ;;  %vm5620_vm10 = vcmp.eq.s32.totalorder %v13293_v3, 2  ;;  %v13351_v17 = vmul.u32.u64.low %v13298_v33, %v5776_v19  ;;  %v13352_v12 = vmul.u32.u64.high %v13298_v33, %v5776_v19, %v13351_v17 }
 0x578   : > { %v5847_v25 = vand.u32 31, %v5845_v46  ;;  %v5698_v8 = vshll.u32 %v13311_v45, %v5696_v20  ;;  %v5699_v30 = vshrl.u32 %v13306_v50, %v5697_v38  ;;  %v5702_v29 = vadd.s32 127, %v5701_v37 }
 0x579   : > { %v5841_v1 = vor.u32 8388608, %v13302_v26  ;;  %v5718_v16 = vadd.s32 3, %v5714_v53  ;;  %v5784_v6 = vmul.u32 %v13298_v33, %v5768_v4  ;;  %v5787_v44 = vadd.s32 1, %v13343_v48 }
 0x57a   : > { %v5848_v10 = vsub.s32 32, %v5847_v25  ;;  %v8594_v34 = vpop.eup %8593  ;;  %v5700_v9 = vor.u32 %v5699_v30, %v5698_v8  ;;  %v5703_v22 = vshll.u32 %v5702_v29, 23  ;;  %v13359_v47 = vshrl.u32 %v5845_v46, 5 }
 0x57b   : > { %v5850_v24 = vshll.u32 %v8715_v54, %v5847_v25  ;;  %v8596_v41 = vpop.eup %8595  ;;  %v5621_v45 = vxor.u32 2147483648, %v8594_v34  ;;  %vm5786_vm13 = vc.u32 %v13352_v12, %v13342_v35  ;;  %v5853_v26 = vshll.u32 %v8716_v58, %v5847_v25 }
 0x57c   : > { %v5859_v50 = vshll.u32 %v8718_v62, %v5847_v25  ;;  %v5618_v33 = vxor.u32 2147483648, %v8596_v41  ;;  %v5704_v36 = vor.u32 4788187, %v5703_v22  ;;  %v5707_v5 = vcvt.s32.f32 %v5700_v9 }
 0x57d   : > { %v5788_v21 = vsel %vm5786_vm13, %v5787_v44, %v13343_v48  ;;  %v5622_v57 = vsel %vm5620_vm10, %v5621_v45, %v8596_v41  ;;  %v5851_v18 = vshrl.u32 %v8716_v58, %v5848_v10  ;;  %v5854_v51 = vshrl.u32 %v8717_v60, %v5848_v10  ;;  %v7796_v45 = vld [vmem:[%s15037_s2 + $0x19] ss:$0 sm:$0xff] }
 0x57e   : > { %v5789_v27 = vadd.s32 %v5788_v21, %v5784_v6  ;;  %v5619_v32 = vsel %vm5617_vm7, %v8594_v34, %v5618_v33  ;;  %v5705_v2 = vand.u32 2147483647, %v5704_v36  ;;  %vm5731_vm0 = vcmp.lt.s32.totalorder %v13091_v23, 0 }
 0x57f   : > { %v5857_v59 = vshrl.u32 %v8718_v62, %v5848_v10  ;;  %v5860_v42 = vshrl.u32 %v8719_v0, %v5848_v10  ;;  %v5623_v39 = vsel %vm5616_vm9, %v5619_v32, %v5622_v57  ;;  %v5852_v53 = vor.u32 %v5851_v18, %v5850_v24 }
 0x580   : > { %v5790_v40 = vadd.s32 536870912, %v5789_v27  ;;  %v5856_v49 = vshll.u32 %v8717_v60, %v5847_v25  ;;  %v5624_v15 = vsel %vm5613_vm12, nan, %v5623_v39  ;;  %v5708_v20 = vmul.f32 %v5707_v5, %v5705_v2 }
 0x581   : > { %v5855_v19 = vor.u32 %v5854_v51, %v5853_v26  ;;  %v5861_v48 = vor.u32 %v5860_v42, %v5859_v50  ;;  %v13381_v38 = vand.u32 3, %v5718_v16  ;;  %v5863_v4 = vshrl.u32 %v8720_v7, %v5848_v10  ;;  %7645 = vst.msk [vmem:[%s9134_s13 + $0x160] sm:$0xff] %vm266_vm1, %v5624_v15 }
 0x582   : > { %v5791_v37 = vshrl.u32 %v5790_v40, 30  ;;  %v13384_v46 = vshll.u32 %v5841_v1, 8  ;;  %v5709_v3 = vxor.u32 2147483648, %v5708_v20  ;;  %v5858_v17 = vor.u32 %v5857_v59, %v5856_v49 }
 0x583   : > { %v5862_v8 = vshll.u32 %v8719_v0, %v5847_v25  ;;  %v5937_v30 = vand.u32 2147483647, %v13289_v13  ;;  %vm5865_vm3 = vcmp.lt.s32.totalorder %v13359_v47, 1  ;;  %vm5868_vm8 = vcmp.lt.s32.totalorder %v13359_v47, 4 }
 0x584   : > { %v5792_v31 = vshll.u32 %v5791_v37, 30  ;;  %v5815_v29 = vsub.s32 4, %v5791_v37  ;;  %v5710_v16 = vsel %vm5627_vm14, %v5709_v3, %v5708_v20  ;;  %v5873_v1 = vsel %vm5865_vm3, %v5852_v53, %v5855_v19 }
 0x585   : > { %v5864_v6 = vor.u32 %v5863_v4, %v5862_v8  ;;  %v5874_v44 = vsel %vm5868_vm8, %v5861_v48, 920167782  ;;  %v5713_v25 = vsel %vm13317_vm2, %v13050_v61, %v5710_v16  ;;  %v5849_v9 = vshrl.u32 %v8715_v54, %v5848_v10 }
 0x586   : > { %v13401_v34 = vsub.s32 %v5789_v27, %v5792_v31  ;;  %vm5867_vm11 = vcmp.lt.s32.totalorder %v13359_v47, 3  ;;  %8597 = vcosq.f32 %v5713_v25  ;;  %vm5866_vm14 = vcmp.lt.s32.totalorder %v13359_v47, 2 }
 0x587   : > { %v5870_v22 = vsel %vm5868_vm8, %v5858_v17, 2102212464  ;;  %v5875_v24 = vsel %vm5867_vm11, %v5858_v17, %v5874_v44  ;;  %8599 = vsinq.f32 %v5713_v25  ;;  %v5816_v56 = vsel %vm5731_vm0, %v5815_v29, %v5791_v37 }
 0x588   : > { %v5795_v41 = vsub.s32 0, %v13401_v34  ;;  %v5876_v10 = vsel %vm5866_vm14, %v5873_v1, %v5875_v24  ;;  %v5877_v26 = vsel %vm5865_vm3, %v5855_v19, %v5858_v17  ;;  %v5878_v50 = vsel %vm5868_vm8, %v5864_v6, 1326507024 }
 0x589   : > { %v13423_v33 = vmul.u32.u64.low %v13384_v46, %v5876_v10  ;;  %v13424_v36 = vmul.u32.u64.high %v13384_v46, %v5876_v10, %v13423_v33  ;;  %v5869_v21 = vsel %vm5865_vm3, %v5849_v9, %v5852_v53  ;;  %v5871_v57 = vsel %vm5867_vm11, %v5855_v19, %v5870_v22 }
 0x58a   : > { %v8020_v5 = vmin.u32 %v5795_v41, %v13401_v34  ;;  %v5879_v27 = vsel %vm5867_vm11, %v5861_v48, %v5878_v50  ;;  %vm13436_vm2 = vcmp.le.f32.partialorder %v5729_v52, 0.7853982  ;;  %v5940_v32 = vand.u32 2139095040, %v13289_v13 }
 0x58b   : > { %v5880_v51 = vsel %vm5866_vm14, %v5877_v26, %v5879_v27  ;;  %v675_v2 = vmul.f32 %v7796_v45, %v8798_v11  ;;  %v13446_v59 = vadd.f32 %v13276_v63, %v13286_v55  ;;  %v5818_v39 = vsel %vm13436_vm2, 0, %v5816_v56 }
 0x58c   : > { %v5797_v42 = vclz %v8020_v5  ;;  %v5872_v52 = vsel %vm5866_vm14, %v5869_v21, %v5871_v57  ;;  %v13453_v40 = vmul.u32.u64.low %v13384_v46, %v5880_v51  ;;  %v13454_v53 = vmul.u32.u64.high %v13384_v46, %v5880_v51, %v13453_v40 }
 0x58d   : > { %v5941_v49 = vshrl.u32 %v5940_v32, 23  ;;  %vm5717_vm4 = vweird.f32 %v13050_v61  ;;  %vm5720_vm5 = vcmp.lt.s32.totalorder %v13381_v38, 2  ;;  %v5944_v63 = vand.u32 8388607, %v5937_v30 }
 0x58e   : > { %v8021_v15 = vadd.s32 4294967294, %v5797_v42  ;;  %vm5721_vm15 = vcmp.eq.s32.totalorder %v13381_v38, 0  ;;  %vm5724_vm6 = vcmp.eq.s32.totalorder %v13381_v38, 2  ;;  %v5891_v55 = vadd.s32 1, %v13424_v36 }
 0x58f   : > { %v8027_v47 = vadd.s32 4294967169, %v5941_v49  ;;  %v5785_v20 = vadd.s32 %v13342_v35, %v13352_v12  ;;  %v5822_v19 = vadd.s32 3, %v5818_v39  ;;  %v5888_v48 = vmul.u32 %v13384_v46, %v5872_v52  ;;  %v13474_v46 = vld [vmem:[%s15038_s3 + $0x19] ss:$0 sm:$0xff] }
 0x590   : > { %vm8022_vm7 = vcmp.lt.s32.totalorder %v8021_v15, 0  ;;  %v8598_v37 = vpop.eup %8597  ;;  %vm5890_vm9 = vc.u32 %v13454_v53, %v13423_v33  ;;  %v6044_v17 = vand.u32 2139095040, %v13446_v59  ;;  %v5945_v6 = vor.u32 8388608, %v5944_v63 }
 0x591   : > { %v5800_v4 = vsel %vm8022_vm7, 0, %v8021_v15  ;;  %v5947_v3 = vadd.s32 1, %v8027_v47  ;;  %v8600_v8 = vpop.eup %8599  ;;  %v5725_v31 = vxor.u32 2147483648, %v8598_v37  ;;  %v5892_v12 = vsel %vm5890_vm9, %v5891_v55, %v13424_v36 }
 0x592   : > { %v5801_v29 = vsub.s32 32, %v5800_v4  ;;  %v5805_v16 = vsub.s32 4294967266, %v5800_v4  ;;  %v5722_v1 = vxor.u32 2147483648, %v8600_v8  ;;  %v5802_v35 = vshll.u32 %v13401_v34, %v5800_v4 }
 0x593   : > { %vm5948_vm12 = vcmp.gt.s32.totalorder %v5947_v3, 0  ;;  %v5726_v44 = vsel %vm5724_vm6, %v5725_v31, %v8600_v8  ;;  %v5893_v22 = vadd.s32 %v5892_v12, %v5888_v48  ;;  %v6041_v34 = vand.u32 2147483647, %v13446_v59 }
 0x594   : > { %v5803_v25 = vshrl.u32 %v5785_v20, %v5801_v29  ;;  %v5806_v9 = vadd.s32 127, %v5805_v16  ;;  %v5723_v24 = vsel %vm5721_vm15, %v8598_v37, %v5722_v1  ;;  %v5949_v41 = vsel %vm5948_vm12, %v5947_v3, 0 }
 0x595   : > { %v6045_v56 = vshrl.u32 %v6044_v17, 23  ;;  %v5727_v10 = vsel %vm5720_vm5, %v5723_v24, %v5726_v44  ;;  %v5894_v36 = vadd.s32 536870912, %v5893_v22  ;;  %v13484_v5 = vmul.f32 %v7796_v45, %v8800_v14 }
 0x596   : > { %v5804_v26 = vor.u32 %v5803_v25, %v5802_v35  ;;  %v5807_v50 = vshll.u32 %v5806_v9, 23  ;;  %v13487_v21 = vadd.f32 %v13474_v46, %v675_v2  ;;  %v5728_v57 = vsel %vm5717_vm4, nan, %v5727_v10 }
 0x597   : > { %v5951_v27 = vand.u32 31, %v5949_v41  ;;  %v13491_v32 = vand.u32 3, %v5822_v19  ;;  %vm5835_vm10 = vcmp.lt.s32.totalorder %v13248_v28, 0  ;;  %v5895_v38 = vshrl.u32 %v5894_v36, 30  ;;  %7646 = vst.msk [vmem:[%s9134_s13 + $0x168] sm:$0xff] %vm266_vm1, %v5728_v57 }
 0x598   : > { %v5808_v51 = vor.u32 4788187, %v5807_v50  ;;  %v13496_v39 = vshll.u32 %v5945_v6, 8  ;;  %v8031_v45 = vadd.s32 4294967169, %v6045_v56  ;;  %v13500_v2 = vand.u32 8388607, %v6041_v34 }
 0x599   : > { %v5952_v42 = vsub.s32 32, %v5951_v27  ;;  %v5811_v61 = vcvt.s32.f32 %v5804_v26  ;;  %v13504_v40 = vadd.s32 %v13423_v33, %v13454_v53  ;;  %v5896_v49 = vshll.u32 %v5895_v38, 30 }
 0x59a   : > { %v5809_v52 = vand.u32 2147483647, %v5808_v51  ;;  %v5950_v15 = vshrl.u32 %v5949_v41, 5  ;;  %v5954_v48 = vshll.u32 %v8715_v54, %v5951_v27  ;;  %vm13515_vm13 = vcmp.le.f32.partialorder %v5833_v43, 0.7853982 }
 0x59b   : > { %v5955_v63 = vshrl.u32 %v8716_v58, %v5952_v42  ;;  %v5958_v55 = vshrl.u32 %v8717_v60, %v5952_v42  ;;  %v5961_v47 = vshrl.u32 %v8718_v62, %v5952_v42  ;;  %v13509_v19 = vsub.s32 %v5893_v22, %v5896_v49 }
 0x59c   : > { %v5812_v20 = vmul.f32 %v5811_v61, %v5809_v52  ;;  %v5964_v37 = vshrl.u32 %v8719_v0, %v5952_v42  ;;  %v5919_v53 = vsub.s32 4, %v5895_v38  ;;  %v5957_v4 = vshll.u32 %v8716_v58, %v5951_v27 }
 0x59d   : > { %v5960_v3 = vshll.u32 %v8717_v60, %v5951_v27  ;;  %v6051_v17 = vadd.s32 1, %v8031_v45  ;;  %v5899_v31 = vsub.s32 0, %v13509_v19  ;;  %v5956_v29 = vor.u32 %v5955_v63, %v5954_v48 }
 0x59e   : > { %v5813_v8 = vxor.u32 2147483648, %v5812_v20  ;;  %v5963_v16 = vshll.u32 %v8718_v62, %v5951_v27  ;;  %v5959_v6 = vor.u32 %v5958_v55, %v5957_v4  ;;  %v5966_v35 = vshll.u32 %v8719_v0, %v5951_v27 }
 0x59f   : > { %v5962_v1 = vor.u32 %v5961_v47, %v5960_v3  ;;  %v5967_v43 = vshrl.u32 %v8720_v7, %v5952_v42  ;;  %v8024_v44 = vmin.u32 %v5899_v31, %v13509_v19  ;;  %v5953_v25 = vshrl.u32 %v8715_v54, %v5952_v42 }
 0x5a0   : > { %v5814_v12 = vsel %vm5731_vm0, %v5813_v8, %v5812_v20  ;;  %v5965_v9 = vor.u32 %v5964_v37, %v5963_v16  ;;  %v5920_v24 = vsel %vm5835_vm10, %v5919_v53, %v5895_v38  ;;  %vm5969_vm3 = vcmp.lt.s32.totalorder %v5950_v15, 1 }
 0x5a1   : > { %v5817_v22 = vsel %vm13436_vm2, %v13091_v23, %v5814_v12  ;;  %v5968_v41 = vor.u32 %v5967_v43, %v5966_v35  ;;  %v5901_v56 = vclz %v8024_v44  ;;  %vm5970_vm8 = vcmp.lt.s32.totalorder %v5950_v15, 2 }
 0x5a2   : > { %8601 = vcosq.f32 %v5817_v22  ;;  %vm5972_vm11 = vcmp.lt.s32.totalorder %v5950_v15, 4  ;;  %vm5971_vm0 = vcmp.lt.s32.totalorder %v5950_v15, 3  ;;  %v5977_v26 = vsel %vm5969_vm3, %v5956_v29, %v5959_v6 }
 0x5a3   : > { %8603 = vsinq.f32 %v5817_v22  ;;  %v5974_v10 = vsel %vm5972_vm11, %v5962_v1, 2102212464  ;;  %v8025_v50 = vadd.s32 4294967294, %v5901_v56  ;;  %v5973_v36 = vsel %vm5969_vm3, %v5953_v25, %v5956_v29 }
 0x5a4   : > { %v5978_v57 = vsel %vm5972_vm11, %v5965_v9, 920167782  ;;  %v5981_v27 = vsel %vm5969_vm3, %v5959_v6, %v5962_v1  ;;  %v5975_v51 = vsel %vm5971_vm0, %v5959_v6, %v5974_v10  ;;  %v5982_v42 = vsel %vm5972_vm11, %v5968_v41, 1326507024 }
 0x5a5   : > { %v5979_v18 = vsel %vm5971_vm0, %v5962_v1, %v5978_v57  ;;  %vm6052_vm14 = vcmp.gt.s32.totalorder %v6051_v17, 0  ;;  %vm8026_vm2 = vcmp.lt.s32.totalorder %v8025_v50, 0  ;;  %v5922_v38 = vsel %vm13515_vm13, 0, %v5920_v24 }
 0x5a6   : > { %v5980_v45 = vsel %vm5970_vm8, %v5977_v26, %v5979_v18  ;;  %v5983_v52 = vsel %vm5971_vm0, %v5965_v9, %v5982_v42  ;;  %vm5825_vm4 = vcmp.eq.s32.totalorder %v13491_v32, 0  ;;  %v5904_v61 = vsel %vm8026_vm2, 0, %v8025_v50 }
 0x5a7   : > { %v5984_v49 = vsel %vm5970_vm8, %v5981_v27, %v5983_v52  ;;  %v13540_v63 = vmul.u32.u64.low %v13496_v39, %v5980_v45  ;;  %v13541_v55 = vmul.u32.u64.high %v13496_v39, %v5980_v45, %v13540_v63  ;;  %vm5824_vm5 = vcmp.lt.s32.totalorder %v13491_v32, 2 }
 0x5a8   : > { %v5905_v47 = vsub.s32 32, %v5904_v61  ;;  %v5909_v20 = vsub.s32 4294967266, %v5904_v61  ;;  %v5976_v48 = vsel %vm5970_vm8, %v5973_v36, %v5975_v51  ;;  %v6053_v37 = vsel %vm6052_vm14, %v6051_v17, 0 }
 0x5a9   : > { %vm5821_vm15 = vweird.f32 %v13091_v23  ;;  %vm5828_vm6 = vcmp.eq.s32.totalorder %v13491_v32, 2  ;;  %v13549_v53 = vmul.u32.u64.low %v13496_v39, %v5984_v49  ;;  %v13550_v4 = vmul.u32.u64.high %v13496_v39, %v5984_v49, %v13549_v53 }
 0x5aa   : > { %v6055_v3 = vand.u32 31, %v6053_v37  ;;  %v5906_v8 = vshll.u32 %v13509_v19, %v5904_v61  ;;  %v5907_v31 = vshrl.u32 %v13504_v40, %v5905_v47  ;;  %v5910_v29 = vadd.s32 127, %v5909_v20 }
 0x5ab   : > { %v6049_v16 = vor.u32 8388608, %v13500_v2  ;;  %v5926_v6 = vadd.s32 3, %v5922_v38  ;;  %v5992_v15 = vmul.u32 %v13496_v39, %v5976_v48  ;;  %v5995_v17 = vadd.s32 1, %v13541_v55 }
 0x5ac   : > { %v6056_v1 = vsub.s32 32, %v6055_v3  ;;  %v8602_v35 = vpop.eup %8601  ;;  %v5908_v43 = vor.u32 %v5907_v31, %v5906_v8  ;;  %v5911_v12 = vshll.u32 %v5910_v29, 23  ;;  %v13557_v44 = vshrl.u32 %v6053_v37, 5 }
 0x5ad   : > { %v6058_v25 = vshll.u32 %v8715_v54, %v6055_v3  ;;  %v8604_v9 = vpop.eup %8603  ;;  %v5829_v19 = vxor.u32 2147483648, %v8602_v35  ;;  %vm5994_vm7 = vc.u32 %v13550_v4, %v13540_v63  ;;  %v6061_v2 = vshll.u32 %v8716_v58, %v6055_v3 }
 0x5ae   : > { %v6067_v40 = vshll.u32 %v8718_v62, %v6055_v3  ;;  %v5826_v39 = vxor.u32 2147483648, %v8604_v9  ;;  %v5912_v22 = vor.u32 4788187, %v5911_v12  ;;  %v5915_v24 = vcvt.s32.f32 %v5908_v43 }
 0x5af   : > { %v5996_v41 = vsel %vm5994_vm7, %v5995_v17, %v13541_v55  ;;  %v5830_v56 = vsel %vm5828_vm6, %v5829_v19, %v8604_v9  ;;  %v6059_v26 = vshrl.u32 %v8716_v58, %v6056_v1  ;;  %v6062_v50 = vshrl.u32 %v8717_v60, %v6056_v1  ;;  %v7797_v19 = vld [vmem:[%s15037_s2 + $0x1a] ss:$0 sm:$0xff] }
 0x5b0   : > { %v5997_v10 = vadd.s32 %v5996_v41, %v5992_v15  ;;  %v5827_v36 = vsel %vm5825_vm4, %v8602_v35, %v5826_v39  ;;  %v5913_v57 = vand.u32 2147483647, %v5912_v22  ;;  %vm5939_vm9 = vcmp.lt.s32.totalorder %v13289_v13, 0 }
 0x5b1   : > { %v6065_v27 = vshrl.u32 %v8718_v62, %v6056_v1  ;;  %v6068_v51 = vshrl.u32 %v8719_v0, %v6056_v1  ;;  %v5831_v18 = vsel %vm5824_vm5, %v5827_v36, %v5830_v56  ;;  %v6060_v38 = vor.u32 %v6059_v26, %v6058_v25 }
 0x5b2   : > { %v5998_v42 = vadd.s32 536870912, %v5997_v10  ;;  %v6064_v45 = vshll.u32 %v8717_v60, %v6055_v3  ;;  %v5832_v52 = vsel %vm5821_vm15, nan, %v5831_v18  ;;  %v5916_v61 = vmul.f32 %v5915_v24, %v5913_v57 }
 0x5b3   : > { %v6063_v49 = vor.u32 %v6062_v50, %v6061_v2  ;;  %v6069_v55 = vor.u32 %v6068_v51, %v6067_v40  ;;  %v13579_v47 = vand.u32 3, %v5926_v6  ;;  %v6071_v48 = vshrl.u32 %v8720_v7, %v6056_v1  ;;  %7647 = vst.msk [vmem:[%s9134_s13 + $0x170] sm:$0xff] %vm266_vm1, %v5832_v52 }
 0x5b4   : > { %v5999_v20 = vshrl.u32 %v5998_v42, 30  ;;  %v13582_v37 = vshll.u32 %v6049_v16, 8  ;;  %v5917_v32 = vxor.u32 2147483648, %v5916_v61  ;;  %v6066_v53 = vor.u32 %v6065_v27, %v6064_v45 }
 0x5b5   : > { %v6070_v8 = vshll.u32 %v8719_v0, %v6055_v3  ;;  %v6145_v31 = vand.u32 2147483647, %v13487_v21  ;;  %vm6073_vm12 = vcmp.lt.s32.totalorder %v13557_v44, 1  ;;  %vm6076_vm3 = vcmp.lt.s32.totalorder %v13557_v44, 4 }
 0x5b6   : > { %v6000_v23 = vshll.u32 %v5999_v20, 30  ;;  %v6023_v29 = vsub.s32 4, %v5999_v20  ;;  %v5918_v6 = vsel %vm5835_vm10, %v5917_v32, %v5916_v61  ;;  %v6081_v16 = vsel %vm6073_vm12, %v6060_v38, %v6063_v49 }
 0x5b7   : > { %v6072_v15 = vor.u32 %v6071_v48, %v6070_v8  ;;  %v6082_v17 = vsel %vm6076_vm3, %v6069_v55, 920167782  ;;  %v5921_v3 = vsel %vm13515_vm13, %v13248_v28, %v5918_v6  ;;  %v6057_v43 = vshrl.u32 %v8715_v54, %v6056_v1 }
 0x5b8   : > { %v13599_v35 = vsub.s32 %v5997_v10, %v6000_v23  ;;  %vm6075_vm8 = vcmp.lt.s32.totalorder %v13557_v44, 3  ;;  %8605 = vcosq.f32 %v5921_v3  ;;  %vm6074_vm10 = vcmp.lt.s32.totalorder %v13557_v44, 2 }
 0x5b9   : > { %v6078_v12 = vsel %vm6076_vm3, %v6066_v53, 2102212464  ;;  %v6083_v25 = vsel %vm6075_vm8, %v6066_v53, %v6082_v17  ;;  %8607 = vsinq.f32 %v5921_v3  ;;  %v6024_v33 = vsel %vm5939_vm9, %v6023_v29, %v5999_v20 }
 0x5ba   : > { %v6003_v9 = vsub.s32 0, %v13599_v35  ;;  %v6084_v1 = vsel %vm6074_vm10, %v6081_v16, %v6083_v25  ;;  %v6085_v2 = vsel %vm6073_vm12, %v6063_v49, %v6066_v53  ;;  %v6086_v40 = vsel %vm6076_vm3, %v6072_v15, 1326507024 }
 0x5bb   : > { %v13621_v39 = vmul.u32.u64.low %v13582_v37, %v6084_v1  ;;  %v13622_v22 = vmul.u32.u64.high %v13582_v37, %v6084_v1, %v13621_v39  ;;  %v6077_v41 = vsel %vm6073_vm12, %v6057_v43, %v6060_v38  ;;  %v6079_v56 = vsel %vm6075_vm8, %v6063_v49, %v6078_v12 }
 0x5bc   : > { %v8028_v24 = vmin.u32 %v6003_v9, %v13599_v35  ;;  %v6087_v10 = vsel %vm6075_vm8, %v6069_v55, %v6086_v40  ;;  %vm13634_vm13 = vcmp.le.f32.partialorder %v5937_v30, 0.7853982  ;;  %v6148_v36 = vand.u32 2139095040, %v13487_v21 }
 0x5bd   : > { %v6088_v50 = vsel %vm6074_vm10, %v6085_v2, %v6087_v10  ;;  %v677_v57 = vmul.f32 %v7797_v19, %v8798_v11  ;;  %v13644_v27 = vadd.f32 %v13474_v46, %v13484_v5  ;;  %v6026_v18 = vsel %vm13634_vm13, 0, %v6024_v33 }
 0x5be   : > { %v6005_v51 = vclz %v8028_v24  ;;  %v6080_v30 = vsel %vm6074_vm10, %v6077_v41, %v6079_v56  ;;  %v13651_v42 = vmul.u32.u64.low %v13582_v37, %v6088_v50  ;;  %v13652_v38 = vmul.u32.u64.high %v13582_v37, %v6088_v50, %v13651_v42 }
 0x5bf   : > { %v6149_v45 = vshrl.u32 %v6148_v36, 23  ;;  %vm5925_vm11 = vweird.f32 %v13248_v28  ;;  %vm5928_vm0 = vcmp.lt.s32.totalorder %v13579_v47, 2  ;;  %v6152_v46 = vand.u32 8388607, %v6145_v31 }
 0x5c0   : > { %v8029_v52 = vadd.s32 4294967294, %v6005_v51  ;;  %vm5929_vm14 = vcmp.eq.s32.totalorder %v13579_v47, 0  ;;  %vm5932_vm2 = vcmp.eq.s32.totalorder %v13579_v47, 2  ;;  %v6099_v5 = vadd.s32 1, %v13622_v22 }
 0x5c1   : > { %v8035_v44 = vadd.s32 4294967169, %v6149_v45  ;;  %v5993_v61 = vadd.s32 %v13540_v63, %v13550_v4  ;;  %v6030_v49 = vadd.s32 3, %v6026_v18  ;;  %v6096_v55 = vmul.u32 %v13582_v37, %v6080_v30  ;;  %v13672_v37 = vld [vmem:[%s15038_s3 + $0x1a] ss:$0 sm:$0xff] }
 0x5c2   : > { %vm8030_vm4 = vcmp.lt.s32.totalorder %v8029_v52, 0  ;;  %v8606_v20 = vpop.eup %8605  ;;  %vm6098_vm5 = vc.u32 %v13652_v38, %v13621_v39  ;;  %v6252_v53 = vand.u32 2139095040, %v13644_v27  ;;  %v6153_v15 = vor.u32 8388608, %v6152_v46 }
 0x5c3   : > { %v6008_v48 = vsel %vm8030_vm4, 0, %v8029_v52  ;;  %v6155_v32 = vadd.s32 1, %v8035_v44  ;;  %v8608_v8 = vpop.eup %8607  ;;  %v5933_v23 = vxor.u32 2147483648, %v8606_v20  ;;  %v6100_v4 = vsel %vm6098_vm5, %v6099_v5, %v13622_v22 }
 0x5c4   : > { %v6009_v29 = vsub.s32 32, %v6008_v48  ;;  %v6013_v6 = vsub.s32 4294967266, %v6008_v48  ;;  %v5930_v16 = vxor.u32 2147483648, %v8608_v8  ;;  %v6010_v63 = vshll.u32 %v13599_v35, %v6008_v48 }
 0x5c5   : > { %vm6156_vm15 = vcmp.gt.s32.totalorder %v6155_v32, 0  ;;  %v5934_v17 = vsel %vm5932_vm2, %v5933_v23, %v8608_v8  ;;  %v6101_v12 = vadd.s32 %v6100_v4, %v6096_v55  ;;  %v6249_v35 = vand.u32 2147483647, %v13644_v27 }
 0x5c6   : > { %v6011_v3 = vshrl.u32 %v5993_v61, %v6009_v29  ;;  %v6014_v43 = vadd.s32 127, %v6013_v6  ;;  %v5931_v25 = vsel %vm5929_vm14, %v8606_v20, %v5930_v16  ;;  %v6157_v9 = vsel %vm6156_vm15, %v6155_v32, 0 }
 0x5c7   : > { %v6253_v33 = vshrl.u32 %v6252_v53, 23  ;;  %v5935_v1 = vsel %vm5928_vm0, %v5931_v25, %v5934_v17  ;;  %v6102_v22 = vadd.s32 536870912, %v6101_v12  ;;  %v13682_v24 = vmul.f32 %v7797_v19, %v8800_v14 }
 0x5c8   : > { %v6012_v2 = vor.u32 %v6011_v3, %v6010_v63  ;;  %v6015_v40 = vshll.u32 %v6014_v43, 23  ;;  %v13685_v41 = vadd.f32 %v13672_v37, %v677_v57  ;;  %v5936_v56 = vsel %vm5925_vm11, nan, %v5935_v1 }
 0x5c9   : > { %v6159_v10 = vand.u32 31, %v6157_v9  ;;  %v13689_v36 = vand.u32 3, %v6030_v49  ;;  %vm6043_vm6 = vcmp.lt.s32.totalorder %v13446_v59, 0  ;;  %v6103_v47 = vshrl.u32 %v6102_v22, 30  ;;  %7648 = vst.msk [vmem:[%s9134_s13 + $0x178] sm:$0xff] %vm266_vm1, %v5936_v56 }
 0x5ca   : > { %v6016_v50 = vor.u32 4788187, %v6015_v40  ;;  %v13694_v18 = vshll.u32 %v6153_v15, 8  ;;  %v8039_v19 = vadd.s32 4294967169, %v6253_v33  ;;  %v13698_v57 = vand.u32 8388607, %v6249_v35 }
 0x5cb   : > { %v6160_v51 = vsub.s32 32, %v6159_v10  ;;  %v6019_v28 = vcvt.s32.f32 %v6012_v2  ;;  %v13702_v42 = vadd.s32 %v13621_v39, %v13652_v38  ;;  %v6104_v45 = vshll.u32 %v6103_v47, 30 }
 0x5cc   : > { %v6017_v30 = vand.u32 2147483647, %v6016_v50  ;;  %v6158_v52 = vshrl.u32 %v6157_v9, 5  ;;  %v6162_v55 = vshll.u32 %v8715_v54, %v6159_v10  ;;  %vm13713_vm7 = vcmp.le.f32.partialorder %v6041_v34, 0.7853982 }
 0x5cd   : > { %v6163_v46 = vshrl.u32 %v8716_v58, %v6160_v51  ;;  %v6166_v5 = vshrl.u32 %v8717_v60, %v6160_v51  ;;  %v6169_v44 = vshrl.u32 %v8718_v62, %v6160_v51  ;;  %v13707_v49 = vsub.s32 %v6101_v12, %v6104_v45 }
 0x5ce   : > { %v6020_v61 = vmul.f32 %v6019_v28, %v6017_v30  ;;  %v6172_v20 = vshrl.u32 %v8719_v0, %v6160_v51  ;;  %v6127_v38 = vsub.s32 4, %v6103_v47  ;;  %v6165_v48 = vshll.u32 %v8716_v58, %v6159_v10 }
 0x5cf   : > { %v6168_v32 = vshll.u32 %v8717_v60, %v6159_v10  ;;  %v6259_v53 = vadd.s32 1, %v8039_v19  ;;  %v6107_v23 = vsub.s32 0, %v13707_v49  ;;  %v6164_v29 = vor.u32 %v6163_v46, %v6162_v55 }
 0x5d0   : > { %v6021_v8 = vxor.u32 2147483648, %v6020_v61  ;;  %v6171_v6 = vshll.u32 %v8718_v62, %v6159_v10  ;;  %v6167_v15 = vor.u32 %v6166_v5, %v6165_v48  ;;  %v6174_v63 = vshll.u32 %v8719_v0, %v6159_v10 }
 0x5d1   : > { %v6170_v16 = vor.u32 %v6169_v44, %v6168_v32  ;;  %v6175_v34 = vshrl.u32 %v8720_v7, %v6160_v51  ;;  %v8032_v17 = vmin.u32 %v6107_v23, %v13707_v49  ;;  %v6161_v3 = vshrl.u32 %v8715_v54, %v6160_v51 }
 0x5d2   : > { %v6022_v4 = vsel %vm5939_vm9, %v6021_v8, %v6020_v61  ;;  %v6173_v43 = vor.u32 %v6172_v20, %v6171_v6  ;;  %v6128_v25 = vsel %vm6043_vm6, %v6127_v38, %v6103_v47  ;;  %vm6177_vm12 = vcmp.lt.s32.totalorder %v6158_v52, 1 }
 0x5d3   : > { %v6025_v12 = vsel %vm13634_vm13, %v13289_v13, %v6022_v4  ;;  %v6176_v9 = vor.u32 %v6175_v34, %v6174_v63  ;;  %v6109_v33 = vclz %v8032_v17  ;;  %vm6178_vm3 = vcmp.lt.s32.totalorder %v6158_v52, 2 }
 0x5d4   : > { %8609 = vcosq.f32 %v6025_v12  ;;  %vm6180_vm8 = vcmp.lt.s32.totalorder %v6158_v52, 4  ;;  %vm6179_vm9 = vcmp.lt.s32.totalorder %v6158_v52, 3  ;;  %v6185_v2 = vsel %vm6177_vm12, %v6164_v29, %v6167_v15 }
 0x5d5   : > { %8611 = vsinq.f32 %v6025_v12  ;;  %v6182_v1 = vsel %vm6180_vm8, %v6170_v16, 2102212464  ;;  %v8033_v40 = vadd.s32 4294967294, %v6109_v33  ;;  %v6181_v22 = vsel %vm6177_vm12, %v6161_v3, %v6164_v29 }
 0x5d6   : > { %v6186_v56 = vsel %vm6180_vm8, %v6173_v43, 920167782  ;;  %v6189_v10 = vsel %vm6177_vm12, %v6167_v15, %v6170_v16  ;;  %v6183_v50 = vsel %vm6179_vm9, %v6167_v15, %v6182_v1  ;;  %v6190_v51 = vsel %vm6180_vm8, %v6176_v9, 1326507024 }
 0x5d7   : > { %v6187_v26 = vsel %vm6179_vm9, %v6170_v16, %v6186_v56  ;;  %vm6260_vm10 = vcmp.gt.s32.totalorder %v6259_v53, 0  ;;  %vm8034_vm13 = vcmp.lt.s32.totalorder %v8033_v40, 0  ;;  %v6130_v47 = vsel %vm13713_vm7, 0, %v6128_v25 }
 0x5d8   : > { %v6188_v19 = vsel %vm6178_vm3, %v6185_v2, %v6187_v26  ;;  %v6191_v30 = vsel %vm6179_vm9, %v6173_v43, %v6190_v51  ;;  %vm6033_vm11 = vcmp.eq.s32.totalorder %v13689_v36, 0  ;;  %v6112_v28 = vsel %vm8034_vm13, 0, %v8033_v40 }
 0x5d9   : > { %v6192_v45 = vsel %vm6178_vm3, %v6189_v10, %v6191_v30  ;;  %v13738_v46 = vmul.u32.u64.low %v13694_v18, %v6188_v19  ;;  %v13739_v5 = vmul.u32.u64.high %v13694_v18, %v6188_v19, %v13738_v46  ;;  %vm6032_vm0 = vcmp.lt.s32.totalorder %v13689_v36, 2 }
 0x5da   : > { %v6113_v44 = vsub.s32 32, %v6112_v28  ;;  %v6117_v61 = vsub.s32 4294967266, %v6112_v28  ;;  %v6184_v55 = vsel %vm6178_vm3, %v6181_v22, %v6183_v50  ;;  %v6261_v20 = vsel %vm6260_vm10, %v6259_v53, 0 }
 0x5db   : > { %vm6029_vm14 = vweird.f32 %v13289_v13  ;;  %vm6036_vm2 = vcmp.eq.s32.totalorder %v13689_v36, 2  ;;  %v13747_v38 = vmul.u32.u64.low %v13694_v18, %v6192_v45  ;;  %v13748_v48 = vmul.u32.u64.high %v13694_v18, %v6192_v45, %v13747_v38 }
 0x5dc   : > { %v6263_v32 = vand.u32 31, %v6261_v20  ;;  %v6114_v8 = vshll.u32 %v13707_v49, %v6112_v28  ;;  %v6115_v23 = vshrl.u32 %v13702_v42, %v6113_v44  ;;  %v6118_v29 = vadd.s32 127, %v6117_v61 }
 0x5dd   : > { %v6257_v6 = vor.u32 8388608, %v13698_v57  ;;  %v6134_v15 = vadd.s32 3, %v6130_v47  ;;  %v6200_v52 = vmul.u32 %v13694_v18, %v6184_v55  ;;  %v6203_v53 = vadd.s32 1, %v13739_v5 }
 0x5de   : > { %v6264_v16 = vsub.s32 32, %v6263_v32  ;;  %v8610_v63 = vpop.eup %8609  ;;  %v6116_v34 = vor.u32 %v6115_v23, %v6114_v8  ;;  %v6119_v4 = vshll.u32 %v6118_v29, 23  ;;  %v13755_v17 = vshrl.u32 %v6261_v20, 5 }
 0x5df   : > { %v6266_v3 = vshll.u32 %v8715_v54, %v6263_v32  ;;  %v8612_v43 = vpop.eup %8611  ;;  %v6037_v49 = vxor.u32 2147483648, %v8610_v63  ;;  %vm6202_vm4 = vc.u32 %v13748_v48, %v13738_v46  ;;  %v6269_v57 = vshll.u32 %v8716_v58, %v6263_v32 }
 0x5e0   : > { %v6275_v42 = vshll.u32 %v8718_v62, %v6263_v32  ;;  %v6034_v18 = vxor.u32 2147483648, %v8612_v43  ;;  %v6120_v12 = vor.u32 4788187, %v6119_v4  ;;  %v6123_v25 = vcvt.s32.f32 %v6116_v34 }
 0x5e1   : > { %v6204_v9 = vsel %vm6202_vm4, %v6203_v53, %v13739_v5  ;;  %v6038_v33 = vsel %vm6036_vm2, %v6037_v49, %v8612_v43  ;;  %v6267_v2 = vshrl.u32 %v8716_v58, %v6264_v16  ;;  %v6270_v40 = vshrl.u32 %v8717_v60, %v6264_v16  ;;  %v7798_v49 = vld [vmem:[%s15037_s2 + $0x1b] ss:$0 sm:$0xff] }
 0x5e2   : > { %v6205_v1 = vadd.s32 %v6204_v9, %v6200_v52  ;;  %v6035_v22 = vsel %vm6033_vm11, %v8610_v63, %v6034_v18  ;;  %v6121_v56 = vand.u32 2147483647, %v6120_v12  ;;  %vm6147_vm5 = vcmp.lt.s32.totalorder %v13487_v21, 0 }
 0x5e3   : > { %v6273_v10 = vshrl.u32 %v8718_v62, %v6264_v16  ;;  %v6276_v50 = vshrl.u32 %v8719_v0, %v6264_v16  ;;  %v6039_v26 = vsel %vm6032_vm0, %v6035_v22, %v6038_v33  ;;  %v6268_v47 = vor.u32 %v6267_v2, %v6266_v3 }
 0x5e4   : > { %v6206_v51 = vadd.s32 536870912, %v6205_v1  ;;  %v6272_v19 = vshll.u32 %v8717_v60, %v6263_v32  ;;  %v6040_v30 = vsel %vm6029_vm14, nan, %v6039_v26  ;;  %v6124_v28 = vmul.f32 %v6123_v25, %v6121_v56 }
 0x5e5   : > { %v6271_v45 = vor.u32 %v6270_v40, %v6269_v57  ;;  %v6277_v5 = vor.u32 %v6276_v50, %v6275_v42  ;;  %v13777_v44 = vand.u32 3, %v6134_v15  ;;  %v6279_v55 = vshrl.u32 %v8720_v7, %v6264_v16  ;;  %7649 = vst.msk [vmem:[%s9134_s13 + $0x180] sm:$0xff] %vm266_vm1, %v6040_v30 }
 0x5e6   : > { %v6207_v61 = vshrl.u32 %v6206_v51, 30  ;;  %v13780_v20 = vshll.u32 %v6257_v6, 8  ;;  %v6125_v36 = vxor.u32 2147483648, %v6124_v28  ;;  %v6274_v38 = vor.u32 %v6273_v10, %v6272_v19 }
 0x5e7   : > { %v6278_v8 = vshll.u32 %v8719_v0, %v6263_v32  ;;  %v6353_v23 = vand.u32 2147483647, %v13685_v41  ;;  %vm6281_vm15 = vcmp.lt.s32.totalorder %v13755_v17, 1  ;;  %vm6284_vm12 = vcmp.lt.s32.totalorder %v13755_v17, 4 }
 0x5e8   : > { %v6208_v13 = vshll.u32 %v6207_v61, 30  ;;  %v6231_v29 = vsub.s32 4, %v6207_v61  ;;  %v6126_v15 = vsel %vm6043_vm6, %v6125_v36, %v6124_v28  ;;  %v6289_v6 = vsel %vm6281_vm15, %v6268_v47, %v6271_v45 }
 0x5e9   : > { %v6280_v52 = vor.u32 %v6279_v55, %v6278_v8  ;;  %v6290_v53 = vsel %vm6284_vm12, %v6277_v5, 920167782  ;;  %v6129_v32 = vsel %vm13713_vm7, %v13446_v59, %v6126_v15  ;;  %v6265_v34 = vshrl.u32 %v8715_v54, %v6264_v16 }
 0x5ea   : > { %v13797_v63 = vsub.s32 %v6205_v1, %v6208_v13  ;;  %vm6283_vm3 = vcmp.lt.s32.totalorder %v13755_v17, 3  ;;  %8613 = vcosq.f32 %v6129_v32  ;;  %vm6282_vm6 = vcmp.lt.s32.totalorder %v13755_v17, 2 }
 0x5eb   : > { %v6286_v4 = vsel %vm6284_vm12, %v6274_v38, 2102212464  ;;  %v6291_v3 = vsel %vm6283_vm3, %v6274_v38, %v6290_v53  ;;  %8615 = vsinq.f32 %v6129_v32  ;;  %v6232_v39 = vsel %vm6147_vm5, %v6231_v29, %v6207_v61 }
 0x5ec   : > { %v6211_v43 = vsub.s32 0, %v13797_v63  ;;  %v6292_v16 = vsel %vm6282_vm6, %v6289_v6, %v6291_v3  ;;  %v6293_v57 = vsel %vm6281_vm15, %v6271_v45, %v6274_v38  ;;  %v6294_v42 = vsel %vm6284_vm12, %v6280_v52, 1326507024 }
 0x5ed   : > { %v13819_v18 = vmul.u32.u64.low %v13780_v20, %v6292_v16  ;;  %v13820_v12 = vmul.u32.u64.high %v13780_v20, %v6292_v16, %v13819_v18  ;;  %v6285_v9 = vsel %vm6281_vm15, %v6265_v34, %v6268_v47  ;;  %v6287_v33 = vsel %vm6283_vm3, %v6271_v45, %v6286_v4 }
 0x5ee   : > { %v8036_v25 = vmin.u32 %v6211_v43, %v13797_v63  ;;  %v6295_v1 = vsel %vm6283_vm3, %v6277_v5, %v6294_v42  ;;  %vm13832_vm7 = vcmp.le.f32.partialorder %v6145_v31, 0.7853982  ;;  %v6356_v22 = vand.u32 2139095040, %v13685_v41 }
 0x5ef   : > { %v6296_v40 = vsel %vm6282_vm6, %v6293_v57, %v6295_v1  ;;  %v679_v56 = vmul.f32 %v7798_v49, %v8798_v11  ;;  %v13842_v10 = vadd.f32 %v13672_v37, %v13682_v24  ;;  %v6234_v26 = vsel %vm13832_vm7, 0, %v6232_v39 }
 0x5f0   : > { %v6213_v50 = vclz %v8036_v25  ;;  %v6288_v31 = vsel %vm6282_vm6, %v6285_v9, %v6287_v33  ;;  %v13849_v51 = vmul.u32.u64.low %v13780_v20, %v6296_v40  ;;  %v13850_v47 = vmul.u32.u64.high %v13780_v20, %v6296_v40, %v13849_v51 }
 0x5f1   : > { %v6357_v19 = vshrl.u32 %v6356_v22, 23  ;;  %vm6133_vm8 = vweird.f32 %v13446_v59  ;;  %vm6136_vm9 = vcmp.lt.s32.totalorder %v13777_v44, 2  ;;  %v6360_v37 = vand.u32 8388607, %v6353_v23 }
 0x5f2   : > { %v8037_v30 = vadd.s32 4294967294, %v6213_v50  ;;  %vm6137_vm10 = vcmp.eq.s32.totalorder %v13777_v44, 0  ;;  %vm6140_vm13 = vcmp.eq.s32.totalorder %v13777_v44, 2  ;;  %v6307_v24 = vadd.s32 1, %v13820_v12 }
 0x5f3   : > { %v8043_v17 = vadd.s32 4294967169, %v6357_v19  ;;  %v6201_v28 = vadd.s32 %v13738_v46, %v13748_v48  ;;  %v6238_v45 = vadd.s32 3, %v6234_v26  ;;  %v6304_v5 = vmul.u32 %v13780_v20, %v6288_v31  ;;  %v13870_v20 = vld [vmem:[%s15038_s3 + $0x1b] ss:$0 sm:$0xff] }
 0x5f4   : > { %vm8038_vm11 = vcmp.lt.s32.totalorder %v8037_v30, 0  ;;  %v8614_v61 = vpop.eup %8613  ;;  %vm6306_vm0 = vc.u32 %v13850_v47, %v13819_v18  ;;  %v6460_v38 = vand.u32 2139095040, %v13842_v10  ;;  %v6361_v52 = vor.u32 8388608, %v6360_v37 }
 0x5f5   : > { %v6216_v55 = vsel %vm8038_vm11, 0, %v8037_v30  ;;  %v6363_v36 = vadd.s32 1, %v8043_v17  ;;  %v8616_v8 = vpop.eup %8615  ;;  %v6141_v13 = vxor.u32 2147483648, %v8614_v61  ;;  %v6308_v48 = vsel %vm6306_vm0, %v6307_v24, %v13820_v12 }
 0x5f6   : > { %v6217_v29 = vsub.s32 32, %v6216_v55  ;;  %v6221_v15 = vsub.s32 4294967266, %v6216_v55  ;;  %v6138_v6 = vxor.u32 2147483648, %v8616_v8  ;;  %v6218_v46 = vshll.u32 %v13797_v63, %v6216_v55 }
 0x5f7   : > { %vm6364_vm14 = vcmp.gt.s32.totalorder %v6363_v36, 0  ;;  %v6142_v53 = vsel %vm6140_vm13, %v6141_v13, %v8616_v8  ;;  %v6309_v4 = vadd.s32 %v6308_v48, %v6304_v5  ;;  %v6457_v63 = vand.u32 2147483647, %v13842_v10 }
 0x5f8   : > { %v6219_v32 = vshrl.u32 %v6201_v28, %v6217_v29  ;;  %v6222_v34 = vadd.s32 127, %v6221_v15  ;;  %v6139_v3 = vsel %vm6137_vm10, %v8614_v61, %v6138_v6  ;;  %v6365_v43 = vsel %vm6364_vm14, %v6363_v36, 0 }
 0x5f9   : > { %v6461_v39 = vshrl.u32 %v6460_v38, 23  ;;  %v6143_v16 = vsel %vm6136_vm9, %v6139_v3, %v6142_v53  ;;  %v6310_v12 = vadd.s32 536870912, %v6309_v4  ;;  %v13880_v25 = vmul.f32 %v7798_v49, %v8800_v14 }
 0x5fa   : > { %v6220_v57 = vor.u32 %v6219_v32, %v6218_v46  ;;  %v6223_v42 = vshll.u32 %v6222_v34, 23  ;;  %v13883_v9 = vadd.f32 %v13870_v20, %v679_v56  ;;  %v6144_v33 = vsel %vm6133_vm8, nan, %v6143_v16 }
 0x5fb   : > { %v6367_v1 = vand.u32 31, %v6365_v43  ;;  %v13887_v22 = vand.u32 3, %v6238_v45  ;;  %vm6251_vm2 = vcmp.lt.s32.totalorder %v13644_v27, 0  ;;  %v6311_v44 = vshrl.u32 %v6310_v12, 30  ;;  %7650 = vst.msk [vmem:[%s9134_s13 + $0x188] sm:$0xff] %vm266_vm1, %v6144_v33 }
 0x5fc   : > { %v6224_v40 = vor.u32 4788187, %v6223_v42  ;;  %v13892_v26 = vshll.u32 %v6361_v52, 8  ;;  %v8047_v49 = vadd.s32 4294967169, %v6461_v39  ;;  %v13896_v56 = vand.u32 8388607, %v6457_v63 }
 0x5fd   : > { %v6368_v50 = vsub.s32 32, %v6367_v1  ;;  %v6227_v59 = vcvt.s32.f32 %v6220_v57  ;;  %v13900_v51 = vadd.s32 %v13819_v18, %v13850_v47  ;;  %v6312_v19 = vshll.u32 %v6311_v44, 30 }
 0x5fe   : > { %v6225_v31 = vand.u32 2147483647, %v6224_v40  ;;  %v6366_v30 = vshrl.u32 %v6365_v43, 5  ;;  %v6370_v5 = vshll.u32 %v8715_v54, %v6367_v1  ;;  %vm13911_vm4 = vcmp.le.f32.partialorder %v6249_v35, 0.7853982 }
 0x5ff   : > { %v6371_v37 = vshrl.u32 %v8716_v58, %v6368_v50  ;;  %v6374_v24 = vshrl.u32 %v8717_v60, %v6368_v50  ;;  %v6377_v17 = vshrl.u32 %v8718_v62, %v6368_v50  ;;  %v13905_v45 = vsub.s32 %v6309_v4, %v6312_v19 }
 0x600   : > { %v6228_v28 = vmul.f32 %v6227_v59, %v6225_v31  ;;  %v6380_v61 = vshrl.u32 %v8719_v0, %v6368_v50  ;;  %v6335_v47 = vsub.s32 4, %v6311_v44  ;;  %v6373_v55 = vshll.u32 %v8716_v58, %v6367_v1 }
 0x601   : > { %v6376_v36 = vshll.u32 %v8717_v60, %v6367_v1  ;;  %v6467_v38 = vadd.s32 1, %v8047_v49  ;;  %v6315_v13 = vsub.s32 0, %v13905_v45  ;;  %v6372_v29 = vor.u32 %v6371_v37, %v6370_v5 }
 0x602   : > { %v6229_v8 = vxor.u32 2147483648, %v6228_v28  ;;  %v6379_v15 = vshll.u32 %v8718_v62, %v6367_v1  ;;  %v6375_v52 = vor.u32 %v6374_v24, %v6373_v55  ;;  %v6382_v46 = vshll.u32 %v8719_v0, %v6367_v1 }
 0x603   : > { %v6378_v6 = vor.u32 %v6377_v17, %v6376_v36  ;;  %v6383_v35 = vshrl.u32 %v8720_v7, %v6368_v50  ;;  %v8040_v53 = vmin.u32 %v6315_v13, %v13905_v45  ;;  %v6369_v32 = vshrl.u32 %v8715_v54, %v6368_v50 }
 0x604   : > { %v6230_v48 = vsel %vm6147_vm5, %v6229_v8, %v6228_v28  ;;  %v6381_v34 = vor.u32 %v6380_v61, %v6379_v15  ;;  %v6336_v3 = vsel %vm6251_vm2, %v6335_v47, %v6311_v44  ;;  %vm6385_vm15 = vcmp.lt.s32.totalorder %v6366_v30, 1 }
 0x605   : > { %v6233_v4 = vsel %vm13832_vm7, %v13487_v21, %v6230_v48  ;;  %v6384_v43 = vor.u32 %v6383_v35, %v6382_v46  ;;  %v6317_v39 = vclz %v8040_v53  ;;  %vm6386_vm12 = vcmp.lt.s32.totalorder %v6366_v30, 2 }
 0x606   : > { %8617 = vcosq.f32 %v6233_v4  ;;  %vm6388_vm3 = vcmp.lt.s32.totalorder %v6366_v30, 4  ;;  %vm6387_vm5 = vcmp.lt.s32.totalorder %v6366_v30, 3  ;;  %v6393_v57 = vsel %vm6385_vm15, %v6372_v29, %v6375_v52 }
 0x607   : > { %8619 = vsinq.f32 %v6233_v4  ;;  %v6390_v16 = vsel %vm6388_vm3, %v6378_v6, 2102212464  ;;  %v8041_v42 = vadd.s32 4294967294, %v6317_v39  ;;  %v6389_v12 = vsel %vm6385_vm15, %v6369_v32, %v6372_v29 }
 0x608   : > { %v6394_v33 = vsel %vm6388_vm3, %v6381_v34, 920167782  ;;  %v6397_v1 = vsel %vm6385_vm15, %v6375_v52, %v6378_v6  ;;  %v6391_v40 = vsel %vm6387_vm5, %v6375_v52, %v6390_v16  ;;  %v6398_v50 = vsel %vm6388_vm3, %v6384_v43, 1326507024 }
 0x609   : > { %v6395_v2 = vsel %vm6387_vm5, %v6378_v6, %v6394_v33  ;;  %vm6468_vm6 = vcmp.gt.s32.totalorder %v6467_v38, 0  ;;  %vm8042_vm7 = vcmp.lt.s32.totalorder %v8041_v42, 0  ;;  %v6338_v44 = vsel %vm13911_vm4, 0, %v6336_v3 }
 0x60a   : > { %v6396_v49 = vsel %vm6386_vm12, %v6393_v57, %v6395_v2  ;;  %v6399_v31 = vsel %vm6387_vm5, %v6381_v34, %v6398_v50  ;;  %vm6241_vm8 = vcmp.eq.s32.totalorder %v13887_v22, 0  ;;  %v6320_v59 = vsel %vm8042_vm7, 0, %v8041_v42 }
 0x60b   : > { %v6400_v19 = vsel %vm6386_vm12, %v6397_v1, %v6399_v31  ;;  %v13936_v37 = vmul.u32.u64.low %v13892_v26, %v6396_v49  ;;  %v13937_v24 = vmul.u32.u64.high %v13892_v26, %v6396_v49, %v13936_v37  ;;  %vm6240_vm9 = vcmp.lt.s32.totalorder %v13887_v22, 2 }
 0x60c   : > { %v6321_v17 = vsub.s32 32, %v6320_v59  ;;  %v6325_v28 = vsub.s32 4294967266, %v6320_v59  ;;  %v6392_v5 = vsel %vm6386_vm12, %v6389_v12, %v6391_v40  ;;  %v6469_v61 = vsel %vm6468_vm6, %v6467_v38, 0 }
 0x60d   : > { %vm6237_vm10 = vweird.f32 %v13487_v21  ;;  %vm6244_vm13 = vcmp.eq.s32.totalorder %v13887_v22, 2  ;;  %v13945_v47 = vmul.u32.u64.low %v13892_v26, %v6400_v19  ;;  %v13946_v55 = vmul.u32.u64.high %v13892_v26, %v6400_v19, %v13945_v47 }
 0x60e   : > { %v6471_v36 = vand.u32 31, %v6469_v61  ;;  %v6322_v8 = vshll.u32 %v13905_v45, %v6320_v59  ;;  %v6323_v13 = vshrl.u32 %v13900_v51, %v6321_v17  ;;  %v6326_v29 = vadd.s32 127, %v6325_v28 }
 0x60f   : > { %v6465_v15 = vor.u32 8388608, %v13896_v56  ;;  %v6342_v52 = vadd.s32 3, %v6338_v44  ;;  %v6408_v30 = vmul.u32 %v13892_v26, %v6392_v5  ;;  %v6411_v38 = vadd.s32 1, %v13937_v24 }
 0x610   : > { %v6472_v6 = vsub.s32 32, %v6471_v36  ;;  %v8618_v46 = vpop.eup %8617  ;;  %v6324_v35 = vor.u32 %v6323_v13, %v6322_v8  ;;  %v6327_v48 = vshll.u32 %v6326_v29, 23  ;;  %v13953_v53 = vshrl.u32 %v6469_v61, 5 }
 0x611   : > { %v6474_v32 = vshll.u32 %v8715_v54, %v6471_v36  ;;  %v8620_v34 = vpop.eup %8619  ;;  %v6245_v45 = vxor.u32 2147483648, %v8618_v46  ;;  %vm6410_vm11 = vc.u32 %v13946_v55, %v13936_v37  ;;  %v6477_v56 = vshll.u32 %v8716_v58, %v6471_v36 }
 0x612   : > { %v6483_v51 = vshll.u32 %v8718_v62, %v6471_v36  ;;  %v6242_v26 = vxor.u32 2147483648, %v8620_v34  ;;  %v6328_v4 = vor.u32 4788187, %v6327_v48  ;;  %v6331_v3 = vcvt.s32.f32 %v6324_v35 }
 0x613   : > { %v6412_v43 = vsel %vm6410_vm11, %v6411_v38, %v13937_v24  ;;  %v6246_v39 = vsel %vm6244_vm13, %v6245_v45, %v8620_v34  ;;  %v6475_v57 = vshrl.u32 %v8716_v58, %v6472_v6  ;;  %v6478_v42 = vshrl.u32 %v8717_v60, %v6472_v6  ;;  %v7799_v45 = vld [vmem:[%s15037_s2 + $0x1c] ss:$0 sm:$0xff] }
 0x614   : > { %v6413_v16 = vadd.s32 %v6412_v43, %v6408_v30  ;;  %v6243_v12 = vsel %vm6241_vm8, %v8618_v46, %v6242_v26  ;;  %v6329_v33 = vand.u32 2147483647, %v6328_v4  ;;  %vm6355_vm0 = vcmp.lt.s32.totalorder %v13685_v41, 0 }
 0x615   : > { %v6481_v1 = vshrl.u32 %v8718_v62, %v6472_v6  ;;  %v6484_v40 = vshrl.u32 %v8719_v0, %v6472_v6  ;;  %v6247_v2 = vsel %vm6240_vm9, %v6243_v12, %v6246_v39  ;;  %v6476_v44 = vor.u32 %v6475_v57, %v6474_v32 }
 0x616   : > { %v6414_v50 = vadd.s32 536870912, %v6413_v16  ;;  %v6480_v49 = vshll.u32 %v8717_v60, %v6471_v36  ;;  %v6248_v31 = vsel %vm6237_vm10, nan, %v6247_v2  ;;  %v6332_v59 = vmul.f32 %v6331_v3, %v6329_v33 }
 0x617   : > { %v6479_v19 = vor.u32 %v6478_v42, %v6477_v56  ;;  %v6485_v24 = vor.u32 %v6484_v40, %v6483_v51  ;;  %v13975_v17 = vand.u32 3, %v6342_v52  ;;  %v6487_v5 = vshrl.u32 %v8720_v7, %v6472_v6  ;;  %7651 = vst.msk [vmem:[%s9134_s13 + $0x190] sm:$0xff] %vm266_vm1, %v6248_v31 }
 0x618   : > { %v6415_v28 = vshrl.u32 %v6414_v50, 30  ;;  %v13978_v61 = vshll.u32 %v6465_v15, 8  ;;  %v6333_v22 = vxor.u32 2147483648, %v6332_v59  ;;  %v6482_v47 = vor.u32 %v6481_v1, %v6480_v49 }
 0x619   : > { %v6486_v8 = vshll.u32 %v8719_v0, %v6471_v36  ;;  %v6561_v13 = vand.u32 2147483647, %v13883_v9  ;;  %vm6489_vm14 = vcmp.lt.s32.totalorder %v13953_v53, 1  ;;  %vm6492_vm15 = vcmp.lt.s32.totalorder %v13953_v53, 4 }
 0x61a   : > { %v6416_v21 = vshll.u32 %v6415_v28, 30  ;;  %v6439_v29 = vsub.s32 4, %v6415_v28  ;;  %v6334_v52 = vsel %vm6251_vm2, %v6333_v22, %v6332_v59  ;;  %v6497_v15 = vsel %vm6489_vm14, %v6476_v44, %v6479_v19 }
 0x61b   : > { %v6488_v30 = vor.u32 %v6487_v5, %v6486_v8  ;;  %v6498_v38 = vsel %vm6492_vm15, %v6485_v24, 920167782  ;;  %v6337_v36 = vsel %vm13911_vm4, %v13644_v27, %v6334_v52  ;;  %v6473_v35 = vshrl.u32 %v8715_v54, %v6472_v6 }
 0x61c   : > { %v13995_v46 = vsub.s32 %v6413_v16, %v6416_v21  ;;  %vm6491_vm12 = vcmp.lt.s32.totalorder %v13953_v53, 3  ;;  %8621 = vcosq.f32 %v6337_v36  ;;  %vm6490_vm2 = vcmp.lt.s32.totalorder %v13953_v53, 2 }
 0x61d   : > { %v6494_v48 = vsel %vm6492_vm15, %v6482_v47, 2102212464  ;;  %v6499_v32 = vsel %vm6491_vm12, %v6482_v47, %v6498_v38  ;;  %8623 = vsinq.f32 %v6337_v36  ;;  %v6440_v18 = vsel %vm6355_vm0, %v6439_v29, %v6415_v28 }
 0x61e   : > { %v6419_v34 = vsub.s32 0, %v13995_v46  ;;  %v6500_v6 = vsel %vm6490_vm2, %v6497_v15, %v6499_v32  ;;  %v6501_v56 = vsel %vm6489_vm14, %v6479_v19, %v6482_v47  ;;  %v6502_v51 = vsel %vm6492_vm15, %v6488_v30, 1326507024 }
 0x61f   : > { %v14017_v26 = vmul.u32.u64.low %v13978_v61, %v6500_v6  ;;  %v14018_v4 = vmul.u32.u64.high %v13978_v61, %v6500_v6, %v14017_v26  ;;  %v6493_v43 = vsel %vm6489_vm14, %v6473_v35, %v6476_v44  ;;  %v6495_v39 = vsel %vm6491_vm12, %v6479_v19, %v6494_v48 }
 0x620   : > { %v8044_v3 = vmin.u32 %v6419_v34, %v13995_v46  ;;  %v6503_v16 = vsel %vm6491_vm12, %v6485_v24, %v6502_v51  ;;  %vm14030_vm4 = vcmp.le.f32.partialorder %v6353_v23, 0.7853982  ;;  %v6564_v12 = vand.u32 2139095040, %v13883_v9 }
 0x621   : > { %v6504_v42 = vsel %vm6490_vm2, %v6501_v56, %v6503_v16  ;;  %v681_v33 = vmul.f32 %v7799_v45, %v8798_v11  ;;  %v14040_v1 = vadd.f32 %v13870_v20, %v13880_v25  ;;  %v6442_v2 = vsel %vm14030_vm4, 0, %v6440_v18 }
 0x622   : > { %v6421_v40 = vclz %v8044_v3  ;;  %v6496_v23 = vsel %vm6490_vm2, %v6493_v43, %v6495_v39  ;;  %v14047_v50 = vmul.u32.u64.low %v13978_v61, %v6504_v42  ;;  %v14048_v44 = vmul.u32.u64.high %v13978_v61, %v6504_v42, %v14047_v50 }
 0x623   : > { %v6565_v49 = vshrl.u32 %v6564_v12, 23  ;;  %vm6341_vm3 = vweird.f32 %v13644_v27  ;;  %vm6344_vm5 = vcmp.lt.s32.totalorder %v13975_v17, 2  ;;  %v6568_v20 = vand.u32 8388607, %v6561_v13 }
 0x624   : > { %v8045_v31 = vadd.s32 4294967294, %v6421_v40  ;;  %vm6345_vm6 = vcmp.eq.s32.totalorder %v13975_v17, 0  ;;  %vm6348_vm7 = vcmp.eq.s32.totalorder %v13975_v17, 2  ;;  %v6515_v25 = vadd.s32 1, %v14018_v4 }
 0x625   : > { %v8051_v53 = vadd.s32 4294967169, %v6565_v49  ;;  %v6409_v59 = vadd.s32 %v13936_v37, %v13946_v55  ;;  %v6446_v19 = vadd.s32 3, %v6442_v2  ;;  %v6512_v24 = vmul.u32 %v13978_v61, %v6496_v23  ;;  %v14068_v61 = vld [vmem:[%s15038_s3 + $0x1c] ss:$0 sm:$0xff] }
 0x626   : > { %vm8046_vm8 = vcmp.lt.s32.totalorder %v8045_v31, 0  ;;  %v8622_v28 = vpop.eup %8621  ;;  %vm6514_vm9 = vc.u32 %v14048_v44, %v14017_v26  ;;  %v6668_v47 = vand.u32 2139095040, %v14040_v1  ;;  %v6569_v30 = vor.u32 8388608, %v6568_v20 }
 0x627   : > { %v6424_v5 = vsel %vm8046_vm8, 0, %v8045_v31  ;;  %v6571_v22 = vadd.s32 1, %v8051_v53  ;;  %v8624_v8 = vpop.eup %8623  ;;  %v6349_v21 = vxor.u32 2147483648, %v8622_v28  ;;  %v6516_v55 = vsel %vm6514_vm9, %v6515_v25, %v14018_v4 }
 0x628   : > { %v6425_v29 = vsub.s32 32, %v6424_v5  ;;  %v6429_v52 = vsub.s32 4294967266, %v6424_v5  ;;  %v6346_v15 = vxor.u32 2147483648, %v8624_v8  ;;  %v6426_v37 = vshll.u32 %v13995_v46, %v6424_v5 }
 0x629   : > { %vm6572_vm10 = vcmp.gt.s32.totalorder %v6571_v22, 0  ;;  %v6350_v38 = vsel %vm6348_vm7, %v6349_v21, %v8624_v8  ;;  %v6517_v48 = vadd.s32 %v6516_v55, %v6512_v24  ;;  %v6665_v46 = vand.u32 2147483647, %v14040_v1 }
 0x62a   : > { %v6427_v36 = vshrl.u32 %v6409_v59, %v6425_v29  ;;  %v6430_v35 = vadd.s32 127, %v6429_v52  ;;  %v6347_v32 = vsel %vm6345_vm6, %v8622_v28, %v6346_v15  ;;  %v6573_v34 = vsel %vm6572_vm10, %v6571_v22, 0 }
 0x62b   : > { %v6669_v18 = vshrl.u32 %v6668_v47, 23  ;;  %v6351_v6 = vsel %vm6344_vm5, %v6347_v32, %v6350_v38  ;;  %v6518_v4 = vadd.s32 536870912, %v6517_v48  ;;  %v14078_v3 = vmul.f32 %v7799_v45, %v8800_v14 }
 0x62c   : > { %v6428_v56 = vor.u32 %v6427_v36, %v6426_v37  ;;  %v6431_v51 = vshll.u32 %v6430_v35, 23  ;;  %v14081_v43 = vadd.f32 %v14068_v61, %v681_v33  ;;  %v6352_v39 = vsel %vm6341_vm3, nan, %v6351_v6 }
 0x62d   : > { %v6575_v16 = vand.u32 31, %v6573_v34  ;;  %v14085_v12 = vand.u32 3, %v6446_v19  ;;  %vm6459_vm13 = vcmp.lt.s32.totalorder %v13842_v10, 0  ;;  %v6519_v17 = vshrl.u32 %v6518_v4, 30  ;;  %7652 = vst.msk [vmem:[%s9134_s13 + $0x198] sm:$0xff] %vm266_vm1, %v6352_v39 }
 0x62e   : > { %v6432_v42 = vor.u32 4788187, %v6431_v51  ;;  %v14090_v2 = vshll.u32 %v6569_v30, 8  ;;  %v8055_v45 = vadd.s32 4294967169, %v6669_v18  ;;  %v14094_v33 = vand.u32 8388607, %v6665_v46 }
 0x62f   : > { %v6576_v40 = vsub.s32 32, %v6575_v16  ;;  %v6435_v27 = vcvt.s32.f32 %v6428_v56  ;;  %v14098_v50 = vadd.s32 %v14017_v26, %v14048_v44  ;;  %v6520_v49 = vshll.u32 %v6519_v17, 30 }
 0x630   : > { %v6433_v23 = vand.u32 2147483647, %v6432_v42  ;;  %v6574_v31 = vshrl.u32 %v6573_v34, 5  ;;  %v6578_v24 = vshll.u32 %v8715_v54, %v6575_v16  ;;  %vm14109_vm11 = vcmp.le.f32.partialorder %v6457_v63, 0.7853982 }
 0x631   : > { %v6579_v20 = vshrl.u32 %v8716_v58, %v6576_v40  ;;  %v6582_v25 = vshrl.u32 %v8717_v60, %v6576_v40  ;;  %v6585_v53 = vshrl.u32 %v8718_v62, %v6576_v40  ;;  %v14103_v19 = vsub.s32 %v6517_v48, %v6520_v49 }
 0x632   : > { %v6436_v59 = vmul.f32 %v6435_v27, %v6433_v23  ;;  %v6588_v28 = vshrl.u32 %v8719_v0, %v6576_v40  ;;  %v6543_v44 = vsub.s32 4, %v6519_v17  ;;  %v6581_v5 = vshll.u32 %v8716_v58, %v6575_v16 }
 0x633   : > { %v6584_v22 = vshll.u32 %v8717_v60, %v6575_v16  ;;  %v6675_v47 = vadd.s32 1, %v8055_v45  ;;  %v6523_v21 = vsub.s32 0, %v14103_v19  ;;  %v6580_v29 = vor.u32 %v6579_v20, %v6578_v24 }
 0x634   : > { %v6437_v8 = vxor.u32 2147483648, %v6436_v59  ;;  %v6587_v52 = vshll.u32 %v8718_v62, %v6575_v16  ;;  %v6583_v30 = vor.u32 %v6582_v25, %v6581_v5  ;;  %v6590_v37 = vshll.u32 %v8719_v0, %v6575_v16 }
 0x635   : > { %v6586_v15 = vor.u32 %v6585_v53, %v6584_v22  ;;  %v6591_v63 = vshrl.u32 %v8720_v7, %v6576_v40  ;;  %v8048_v38 = vmin.u32 %v6523_v21, %v14103_v19  ;;  %v6577_v36 = vshrl.u32 %v8715_v54, %v6576_v40 }
 0x636   : > { %v6438_v55 = vsel %vm6355_vm0, %v6437_v8, %v6436_v59  ;;  %v6589_v35 = vor.u32 %v6588_v28, %v6587_v52  ;;  %v6544_v32 = vsel %vm6459_vm13, %v6543_v44, %v6519_v17  ;;  %vm6593_vm14 = vcmp.lt.s32.totalorder %v6574_v31, 1 }
 0x637   : > { %v6441_v48 = vsel %vm14030_vm4, %v13685_v41, %v6438_v55  ;;  %v6592_v34 = vor.u32 %v6591_v63, %v6590_v37  ;;  %v6525_v18 = vclz %v8048_v38  ;;  %vm6594_vm15 = vcmp.lt.s32.totalorder %v6574_v31, 2 }
 0x638   : > { %8625 = vcosq.f32 %v6441_v48  ;;  %vm6596_vm12 = vcmp.lt.s32.totalorder %v6574_v31, 4  ;;  %vm6595_vm0 = vcmp.lt.s32.totalorder %v6574_v31, 3  ;;  %v6601_v56 = vsel %vm6593_vm14, %v6580_v29, %v6583_v30 }
 0x639   : > { %8627 = vsinq.f32 %v6441_v48  ;;  %v6598_v6 = vsel %vm6596_vm12, %v6586_v15, 2102212464  ;;  %v8049_v51 = vadd.s32 4294967294, %v6525_v18  ;;  %v6597_v4 = vsel %vm6593_vm14, %v6577_v36, %v6580_v29 }
 0x63a   : > { %v6602_v39 = vsel %vm6596_vm12, %v6589_v35, 920167782  ;;  %v6605_v16 = vsel %vm6593_vm14, %v6583_v30, %v6586_v15  ;;  %v6599_v42 = vsel %vm6595_vm0, %v6583_v30, %v6598_v6  ;;  %v6606_v40 = vsel %vm6596_vm12, %v6592_v34, 1326507024 }
 0x63b   : > { %v6603_v57 = vsel %vm6595_vm0, %v6586_v15, %v6602_v39  ;;  %vm6676_vm2 = vcmp.gt.s32.totalorder %v6675_v47, 0  ;;  %vm8050_vm4 = vcmp.lt.s32.totalorder %v8049_v51, 0  ;;  %v6546_v17 = vsel %vm14109_vm11, 0, %v6544_v32 }
 0x63c   : > { %v6604_v45 = vsel %vm6594_vm15, %v6601_v56, %v6603_v57  ;;  %v6607_v23 = vsel %vm6595_vm0, %v6589_v35, %v6606_v40  ;;  %vm6449_vm3 = vcmp.eq.s32.totalorder %v14085_v12, 0  ;;  %v6528_v27 = vsel %vm8050_vm4, 0, %v8049_v51 }
 0x63d   : > { %v6608_v49 = vsel %vm6594_vm15, %v6605_v16, %v6607_v23  ;;  %v14134_v20 = vmul.u32.u64.low %v14090_v2, %v6604_v45  ;;  %v14135_v25 = vmul.u32.u64.high %v14090_v2, %v6604_v45, %v14134_v20  ;;  %vm6448_vm5 = vcmp.lt.s32.totalorder %v14085_v12, 2 }
 0x63e   : > { %v6529_v53 = vsub.s32 32, %v6528_v27  ;;  %v6533_v59 = vsub.s32 4294967266, %v6528_v27  ;;  %v6600_v24 = vsel %vm6594_vm15, %v6597_v4, %v6599_v42  ;;  %v6677_v28 = vsel %vm6676_vm2, %v6675_v47, 0 }
 0x63f   : > { %vm6445_vm6 = vweird.f32 %v13685_v41  ;;  %vm6452_vm7 = vcmp.eq.s32.totalorder %v14085_v12, 2  ;;  %v14143_v44 = vmul.u32.u64.low %v14090_v2, %v6608_v49  ;;  %v14144_v5 = vmul.u32.u64.high %v14090_v2, %v6608_v49, %v14143_v44 }
 0x640   : > { %v6679_v22 = vand.u32 31, %v6677_v28  ;;  %v6530_v8 = vshll.u32 %v14103_v19, %v6528_v27  ;;  %v6531_v21 = vshrl.u32 %v14098_v50, %v6529_v53  ;;  %v6534_v29 = vadd.s32 127, %v6533_v59 }
 0x641   : > { %v6673_v52 = vor.u32 8388608, %v14094_v33  ;;  %v6550_v30 = vadd.s32 3, %v6546_v17  ;;  %v6616_v31 = vmul.u32 %v14090_v2, %v6600_v24  ;;  %v6619_v47 = vadd.s32 1, %v14135_v25 }
 0x642   : > { %v6680_v15 = vsub.s32 32, %v6679_v22  ;;  %v8626_v37 = vpop.eup %8625  ;;  %v6532_v63 = vor.u32 %v6531_v21, %v6530_v8  ;;  %v6535_v55 = vshll.u32 %v6534_v29, 23  ;;  %v14151_v38 = vshrl.u32 %v6677_v28, 5 }
 0x643   : > { %v6682_v36 = vshll.u32 %v8715_v54, %v6679_v22  ;;  %v8628_v35 = vpop.eup %8627  ;;  %v6453_v19 = vxor.u32 2147483648, %v8626_v37  ;;  %vm6618_vm8 = vc.u32 %v14144_v5, %v14134_v20  ;;  %v6685_v33 = vshll.u32 %v8716_v58, %v6679_v22 }
 0x644   : > { %v6691_v50 = vshll.u32 %v8718_v62, %v6679_v22  ;;  %v6450_v2 = vxor.u32 2147483648, %v8628_v35  ;;  %v6536_v48 = vor.u32 4788187, %v6535_v55  ;;  %v6539_v32 = vcvt.s32.f32 %v6532_v63 }
 0x645   : > { %v6620_v34 = vsel %vm6618_vm8, %v6619_v47, %v14135_v25  ;;  %v6454_v18 = vsel %vm6452_vm7, %v6453_v19, %v8628_v35  ;;  %v6683_v56 = vshrl.u32 %v8716_v58, %v6680_v15  ;;  %v6686_v51 = vshrl.u32 %v8717_v60, %v6680_v15  ;;  %v7800_v19 = vld [vmem:[%s15037_s2 + $0x1d] ss:$0 sm:$0xff] }
 0x646   : > { %v6621_v6 = vadd.s32 %v6620_v34, %v6616_v31  ;;  %v6451_v4 = vsel %vm6449_vm3, %v8626_v37, %v6450_v2  ;;  %v6537_v39 = vand.u32 2147483647, %v6536_v48  ;;  %vm6563_vm9 = vcmp.lt.s32.totalorder %v13883_v9, 0 }
 0x647   : > { %v6689_v16 = vshrl.u32 %v8718_v62, %v6680_v15  ;;  %v6692_v42 = vshrl.u32 %v8719_v0, %v6680_v15  ;;  %v6455_v57 = vsel %vm6448_vm5, %v6451_v4, %v6454_v18  ;;  %v6684_v17 = vor.u32 %v6683_v56, %v6682_v36 }
 0x648   : > { %v6622_v40 = vadd.s32 536870912, %v6621_v6  ;;  %v6688_v45 = vshll.u32 %v8717_v60, %v6679_v22  ;;  %v6456_v23 = vsel %vm6445_vm6, nan, %v6455_v57  ;;  %v6540_v27 = vmul.f32 %v6539_v32, %v6537_v39 }
 0x649   : > { %v6687_v49 = vor.u32 %v6686_v51, %v6685_v33  ;;  %v6693_v25 = vor.u32 %v6692_v42, %v6691_v50  ;;  %v14173_v53 = vand.u32 3, %v6550_v30  ;;  %v6695_v24 = vshrl.u32 %v8720_v7, %v6680_v15  ;;  %7653 = vst.msk [vmem:[%s9134_s13 + $0x1a0] sm:$0xff] %vm266_vm1, %v6456_v23 }
 0x64a   : > { %v6623_v59 = vshrl.u32 %v6622_v40, 30  ;;  %v14176_v28 = vshll.u32 %v6673_v52, 8  ;;  %v6541_v12 = vxor.u32 2147483648, %v6540_v27  ;;  %v6690_v44 = vor.u32 %v6689_v16, %v6688_v45 }
 0x64b   : > { %v6694_v8 = vshll.u32 %v8719_v0, %v6679_v22  ;;  %v6769_v21 = vand.u32 2147483647, %v14081_v43  ;;  %vm6697_vm10 = vcmp.lt.s32.totalorder %v14151_v38, 1  ;;  %vm6700_vm14 = vcmp.lt.s32.totalorder %v14151_v38, 4 }
 0x64c   : > { %v6624_v41 = vshll.u32 %v6623_v59, 30  ;;  %v6647_v29 = vsub.s32 4, %v6623_v59  ;;  %v6542_v30 = vsel %vm6459_vm13, %v6541_v12, %v6540_v27  ;;  %v6705_v52 = vsel %vm6697_vm10, %v6684_v17, %v6687_v49 }
 0x64d   : > { %v6696_v31 = vor.u32 %v6695_v24, %v6694_v8  ;;  %v6706_v47 = vsel %vm6700_vm14, %v6693_v25, 920167782  ;;  %v6545_v22 = vsel %vm14109_vm11, %v13842_v10, %v6542_v30  ;;  %v6681_v63 = vshrl.u32 %v8715_v54, %v6680_v15 }
 0x64e   : > { %v14193_v37 = vsub.s32 %v6621_v6, %v6624_v41  ;;  %vm6699_vm15 = vcmp.lt.s32.totalorder %v14151_v38, 3  ;;  %8629 = vcosq.f32 %v6545_v22  ;;  %vm6698_vm13 = vcmp.lt.s32.totalorder %v14151_v38, 2 }
 0x64f   : > { %v6702_v55 = vsel %vm6700_vm14, %v6690_v44, 2102212464  ;;  %v6707_v36 = vsel %vm6699_vm15, %v6690_v44, %v6706_v47  ;;  %8631 = vsinq.f32 %v6545_v22  ;;  %v6648_v26 = vsel %vm6563_vm9, %v6647_v29, %v6623_v59 }
 0x650   : > { %v6627_v35 = vsub.s32 0, %v14193_v37  ;;  %v6708_v15 = vsel %vm6698_vm13, %v6705_v52, %v6707_v36  ;;  %v6709_v33 = vsel %vm6697_vm10, %v6687_v49, %v6690_v44  ;;  %v6710_v50 = vsel %vm6700_vm14, %v6696_v31, 1326507024 }
 0x651   : > { %v14215_v2 = vmul.u32.u64.low %v14176_v28, %v6708_v15  ;;  %v14216_v48 = vmul.u32.u64.high %v14176_v28, %v6708_v15, %v14215_v2  ;;  %v6701_v34 = vsel %vm6697_vm10, %v6681_v63, %v6684_v17  ;;  %v6703_v18 = vsel %vm6699_vm15, %v6687_v49, %v6702_v55 }
 0x652   : > { %v8052_v32 = vmin.u32 %v6627_v35, %v14193_v37  ;;  %v6711_v6 = vsel %vm6699_vm15, %v6693_v25, %v6710_v50  ;;  %vm14228_vm11 = vcmp.le.f32.partialorder %v6561_v13, 0.7853982  ;;  %v6772_v4 = vand.u32 2139095040, %v14081_v43 }
 0x653   : > { %v6712_v51 = vsel %vm6698_vm13, %v6709_v33, %v6711_v6  ;;  %v683_v39 = vmul.f32 %v7800_v19, %v8798_v11  ;;  %v14238_v16 = vadd.f32 %v14068_v61, %v14078_v3  ;;  %v6650_v57 = vsel %vm14228_vm11, 0, %v6648_v26 }
 0x654   : > { %v6629_v42 = vclz %v8052_v32  ;;  %v6704_v13 = vsel %vm6698_vm13, %v6701_v34, %v6703_v18  ;;  %v14245_v40 = vmul.u32.u64.low %v14176_v28, %v6712_v51  ;;  %v14246_v17 = vmul.u32.u64.high %v14176_v28, %v6712_v51, %v14245_v40 }
 0x655   : > { %v6773_v45 = vshrl.u32 %v6772_v4, 23  ;;  %vm6549_vm12 = vweird.f32 %v13842_v10  ;;  %vm6552_vm0 = vcmp.lt.s32.totalorder %v14173_v53, 2  ;;  %v6776_v61 = vand.u32 8388607, %v6769_v21 }
 0x656   : > { %v8053_v23 = vadd.s32 4294967294, %v6629_v42  ;;  %vm6553_vm2 = vcmp.eq.s32.totalorder %v14173_v53, 0  ;;  %vm6556_vm4 = vcmp.eq.s32.totalorder %v14173_v53, 2  ;;  %v6723_v3 = vadd.s32 1, %v14216_v48 }
 0x657   : > { %v8059_v38 = vadd.s32 4294967169, %v6773_v45  ;;  %v6617_v27 = vadd.s32 %v14134_v20, %v14144_v5  ;;  %v6654_v49 = vadd.s32 3, %v6650_v57  ;;  %v6720_v25 = vmul.u32 %v14176_v28, %v6704_v13  ;;  %v14266_v28 = vld [vmem:[%s15038_s3 + $0x1d] ss:$0 sm:$0xff] }
 0x658   : > { %vm8054_vm3 = vcmp.lt.s32.totalorder %v8053_v23, 0  ;;  %v8630_v59 = vpop.eup %8629  ;;  %vm6722_vm5 = vc.u32 %v14246_v17, %v14215_v2  ;;  %v6876_v44 = vand.u32 2139095040, %v14238_v16  ;;  %v6777_v31 = vor.u32 8388608, %v6776_v61 }
 0x659   : > { %v6632_v24 = vsel %vm8054_vm3, 0, %v8053_v23  ;;  %v6779_v12 = vadd.s32 1, %v8059_v38  ;;  %v8632_v8 = vpop.eup %8631  ;;  %v6557_v41 = vxor.u32 2147483648, %v8630_v59  ;;  %v6724_v5 = vsel %vm6722_vm5, %v6723_v3, %v14216_v48 }
 0x65a   : > { %v6633_v29 = vsub.s32 32, %v6632_v24  ;;  %v6637_v30 = vsub.s32 4294967266, %v6632_v24  ;;  %v6554_v52 = vxor.u32 2147483648, %v8632_v8  ;;  %v6634_v20 = vshll.u32 %v14193_v37, %v6632_v24 }
 0x65b   : > { %vm6780_vm6 = vcmp.gt.s32.totalorder %v6779_v12, 0  ;;  %v6558_v47 = vsel %vm6556_vm4, %v6557_v41, %v8632_v8  ;;  %v6725_v55 = vadd.s32 %v6724_v5, %v6720_v25  ;;  %v6873_v37 = vand.u32 2147483647, %v14238_v16 }
 0x65c   : > { %v6635_v22 = vshrl.u32 %v6617_v27, %v6633_v29  ;;  %v6638_v63 = vadd.s32 127, %v6637_v30  ;;  %v6555_v36 = vsel %vm6553_vm2, %v8630_v59, %v6554_v52  ;;  %v6781_v35 = vsel %vm6780_vm6, %v6779_v12, 0 }
 0x65d   : > { %v6877_v26 = vshrl.u32 %v6876_v44, 23  ;;  %v6559_v15 = vsel %vm6552_vm0, %v6555_v36, %v6558_v47  ;;  %v6726_v48 = vadd.s32 536870912, %v6725_v55  ;;  %v14276_v32 = vmul.f32 %v7800_v19, %v8800_v14 }
 0x65e   : > { %v6636_v33 = vor.u32 %v6635_v22, %v6634_v20  ;;  %v6639_v50 = vshll.u32 %v6638_v63, 23  ;;  %v14279_v34 = vadd.f32 %v14266_v28, %v683_v39  ;;  %v6560_v18 = vsel %vm6549_vm12, nan, %v6559_v15 }
 0x65f   : > { %v6783_v6 = vand.u32 31, %v6781_v35  ;;  %v14283_v4 = vand.u32 3, %v6654_v49  ;;  %vm6667_vm7 = vcmp.lt.s32.totalorder %v14040_v1, 0  ;;  %v6727_v53 = vshrl.u32 %v6726_v48, 30  ;;  %7654 = vst.msk [vmem:[%s9134_s13 + $0x1a8] sm:$0xff] %vm266_vm1, %v6560_v18 }
 0x660   : > { %v6640_v51 = vor.u32 4788187, %v6639_v50  ;;  %v14288_v57 = vshll.u32 %v6777_v31, 8  ;;  %v8063_v19 = vadd.s32 4294967169, %v6877_v26  ;;  %v14292_v39 = vand.u32 8388607, %v6873_v37 }
 0x661   : > { %v6784_v42 = vsub.s32 32, %v6783_v6  ;;  %v6643_v10 = vcvt.s32.f32 %v6636_v33  ;;  %v14296_v40 = vadd.s32 %v14215_v2, %v14246_v17  ;;  %v6728_v45 = vshll.u32 %v6727_v53, 30 }
 0x662   : > { %v6641_v13 = vand.u32 2147483647, %v6640_v51  ;;  %v6782_v23 = vshrl.u32 %v6781_v35, 5  ;;  %v6786_v25 = vshll.u32 %v8715_v54, %v6783_v6  ;;  %vm14307_vm8 = vcmp.le.f32.partialorder %v6665_v46, 0.7853982 }
 0x663   : > { %v6787_v61 = vshrl.u32 %v8716_v58, %v6784_v42  ;;  %v6790_v3 = vshrl.u32 %v8717_v60, %v6784_v42  ;;  %v6793_v38 = vshrl.u32 %v8718_v62, %v6784_v42  ;;  %v14301_v49 = vsub.s32 %v6725_v55, %v6728_v45 }
 0x664   : > { %v6644_v27 = vmul.f32 %v6643_v10, %v6641_v13  ;;  %v6796_v59 = vshrl.u32 %v8719_v0, %v6784_v42  ;;  %v6751_v17 = vsub.s32 4, %v6727_v53  ;;  %v6789_v24 = vshll.u32 %v8716_v58, %v6783_v6 }
 0x665   : > { %v6792_v12 = vshll.u32 %v8717_v60, %v6783_v6  ;;  %v6883_v44 = vadd.s32 1, %v8063_v19  ;;  %v6731_v41 = vsub.s32 0, %v14301_v49  ;;  %v6788_v29 = vor.u32 %v6787_v61, %v6786_v25 }
 0x666   : > { %v6645_v8 = vxor.u32 2147483648, %v6644_v27  ;;  %v6795_v30 = vshll.u32 %v8718_v62, %v6783_v6  ;;  %v6791_v31 = vor.u32 %v6790_v3, %v6789_v24  ;;  %v6798_v20 = vshll.u32 %v8719_v0, %v6783_v6 }
 0x667   : > { %v6794_v52 = vor.u32 %v6793_v38, %v6792_v12  ;;  %v6799_v46 = vshrl.u32 %v8720_v7, %v6784_v42  ;;  %v8056_v47 = vmin.u32 %v6731_v41, %v14301_v49  ;;  %v6785_v22 = vshrl.u32 %v8715_v54, %v6784_v42 }
 0x668   : > { %v6646_v5 = vsel %vm6563_vm9, %v6645_v8, %v6644_v27  ;;  %v6797_v63 = vor.u32 %v6796_v59, %v6795_v30  ;;  %v6752_v36 = vsel %vm6667_vm7, %v6751_v17, %v6727_v53  ;;  %vm6801_vm10 = vcmp.lt.s32.totalorder %v6782_v23, 1 }
 0x669   : > { %v6649_v55 = vsel %vm14228_vm11, %v13883_v9, %v6646_v5  ;;  %v6800_v35 = vor.u32 %v6799_v46, %v6798_v20  ;;  %v6733_v26 = vclz %v8056_v47  ;;  %vm6802_vm14 = vcmp.lt.s32.totalorder %v6782_v23, 2 }
 0x66a   : > { %8633 = vcosq.f32 %v6649_v55  ;;  %vm6804_vm15 = vcmp.lt.s32.totalorder %v6782_v23, 4  ;;  %vm6803_vm9 = vcmp.lt.s32.totalorder %v6782_v23, 3  ;;  %v6809_v33 = vsel %vm6801_vm10, %v6788_v29, %v6791_v31 }
 0x66b   : > { %8635 = vsinq.f32 %v6649_v55  ;;  %v6806_v15 = vsel %vm6804_vm15, %v6794_v52, 2102212464  ;;  %v8057_v50 = vadd.s32 4294967294, %v6733_v26  ;;  %v6805_v48 = vsel %vm6801_vm10, %v6785_v22, %v6788_v29 }
 0x66c   : > { %v6810_v18 = vsel %vm6804_vm15, %v6797_v63, 920167782  ;;  %v6813_v6 = vsel %vm6801_vm10, %v6791_v31, %v6794_v52  ;;  %v6807_v51 = vsel %vm6803_vm9, %v6791_v31, %v6806_v15  ;;  %v6814_v42 = vsel %vm6804_vm15, %v6800_v35, 1326507024 }
 0x66d   : > { %v6811_v56 = vsel %vm6803_vm9, %v6794_v52, %v6810_v18  ;;  %vm6884_vm13 = vcmp.gt.s32.totalorder %v6883_v44, 0  ;;  %vm8058_vm11 = vcmp.lt.s32.totalorder %v8057_v50, 0  ;;  %v6754_v53 = vsel %vm14307_vm8, 0, %v6752_v36 }
 0x66e   : > { %v6812_v19 = vsel %vm6802_vm14, %v6809_v33, %v6811_v56  ;;  %v6815_v13 = vsel %vm6803_vm9, %v6797_v63, %v6814_v42  ;;  %vm6657_vm12 = vcmp.eq.s32.totalorder %v14283_v4, 0  ;;  %v6736_v10 = vsel %vm8058_vm11, 0, %v8057_v50 }
 0x66f   : > { %v6816_v45 = vsel %vm6802_vm14, %v6813_v6, %v6815_v13  ;;  %v14332_v61 = vmul.u32.u64.low %v14288_v57, %v6812_v19  ;;  %v14333_v3 = vmul.u32.u64.high %v14288_v57, %v6812_v19, %v14332_v61  ;;  %vm6656_vm0 = vcmp.lt.s32.totalorder %v14283_v4, 2 }
 0x670   : > { %v6737_v38 = vsub.s32 32, %v6736_v10  ;;  %v6741_v27 = vsub.s32 4294967266, %v6736_v10  ;;  %v6808_v25 = vsel %vm6802_vm14, %v6805_v48, %v6807_v51  ;;  %v6885_v59 = vsel %vm6884_vm13, %v6883_v44, 0 }
 0x671   : > { %vm6653_vm2 = vweird.f32 %v13883_v9  ;;  %vm6660_vm4 = vcmp.eq.s32.totalorder %v14283_v4, 2  ;;  %v14341_v17 = vmul.u32.u64.low %v14288_v57, %v6816_v45  ;;  %v14342_v24 = vmul.u32.u64.high %v14288_v57, %v6816_v45, %v14341_v17 }
 0x672   : > { %v6887_v12 = vand.u32 31, %v6885_v59  ;;  %v6738_v8 = vshll.u32 %v14301_v49, %v6736_v10  ;;  %v6739_v41 = vshrl.u32 %v14296_v40, %v6737_v38  ;;  %v6742_v29 = vadd.s32 127, %v6741_v27 }
 0x673   : > { %v6881_v30 = vor.u32 8388608, %v14292_v39  ;;  %v6758_v31 = vadd.s32 3, %v6754_v53  ;;  %v6824_v23 = vmul.u32 %v14288_v57, %v6808_v25  ;;  %v6827_v44 = vadd.s32 1, %v14333_v3 }
 0x674   : > { %v6888_v52 = vsub.s32 32, %v6887_v12  ;;  %v8634_v20 = vpop.eup %8633  ;;  %v6740_v46 = vor.u32 %v6739_v41, %v6738_v8  ;;  %v6743_v5 = vshll.u32 %v6742_v29, 23  ;;  %v14349_v47 = vshrl.u32 %v6885_v59, 5 }
 0x675   : > { %v6890_v22 = vshll.u32 %v8715_v54, %v6887_v12  ;;  %v8636_v63 = vpop.eup %8635  ;;  %v6661_v49 = vxor.u32 2147483648, %v8634_v20  ;;  %vm6826_vm3 = vc.u32 %v14342_v24, %v14332_v61  ;;  %v6893_v39 = vshll.u32 %v8716_v58, %v6887_v12 }
 0x676   : > { %v6899_v40 = vshll.u32 %v8718_v62, %v6887_v12  ;;  %v6658_v57 = vxor.u32 2147483648, %v8636_v63  ;;  %v6744_v55 = vor.u32 4788187, %v6743_v5  ;;  %v6747_v36 = vcvt.s32.f32 %v6740_v46 }
 0x677   : > { %v6828_v35 = vsel %vm6826_vm3, %v6827_v44, %v14333_v3  ;;  %v6662_v26 = vsel %vm6660_vm4, %v6661_v49, %v8636_v63  ;;  %v6891_v33 = vshrl.u32 %v8716_v58, %v6888_v52  ;;  %v6894_v50 = vshrl.u32 %v8717_v60, %v6888_v52  ;;  %v7801_v49 = vld [vmem:[%s15037_s2 + $0x1e] ss:$0 sm:$0xff] }
 0x678   : > { %v6829_v15 = vadd.s32 %v6828_v35, %v6824_v23  ;;  %v6659_v48 = vsel %vm6657_vm12, %v8634_v20, %v6658_v57  ;;  %v6745_v18 = vand.u32 2147483647, %v6744_v55  ;;  %vm6771_vm5 = vcmp.lt.s32.totalorder %v14081_v43, 0 }
 0x679   : > { %v6897_v6 = vshrl.u32 %v8718_v62, %v6888_v52  ;;  %v6900_v51 = vshrl.u32 %v8719_v0, %v6888_v52  ;;  %v6663_v56 = vsel %vm6656_vm0, %v6659_v48, %v6662_v26  ;;  %v6892_v53 = vor.u32 %v6891_v33, %v6890_v22 }
 0x67a   : > { %v6830_v42 = vadd.s32 536870912, %v6829_v15  ;;  %v6896_v19 = vshll.u32 %v8717_v60, %v6887_v12  ;;  %v6664_v13 = vsel %vm6653_vm2, nan, %v6663_v56  ;;  %v6748_v10 = vmul.f32 %v6747_v36, %v6745_v18 }
 0x67b   : > { %v6895_v45 = vor.u32 %v6894_v50, %v6893_v39  ;;  %v6901_v3 = vor.u32 %v6900_v51, %v6899_v40  ;;  %v14371_v38 = vand.u32 3, %v6758_v31  ;;  %v6903_v25 = vshrl.u32 %v8720_v7, %v6888_v52  ;;  %7655 = vst.msk [vmem:[%s9134_s13 + $0x1b0] sm:$0xff] %vm266_vm1, %v6664_v13 }
 0x67c   : > { %v6831_v27 = vshrl.u32 %v6830_v42, 30  ;;  %v14374_v59 = vshll.u32 %v6881_v30, 8  ;;  %v6749_v4 = vxor.u32 2147483648, %v6748_v10  ;;  %v6898_v17 = vor.u32 %v6897_v6, %v6896_v19 }
 0x67d   : > { %v6902_v8 = vshll.u32 %v8719_v0, %v6887_v12  ;;  %v6977_v41 = vand.u32 2147483647, %v14279_v34  ;;  %vm6905_vm6 = vcmp.lt.s32.totalorder %v14349_v47, 1  ;;  %vm6908_vm10 = vcmp.lt.s32.totalorder %v14349_v47, 4 }
 0x67e   : > { %v6832_v9 = vshll.u32 %v6831_v27, 30  ;;  %v6855_v29 = vsub.s32 4, %v6831_v27  ;;  %v6750_v31 = vsel %vm6667_vm7, %v6749_v4, %v6748_v10  ;;  %v6913_v30 = vsel %vm6905_vm6, %v6892_v53, %v6895_v45 }
 0x67f   : > { %v6904_v23 = vor.u32 %v6903_v25, %v6902_v8  ;;  %v6914_v44 = vsel %vm6908_vm10, %v6901_v3, 920167782  ;;  %v6753_v12 = vsel %vm14307_vm8, %v14040_v1, %v6750_v31  ;;  %v6889_v46 = vshrl.u32 %v8715_v54, %v6888_v52 }
 0x680   : > { %v14391_v20 = vsub.s32 %v6829_v15, %v6832_v9  ;;  %vm6907_vm14 = vcmp.lt.s32.totalorder %v14349_v47, 3  ;;  %8637 = vcosq.f32 %v6753_v12  ;;  %vm6906_vm7 = vcmp.lt.s32.totalorder %v14349_v47, 2 }
 0x681   : > { %v6910_v5 = vsel %vm6908_vm10, %v6898_v17, 2102212464  ;;  %v6915_v22 = vsel %vm6907_vm14, %v6898_v17, %v6914_v44  ;;  %8639 = vsinq.f32 %v6753_v12  ;;  %v6856_v2 = vsel %vm6771_vm5, %v6855_v29, %v6831_v27 }
 0x682   : > { %v6835_v63 = vsub.s32 0, %v14391_v20  ;;  %v6916_v52 = vsel %vm6906_vm7, %v6913_v30, %v6915_v22  ;;  %v6917_v39 = vsel %vm6905_vm6, %v6895_v45, %v6898_v17  ;;  %v6918_v40 = vsel %vm6908_vm10, %v6904_v23, 1326507024 }
 0x683   : > { %v14413_v57 = vmul.u32.u64.low %v14374_v59, %v6916_v52  ;;  %v14414_v55 = vmul.u32.u64.high %v14374_v59, %v6916_v52, %v14413_v57  ;;  %v6909_v35 = vsel %vm6905_vm6, %v6889_v46, %v6892_v53  ;;  %v6911_v26 = vsel %vm6907_vm14, %v6895_v45, %v6910_v5 }
 0x684   : > { %v8060_v36 = vmin.u32 %v6835_v63, %v14391_v20  ;;  %v6919_v15 = vsel %vm6907_vm14, %v6901_v3, %v6918_v40  ;;  %vm14426_vm8 = vcmp.le.f32.partialorder %v6769_v21, 0.7853982  ;;  %v6980_v48 = vand.u32 2139095040, %v14279_v34 }
 0x685   : > { %v6920_v50 = vsel %vm6906_vm7, %v6917_v39, %v6919_v15  ;;  %v685_v18 = vmul.f32 %v7801_v49, %v8798_v11  ;;  %v14436_v6 = vadd.f32 %v14266_v28, %v14276_v32  ;;  %v6858_v56 = vsel %vm14426_vm8, 0, %v6856_v2 }
 0x686   : > { %v6837_v51 = vclz %v8060_v36  ;;  %v6912_v21 = vsel %vm6906_vm7, %v6909_v35, %v6911_v26  ;;  %v14443_v42 = vmul.u32.u64.low %v14374_v59, %v6920_v50  ;;  %v14444_v53 = vmul.u32.u64.high %v14374_v59, %v6920_v50, %v14443_v42 }
 0x687   : > { %v6981_v19 = vshrl.u32 %v6980_v48, 23  ;;  %vm6757_vm15 = vweird.f32 %v14040_v1  ;;  %vm6760_vm9 = vcmp.lt.s32.totalorder %v14371_v38, 2  ;;  %v6984_v28 = vand.u32 8388607, %v6977_v41 }
 0x688   : > { %v8061_v13 = vadd.s32 4294967294, %v6837_v51  ;;  %vm6761_vm13 = vcmp.eq.s32.totalorder %v14371_v38, 0  ;;  %vm6764_vm11 = vcmp.eq.s32.totalorder %v14371_v38, 2  ;;  %v6931_v32 = vadd.s32 1, %v14414_v55 }
 0x689   : > { %v8067_v47 = vadd.s32 4294967169, %v6981_v19  ;;  %v6825_v10 = vadd.s32 %v14332_v61, %v14342_v24  ;;  %v6862_v45 = vadd.s32 3, %v6858_v56  ;;  %v6928_v3 = vmul.u32 %v14374_v59, %v6912_v21  ;;  %v14464_v59 = vld [vmem:[%s15038_s3 + $0x1e] ss:$0 sm:$0xff] }
 0x68a   : > { %vm8062_vm12 = vcmp.lt.s32.totalorder %v8061_v13, 0  ;;  %v8638_v27 = vpop.eup %8637  ;;  %vm6930_vm0 = vc.u32 %v14444_v53, %v14413_v57  ;;  %v7084_v17 = vand.u32 2139095040, %v14436_v6  ;;  %v6985_v23 = vor.u32 8388608, %v6984_v28 }
 0x68b   : > { %v6840_v25 = vsel %vm8062_vm12, 0, %v8061_v13  ;;  %v6987_v4 = vadd.s32 1, %v8067_v47  ;;  %v8640_v8 = vpop.eup %8639  ;;  %v6765_v9 = vxor.u32 2147483648, %v8638_v27  ;;  %v6932_v24 = vsel %vm6930_vm0, %v6931_v32, %v14414_v55 }
 0x68c   : > { %v6841_v29 = vsub.s32 32, %v6840_v25  ;;  %v6845_v31 = vsub.s32 4294967266, %v6840_v25  ;;  %v6762_v30 = vxor.u32 2147483648, %v8640_v8  ;;  %v6842_v61 = vshll.u32 %v14391_v20, %v6840_v25 }
 0x68d   : > { %vm6988_vm2 = vcmp.gt.s32.totalorder %v6987_v4, 0  ;;  %v6766_v44 = vsel %vm6764_vm11, %v6765_v9, %v8640_v8  ;;  %v6933_v5 = vadd.s32 %v6932_v24, %v6928_v3  ;;  %v7081_v20 = vand.u32 2147483647, %v14436_v6 }
 0x68e   : > { %v6843_v12 = vshrl.u32 %v6825_v10, %v6841_v29  ;;  %v6846_v46 = vadd.s32 127, %v6845_v31  ;;  %v6763_v22 = vsel %vm6761_vm13, %v8638_v27, %v6762_v30  ;;  %v6989_v63 = vsel %vm6988_vm2, %v6987_v4, 0 }
 0x68f   : > { %v7085_v2 = vshrl.u32 %v7084_v17, 23  ;;  %v6767_v52 = vsel %vm6760_vm9, %v6763_v22, %v6766_v44  ;;  %v6934_v55 = vadd.s32 536870912, %v6933_v5  ;;  %v14474_v36 = vmul.f32 %v7801_v49, %v8800_v14 }
 0x690   : > { %v6844_v39 = vor.u32 %v6843_v12, %v6842_v61  ;;  %v6847_v40 = vshll.u32 %v6846_v46, 23  ;;  %v14477_v35 = vadd.f32 %v14464_v59, %v685_v18  ;;  %v6768_v26 = vsel %vm6757_vm15, nan, %v6767_v52 }
 0x691   : > { %v6991_v15 = vand.u32 31, %v6989_v63  ;;  %v14481_v48 = vand.u32 3, %v6862_v45  ;;  %vm6875_vm4 = vcmp.lt.s32.totalorder %v14238_v16, 0  ;;  %v6935_v38 = vshrl.u32 %v6934_v55, 30  ;;  %7656 = vst.msk [vmem:[%s9134_s13 + $0x1b8] sm:$0xff] %vm266_vm1, %v6768_v26 }
 0x692   : > { %v6848_v50 = vor.u32 4788187, %v6847_v40  ;;  %v14486_v56 = vshll.u32 %v6985_v23, 8  ;;  %v8071_v49 = vadd.s32 4294967169, %v7085_v2  ;;  %v14490_v18 = vand.u32 8388607, %v7081_v20 }
 0x693   : > { %v6992_v51 = vsub.s32 32, %v6991_v15  ;;  %v6851_v1 = vcvt.s32.f32 %v6844_v39  ;;  %v14494_v42 = vadd.s32 %v14413_v57, %v14444_v53  ;;  %v6936_v19 = vshll.u32 %v6935_v38, 30 }
 0x694   : > { %v6849_v21 = vand.u32 2147483647, %v6848_v50  ;;  %v6990_v13 = vshrl.u32 %v6989_v63, 5  ;;  %v6994_v3 = vshll.u32 %v8715_v54, %v6991_v15  ;;  %vm14505_vm3 = vcmp.le.f32.partialorder %v6873_v37, 0.7853982 }
 0x695   : > { %v6995_v28 = vshrl.u32 %v8716_v58, %v6992_v51  ;;  %v6998_v32 = vshrl.u32 %v8717_v60, %v6992_v51  ;;  %v7001_v47 = vshrl.u32 %v8718_v62, %v6992_v51  ;;  %v14499_v45 = vsub.s32 %v6933_v5, %v6936_v19 }
 0x696   : > { %v6852_v10 = vmul.f32 %v6851_v1, %v6849_v21  ;;  %v7004_v27 = vshrl.u32 %v8719_v0, %v6992_v51  ;;  %v6959_v53 = vsub.s32 4, %v6935_v38  ;;  %v6997_v25 = vshll.u32 %v8716_v58, %v6991_v15 }
 0x697   : > { %v7000_v4 = vshll.u32 %v8717_v60, %v6991_v15  ;;  %v7091_v17 = vadd.s32 1, %v8071_v49  ;;  %v6939_v9 = vsub.s32 0, %v14499_v45  ;;  %v6996_v29 = vor.u32 %v6995_v28, %v6994_v3 }
 0x698   : > { %v6853_v8 = vxor.u32 2147483648, %v6852_v10  ;;  %v7003_v31 = vshll.u32 %v8718_v62, %v6991_v15  ;;  %v6999_v23 = vor.u32 %v6998_v32, %v6997_v25  ;;  %v7006_v61 = vshll.u32 %v8719_v0, %v6991_v15 }
 0x699   : > { %v7002_v30 = vor.u32 %v7001_v47, %v7000_v4  ;;  %v7007_v37 = vshrl.u32 %v8720_v7, %v6992_v51  ;;  %v8064_v44 = vmin.u32 %v6939_v9, %v14499_v45  ;;  %v6993_v12 = vshrl.u32 %v8715_v54, %v6992_v51 }
 0x69a   : > { %v6854_v24 = vsel %vm6771_vm5, %v6853_v8, %v6852_v10  ;;  %v7005_v46 = vor.u32 %v7004_v27, %v7003_v31  ;;  %v6960_v22 = vsel %vm6875_vm4, %v6959_v53, %v6935_v38  ;;  %vm7009_vm6 = vcmp.lt.s32.totalorder %v6990_v13, 1 }
 0x69b   : > { %v6857_v5 = vsel %vm14426_vm8, %v14081_v43, %v6854_v24  ;;  %v7008_v63 = vor.u32 %v7007_v37, %v7006_v61  ;;  %v6941_v2 = vclz %v8064_v44  ;;  %vm7010_vm10 = vcmp.lt.s32.totalorder %v6990_v13, 2 }
 0x69c   : > { %8641 = vcosq.f32 %v6857_v5  ;;  %vm7012_vm14 = vcmp.lt.s32.totalorder %v6990_v13, 4  ;;  %vm7011_vm5 = vcmp.lt.s32.totalorder %v6990_v13, 3  ;;  %v7017_v39 = vsel %vm7009_vm6, %v6996_v29, %v6999_v23 }
 0x69d   : > { %8643 = vsinq.f32 %v6857_v5  ;;  %v7014_v52 = vsel %vm7012_vm14, %v7002_v30, 2102212464  ;;  %v8065_v40 = vadd.s32 4294967294, %v6941_v2  ;;  %v7013_v55 = vsel %vm7009_vm6, %v6993_v12, %v6996_v29 }
 0x69e   : > { %v7018_v26 = vsel %vm7012_vm14, %v7005_v46, 920167782  ;;  %v7021_v15 = vsel %vm7009_vm6, %v6999_v23, %v7002_v30  ;;  %v7015_v50 = vsel %vm7011_vm5, %v6999_v23, %v7014_v52  ;;  %v7022_v51 = vsel %vm7012_vm14, %v7008_v63, 1326507024 }
 0x69f   : > { %v7019_v33 = vsel %vm7011_vm5, %v7002_v30, %v7018_v26  ;;  %vm7092_vm7 = vcmp.gt.s32.totalorder %v7091_v17, 0  ;;  %vm8066_vm8 = vcmp.lt.s32.totalorder %v8065_v40, 0  ;;  %v6962_v38 = vsel %vm14505_vm3, 0, %v6960_v22 }
 0x6a0   : > { %v7020_v49 = vsel %vm7010_vm10, %v7017_v39, %v7019_v33  ;;  %v7023_v21 = vsel %vm7011_vm5, %v7005_v46, %v7022_v51  ;;  %vm6865_vm15 = vcmp.eq.s32.totalorder %v14481_v48, 0  ;;  %v6944_v1 = vsel %vm8066_vm8, 0, %v8065_v40 }
 0x6a1   : > { %v7024_v19 = vsel %vm7010_vm10, %v7021_v15, %v7023_v21  ;;  %v14530_v28 = vmul.u32.u64.low %v14486_v56, %v7020_v49  ;;  %v14531_v32 = vmul.u32.u64.high %v14486_v56, %v7020_v49, %v14530_v28  ;;  %vm6864_vm9 = vcmp.lt.s32.totalorder %v14481_v48, 2 }
 0x6a2   : > { %v6945_v47 = vsub.s32 32, %v6944_v1  ;;  %v6949_v10 = vsub.s32 4294967266, %v6944_v1  ;;  %v7016_v3 = vsel %vm7010_vm10, %v7013_v55, %v7015_v50  ;;  %v7093_v27 = vsel %vm7092_vm7, %v7091_v17, 0 }
 0x6a3   : > { %vm6861_vm13 = vweird.f32 %v14081_v43  ;;  %vm6868_vm11 = vcmp.eq.s32.totalorder %v14481_v48, 2  ;;  %v14539_v53 = vmul.u32.u64.low %v14486_v56, %v7024_v19  ;;  %v14540_v25 = vmul.u32.u64.high %v14486_v56, %v7024_v19, %v14539_v53 }
 0x6a4   : > { %v7095_v4 = vand.u32 31, %v7093_v27  ;;  %v6946_v8 = vshll.u32 %v14499_v45, %v6944_v1  ;;  %v6947_v9 = vshrl.u32 %v14494_v42, %v6945_v47  ;;  %v6950_v29 = vadd.s32 127, %v6949_v10 }
 0x6a5   : > { %v7089_v31 = vor.u32 8388608, %v14490_v18  ;;  %v6966_v23 = vadd.s32 3, %v6962_v38  ;;  %v7032_v13 = vmul.u32 %v14486_v56, %v7016_v3  ;;  %v7035_v17 = vadd.s32 1, %v14531_v32 }
 0x6a6   : > { %v7096_v30 = vsub.s32 32, %v7095_v4  ;;  %v8642_v61 = vpop.eup %8641  ;;  %v6948_v37 = vor.u32 %v6947_v9, %v6946_v8  ;;  %v6951_v24 = vshll.u32 %v6950_v29, 23  ;;  %v14547_v44 = vshrl.u32 %v7093_v27, 5 }
 0x6a7   : > { %v7098_v12 = vshll.u32 %v8715_v54, %v7095_v4  ;;  %v8644_v46 = vpop.eup %8643  ;;  %v6869_v45 = vxor.u32 2147483648, %v8642_v61  ;;  %vm7034_vm12 = vc.u32 %v14540_v25, %v14530_v28  ;;  %v7101_v18 = vshll.u32 %v8716_v58, %v7095_v4 }
 0x6a8   : > { %v7107_v42 = vshll.u32 %v8718_v62, %v7095_v4  ;;  %v6866_v56 = vxor.u32 2147483648, %v8644_v46  ;;  %v6952_v5 = vor.u32 4788187, %v6951_v24  ;;  %v6955_v22 = vcvt.s32.f32 %v6948_v37 }
 0x6a9   : > { %v7036_v63 = vsel %vm7034_vm12, %v7035_v17, %v14531_v32  ;;  %v6870_v2 = vsel %vm6868_vm11, %v6869_v45, %v8644_v46  ;;  %v7099_v39 = vshrl.u32 %v8716_v58, %v7096_v30  ;;  %v7102_v40 = vshrl.u32 %v8717_v60, %v7096_v30 }
 0x6aa   : > { %v7037_v52 = vadd.s32 %v7036_v63, %v7032_v13  ;;  %v6867_v55 = vsel %vm6865_vm15, %v8642_v61, %v6866_v56  ;;  %v6953_v26 = vand.u32 2147483647, %v6952_v5  ;;  %vm6979_vm0 = vcmp.lt.s32.totalorder %v14279_v34, 0 }
 0x6ab   : > { %v7105_v15 = vshrl.u32 %v8718_v62, %v7096_v30  ;;  %v7108_v50 = vshrl.u32 %v8719_v0, %v7096_v30  ;;  %v6871_v33 = vsel %vm6864_vm9, %v6867_v55, %v6870_v2  ;;  %v7100_v38 = vor.u32 %v7099_v39, %v7098_v12 }
 0x6ac   : > { %v7038_v51 = vadd.s32 536870912, %v7037_v52  ;;  %v7104_v49 = vshll.u32 %v8717_v60, %v7095_v4  ;;  %v6872_v21 = vsel %vm6861_vm13, nan, %v6871_v33  ;;  %v6956_v1 = vmul.f32 %v6955_v22, %v6953_v26 }
 0x6ad   : > { %v7103_v19 = vor.u32 %v7102_v40, %v7101_v18  ;;  %v7109_v32 = vor.u32 %v7108_v50, %v7107_v42  ;;  %v14569_v47 = vand.u32 3, %v6966_v23  ;;  %v7111_v3 = vshrl.u32 %v8720_v7, %v7096_v30  ;;  %7657 = vst.msk [vmem:[%s9134_s13 + $0x1c0] sm:$0xff] %vm266_vm1, %v6872_v21 }
 0x6ae   : > { %v7039_v10 = vshrl.u32 %v7038_v51, 30  ;;  %v14572_v27 = vshll.u32 %v7089_v31, 8  ;;  %v6957_v48 = vxor.u32 2147483648, %v6956_v1  ;;  %v7106_v53 = vor.u32 %v7105_v15, %v7104_v49 }
 0x6af   : > { %v7110_v8 = vshll.u32 %v8719_v0, %v7095_v4  ;;  %v7185_v9 = vand.u32 2147483647, %v14477_v35  ;;  %vm7113_vm2 = vcmp.lt.s32.totalorder %v14547_v44, 1  ;;  %vm7116_vm6 = vcmp.lt.s32.totalorder %v14547_v44, 4 }
 0x6b0   : > { %v7040_v43 = vshll.u32 %v7039_v10, 30  ;;  %v7063_v29 = vsub.s32 4, %v7039_v10  ;;  %v6958_v23 = vsel %vm6875_vm4, %v6957_v48, %v6956_v1  ;;  %v7121_v31 = vsel %vm7113_vm2, %v7100_v38, %v7103_v19 }
 0x6b1   : > { %v7112_v13 = vor.u32 %v7111_v3, %v7110_v8  ;;  %v7122_v17 = vsel %vm7116_vm6, %v7109_v32, 920167782  ;;  %v6961_v4 = vsel %vm14505_vm3, %v14238_v16, %v6958_v23  ;;  %v7097_v37 = vshrl.u32 %v8715_v54, %v7096_v30 }
 0x6b2   : > { %v14589_v61 = vsub.s32 %v7037_v52, %v7040_v43  ;;  %vm7115_vm10 = vcmp.lt.s32.totalorder %v14547_v44, 3  ;;  %8645 = vcosq.f32 %v6961_v4  ;;  %vm7114_vm4 = vcmp.lt.s32.totalorder %v14547_v44, 2 }
 0x6b3   : > { %v7118_v24 = vsel %vm7116_vm6, %v7106_v53, 2102212464  ;;  %v7123_v12 = vsel %vm7115_vm10, %v7106_v53, %v7122_v17  ;;  %8647 = vsinq.f32 %v6961_v4  ;;  %v7064_v57 = vsel %vm6979_vm0, %v7063_v29, %v7039_v10 }
 0x6b4   : > { %v7043_v46 = vsub.s32 0, %v14589_v61  ;;  %v7124_v45 = vsel %vm7114_vm4, %v7121_v31, %v7123_v12  ;;  %v7125_v30 = vsel %vm7113_vm2, %v7103_v19, %v7106_v53  ;;  %v7126_v18 = vsel %vm7116_vm6, %v7112_v13, 1326507024 }
 0x6b5   : > { %v14606_v42 = vmul.u32.u64.low %v14572_v27, %v7124_v45  ;;  %v14607_v56 = vmul.u32.u64.high %v14572_v27, %v7124_v45, %v14606_v42  ;;  %v7117_v22 = vsel %vm7113_vm2, %v7097_v37, %v7100_v38  ;;  %v7119_v63 = vsel %vm7115_vm10, %v7103_v19, %v7118_v24 }
 0x6b6   : > { %v8068_v5 = vmin.u32 %v7043_v46, %v14589_v61  ;;  %v7127_v2 = vsel %vm7115_vm10, %v7109_v32, %v7126_v18  ;;  %vm14615_vm3 = vcmp.le.f32.partialorder %v6977_v41, 0.7853982  ;;  %v7188_v40 = vand.u32 2139095040, %v14477_v35 }
 0x6b7   : > { %v7128_v39 = vsel %vm7114_vm4, %v7125_v30, %v7127_v2  ;;  %v14624_v55 = vadd.f32 %v14464_v59, %v14474_v36  ;;  %v7066_v15 = vsel %vm14615_vm3, 0, %v7064_v57  ;;  %v7120_v50 = vsel %vm7114_vm4, %v7117_v22, %v7119_v63 }
 0x6b8   : > { %v7045_v26 = vclz %v8068_v5  ;;  %v14631_v41 = vmul.u32.u64.low %v14572_v27, %v7128_v39  ;;  %v14632_v33 = vmul.u32.u64.high %v14572_v27, %v7128_v39, %v14631_v41  ;;  %v7189_v51 = vshrl.u32 %v7188_v40, 23 }
 0x6b9   : > { %vm6965_vm14 = vweird.f32 %v14238_v16  ;;  %vm6968_vm5 = vcmp.lt.s32.totalorder %v14569_v47, 2  ;;  %v7192_v59 = vand.u32 8388607, %v7185_v9  ;;  %vm6969_vm7 = vcmp.eq.s32.totalorder %v14569_v47, 0 }
 0x6ba   : > { %v8069_v38 = vadd.s32 4294967294, %v7045_v26  ;;  %vm6972_vm8 = vcmp.eq.s32.totalorder %v14569_v47, 2  ;;  %v7139_v36 = vadd.s32 1, %v14607_v56  ;;  %v8075_v44 = vadd.s32 4294967169, %v7189_v51 }
 0x6bb   : > { %v7033_v49 = vadd.s32 %v14530_v28, %v14540_v25  ;;  %v7070_v21 = vadd.s32 3, %v7066_v15  ;;  %v7136_v1 = vmul.u32 %v14572_v27, %v7120_v50  ;;  %vm7138_vm9 = vc.u32 %v14632_v33, %v14606_v42  ;;  %v14652_v27 = vld [vmem:[%s15037_s2 + $0x1f] ss:$0 sm:$0xff] }
 0x6bc   : > { %vm8070_vm15 = vcmp.lt.s32.totalorder %v8069_v38, 0  ;;  %v8646_v19 = vpop.eup %8645  ;;  %v7195_v10 = vadd.s32 1, %v8075_v44  ;;  %v7292_v3 = vand.u32 2139095040, %v14624_v55  ;;  %v7193_v29 = vor.u32 8388608, %v7192_v59 }
 0x6bd   : > { %v7048_v32 = vsel %vm8070_vm15, 0, %v8069_v38  ;;  %v8648_v48 = vpop.eup %8647  ;;  %v6973_v53 = vxor.u32 2147483648, %v8646_v19  ;;  %v7140_v25 = vsel %vm7138_vm9, %v7139_v36, %v14607_v56  ;;  %v14663_v18 = vmul.f32 %v14652_v27, %v8798_v11 }
 0x6be   : > { %v7049_v8 = vsub.s32 32, %v7048_v32  ;;  %v7053_v43 = vsub.s32 4294967266, %v7048_v32  ;;  %v6970_v23 = vxor.u32 2147483648, %v8648_v48  ;;  %v7050_v28 = vshll.u32 %v14589_v61, %v7048_v32 }
 0x6bf   : > { %vm7196_vm13 = vcmp.gt.s32.totalorder %v7195_v10, 0  ;;  %v6974_v13 = vsel %vm6972_vm8, %v6973_v53, %v8648_v48  ;;  %v7141_v4 = vadd.s32 %v7140_v25, %v7136_v1  ;;  %v7289_v61 = vand.u32 2147483647, %v14624_v55 }
 0x6c0   : > { %v7051_v31 = vshrl.u32 %v7033_v49, %v7049_v8  ;;  %v7054_v17 = vadd.s32 127, %v7053_v43  ;;  %v6971_v37 = vsel %vm6969_vm7, %v8646_v19, %v6970_v23  ;;  %v7197_v24 = vsel %vm7196_vm13, %v7195_v10, 0 }
 0x6c1   : > { %v7293_v12 = vshrl.u32 %v7292_v3, 23  ;;  %v6975_v46 = vsel %vm6968_vm5, %v6971_v37, %v6974_v13  ;;  %v7142_v30 = vadd.s32 536870912, %v7141_v4  ;;  %v7199_v5 = vand.u32 31, %v7197_v24 }
 0x6c2   : > { %v7052_v57 = vor.u32 %v7051_v31, %v7050_v28  ;;  %v7055_v45 = vshll.u32 %v7054_v17, 23  ;;  %v6976_v56 = vsel %vm6965_vm14, nan, %v6975_v46  ;;  %v14667_v63 = vand.u32 3, %v7070_v21 }
 0x6c3   : > { %vm7083_vm11 = vcmp.lt.s32.totalorder %v14436_v6, 0  ;;  %v7143_v2 = vshrl.u32 %v7142_v30, 30  ;;  %7658 = vst.msk [vmem:[%s9134_s13 + $0x1c8] sm:$0xff] %vm266_vm1, %v6976_v56  ;;  %v7200_v47 = vsub.s32 32, %v7199_v5  ;;  %v14672_v39 = vshll.u32 %v7193_v29, 8 }
 0x6c4   : > { %v7056_v22 = vor.u32 4788187, %v7055_v45  ;;  %v8079_v40 = vadd.s32 4294967169, %v7293_v12  ;;  %v14676_v11 = vand.u32 8388607, %v7289_v61  ;;  %v7059_v16 = vcvt.s32.f32 %v7052_v57 }
 0x6c5   : > { %v14680_v15 = vadd.s32 %v14606_v42, %v14632_v33  ;;  %v7144_v50 = vshll.u32 %v7143_v2, 30  ;;  %v7198_v41 = vshrl.u32 %v7197_v24, 5  ;;  %v7203_v51 = vshrl.u32 %v8716_v58, %v7200_v47 }
 0x6c6   : > { %v7057_v26 = vand.u32 2147483647, %v7056_v22  ;;  %v7206_v38 = vshrl.u32 %v8717_v60, %v7200_v47  ;;  %v7209_v59 = vshrl.u32 %v8718_v62, %v7200_v47  ;;  %v7202_v49 = vshll.u32 %v8715_v54, %v7199_v5 }
 0x6c7   : > { %v14685_v44 = vsub.s32 %v7141_v4, %v7144_v50  ;;  %v7212_v21 = vshrl.u32 %v8719_v0, %v7200_v47  ;;  %vm14691_vm12 = vcmp.le.f32.partialorder %v7081_v20, 0.7853982  ;;  %v7167_v33 = vsub.s32 4, %v7143_v2 }
 0x6c8   : > { %v7060_v36 = vmul.f32 %v7059_v16, %v7057_v26  ;;  %v7205_v1 = vshll.u32 %v8716_v58, %v7199_v5  ;;  %v7208_v19 = vshll.u32 %v8717_v60, %v7199_v5  ;;  %v7299_v32 = vadd.s32 1, %v8079_v40 }
 0x6c9   : > { %v7147_v3 = vsub.s32 0, %v14685_v44  ;;  %v7204_v48 = vor.u32 %v7203_v51, %v7202_v49  ;;  %v7211_v53 = vshll.u32 %v8718_v62, %v7199_v5  ;;  %v7214_v29 = vshll.u32 %v8719_v0, %v7199_v5 }
 0x6ca   : > { %v7061_v10 = vxor.u32 2147483648, %v7060_v36  ;;  %v7207_v8 = vor.u32 %v7206_v38, %v7205_v1  ;;  %v7210_v43 = vor.u32 %v7209_v59, %v7208_v19  ;;  %v7215_v20 = vshrl.u32 %v8720_v7, %v7200_v47 }
 0x6cb   : > { %v8072_v28 = vmin.u32 %v7147_v3, %v14685_v44  ;;  %v7201_v25 = vshrl.u32 %v8715_v54, %v7200_v47  ;;  %v7213_v13 = vor.u32 %v7212_v21, %v7211_v53  ;;  %v7168_v17 = vsel %vm7083_vm11, %v7167_v33, %v7143_v2 }
 0x6cc   : > { %v7062_v23 = vsel %vm6979_vm0, %v7061_v10, %v7060_v36  ;;  %v7216_v4 = vor.u32 %v7215_v20, %v7214_v29  ;;  %vm7217_vm2 = vcmp.lt.s32.totalorder %v7198_v41, 1  ;;  %vm7218_vm6 = vcmp.lt.s32.totalorder %v7198_v41, 2 }
 0x6cd   : > { %v7065_v31 = vsel %vm14615_vm3, %v14279_v34, %v7062_v23  ;;  %v7149_v37 = vclz %v8072_v28  ;;  %vm7220_vm10 = vcmp.lt.s32.totalorder %v7198_v41, 4  ;;  %vm7219_vm0 = vcmp.lt.s32.totalorder %v7198_v41, 3 }
 0x6ce   : > { %8649 = vcosq.f32 %v7065_v31  ;;  %v7222_v24 = vsel %vm7220_vm10, %v7210_v43, 2102212464  ;;  %v7225_v12 = vsel %vm7217_vm2, %v7204_v48, %v7207_v8  ;;  %v7221_v57 = vsel %vm7217_vm2, %v7201_v25, %v7204_v48 }
 0x6cf   : > { %8651 = vsinq.f32 %v7065_v31  ;;  %v8073_v46 = vadd.s32 4294967294, %v7149_v37  ;;  %v7226_v45 = vsel %vm7220_vm10, %v7213_v13, 920167782  ;;  %v7229_v30 = vsel %vm7217_vm2, %v7207_v8, %v7210_v43 }
 0x6d0   : > { %v7223_v56 = vsel %vm7219_vm0, %v7207_v8, %v7222_v24  ;;  %v7227_v52 = vsel %vm7219_vm0, %v7210_v43, %v7226_v45  ;;  %v7230_v5 = vsel %vm7220_vm10, %v7216_v4, 1326507024  ;;  %vm7300_vm4 = vcmp.gt.s32.totalorder %v7299_v32, 0 }
 0x6d1   : > { %vm8074_vm3 = vcmp.lt.s32.totalorder %v8073_v46, 0  ;;  %v7170_v22 = vsel %vm14691_vm12, 0, %v7168_v17  ;;  %v7228_v2 = vsel %vm7218_vm6, %v7225_v12, %v7227_v52  ;;  %v7231_v47 = vsel %vm7219_vm0, %v7213_v13, %v7230_v5  ;;  %v7834_v12 = vld [vmem:[%s15038_s3 + $0x1f] ss:$0 sm:$0xff] }
 0x6d2   : > { %vm7073_vm14 = vcmp.eq.s32.totalorder %v14667_v63, 0  ;;  %v7152_v40 = vsel %vm8074_vm3, 0, %v8073_v46  ;;  %v7232_v26 = vsel %vm7218_vm6, %v7229_v30, %v7231_v47  ;;  %vm7072_vm5 = vcmp.lt.s32.totalorder %v14667_v63, 2 }
 0x6d3   : > { %v14716_v16 = vmul.u32.u64.low %v14672_v39, %v7228_v2  ;;  %v14717_v50 = vmul.u32.u64.high %v14672_v39, %v7228_v2, %v14716_v16  ;;  %v7153_v51 = vsub.s32 32, %v7152_v40  ;;  %v7157_v38 = vsub.s32 4294967266, %v7152_v40 }
 0x6d4   : > { %v7224_v59 = vsel %vm7218_vm6, %v7221_v57, %v7223_v56  ;;  %v7301_v36 = vsel %vm7300_vm4, %v7299_v32, 0  ;;  %vm7069_vm7 = vweird.f32 %v14279_v34  ;;  %vm7076_vm8 = vcmp.eq.s32.totalorder %v14667_v63, 2 }
 0x6d5   : > { %v14725_v49 = vmul.u32.u64.low %v14672_v39, %v7232_v26  ;;  %v14726_v21 = vmul.u32.u64.high %v14672_v39, %v7232_v26, %v14725_v49  ;;  %v7303_v33 = vand.u32 31, %v7301_v36  ;;  %v7154_v1 = vshll.u32 %v14685_v44, %v7152_v40 }
 0x6d6   : > { %v7155_v19 = vshrl.u32 %v14680_v15, %v7153_v51  ;;  %v7158_v10 = vadd.s32 127, %v7157_v38  ;;  %v7297_v3 = vor.u32 8388608, %v14676_v11  ;;  %v7174_v48 = vadd.s32 3, %v7170_v22 }
 0x6d7   : > { %v7240_v41 = vmul.u32 %v14672_v39, %v7224_v59  ;;  %v7243_v32 = vadd.s32 1, %v14717_v50  ;;  %v7304_v53 = vsub.s32 32, %v7303_v33  ;;  %v14733_v20 = vshrl.u32 %v7301_v36, 5 }
 0x6d8   : > { %v8650_v8 = vpop.eup %8649  ;;  %v7156_v43 = vor.u32 %v7155_v19, %v7154_v1  ;;  %v7159_v29 = vshll.u32 %v7158_v10, 23  ;;  %v7306_v23 = vshll.u32 %v8715_v54, %v7303_v33  ;;  %vm7242_vm15 = vc.u32 %v14726_v21, %v14716_v16 }
 0x6d9   : > { %v8652_v28 = vpop.eup %8651  ;;  %v7077_v44 = vxor.u32 2147483648, %v8650_v8  ;;  %v7309_v11 = vshll.u32 %v8716_v58, %v7303_v33  ;;  %v7315_v15 = vshll.u32 %v8718_v62, %v7303_v33  ;;  %v7244_v31 = vsel %vm7242_vm15, %v7243_v32, %v14717_v50 }
 0x6da   : > { %v7074_v39 = vxor.u32 2147483648, %v8652_v28  ;;  %v7160_v25 = vor.u32 4788187, %v7159_v29  ;;  %v7163_v13 = vcvt.s32.f32 %v7156_v43  ;;  %v7245_v4 = vadd.s32 %v7244_v31, %v7240_v41 }
 0x6db   : > { %v7078_v17 = vsel %vm7076_vm8, %v7077_v44, %v8652_v28  ;;  %v7307_v37 = vshrl.u32 %v8716_v58, %v7304_v53  ;;  %v7310_v24 = vshrl.u32 %v8717_v60, %v7304_v53  ;;  %v7313_v45 = vshrl.u32 %v8718_v62, %v7304_v53 }
 0x6dc   : > { %v7075_v46 = vsel %vm7073_vm14, %v8650_v8, %v7074_v39  ;;  %v7161_v57 = vand.u32 2147483647, %v7160_v25  ;;  %v7316_v30 = vshrl.u32 %v8719_v0, %v7304_v53  ;;  %v7246_v52 = vadd.s32 536870912, %v7245_v4 }
 0x6dd   : > { %v7079_v56 = vsel %vm7072_vm5, %v7075_v46, %v7078_v17  ;;  %v7308_v5 = vor.u32 %v7307_v37, %v7306_v23  ;;  %v7312_v22 = vshll.u32 %v8717_v60, %v7303_v33  ;;  %v7311_v40 = vor.u32 %v7310_v24, %v7309_v11 }
 0x6de   : > { %v7080_v2 = vsel %vm7069_vm7, nan, %v7079_v56  ;;  %v7164_v47 = vmul.f32 %v7163_v13, %v7161_v57  ;;  %v7317_v26 = vor.u32 %v7316_v30, %v7315_v15  ;;  %v688_v50 = vmul.f32 %v14652_v27, %v8800_v14 }
 0x6df   : > { %v14760_v51 = vadd.f32 %v7834_v12, %v14663_v18  ;;  %v7247_v38 = vshrl.u32 %v7246_v52, 30  ;;  %v7319_v63 = vshrl.u32 %v8720_v7, %v7304_v53  ;;  %7659 = vst.msk [vmem:[%s9134_s13 + $0x1d0] sm:$0xff] %vm266_vm1, %v7080_v2  ;;  %v7314_v36 = vor.u32 %v7313_v45, %v7312_v22 }
 0x6e0   : > { %v7165_v59 = vxor.u32 2147483648, %v7164_v47  ;;  %v7318_v49 = vshll.u32 %v8719_v0, %v7303_v33  ;;  %v14766_v34 = vshll.u32 %v7297_v3, 8  ;;  %v14768_v1 = vand.u32 3, %v7174_v48 }
 0x6e1   : > { %v7248_v19 = vshll.u32 %v7247_v38, 30  ;;  %vm7321_vm9 = vcmp.lt.s32.totalorder %v14733_v20, 1  ;;  %vm7324_vm13 = vcmp.lt.s32.totalorder %v14733_v20, 4  ;;  %v7305_v48 = vshrl.u32 %v8715_v54, %v7304_v53 }
 0x6e2   : > { %v7166_v14 = vsel %vm7083_vm11, %v7165_v59, %v7164_v47  ;;  %v7320_v27 = vor.u32 %v7319_v63, %v7318_v49  ;;  %v7329_v18 = vsel %vm7321_vm9, %v7308_v5, %v7311_v40  ;;  %v7330_v10 = vsel %vm7324_vm13, %v7317_v26, 920167782 }
 0x6e3   : > { %v7169_v33 = vsel %vm14691_vm12, %v14436_v6, %v7166_v14  ;;  %v14781_v3 = vsub.s32 %v7245_v4, %v7248_v19  ;;  %vm7323_vm2 = vcmp.lt.s32.totalorder %v14733_v20, 3  ;;  %vm7322_vm11 = vcmp.lt.s32.totalorder %v14733_v20, 2 }
 0x6e4   : > { %8653 = vcosq.f32 %v7169_v33  ;;  %v7326_v41 = vsel %vm7324_vm13, %v7314_v36, 2102212464  ;;  %v7331_v32 = vsel %vm7323_vm2, %v7314_v36, %v7330_v10  ;;  %v7271_v43 = vsub.s32 4, %v7247_v38 }
 0x6e5   : > { %8655 = vsinq.f32 %v7169_v33  ;;  %v7251_v8 = vsub.s32 0, %v14781_v3  ;;  %v7332_v42 = vsel %vm7322_vm11, %v7329_v18, %v7331_v32  ;;  %v7333_v29 = vsel %vm7321_vm9, %v7311_v40, %v7314_v36 }
 0x6e6   : > { %v7334_v53 = vsel %vm7324_vm13, %v7320_v27, 1326507024  ;;  %v14796_v23 = vmul.u32.u64.low %v14766_v34, %v7332_v42  ;;  %v14797_v28 = vmul.u32.u64.high %v14766_v34, %v7332_v42, %v14796_v23  ;;  %v7325_v11 = vsel %vm7321_vm9, %v7305_v48, %v7308_v5 }
 0x6e7   : > { %v8076_v44 = vmin.u32 %v7251_v8, %v14781_v3  ;;  %v7327_v15 = vsel %vm7323_vm2, %v7311_v40, %v7326_v41  ;;  %v7335_v39 = vsel %vm7323_vm2, %v7317_v26, %v7334_v53  ;;  %vm7187_vm12 = vcmp.lt.s32.totalorder %v14477_v35, 0 }
 0x6e8   : > { %v7336_v25 = vsel %vm7322_vm11, %v7333_v29, %v7335_v39  ;;  %v7396_v13 = vand.u32 2139095040, %v14760_v51  ;;  %v14807_v31 = vadd.f32 %v7834_v12, %v688_v50  ;;  %v7272_v4 = vsel %vm7187_vm12, %v7271_v43, %v7247_v38 }
 0x6e9   : > { %v7253_v17 = vclz %v8076_v44  ;;  %v7393_v37 = vand.u32 2147483647, %v14760_v51  ;;  %v7328_v24 = vsel %vm7322_vm11, %v7325_v11, %v7327_v15  ;;  %vm7173_vm6 = vweird.f32 %v14436_v6 }
 0x6ea   : > { %v14815_v46 = vmul.u32.u64.low %v14766_v34, %v7336_v25  ;;  %v14816_v57 = vmul.u32.u64.high %v14766_v34, %v7336_v25, %v14815_v46  ;;  %v7397_v45 = vshrl.u32 %v7396_v13, 23  ;;  %vm7176_vm10 = vcmp.lt.s32.totalorder %v14768_v1, 2 }
 0x6eb   : > { %vm14822_vm0 = vcmp.le.f32.partialorder %v7185_v9, 0.7853982  ;;  %v8077_v30 = vadd.s32 4294967294, %v7253_v17  ;;  %vm7177_vm4 = vcmp.eq.s32.totalorder %v14768_v1, 0  ;;  %vm7180_vm3 = vcmp.eq.s32.totalorder %v14768_v1, 2 }
 0x6ec   : > { %v7347_v20 = vadd.s32 1, %v14797_v28  ;;  %v8083_v56 = vadd.s32 4294967169, %v7397_v45  ;;  %v7241_v52 = vadd.s32 %v14716_v16, %v14726_v21  ;;  %v7274_v5 = vsel %vm14822_vm0, 0, %v7272_v4 }
 0x6ed   : > { %vm8078_vm14 = vcmp.lt.s32.totalorder %v8077_v30, 0  ;;  %v7344_v9 = vmul.u32 %v14766_v34, %v7328_v24  ;;  %vm7346_vm5 = vc.u32 %v14816_v57, %v14796_v23  ;;  %v7400_v47 = vand.u32 8388607, %v7393_v37 }
 0x6ee   : > { %v8654_v22 = vpop.eup %8653  ;;  %v7256_v2 = vsel %vm8078_vm14, 0, %v8077_v30  ;;  %v7403_v40 = vadd.s32 1, %v8083_v56  ;;  %v7500_v16 = vand.u32 2139095040, %v14807_v31  ;;  %v7348_v36 = vsel %vm7346_vm5, %v7347_v20, %v14797_v28 }
 0x6ef   : > { %v8656_v26 = vpop.eup %8655  ;;  %v7181_v50 = vxor.u32 2147483648, %v8654_v22  ;;  %v7257_v38 = vsub.s32 32, %v7256_v2  ;;  %v7261_v63 = vsub.s32 4294967266, %v7256_v2  ;;  %v7258_v59 = vshll.u32 %v14781_v3, %v7256_v2 }
 0x6f0   : > { %v7178_v21 = vxor.u32 2147483648, %v8656_v26  ;;  %vm7404_vm7 = vcmp.gt.s32.totalorder %v7403_v40, 0  ;;  %v7349_v14 = vadd.s32 %v7348_v36, %v7344_v9  ;;  %v7278_v18 = vadd.s32 3, %v7274_v5 }
 0x6f1   : > { %v7182_v49 = vsel %vm7180_vm3, %v7181_v50, %v8656_v26  ;;  %v7259_v34 = vshrl.u32 %v7241_v52, %v7257_v38  ;;  %v7262_v19 = vadd.s32 127, %v7261_v63  ;;  %v7401_v10 = vor.u32 8388608, %v7400_v47 }
 0x6f2   : > { %v7179_v27 = vsel %vm7177_vm4, %v8654_v22, %v7178_v21  ;;  %v7405_v33 = vsel %vm7404_vm7, %v7403_v40, 0  ;;  %v7350_v32 = vadd.s32 536870912, %v7349_v14  ;;  %v7501_v42 = vshrl.u32 %v7500_v16, 23 }
 0x6f3   : > { %v7183_v48 = vsel %vm7176_vm10, %v7179_v27, %v7182_v49  ;;  %v7260_v3 = vor.u32 %v7259_v34, %v7258_v59  ;;  %v7263_v41 = vshll.u32 %v7262_v19, 23  ;;  %v7407_v43 = vand.u32 31, %v7405_v33 }
 0x6f4   : > { %v7184_v8 = vsel %vm7173_vm6, nan, %v7183_v48  ;;  %v14849_v53 = vshrl.u32 %v7350_v32, 30  ;;  %v14853_v28 = vand.u32 3, %v7278_v18  ;;  %v7497_v11 = vand.u32 2147483647, %v14807_v31 }
 0x6f5   : > { %v7264_v29 = vor.u32 4788187, %v7263_v41  ;;  %7660 = vst.msk [vmem:[%s9134_s13 + $0x1d8] sm:$0xff] %vm266_vm1, %v7184_v8  ;;  %v7408_v44 = vsub.s32 32, %v7407_v43  ;;  %v7267_v15 = vcvt.s32.f32 %v7260_v3  ;;  %v14857_v25 = vshll.u32 %v7401_v10, 8 }
 0x6f6   : > { %v7352_v39 = vshll.u32 %v14849_v53, 30  ;;  %v8087_v4 = vadd.s32 4294967169, %v7501_v42  ;;  %v7410_v45 = vshll.u32 %v8715_v54, %v7407_v43  ;;  %v7345_v20 = vadd.s32 %v14796_v23, %v14816_v57 }
 0x6f7   : > { %v7265_v1 = vand.u32 2147483647, %v7264_v29  ;;  %v7411_v6 = vshrl.u32 %v8716_v58, %v7408_v44  ;;  %v7414_v13 = vshrl.u32 %v8717_v60, %v7408_v44  ;;  %v7417_v17 = vshrl.u32 %v8718_v62, %v7408_v44 }
 0x6f8   : > { %v14862_v46 = vsub.s32 %v7349_v14, %v7352_v39  ;;  %v7420_v30 = vshrl.u32 %v8719_v0, %v7408_v44  ;;  %v7406_v56 = vshrl.u32 %v7405_v33, 5  ;;  %v7413_v52 = vshll.u32 %v8716_v58, %v7407_v43 }
 0x6f9   : > { %v7268_v24 = vmul.f32 %v7267_v15, %v7265_v1  ;;  %v7416_v5 = vshll.u32 %v8717_v60, %v7407_v43  ;;  %v7412_v2 = vor.u32 %v7411_v6, %v7410_v45  ;;  %v7419_v47 = vshll.u32 %v8718_v62, %v7407_v43 }
 0x6fa   : > { %v7355_v22 = vsub.s32 0, %v14862_v46  ;;  %v7415_v40 = vor.u32 %v7414_v13, %v7413_v52  ;;  %v7422_v50 = vshll.u32 %v8719_v0, %v7407_v43  ;;  %v7423_v38 = vshrl.u32 %v8720_v7, %v7408_v44 }
 0x6fb   : > { %v7269_v9 = vxor.u32 2147483648, %v7268_v24  ;;  %v7418_v26 = vor.u32 %v7417_v17, %v7416_v5  ;;  %v7421_v63 = vor.u32 %v7420_v30, %v7419_v47  ;;  %v7507_v16 = vadd.s32 1, %v8087_v4 }
 0x6fc   : > { %v8080_v57 = vmin.u32 %v7355_v22, %v14862_v46  ;;  %v7409_v59 = vshrl.u32 %v8715_v54, %v7408_v44  ;;  %v7424_v36 = vor.u32 %v7423_v38, %v7422_v50  ;;  %vm7425_vm8 = vcmp.lt.s32.totalorder %v7406_v56, 1 }
 0x6fd   : > { %v7270_v23 = vsel %vm7187_vm12, %v7269_v9, %v7268_v24  ;;  %vm7291_vm15 = vcmp.lt.s32.totalorder %v14624_v55, 0  ;;  %vm7426_vm9 = vcmp.lt.s32.totalorder %v7406_v56, 2  ;;  %vm7428_vm13 = vcmp.lt.s32.totalorder %v7406_v56, 4 }
 0x6fe   : > { %v7273_v21 = vsel %vm14822_vm0, %v14477_v35, %v7270_v23  ;;  %v7357_v49 = vclz %v8080_v57  ;;  %vm7427_vm2 = vcmp.lt.s32.totalorder %v7406_v56, 3  ;;  %v7430_v34 = vsel %vm7428_vm13, %v7418_v26, 2102212464 }
 0x6ff   : > { %8657 = vcosq.f32 %v7273_v21  ;;  %v7433_v19 = vsel %vm7425_vm8, %v7412_v2, %v7415_v40  ;;  %v7429_v27 = vsel %vm7425_vm8, %v7409_v59, %v7412_v2  ;;  %v7434_v18 = vsel %vm7428_vm13, %v7421_v63, 920167782 }
 0x700   : > { %8659 = vsinq.f32 %v7273_v21  ;;  %v8081_v14 = vadd.s32 4294967294, %v7357_v49  ;;  %v7437_v10 = vsel %vm7425_vm8, %v7415_v40, %v7418_v26  ;;  %v7431_v12 = vsel %vm7427_vm2, %v7415_v40, %v7430_v34 }
 0x701   : > { %v7435_v33 = vsel %vm7427_vm2, %v7418_v26, %v7434_v18  ;;  %v7438_v48 = vsel %vm7428_vm13, %v7424_v36, 1326507024  ;;  %vm7508_vm11 = vcmp.gt.s32.totalorder %v7507_v16, 0  ;;  %v7375_v3 = vsub.s32 4, %v14849_v53 }
 0x702   : > { %vm8082_vm12 = vcmp.lt.s32.totalorder %v8081_v14, 0  ;;  %v7436_v41 = vsel %vm7426_vm9, %v7433_v19, %v7435_v33  ;;  %v7439_v32 = vsel %vm7427_vm2, %v7421_v63, %v7438_v48  ;;  %vm7281_vm6 = vcmp.eq.s32.totalorder %v14853_v28, 0 }
 0x703   : > { %v7360_v8 = vsel %vm8082_vm12, 0, %v8081_v14  ;;  %v7440_v43 = vsel %vm7426_vm9, %v7437_v10, %v7439_v32  ;;  %v14887_v42 = vmul.u32.u64.low %v14857_v25, %v7436_v41  ;;  %v14888_v29 = vmul.u32.u64.high %v14857_v25, %v7436_v41, %v14887_v42 }
 0x704   : > { %vm7280_vm10 = vcmp.lt.s32.totalorder %v14853_v28, 2  ;;  %v7361_v44 = vsub.s32 32, %v7360_v8  ;;  %v7365_v1 = vsub.s32 4294967266, %v7360_v8  ;;  %v7432_v15 = vsel %vm7426_vm9, %v7429_v27, %v7431_v12 }
 0x705   : > { %v7509_v39 = vsel %vm7508_vm11, %v7507_v16, 0  ;;  %vm7277_vm0 = vweird.f32 %v14477_v35  ;;  %vm7284_vm4 = vcmp.eq.s32.totalorder %v14853_v28, 2  ;;  %v7362_v4 = vshll.u32 %v14862_v46, %v7360_v8 }
 0x706   : > { %v14896_v6 = vmul.u32.u64.low %v14857_v25, %v7440_v43  ;;  %v14897_v13 = vmul.u32.u64.high %v14857_v25, %v7440_v43, %v14896_v6  ;;  %v7511_v17 = vand.u32 31, %v7509_v39  ;;  %v7363_v24 = vshrl.u32 %v7345_v20, %v7361_v44 }
 0x707   : > { %v7366_v45 = vadd.s32 127, %v7365_v1  ;;  %v7504_v30 = vand.u32 8388607, %v7497_v11  ;;  %v7376_v56 = vsel %vm7291_vm15, %v7375_v3, %v14849_v53  ;;  %v7448_v52 = vmul.u32 %v14857_v25, %v7432_v15 }
 0x708   : > { %v7451_v5 = vadd.s32 1, %v14888_v29  ;;  %v14907_v9 = vsub.s32 32, %v7511_v17  ;;  %v7364_v2 = vor.u32 %v7363_v24, %v7362_v4  ;;  %v14909_v40 = vshrl.u32 %v7509_v39, 5 }
 0x709   : > { %v8658_v22 = vpop.eup %8657  ;;  %v7367_v47 = vshll.u32 %v7366_v45, 23  ;;  %v7514_v46 = vshll.u32 %v8715_v54, %v7511_v17  ;;  %vm7450_vm3 = vc.u32 %v14897_v13, %v14887_v42  ;;  %v7517_v53 = vshll.u32 %v8716_v58, %v7511_v17 }
 0x70a   : > { %v8660_v20 = vpop.eup %8659  ;;  %v7285_v26 = vxor.u32 2147483648, %v8658_v22  ;;  %v7523_v25 = vshll.u32 %v8718_v62, %v7511_v17  ;;  %v7371_v23 = vcvt.s32.f32 %v7364_v2  ;;  %v7452_v57 = vsel %vm7450_vm3, %v7451_v5, %v14888_v29 }
 0x70b   : > { %v7282_v50 = vxor.u32 2147483648, %v8660_v20  ;;  %v7368_v38 = vor.u32 4788187, %v7367_v47  ;;  %v7453_v16 = vadd.s32 %v7452_v57, %v7448_v52  ;;  %v7515_v21 = vshrl.u32 %v8716_v58, %v14907_v9 }
 0x70c   : > { %v7286_v63 = vsel %vm7284_vm4, %v7285_v26, %v8660_v20  ;;  %v7518_v59 = vshrl.u32 %v8717_v60, %v14907_v9  ;;  %v7521_v34 = vshrl.u32 %v8718_v62, %v14907_v9  ;;  %v7524_v19 = vshrl.u32 %v8719_v0, %v14907_v9 }
 0x70d   : > { %v7283_v36 = vsel %vm7281_vm6, %v8658_v22, %v7282_v50  ;;  %v7369_v49 = vand.u32 2147483647, %v7368_v38  ;;  %v7454_v27 = vadd.s32 536870912, %v7453_v16  ;;  %v7516_v18 = vor.u32 %v7515_v21, %v7514_v46 }
 0x70e   : > { %v7287_v14 = vsel %vm7280_vm10, %v7283_v36, %v7286_v63  ;;  %v7520_v58 = vshll.u32 %v8717_v60, %v7511_v17  ;;  %v7519_v33 = vor.u32 %v7518_v59, %v7517_v53  ;;  %v7525_v48 = vor.u32 %v7524_v19, %v7523_v25 }
 0x70f   : > { %v7288_v10 = vsel %vm7277_vm0, nan, %v7287_v14  ;;  %v7372_v12 = vmul.f32 %v7371_v23, %v7369_v49  ;;  %v14934_v3 = vshrl.u32 %v7454_v27, 30  ;;  %v7505_v41 = vor.u32 8388608, %v7504_v30 }
 0x710   : > { %v7527_v62 = vshrl.u32 %v8720_v7, %v14907_v9  ;;  %7661 = vst.msk [vmem:[%s9134_s13 + $0x1e0] sm:$0xff] %vm266_vm1, %v7288_v10  ;;  %vm14942_vm14 = vcmp.le.f32.partialorder %v7289_v61, 0.7853982  ;;  %v7522_v35 = vor.u32 %v7521_v34, %v7520_v58  ;;  %v7526_v32 = vshll.u32 %v8719_v0, %v7511_v17 }
 0x711   : > { %v7373_v60 = vxor.u32 2147483648, %v7372_v12  ;;  %v7378_v8 = vsel %vm14942_vm14, 0, %v7376_v56  ;;  %v7456_v43 = vshll.u32 %v14934_v3, 30  ;;  %vm7529_vm5 = vcmp.lt.s32.totalorder %v14909_v40, 1 }
 0x712   : > { %vm7532_vm7 = vcmp.lt.s32.totalorder %v14909_v40, 4  ;;  %v7528_v61 = vor.u32 %v7527_v62, %v7526_v32  ;;  %v7537_v29 = vsel %vm7529_vm5, %v7516_v18, %v7519_v33  ;;  %vm7531_vm8 = vcmp.lt.s32.totalorder %v14909_v40, 3 }
 0x713   : > { %v7374_v7 = vsel %vm7291_vm15, %v7373_v60, %v7372_v12  ;;  %v7538_v44 = vsel %vm7532_vm7, %v7525_v48, 920167782  ;;  %v7457_v1 = vsub.s32 %v7453_v16, %v7456_v43  ;;  %v7545_v15 = vshll.u32 %v7505_v41, 8 }
 0x714   : > { %v7377_v0 = vsel %vm14942_vm14, %v14624_v55, %v7374_v7  ;;  %v7382_v39 = vadd.s32 3, %v7378_v8  ;;  %vm7530_vm9 = vcmp.lt.s32.totalorder %v14909_v40, 2  ;;  %v7539_v6 = vsel %vm7531_vm8, %v7522_v35, %v7538_v44 }
 0x715   : > { %8661 = vcosq.f32 %v7377_v0  ;;  %v7459_v17 = vsub.s32 0, %v7457_v1  ;;  %v7534_v4 = vsel %vm7532_vm7, %v7522_v35, 2102212464  ;;  %v7540_v24 = vsel %vm7530_vm9, %v7537_v29, %v7539_v6 }
 0x716   : > { %8663 = vsinq.f32 %v7377_v0  ;;  %v7541_v45 = vsel %vm7529_vm5, %v7519_v33, %v7522_v35  ;;  %v7542_v30 = vsel %vm7532_vm7, %v7528_v61, 1326507024  ;;  %v7513_v22 = vshrl.u32 %v8715_v54, %v14907_v9 }
 0x717   : > { %v14973_v56 = vmul.u32.u64.low %v7545_v15, %v7540_v24  ;;  %v14974_v52 = vmul.u32.u64.high %v7545_v15, %v7540_v24, %v14973_v56  ;;  %v8084_v5 = vmin.u32 %v7459_v17, %v7457_v1  ;;  %v7543_v2 = vsel %vm7531_vm8, %v7525_v48, %v7542_v30 }
 0x718   : > { %v7544_v47 = vsel %vm7530_vm9, %v7541_v45, %v7543_v2  ;;  %v7533_v20 = vsel %vm7529_vm5, %v7513_v22, %v7516_v18  ;;  %v7535_v26 = vsel %vm7531_vm8, %v7519_v33, %v7534_v4  ;;  %v7383_v53 = vand.u32 3, %v7382_v39 }
 0x719   : > { %v7461_v46 = vclz %v8084_v5  ;;  %v14987_v25 = vmul.u32.u64.low %v7545_v15, %v7544_v47  ;;  %v14988_v50 = vmul.u32.u64.high %v7545_v15, %v7544_v47, %v14987_v25  ;;  %v7536_v54 = vsel %vm7530_vm9, %v7533_v20, %v7535_v26 }
 0x71a   : > { %v7555_v9 = vadd.s32 1, %v14974_v52  ;;  %vm7385_vm13 = vcmp.eq.s32.totalorder %v7383_v53, 0  ;;  %v7449_v57 = vadd.s32 %v14887_v42, %v14897_v13  ;;  %v7552_v49 = vmul.u32 %v7545_v15, %v7536_v54 }
 0x71b   : > { %v8085_v38 = vadd.s32 4294967294, %v7461_v46  ;;  %vm7554_vm2 = vc.u32 %v14988_v50, %v14973_v56  ;;  %vm7388_vm11 = vcmp.eq.s32.totalorder %v7383_v53, 2  ;;  %vm7381_vm12 = vweird.f32 %v14624_v55 }
 0x71c   : > { %v7556_v19 = vsel %vm7554_vm2, %v7555_v9, %v14974_v52  ;;  %vm7384_vm6 = vcmp.lt.s32.totalorder %v7383_v53, 2  ;;  %v7479_v8 = vsub.s32 4, %v14934_v3  ;;  %vm7395_vm10 = vcmp.lt.s32.totalorder %v14760_v51, 0 }
 0x71d   : > { %vm8086_vm15 = vcmp.lt.s32.totalorder %v8085_v38, 0  ;;  %v7557_v58 = vadd.s32 %v7556_v19, %v7552_v49  ;;  %vm7394_vm0 = vcmp.le.f32.partialorder %v7393_v37, 0.7853982  ;;  %v7553_v4 = vadd.s32 %v14973_v56, %v14988_v50 }
 0x71e   : > { %v7464_v63 = vsel %vm8086_vm15, 0, %v8085_v38  ;;  %v7480_v29 = vsel %vm7395_vm10, %v7479_v8, %v14934_v3  ;;  %vm7485_vm7 = vweird.f32 %v14760_v51  ;;  %vm7499_vm8 = vcmp.lt.s32.totalorder %v14807_v31, 0 }
 0x71f   : > { %v8662_v23 = vpop.eup %8661  ;;  %v7465_v59 = vsub.s32 32, %v7464_v63  ;;  %v7469_v36 = vsub.s32 4294967266, %v7464_v63  ;;  %v7466_v40 = vshll.u32 %v7457_v1, %v7464_v63  ;;  %v7558_v33 = vadd.s32 536870912, %v7557_v58 }
 0x720   : > { %v8664_v16 = vpop.eup %8663  ;;  %v7389_v21 = vxor.u32 2147483648, %v8662_v23  ;;  %v7482_v15 = vsel %vm7394_vm0, 0, %v7480_v29  ;;  %vm7498_vm9 = vcmp.le.f32.partialorder %v7497_v11, 0.7853982 }
 0x721   : > { %v7386_v34 = vxor.u32 2147483648, %v8664_v16  ;;  %v7467_v27 = vshrl.u32 %v7449_v57, %v7465_v59  ;;  %v7470_v18 = vadd.s32 127, %v7469_v36  ;;  %v7559_v62 = vshrl.u32 %v7558_v33, 30 }
 0x722   : > { %v7390_v14 = vsel %vm7388_vm11, %v7389_v21, %v8664_v16  ;;  %v7486_v6 = vadd.s32 3, %v7482_v15  ;;  %vm7589_vm11 = vweird.f32 %v14807_v31 }
 0x723   : > { %v7387_v42 = vsel %vm7385_vm13, %v8662_v23, %v7386_v34  ;;  %v7468_v10 = vor.u32 %v7467_v27, %v7466_v40  ;;  %v7471_v12 = vshll.u32 %v7470_v18, 23  ;;  %v7560_v35 = vshll.u32 %v7559_v62, 30 }
 0x724   : > { %v7391_v13 = vsel %vm7384_vm6, %v7387_v42, %v7390_v14  ;;  %v7487_v37 = vand.u32 3, %v7486_v6  ;;  %v7583_v23 = vsub.s32 4, %v7559_v62 }
 0x725   : > { %v7392_v48 = vsel %vm7381_vm12, nan, %v7391_v13  ;;  %v7472_v41 = vor.u32 4788187, %v7471_v12  ;;  %v7475_v60 = vcvt.s32.f32 %v7468_v10  ;;  %v7561_v43 = vsub.s32 %v7557_v58, %v7560_v35 }
 0x726   : > { %7662 = vst.msk [vmem:[%s9134_s13 + $0x1e8] sm:$0xff] %vm266_vm1, %v7392_v48  ;;  %vm7492_vm3 = vcmp.eq.s32.totalorder %v7487_v37, 2  ;;  %vm7489_vm14 = vcmp.eq.s32.totalorder %v7487_v37, 0  ;;  %vm7488_vm5 = vcmp.lt.s32.totalorder %v7487_v37, 2  ;;  %v7584_v16 = vsel %vm7499_vm8, %v7583_v23, %v7559_v62 }
 0x727   : > { %v7473_v28 = vand.u32 2147483647, %v7472_v41  ;;  %v7563_v7 = vsub.s32 0, %v7561_v43  ;;  %v7586_v59 = vsel %vm7498_vm9, 0, %v7584_v16 }
 0x729   : > { %v7476_v32 = vmul.f32 %v7475_v60, %v7473_v28  ;;  %v8088_v44 = vmin.u32 %v7563_v7, %v7561_v43 }
 0x72b   : > { %v7477_v55 = vxor.u32 2147483648, %v7476_v32  ;;  %v7565_v1 = vclz %v8088_v44 }
 0x72d   : > { %v7478_v61 = vsel %vm7395_vm10, %v7477_v55, %v7476_v32  ;;  %v8089_v39 = vadd.s32 4294967294, %v7565_v1 }
 0x72e   : > { %v7481_v0 = vsel %vm7394_vm0, %v14760_v51, %v7478_v61  ;;  %v7590_v51 = vadd.s32 3, %v7586_v59 }
 0x72f   : > { %8665 = vcosq.f32 %v7481_v0  ;;  %vm8090_vm4 = vcmp.lt.s32.totalorder %v8089_v39, 0 }
 0x730   : > { %8667 = vsinq.f32 %v7481_v0  ;;  %v7568_v17 = vsel %vm8090_vm4, 0, %v8089_v39  ;;  %v7591_v36 = vand.u32 3, %v7590_v51 }
 0x731   : > { %v7569_v24 = vsub.s32 32, %v7568_v17  ;;  %v7573_v45 = vsub.s32 4294967266, %v7568_v17  ;;  %v7570_v30 = vshll.u32 %v7561_v43, %v7568_v17 }
 0x732   : > { %vm7596_vm15 = vcmp.eq.s32.totalorder %v7591_v36, 2  ;;  %vm7593_vm13 = vcmp.eq.s32.totalorder %v7591_v36, 0  ;;  %vm7592_vm2 = vcmp.lt.s32.totalorder %v7591_v36, 2 }
 0x733   : > { %v7571_v52 = vshrl.u32 %v7553_v4, %v7569_v24  ;;  %v7574_v3 = vadd.s32 127, %v7573_v45 }
 0x735   : > { %v7572_v22 = vor.u32 %v7571_v52, %v7570_v30  ;;  %v7575_v2 = vshll.u32 %v7574_v3, 23 }
 0x737   : > { %v7576_v26 = vor.u32 4788187, %v7575_v2  ;;  %v7579_v50 = vcvt.s32.f32 %v7572_v22 }
 0x739   : > { %v8666_v5 = vpop.eup %8665  ;;  %v7577_v56 = vand.u32 2147483647, %v7576_v26 }
 0x73a   : > { %v8668_v47 = vpop.eup %8667  ;;  %v7493_v46 = vxor.u32 2147483648, %v8666_v5 }
 0x73b   : > { %v7490_v20 = vxor.u32 2147483648, %v8668_v47  ;;  %v7580_v9 = vmul.f32 %v7579_v50, %v7577_v56 }
 0x73c   : > { %v7494_v53 = vsel %vm7492_vm3, %v7493_v46, %v8668_v47 }
 0x73d   : > { %v7491_v25 = vsel %vm7489_vm14, %v8666_v5, %v7490_v20  ;;  %v7581_v57 = vxor.u32 2147483648, %v7580_v9 }
 0x73e   : > { %v7495_v38 = vsel %vm7488_vm5, %v7491_v25, %v7494_v53 }
 0x73f   : > { %v7496_v54 = vsel %vm7485_vm7, nan, %v7495_v38  ;;  %v7582_v63 = vsel %vm7499_vm8, %v7581_v57, %v7580_v9 }
 0x740   : > { %7663 = vst.msk [vmem:[%s9134_s13 + $0x1f0] sm:$0xff] %vm266_vm1, %v7496_v54  ;;  %v7585_v21 = vsel %vm7498_vm9, %v14807_v31, %v7582_v63 }
 0x741   : > { %8669 = vcosq.f32 %v7585_v21 }
 0x742   : > { %8671 = vsinq.f32 %v7585_v21 }
 0x74b   : > { %v8670_v49 = vpop.eup %8669 }
 0x74c   : > { %v8672_v34 = vpop.eup %8671  ;;  %v7597_v40 = vxor.u32 2147483648, %v8670_v49 }
 0x74d   : > { %v7594_v19 = vxor.u32 2147483648, %v8672_v34 }
 0x74e   : > { %v7598_v14 = vsel %vm7596_vm15, %v7597_v40, %v8672_v34 }
 0x74f   : > { %v7595_v27 = vsel %vm7593_vm13, %v8670_v49, %v7594_v19 }
 0x750   : > { %v7599_v11 = vsel %vm7592_vm2, %v7595_v27, %v7598_v14 }
 0x751   : > { %v7600_v18 = vsel %vm7589_vm11, nan, %v7599_v11 }
 0x752   : > { %7664 = vst.msk [vmem:[%s9134_s13 + $0x1f8] sm:$0xff] %vm266_vm1, %v7600_v18 }
 0x753 PF: > { %s15_s22 = sadd.s32 1, %s8711_s22   ;;  %s15166_s18 = smov %s8703_s20 }
 0x754   : > { %p12_p8 = scmp.ge.s32.totalorder %s15_s22, 6   ;;  %s15167_s19 = smov %s8707_s21 }
 0x755   : > { %s15168_s20 = smov %s15171_s23  ;;  %s15169_s21 = smov %s15175_s24 }
 0x756   :  { %14 = sbr.rel (!%p12_p8) target bundleno = 3 (0x3), region = 70 }

</bundles_post_ra>
